<compile_context>
chip_gen: v7x
topology: tpu7x:2x2x1
jax: 0.10.0
libtpu: 0.0.40
codegen_flags: <defaults>
</compile_context>

<pallas_src>
import functools
import math

import jax
import jax.numpy as jnp
from jax.experimental import pallas as pl
from jax.experimental.pallas import tpu as pltpu

# ----------------------------- model config (small) -----------------------------
VOCAB = 256
HIDDEN = 128
NUM_LAYERS = 2
NUM_HEADS = 8
FFN = HIDDEN * 4
HEAD_DIM = HIDDEN // NUM_HEADS
LN_EPS = 1e-5

BATCH = 2
SEQ = 16


# ----------------------------- in-kernel helpers -----------------------------
def _layer_norm(x, w, b, eps=LN_EPS):
    # x: [N, H] fp32, w/b: [1, H] fp32 (biased variance, matches nn.LayerNorm)
    mu = jnp.mean(x, axis=-1, keepdims=True)
    var = jnp.mean((x - mu) * (x - mu), axis=-1, keepdims=True)
    return (x - mu) * jax.lax.rsqrt(var + eps) * w + b


# ----------------------------- fully fused forward kernel -----------------------------
def fused_forward_kernel(ids_ref, labels_ref, emb_ref,
                         wqkv_ref, bqkv_ref, wo_ref, bo_ref,
                         w1_ref, b1_ref, w2_ref, b2_ref,
                         ln1w_ref, ln1b_ref, ln2w_ref, ln2b_ref,
                         lnw_ref, lnb_ref, wlm_ref, blm_ref,
                         hs_ref, logits_ref, loss_ref,
                         *, num_layers, num_heads, head_dim, batch, seq, vocab):
    n_rows = batch * seq
    hidden = num_heads * head_dim

    def split_heads(t):
        # [N, H] -> [nh*B, S, hd]  (group g = h*B + b); static sublane/lane slices +
        # leading-axis stack only (no lane-splitting reshapes, no broadcast_to).
        tiles = [t[b * seq:(b + 1) * seq, h * head_dim:(h + 1) * head_dim]
                 for h in range(num_heads) for b in range(batch)]
        return jnp.stack(tiles, axis=0)

    def merge_heads(c):
        # [nh*B, S, hd] -> [N, H] : lane-repack tiny [S,hd] tiles back to head-major cols.
        rows = [jnp.concatenate([c[h * batch + b] for h in range(num_heads)], axis=-1)
                for b in range(batch)]
        return jnp.concatenate(rows, axis=0)

    # ---- embedding lookup as a lane-dense one-hot MXU matmul (table VMEM resident) ----
    ids = ids_ref[...]                                                    # [N, 1] int32
    vocab_iota = jax.lax.broadcasted_iota(jnp.int32, (n_rows, vocab), 1)  # [N, V]
    onehot_ids = (vocab_iota == ids).astype(jnp.bfloat16)                 # [N, V]
    x = jnp.dot(onehot_ids, emb_ref[...],
                preferred_element_type=jnp.float32)                       # [N, H] fp32

    # ---- transformer encoder layers (post-norm, ReLU FFN; dropout omitted) ----
    for l in range(num_layers):
        x_bf = x.astype(jnp.bfloat16)

        # packed QKV projection: single full-width MXU push (q-scale folded into Wq cols)
        qkv = jnp.dot(x_bf, wqkv_ref[l],
                      preferred_element_type=jnp.float32) + bqkv_ref[l]   # [N, 3H]
        q = split_heads(qkv[:, :hidden]).astype(jnp.bfloat16)             # [nh*B, S, hd]
        k = split_heads(qkv[:, hidden:2 * hidden]).astype(jnp.bfloat16)
        v = split_heads(qkv[:, 2 * hidden:]).astype(jnp.bfloat16)

        # one batched attention over the combined (head, batch) axis
        s = jnp.einsum('gqd,gkd->gqk', q, k,
                       preferred_element_type=jnp.float32)                # [nh*B, S, S]
        s = s - jnp.max(s, axis=-1, keepdims=True)
        p = jnp.exp(s)
        p = p * pl.reciprocal(jnp.sum(p, axis=-1, keepdims=True), approx=True)
        ctx = jnp.einsum('gqk,gkd->gqd', p.astype(jnp.bfloat16), v,
                         preferred_element_type=jnp.float32)              # [nh*B, S, hd]

        # repack heads to lane-dense [N, H] and apply out_proj with ONE matmul
        attn_ctx = merge_heads(ctx).astype(jnp.bfloat16)                  # [N, H]
        attn = jnp.dot(attn_ctx, wo_ref[l],
                       preferred_element_type=jnp.float32) + bo_ref[l]    # [N, H]

        # residual + norm1 (PyTorch default norm_first=False)
        x = _layer_norm(x + attn, ln1w_ref[l], ln1b_ref[l])

        # feed-forward (ReLU, PyTorch default)
        h1 = jnp.dot(x.astype(jnp.bfloat16), w1_ref[l],
                     preferred_element_type=jnp.float32) + b1_ref[l]      # [N, 4H]
        h1 = jnp.maximum(h1, 0.0)
        h2 = jnp.dot(h1.astype(jnp.bfloat16), w2_ref[l],
                     preferred_element_type=jnp.float32) + b2_ref[l]      # [N, H]

        # residual + norm2
        x = _layer_norm(x + h2, ln2w_ref[l], ln2b_ref[l])

    # ---- final layer norm + lm head ----
    x = _layer_norm(x, lnw_ref[...], lnb_ref[...])
    hs_ref[...] = x.astype(hs_ref.dtype)
    logits = jnp.dot(x.astype(jnp.bfloat16), wlm_ref[...],
                     preferred_element_type=jnp.float32) + blm_ref[...]   # [N, V]
    logits_ref[...] = logits.astype(logits_ref.dtype)

    # ---- cross entropy (mean over all tokens, matches nn.CrossEntropyLoss) ----
    labels = labels_ref[...]                                              # [N, 1] int32
    m = jnp.max(logits, axis=-1, keepdims=True)
    lse = m + jnp.log(jnp.sum(jnp.exp(logits - m), axis=-1, keepdims=True))   # [N, 1]
    onehot_lab = (vocab_iota == labels).astype(jnp.float32)
    picked = jnp.sum(logits * onehot_lab, axis=-1, keepdims=True)             # [N, 1]
    loss_ref[...] = jnp.sum(lse - picked, axis=0, keepdims=True) * (1.0 / n_rows)


# ----------------------------- forward (MockModel.forward equivalent) -----------------------------
def mock_model_forward(params, input_ids, attention_mask=None, labels=None):
    del attention_mask  # accepted but unused, matching the reference module
    B, S = input_ids.shape
    N = B * S
    ids2 = input_ids.reshape(N, 1).astype(jnp.int32)
    lab_src = labels if labels is not None else jnp.zeros_like(input_ids)
    labels2 = lab_src.reshape(N, 1).astype(jnp.int32)

    kernel = functools.partial(fused_forward_kernel,
                               num_layers=NUM_LAYERS, num_heads=NUM_HEADS,
                               head_dim=HEAD_DIM, batch=B, seq=S, vocab=VOCAB)

    vmem = pl.BlockSpec(memory_space=pltpu.MemorySpace.VMEM)
    n_inputs = 19

    hs2, logits2, loss_arr = pl.pallas_call(
        kernel,
        out_shape=(jax.ShapeDtypeStruct((N, HIDDEN), jnp.float32),
                   jax.ShapeDtypeStruct((N, VOCAB), jnp.float32),
                   jax.ShapeDtypeStruct((1, 1), jnp.float32)),
        in_specs=[vmem] * n_inputs,
        out_specs=(vmem, vmem, vmem),
    )(ids2, labels2, params["emb"],
      params["wqkv"], params["bqkv"], params["wo"], params["bo"],
      params["w1"], params["b1"], params["w2"], params["b2"],
      params["ln1w"], params["ln1b"], params["ln2w"], params["ln2b"],
      params["lnw"], params["lnb"], params["wlm"], params["blm"])

    hidden_states = hs2.reshape(B, S, HIDDEN)
    logits = logits2.reshape(B, S, VOCAB)
    loss = loss_arr[0, 0] if labels is not None else None
    return {"logits": logits, "loss": loss,
            "hidden_states": hidden_states, "last_hidden_state": hidden_states}


# ----------------------------- parameter init (deterministic, packed layouts) -----------------------------
def init_params(key):
    def nrm(k, shape, scale=0.02):
        return jax.random.normal(k, shape, jnp.float32) * scale

    keys = jax.random.split(key, 8)
    q_scale = 1.0 / math.sqrt(HEAD_DIM)
    bf = jnp.bfloat16

    # NOTE: the 1/sqrt(head_dim) attention scale is folded into the Q columns of wqkv
    # (and would apply to the Q bias). Re-apply the fold if loading real checkpoints.
    wq = nrm(keys[0], (NUM_LAYERS, HIDDEN, HIDDEN)) * q_scale
    wk = nrm(keys[1], (NUM_LAYERS, HIDDEN, HIDDEN))
    wv = nrm(keys[2], (NUM_LAYERS, HIDDEN, HIDDEN))
    wqkv = jnp.concatenate([wq, wk, wv], axis=-1)       # [L, H, 3H] lane-dense packed

    params = {
        "emb": nrm(keys[6], (VOCAB, HIDDEN)).astype(bf),
        "wqkv": wqkv.astype(bf),
        "bqkv": jnp.zeros((NUM_LAYERS, 1, 3 * HIDDEN), jnp.float32),
        "wo": nrm(keys[3], (NUM_LAYERS, HIDDEN, HIDDEN)).astype(bf),
        "bo": jnp.zeros((NUM_LAYERS, 1, HIDDEN), jnp.float32),
        "w1": nrm(keys[4], (NUM_LAYERS, HIDDEN, FFN)).astype(bf),
        "b1": jnp.zeros((NUM_LAYERS, 1, FFN), jnp.float32),
        "w2": nrm(keys[5], (NUM_LAYERS, FFN, HIDDEN)).astype(bf),
        "b2": jnp.zeros((NUM_LAYERS, 1, HIDDEN), jnp.float32),
        "ln1w": jnp.ones((NUM_LAYERS, 1, HIDDEN), jnp.float32),
        "ln1b": jnp.zeros((NUM_LAYERS, 1, HIDDEN), jnp.float32),
        "ln2w": jnp.ones((NUM_LAYERS, 1, HIDDEN), jnp.float32),
        "ln2b": jnp.zeros((NUM_LAYERS, 1, HIDDEN), jnp.float32),
        "lnw": jnp.ones((1, HIDDEN), jnp.float32),
        "lnb": jnp.zeros((1, HIDDEN), jnp.float32),
        "wlm": nrm(keys[7], (HIDDEN, VOCAB)).astype(bf),
        "blm": jnp.zeros((1, VOCAB), jnp.float32),
    }
    return params


# ----------------------------- main -----------------------------
if __name__ == "__main__":
    key = jax.random.PRNGKey(0)
    k_param, k_ids, k_lab = jax.random.split(key, 3)

    params = init_params(k_param)
    input_ids = jax.random.randint(k_ids, (BATCH, SEQ), 0, VOCAB, dtype=jnp.int32)
    labels = jax.random.randint(k_lab, (BATCH, SEQ), 0, VOCAB, dtype=jnp.int32)

    fwd = jax.jit(mock_model_forward)
    out = fwd(params, input_ids, labels=labels)
    jax.block_until_ready((out["logits"], out["hidden_states"], out["loss"]))

    assert out["logits"].shape == (BATCH, SEQ, VOCAB)
    assert out["hidden_states"].shape == (BATCH, SEQ, HIDDEN)
    assert out["loss"].shape == ()
    assert bool(jnp.isfinite(out["loss"]))

    print("KERNEL_OK")
</pallas_src>

<mosaic_0001>
module attributes {stable_mosaic.version = 11 : i64} {
  func.func @fused_forward_kernel(%arg0: memref<32x1xi32, #tpu.memory_space<vmem>>, %arg1: memref<32x1xi32, #tpu.memory_space<vmem>>, %arg2: memref<256x128xbf16, #tpu.memory_space<vmem>>, %arg3: memref<2x128x384xbf16, #tpu.memory_space<vmem>>, %arg4: memref<2x1x384xf32, #tpu.memory_space<vmem>>, %arg5: memref<2x128x128xbf16, #tpu.memory_space<vmem>>, %arg6: memref<2x1x128xf32, #tpu.memory_space<vmem>>, %arg7: memref<2x128x512xbf16, #tpu.memory_space<vmem>>, %arg8: memref<2x1x512xf32, #tpu.memory_space<vmem>>, %arg9: memref<2x512x128xbf16, #tpu.memory_space<vmem>>, %arg10: memref<2x1x128xf32, #tpu.memory_space<vmem>>, %arg11: memref<2x1x128xf32, #tpu.memory_space<vmem>>, %arg12: memref<2x1x128xf32, #tpu.memory_space<vmem>>, %arg13: memref<2x1x128xf32, #tpu.memory_space<vmem>>, %arg14: memref<2x1x128xf32, #tpu.memory_space<vmem>>, %arg15: memref<1x128xf32, #tpu.memory_space<vmem>>, %arg16: memref<1x128xf32, #tpu.memory_space<vmem>>, %arg17: memref<128x256xbf16, #tpu.memory_space<vmem>>, %arg18: memref<1x256xf32, #tpu.memory_space<vmem>>, %arg19: memref<32x128xf32, #tpu.memory_space<vmem>>, %arg20: memref<32x256xf32, #tpu.memory_space<vmem>>, %arg21: memref<1x1xf32, #tpu.memory_space<vmem>>) attributes {dimension_semantics = [], scalar_prefetch = 0 : i64, scratch_operands = 0 : i64, tpu.core_type = #tpu.core_type<tc>} {
    %c0 = arith.constant 0 : index
    %c0_0 = arith.constant 0 : index
    %0 = vector.load %arg0[%c0, %c0_0] : memref<32x1xi32, #tpu.memory_space<vmem>>, vector<32x1xi32>
    %1 = tpu.iota {dimensions = array<i32: 1>} : vector<32x256xi32>
    %2 = vector.broadcast %0 : vector<32x1xi32> to vector<32x256xi32>
    %3 = arith.cmpi eq, %1, %2 : vector<32x256xi32>
    %4 = arith.extui %3 : vector<32x256xi1> to vector<32x256xi32>
    %5 = arith.sitofp %4 : vector<32x256xi32> to vector<32x256xf32>
    %6 = arith.truncf %5 : vector<32x256xf32> to vector<32x256xbf16>
    %c0_1 = arith.constant 0 : index
    %c0_2 = arith.constant 0 : index
    %7 = vector.load %arg2[%c0_1, %c0_2] : memref<256x128xbf16, #tpu.memory_space<vmem>>, vector<256x128xbf16>
    %cst = arith.constant dense<0.000000e+00> : vector<32x128xf32>
    %8 = tpu.matmul %6, %7, %cst {dimension_numbers = #tpu.dot_dimension_numbers<[1], [0], [0], [1], [0, 0, 1, 1], [], []>} : vector<32x256xbf16>, vector<256x128xbf16>, vector<32x128xf32> -> vector<32x128xf32>
    %9 = arith.truncf %8 : vector<32x128xf32> to vector<32x128xbf16>
    %c0_3 = arith.constant 0 : index
    %c0_4 = arith.constant 0 : index
    %c0_5 = arith.constant 0 : index
    %10 = vector.load %arg3[%c0_3, %c0_4, %c0_5] : memref<2x128x384xbf16, #tpu.memory_space<vmem>>, vector<1x128x384xbf16>
    %11 = vector.shape_cast %10 : vector<1x128x384xbf16> to vector<128x384xbf16>
    %cst_6 = arith.constant dense<0.000000e+00> : vector<32x384xf32>
    %12 = tpu.matmul %9, %11, %cst_6 {dimension_numbers = #tpu.dot_dimension_numbers<[1], [0], [0], [1], [0, 0, 1, 1], [], []>} : vector<32x128xbf16>, vector<128x384xbf16>, vector<32x384xf32> -> vector<32x384xf32>
    %c0_7 = arith.constant 0 : index
    %c0_8 = arith.constant 0 : index
    %c0_9 = arith.constant 0 : index
    %13 = vector.load %arg4[%c0_7, %c0_8, %c0_9] : memref<2x1x384xf32, #tpu.memory_space<vmem>>, vector<1x1x384xf32>
    %14 = vector.shape_cast %13 : vector<1x1x384xf32> to vector<1x384xf32>
    %15 = vector.broadcast %14 : vector<1x384xf32> to vector<32x384xf32>
    %16 = arith.addf %12, %15 : vector<32x384xf32>
    %17 = vector.extract_strided_slice %16 {offsets = [0, 0], sizes = [32, 128], strides = [1, 1]} : vector<32x384xf32> to vector<32x128xf32>
    %18 = vector.extract_strided_slice %17 {offsets = [0, 0], sizes = [16, 16], strides = [1, 1]} : vector<32x128xf32> to vector<16x16xf32>
    %19 = vector.extract_strided_slice %17 {offsets = [16, 0], sizes = [16, 16], strides = [1, 1]} : vector<32x128xf32> to vector<16x16xf32>
    %20 = vector.extract_strided_slice %17 {offsets = [0, 16], sizes = [16, 16], strides = [1, 1]} : vector<32x128xf32> to vector<16x16xf32>
    %21 = vector.extract_strided_slice %17 {offsets = [16, 16], sizes = [16, 16], strides = [1, 1]} : vector<32x128xf32> to vector<16x16xf32>
    %22 = vector.extract_strided_slice %17 {offsets = [0, 32], sizes = [16, 16], strides = [1, 1]} : vector<32x128xf32> to vector<16x16xf32>
    %23 = vector.extract_strided_slice %17 {offsets = [16, 32], sizes = [16, 16], strides = [1, 1]} : vector<32x128xf32> to vector<16x16xf32>
    %24 = vector.extract_strided_slice %17 {offsets = [0, 48], sizes = [16, 16], strides = [1, 1]} : vector<32x128xf32> to vector<16x16xf32>
    %25 = vector.extract_strided_slice %17 {offsets = [16, 48], sizes = [16, 16], strides = [1, 1]} : vector<32x128xf32> to vector<16x16xf32>
    %26 = vector.extract_strided_slice %17 {offsets = [0, 64], sizes = [16, 16], strides = [1, 1]} : vector<32x128xf32> to vector<16x16xf32>
    %27 = vector.extract_strided_slice %17 {offsets = [16, 64], sizes = [16, 16], strides = [1, 1]} : vector<32x128xf32> to vector<16x16xf32>
    %28 = vector.extract_strided_slice %17 {offsets = [0, 80], sizes = [16, 16], strides = [1, 1]} : vector<32x128xf32> to vector<16x16xf32>
    %29 = vector.extract_strided_slice %17 {offsets = [16, 80], sizes = [16, 16], strides = [1, 1]} : vector<32x128xf32> to vector<16x16xf32>
    %30 = vector.extract_strided_slice %17 {offsets = [0, 96], sizes = [16, 16], strides = [1, 1]} : vector<32x128xf32> to vector<16x16xf32>
    %31 = vector.extract_strided_slice %17 {offsets = [16, 96], sizes = [16, 16], strides = [1, 1]} : vector<32x128xf32> to vector<16x16xf32>
    %32 = vector.extract_strided_slice %17 {offsets = [0, 112], sizes = [16, 16], strides = [1, 1]} : vector<32x128xf32> to vector<16x16xf32>
    %33 = vector.extract_strided_slice %17 {offsets = [16, 112], sizes = [16, 16], strides = [1, 1]} : vector<32x128xf32> to vector<16x16xf32>
    %34 = vector.shape_cast %18 : vector<16x16xf32> to vector<1x16x16xf32>
    %35 = vector.shape_cast %19 : vector<16x16xf32> to vector<1x16x16xf32>
    %36 = vector.shape_cast %20 : vector<16x16xf32> to vector<1x16x16xf32>
    %37 = vector.shape_cast %21 : vector<16x16xf32> to vector<1x16x16xf32>
    %38 = vector.shape_cast %22 : vector<16x16xf32> to vector<1x16x16xf32>
    %39 = vector.shape_cast %23 : vector<16x16xf32> to vector<1x16x16xf32>
    %40 = vector.shape_cast %24 : vector<16x16xf32> to vector<1x16x16xf32>
    %41 = vector.shape_cast %25 : vector<16x16xf32> to vector<1x16x16xf32>
    %42 = vector.shape_cast %26 : vector<16x16xf32> to vector<1x16x16xf32>
    %43 = vector.shape_cast %27 : vector<16x16xf32> to vector<1x16x16xf32>
    %44 = vector.shape_cast %28 : vector<16x16xf32> to vector<1x16x16xf32>
    %45 = vector.shape_cast %29 : vector<16x16xf32> to vector<1x16x16xf32>
    %46 = vector.shape_cast %30 : vector<16x16xf32> to vector<1x16x16xf32>
    %47 = vector.shape_cast %31 : vector<16x16xf32> to vector<1x16x16xf32>
    %48 = vector.shape_cast %32 : vector<16x16xf32> to vector<1x16x16xf32>
    %49 = vector.shape_cast %33 : vector<16x16xf32> to vector<1x16x16xf32>
    %50 = tpu.concatenate %34, %35, %36, %37, %38, %39, %40, %41, %42, %43, %44, %45, %46, %47, %48, %49 in 0 : vector<1x16x16xf32>, vector<1x16x16xf32>, vector<1x16x16xf32>, vector<1x16x16xf32>, vector<1x16x16xf32>, vector<1x16x16xf32>, vector<1x16x16xf32>, vector<1x16x16xf32>, vector<1x16x16xf32>, vector<1x16x16xf32>, vector<1x16x16xf32>, vector<1x16x16xf32>, vector<1x16x16xf32>, vector<1x16x16xf32>, vector<1x16x16xf32>, vector<1x16x16xf32> -> vector<16x16x16xf32>
    %51 = arith.truncf %50 : vector<16x16x16xf32> to vector<16x16x16xbf16>
    %52 = vector.extract_strided_slice %16 {offsets = [0, 128], sizes = [32, 128], strides = [1, 1]} : vector<32x384xf32> to vector<32x128xf32>
    %53 = vector.extract_strided_slice %52 {offsets = [0, 0], sizes = [16, 16], strides = [1, 1]} : vector<32x128xf32> to vector<16x16xf32>
    %54 = vector.extract_strided_slice %52 {offsets = [16, 0], sizes = [16, 16], strides = [1, 1]} : vector<32x128xf32> to vector<16x16xf32>
    %55 = vector.extract_strided_slice %52 {offsets = [0, 16], sizes = [16, 16], strides = [1, 1]} : vector<32x128xf32> to vector<16x16xf32>
    %56 = vector.extract_strided_slice %52 {offsets = [16, 16], sizes = [16, 16], strides = [1, 1]} : vector<32x128xf32> to vector<16x16xf32>
    %57 = vector.extract_strided_slice %52 {offsets = [0, 32], sizes = [16, 16], strides = [1, 1]} : vector<32x128xf32> to vector<16x16xf32>
    %58 = vector.extract_strided_slice %52 {offsets = [16, 32], sizes = [16, 16], strides = [1, 1]} : vector<32x128xf32> to vector<16x16xf32>
    %59 = vector.extract_strided_slice %52 {offsets = [0, 48], sizes = [16, 16], strides = [1, 1]} : vector<32x128xf32> to vector<16x16xf32>
    %60 = vector.extract_strided_slice %52 {offsets = [16, 48], sizes = [16, 16], strides = [1, 1]} : vector<32x128xf32> to vector<16x16xf32>
    %61 = vector.extract_strided_slice %52 {offsets = [0, 64], sizes = [16, 16], strides = [1, 1]} : vector<32x128xf32> to vector<16x16xf32>
    %62 = vector.extract_strided_slice %52 {offsets = [16, 64], sizes = [16, 16], strides = [1, 1]} : vector<32x128xf32> to vector<16x16xf32>
    %63 = vector.extract_strided_slice %52 {offsets = [0, 80], sizes = [16, 16], strides = [1, 1]} : vector<32x128xf32> to vector<16x16xf32>
    %64 = vector.extract_strided_slice %52 {offsets = [16, 80], sizes = [16, 16], strides = [1, 1]} : vector<32x128xf32> to vector<16x16xf32>
    %65 = vector.extract_strided_slice %52 {offsets = [0, 96], sizes = [16, 16], strides = [1, 1]} : vector<32x128xf32> to vector<16x16xf32>
    %66 = vector.extract_strided_slice %52 {offsets = [16, 96], sizes = [16, 16], strides = [1, 1]} : vector<32x128xf32> to vector<16x16xf32>
    %67 = vector.extract_strided_slice %52 {offsets = [0, 112], sizes = [16, 16], strides = [1, 1]} : vector<32x128xf32> to vector<16x16xf32>
    %68 = vector.extract_strided_slice %52 {offsets = [16, 112], sizes = [16, 16], strides = [1, 1]} : vector<32x128xf32> to vector<16x16xf32>
    %69 = vector.shape_cast %53 : vector<16x16xf32> to vector<1x16x16xf32>
    %70 = vector.shape_cast %54 : vector<16x16xf32> to vector<1x16x16xf32>
    %71 = vector.shape_cast %55 : vector<16x16xf32> to vector<1x16x16xf32>
    %72 = vector.shape_cast %56 : vector<16x16xf32> to vector<1x16x16xf32>
    %73 = vector.shape_cast %57 : vector<16x16xf32> to vector<1x16x16xf32>
    %74 = vector.shape_cast %58 : vector<16x16xf32> to vector<1x16x16xf32>
    %75 = vector.shape_cast %59 : vector<16x16xf32> to vector<1x16x16xf32>
    %76 = vector.shape_cast %60 : vector<16x16xf32> to vector<1x16x16xf32>
    %77 = vector.shape_cast %61 : vector<16x16xf32> to vector<1x16x16xf32>
    %78 = vector.shape_cast %62 : vector<16x16xf32> to vector<1x16x16xf32>
    %79 = vector.shape_cast %63 : vector<16x16xf32> to vector<1x16x16xf32>
    %80 = vector.shape_cast %64 : vector<16x16xf32> to vector<1x16x16xf32>
    %81 = vector.shape_cast %65 : vector<16x16xf32> to vector<1x16x16xf32>
    %82 = vector.shape_cast %66 : vector<16x16xf32> to vector<1x16x16xf32>
    %83 = vector.shape_cast %67 : vector<16x16xf32> to vector<1x16x16xf32>
    %84 = vector.shape_cast %68 : vector<16x16xf32> to vector<1x16x16xf32>
    %85 = tpu.concatenate %69, %70, %71, %72, %73, %74, %75, %76, %77, %78, %79, %80, %81, %82, %83, %84 in 0 : vector<1x16x16xf32>, vector<1x16x16xf32>, vector<1x16x16xf32>, vector<1x16x16xf32>, vector<1x16x16xf32>, vector<1x16x16xf32>, vector<1x16x16xf32>, vector<1x16x16xf32>, vector<1x16x16xf32>, vector<1x16x16xf32>, vector<1x16x16xf32>, vector<1x16x16xf32>, vector<1x16x16xf32>, vector<1x16x16xf32>, vector<1x16x16xf32>, vector<1x16x16xf32> -> vector<16x16x16xf32>
    %86 = arith.truncf %85 : vector<16x16x16xf32> to vector<16x16x16xbf16>
    %87 = vector.extract_strided_slice %16 {offsets = [0, 256], sizes = [32, 128], strides = [1, 1]} : vector<32x384xf32> to vector<32x128xf32>
    %88 = vector.extract_strided_slice %87 {offsets = [0, 0], sizes = [16, 16], strides = [1, 1]} : vector<32x128xf32> to vector<16x16xf32>
    %89 = vector.extract_strided_slice %87 {offsets = [16, 0], sizes = [16, 16], strides = [1, 1]} : vector<32x128xf32> to vector<16x16xf32>
    %90 = vector.extract_strided_slice %87 {offsets = [0, 16], sizes = [16, 16], strides = [1, 1]} : vector<32x128xf32> to vector<16x16xf32>
    %91 = vector.extract_strided_slice %87 {offsets = [16, 16], sizes = [16, 16], strides = [1, 1]} : vector<32x128xf32> to vector<16x16xf32>
    %92 = vector.extract_strided_slice %87 {offsets = [0, 32], sizes = [16, 16], strides = [1, 1]} : vector<32x128xf32> to vector<16x16xf32>
    %93 = vector.extract_strided_slice %87 {offsets = [16, 32], sizes = [16, 16], strides = [1, 1]} : vector<32x128xf32> to vector<16x16xf32>
    %94 = vector.extract_strided_slice %87 {offsets = [0, 48], sizes = [16, 16], strides = [1, 1]} : vector<32x128xf32> to vector<16x16xf32>
    %95 = vector.extract_strided_slice %87 {offsets = [16, 48], sizes = [16, 16], strides = [1, 1]} : vector<32x128xf32> to vector<16x16xf32>
    %96 = vector.extract_strided_slice %87 {offsets = [0, 64], sizes = [16, 16], strides = [1, 1]} : vector<32x128xf32> to vector<16x16xf32>
    %97 = vector.extract_strided_slice %87 {offsets = [16, 64], sizes = [16, 16], strides = [1, 1]} : vector<32x128xf32> to vector<16x16xf32>
    %98 = vector.extract_strided_slice %87 {offsets = [0, 80], sizes = [16, 16], strides = [1, 1]} : vector<32x128xf32> to vector<16x16xf32>
    %99 = vector.extract_strided_slice %87 {offsets = [16, 80], sizes = [16, 16], strides = [1, 1]} : vector<32x128xf32> to vector<16x16xf32>
    %100 = vector.extract_strided_slice %87 {offsets = [0, 96], sizes = [16, 16], strides = [1, 1]} : vector<32x128xf32> to vector<16x16xf32>
    %101 = vector.extract_strided_slice %87 {offsets = [16, 96], sizes = [16, 16], strides = [1, 1]} : vector<32x128xf32> to vector<16x16xf32>
    %102 = vector.extract_strided_slice %87 {offsets = [0, 112], sizes = [16, 16], strides = [1, 1]} : vector<32x128xf32> to vector<16x16xf32>
    %103 = vector.extract_strided_slice %87 {offsets = [16, 112], sizes = [16, 16], strides = [1, 1]} : vector<32x128xf32> to vector<16x16xf32>
    %104 = vector.shape_cast %88 : vector<16x16xf32> to vector<1x16x16xf32>
    %105 = vector.shape_cast %89 : vector<16x16xf32> to vector<1x16x16xf32>
    %106 = vector.shape_cast %90 : vector<16x16xf32> to vector<1x16x16xf32>
    %107 = vector.shape_cast %91 : vector<16x16xf32> to vector<1x16x16xf32>
    %108 = vector.shape_cast %92 : vector<16x16xf32> to vector<1x16x16xf32>
    %109 = vector.shape_cast %93 : vector<16x16xf32> to vector<1x16x16xf32>
    %110 = vector.shape_cast %94 : vector<16x16xf32> to vector<1x16x16xf32>
    %111 = vector.shape_cast %95 : vector<16x16xf32> to vector<1x16x16xf32>
    %112 = vector.shape_cast %96 : vector<16x16xf32> to vector<1x16x16xf32>
    %113 = vector.shape_cast %97 : vector<16x16xf32> to vector<1x16x16xf32>
    %114 = vector.shape_cast %98 : vector<16x16xf32> to vector<1x16x16xf32>
    %115 = vector.shape_cast %99 : vector<16x16xf32> to vector<1x16x16xf32>
    %116 = vector.shape_cast %100 : vector<16x16xf32> to vector<1x16x16xf32>
    %117 = vector.shape_cast %101 : vector<16x16xf32> to vector<1x16x16xf32>
    %118 = vector.shape_cast %102 : vector<16x16xf32> to vector<1x16x16xf32>
    %119 = vector.shape_cast %103 : vector<16x16xf32> to vector<1x16x16xf32>
    %120 = tpu.concatenate %104, %105, %106, %107, %108, %109, %110, %111, %112, %113, %114, %115, %116, %117, %118, %119 in 0 : vector<1x16x16xf32>, vector<1x16x16xf32>, vector<1x16x16xf32>, vector<1x16x16xf32>, vector<1x16x16xf32>, vector<1x16x16xf32>, vector<1x16x16xf32>, vector<1x16x16xf32>, vector<1x16x16xf32>, vector<1x16x16xf32>, vector<1x16x16xf32>, vector<1x16x16xf32>, vector<1x16x16xf32>, vector<1x16x16xf32>, vector<1x16x16xf32>, vector<1x16x16xf32> -> vector<16x16x16xf32>
    %121 = arith.truncf %120 : vector<16x16x16xf32> to vector<16x16x16xbf16>
    "tpu.trace_start"() <{level = 10 : i32, message = "gqd,gkd->gqk"}> : () -> ()
    %cst_10 = arith.constant dense<0.000000e+00> : vector<16x16x16xf32>
    %122 = tpu.matmul %51, %86, %cst_10 {dimension_numbers = #tpu.dot_dimension_numbers<[2], [2], [1], [1], [0, 0, 0, 1, 1, 1], [0], [0]>} : vector<16x16x16xbf16>, vector<16x16x16xbf16>, vector<16x16x16xf32> -> vector<16x16x16xf32>
    "tpu.trace_stop"() : () -> ()
    %cst_11 = arith.constant dense<0xFF800000> : vector<16x16xf32>
    %123 = vector.multi_reduction <maximumf>, %122, %cst_11 [2] : vector<16x16x16xf32> to vector<16x16xf32>
    %124 = vector.shape_cast %123 : vector<16x16xf32> to vector<16x16x1xf32>
    %125 = vector.broadcast %124 : vector<16x16x1xf32> to vector<16x16x16xf32>
    %126 = arith.subf %122, %125 : vector<16x16x16xf32>
    %127 = math.exp %126 : vector<16x16x16xf32>
    %cst_12 = arith.constant dense<0.000000e+00> : vector<16x16xf32>
    %128 = vector.multi_reduction <add>, %127, %cst_12 [2] : vector<16x16x16xf32> to vector<16x16xf32>
    %129 = vector.shape_cast %128 : vector<16x16xf32> to vector<16x16x1xf32>
    %130 = tpu.reciprocal %129 {approx = true} : vector<16x16x1xf32> -> vector<16x16x1xf32>
    %131 = vector.broadcast %130 : vector<16x16x1xf32> to vector<16x16x16xf32>
    %132 = arith.mulf %127, %131 : vector<16x16x16xf32>
    %133 = arith.truncf %132 : vector<16x16x16xf32> to vector<16x16x16xbf16>
    "tpu.trace_start"() <{level = 10 : i32, message = "gqk,gkd->gqd"}> : () -> ()
    %cst_13 = arith.constant dense<0.000000e+00> : vector<16x16x16xf32>
    %134 = tpu.matmul %133, %121, %cst_13 {dimension_numbers = #tpu.dot_dimension_numbers<[2], [1], [1], [2], [0, 0, 0, 1, 1, 2], [0], [0]>} : vector<16x16x16xbf16>, vector<16x16x16xbf16>, vector<16x16x16xf32> -> vector<16x16x16xf32>
    "tpu.trace_stop"() : () -> ()
    %135 = vector.extract_strided_slice %134 {offsets = [0, 0, 0], sizes = [1, 16, 16], strides = [1, 1, 1]} : vector<16x16x16xf32> to vector<1x16x16xf32>
    %136 = vector.shape_cast %135 : vector<1x16x16xf32> to vector<16x16xf32>
    %137 = vector.extract_strided_slice %134 {offsets = [2, 0, 0], sizes = [1, 16, 16], strides = [1, 1, 1]} : vector<16x16x16xf32> to vector<1x16x16xf32>
    %138 = vector.shape_cast %137 : vector<1x16x16xf32> to vector<16x16xf32>
    %139 = vector.extract_strided_slice %134 {offsets = [4, 0, 0], sizes = [1, 16, 16], strides = [1, 1, 1]} : vector<16x16x16xf32> to vector<1x16x16xf32>
    %140 = vector.shape_cast %139 : vector<1x16x16xf32> to vector<16x16xf32>
    %141 = vector.extract_strided_slice %134 {offsets = [6, 0, 0], sizes = [1, 16, 16], strides = [1, 1, 1]} : vector<16x16x16xf32> to vector<1x16x16xf32>
    %142 = vector.shape_cast %141 : vector<1x16x16xf32> to vector<16x16xf32>
    %143 = vector.extract_strided_slice %134 {offsets = [8, 0, 0], sizes = [1, 16, 16], strides = [1, 1, 1]} : vector<16x16x16xf32> to vector<1x16x16xf32>
    %144 = vector.shape_cast %143 : vector<1x16x16xf32> to vector<16x16xf32>
    %145 = vector.extract_strided_slice %134 {offsets = [10, 0, 0], sizes = [1, 16, 16], strides = [1, 1, 1]} : vector<16x16x16xf32> to vector<1x16x16xf32>
    %146 = vector.shape_cast %145 : vector<1x16x16xf32> to vector<16x16xf32>
    %147 = vector.extract_strided_slice %134 {offsets = [12, 0, 0], sizes = [1, 16, 16], strides = [1, 1, 1]} : vector<16x16x16xf32> to vector<1x16x16xf32>
    %148 = vector.shape_cast %147 : vector<1x16x16xf32> to vector<16x16xf32>
    %149 = vector.extract_strided_slice %134 {offsets = [14, 0, 0], sizes = [1, 16, 16], strides = [1, 1, 1]} : vector<16x16x16xf32> to vector<1x16x16xf32>
    %150 = vector.shape_cast %149 : vector<1x16x16xf32> to vector<16x16xf32>
    %151 = tpu.concatenate %136, %138, %140, %142, %144, %146, %148, %150 in 1 : vector<16x16xf32>, vector<16x16xf32>, vector<16x16xf32>, vector<16x16xf32>, vector<16x16xf32>, vector<16x16xf32>, vector<16x16xf32>, vector<16x16xf32> -> vector<16x128xf32>
    %152 = vector.extract_strided_slice %134 {offsets = [1, 0, 0], sizes = [1, 16, 16], strides = [1, 1, 1]} : vector<16x16x16xf32> to vector<1x16x16xf32>
    %153 = vector.shape_cast %152 : vector<1x16x16xf32> to vector<16x16xf32>
    %154 = vector.extract_strided_slice %134 {offsets = [3, 0, 0], sizes = [1, 16, 16], strides = [1, 1, 1]} : vector<16x16x16xf32> to vector<1x16x16xf32>
    %155 = vector.shape_cast %154 : vector<1x16x16xf32> to vector<16x16xf32>
    %156 = vector.extract_strided_slice %134 {offsets = [5, 0, 0], sizes = [1, 16, 16], strides = [1, 1, 1]} : vector<16x16x16xf32> to vector<1x16x16xf32>
    %157 = vector.shape_cast %156 : vector<1x16x16xf32> to vector<16x16xf32>
    %158 = vector.extract_strided_slice %134 {offsets = [7, 0, 0], sizes = [1, 16, 16], strides = [1, 1, 1]} : vector<16x16x16xf32> to vector<1x16x16xf32>
    %159 = vector.shape_cast %158 : vector<1x16x16xf32> to vector<16x16xf32>
    %160 = vector.extract_strided_slice %134 {offsets = [9, 0, 0], sizes = [1, 16, 16], strides = [1, 1, 1]} : vector<16x16x16xf32> to vector<1x16x16xf32>
    %161 = vector.shape_cast %160 : vector<1x16x16xf32> to vector<16x16xf32>
    %162 = vector.extract_strided_slice %134 {offsets = [11, 0, 0], sizes = [1, 16, 16], strides = [1, 1, 1]} : vector<16x16x16xf32> to vector<1x16x16xf32>
    %163 = vector.shape_cast %162 : vector<1x16x16xf32> to vector<16x16xf32>
    %164 = vector.extract_strided_slice %134 {offsets = [13, 0, 0], sizes = [1, 16, 16], strides = [1, 1, 1]} : vector<16x16x16xf32> to vector<1x16x16xf32>
    %165 = vector.shape_cast %164 : vector<1x16x16xf32> to vector<16x16xf32>
    %166 = vector.extract_strided_slice %134 {offsets = [15, 0, 0], sizes = [1, 16, 16], strides = [1, 1, 1]} : vector<16x16x16xf32> to vector<1x16x16xf32>
    %167 = vector.shape_cast %166 : vector<1x16x16xf32> to vector<16x16xf32>
    %168 = tpu.concatenate %153, %155, %157, %159, %161, %163, %165, %167 in 1 : vector<16x16xf32>, vector<16x16xf32>, vector<16x16xf32>, vector<16x16xf32>, vector<16x16xf32>, vector<16x16xf32>, vector<16x16xf32>, vector<16x16xf32> -> vector<16x128xf32>
    %169 = tpu.concatenate %151, %168 in 0 : vector<16x128xf32>, vector<16x128xf32> -> vector<32x128xf32>
    %170 = arith.truncf %169 : vector<32x128xf32> to vector<32x128xbf16>
    %c0_14 = arith.constant 0 : index
    %c0_15 = arith.constant 0 : index
    %c0_16 = arith.constant 0 : index
    %171 = vector.load %arg5[%c0_14, %c0_15, %c0_16] : memref<2x128x128xbf16, #tpu.memory_space<vmem>>, vector<1x128x128xbf16>
    %172 = vector.shape_cast %171 : vector<1x128x128xbf16> to vector<128x128xbf16>
    %cst_17 = arith.constant dense<0.000000e+00> : vector<32x128xf32>
    %173 = tpu.matmul %170, %172, %cst_17 {dimension_numbers = #tpu.dot_dimension_numbers<[1], [0], [0], [1], [0, 0, 1, 1], [], []>} : vector<32x128xbf16>, vector<128x128xbf16>, vector<32x128xf32> -> vector<32x128xf32>
    %c0_18 = arith.constant 0 : index
    %c0_19 = arith.constant 0 : index
    %c0_20 = arith.constant 0 : index
    %174 = vector.load %arg6[%c0_18, %c0_19, %c0_20] : memref<2x1x128xf32, #tpu.memory_space<vmem>>, vector<1x1x128xf32>
    %175 = vector.shape_cast %174 : vector<1x1x128xf32> to vector<1x128xf32>
    %176 = vector.broadcast %175 : vector<1x128xf32> to vector<32x128xf32>
    %177 = arith.addf %173, %176 : vector<32x128xf32>
    %178 = arith.addf %8, %177 : vector<32x128xf32>
    %c0_21 = arith.constant 0 : index
    %c0_22 = arith.constant 0 : index
    %c0_23 = arith.constant 0 : index
    %179 = vector.load %arg11[%c0_21, %c0_22, %c0_23] : memref<2x1x128xf32, #tpu.memory_space<vmem>>, vector<1x1x128xf32>
    %180 = vector.shape_cast %179 : vector<1x1x128xf32> to vector<1x128xf32>
    %c0_24 = arith.constant 0 : index
    %c0_25 = arith.constant 0 : index
    %c0_26 = arith.constant 0 : index
    %181 = vector.load %arg12[%c0_24, %c0_25, %c0_26] : memref<2x1x128xf32, #tpu.memory_space<vmem>>, vector<1x1x128xf32>
    %182 = vector.shape_cast %181 : vector<1x1x128xf32> to vector<1x128xf32>
    %cst_27 = arith.constant dense<0.000000e+00> : vector<32xf32>
    %183 = vector.multi_reduction <add>, %178, %cst_27 [1] : vector<32x128xf32> to vector<32xf32>
    %184 = vector.shape_cast %183 : vector<32xf32> to vector<32x1xf32>
    %cst_28 = arith.constant 1.280000e+02 : f32
    %185 = vector.broadcast %cst_28 : f32 to vector<32x1xf32>
    %186 = arith.divf %184, %185 : vector<32x1xf32>
    %187 = vector.broadcast %186 : vector<32x1xf32> to vector<32x128xf32>
    %188 = arith.subf %178, %187 : vector<32x128xf32>
    %189 = vector.broadcast %186 : vector<32x1xf32> to vector<32x128xf32>
    %190 = arith.subf %178, %189 : vector<32x128xf32>
    %191 = arith.mulf %188, %190 : vector<32x128xf32>
    %cst_29 = arith.constant dense<0.000000e+00> : vector<32xf32>
    %192 = vector.multi_reduction <add>, %191, %cst_29 [1] : vector<32x128xf32> to vector<32xf32>
    %193 = vector.shape_cast %192 : vector<32xf32> to vector<32x1xf32>
    %cst_30 = arith.constant 1.280000e+02 : f32
    %194 = vector.broadcast %cst_30 : f32 to vector<32x1xf32>
    %195 = arith.divf %193, %194 : vector<32x1xf32>
    %196 = vector.broadcast %186 : vector<32x1xf32> to vector<32x128xf32>
    %197 = arith.subf %178, %196 : vector<32x128xf32>
    %cst_31 = arith.constant 9.99999974E-6 : f32
    %198 = vector.broadcast %cst_31 : f32 to vector<32x1xf32>
    %199 = arith.addf %195, %198 : vector<32x1xf32>
    %200 = math.rsqrt %199 : vector<32x1xf32>
    %201 = vector.broadcast %200 : vector<32x1xf32> to vector<32x128xf32>
    %202 = arith.mulf %197, %201 : vector<32x128xf32>
    %203 = vector.broadcast %180 : vector<1x128xf32> to vector<32x128xf32>
    %204 = arith.mulf %202, %203 : vector<32x128xf32>
    %205 = vector.broadcast %182 : vector<1x128xf32> to vector<32x128xf32>
    %206 = arith.addf %204, %205 : vector<32x128xf32>
    %207 = arith.truncf %206 : vector<32x128xf32> to vector<32x128xbf16>
    %c0_32 = arith.constant 0 : index
    %c0_33 = arith.constant 0 : index
    %c0_34 = arith.constant 0 : index
    %208 = vector.load %arg7[%c0_32, %c0_33, %c0_34] : memref<2x128x512xbf16, #tpu.memory_space<vmem>>, vector<1x128x512xbf16>
    %209 = vector.shape_cast %208 : vector<1x128x512xbf16> to vector<128x512xbf16>
    %cst_35 = arith.constant dense<0.000000e+00> : vector<32x512xf32>
    %210 = tpu.matmul %207, %209, %cst_35 {dimension_numbers = #tpu.dot_dimension_numbers<[1], [0], [0], [1], [0, 0, 1, 1], [], []>} : vector<32x128xbf16>, vector<128x512xbf16>, vector<32x512xf32> -> vector<32x512xf32>
    %c0_36 = arith.constant 0 : index
    %c0_37 = arith.constant 0 : index
    %c0_38 = arith.constant 0 : index
    %211 = vector.load %arg8[%c0_36, %c0_37, %c0_38] : memref<2x1x512xf32, #tpu.memory_space<vmem>>, vector<1x1x512xf32>
    %212 = vector.shape_cast %211 : vector<1x1x512xf32> to vector<1x512xf32>
    %213 = vector.broadcast %212 : vector<1x512xf32> to vector<32x512xf32>
    %214 = arith.addf %210, %213 : vector<32x512xf32>
    %cst_39 = arith.constant 0.000000e+00 : f32
    %215 = vector.broadcast %cst_39 : f32 to vector<32x512xf32>
    %216 = arith.maximumf %214, %215 : vector<32x512xf32>
    %217 = arith.truncf %216 : vector<32x512xf32> to vector<32x512xbf16>
    %c0_40 = arith.constant 0 : index
    %c0_41 = arith.constant 0 : index
    %c0_42 = arith.constant 0 : index
    %218 = vector.load %arg9[%c0_40, %c0_41, %c0_42] : memref<2x512x128xbf16, #tpu.memory_space<vmem>>, vector<1x512x128xbf16>
    %219 = vector.shape_cast %218 : vector<1x512x128xbf16> to vector<512x128xbf16>
    %cst_43 = arith.constant dense<0.000000e+00> : vector<32x128xf32>
    %220 = tpu.matmul %217, %219, %cst_43 {dimension_numbers = #tpu.dot_dimension_numbers<[1], [0], [0], [1], [0, 0, 1, 1], [], []>} : vector<32x512xbf16>, vector<512x128xbf16>, vector<32x128xf32> -> vector<32x128xf32>
    %c0_44 = arith.constant 0 : index
    %c0_45 = arith.constant 0 : index
    %c0_46 = arith.constant 0 : index
    %221 = vector.load %arg10[%c0_44, %c0_45, %c0_46] : memref<2x1x128xf32, #tpu.memory_space<vmem>>, vector<1x1x128xf32>
    %222 = vector.shape_cast %221 : vector<1x1x128xf32> to vector<1x128xf32>
    %223 = vector.broadcast %222 : vector<1x128xf32> to vector<32x128xf32>
    %224 = arith.addf %220, %223 : vector<32x128xf32>
    %225 = arith.addf %206, %224 : vector<32x128xf32>
    %c0_47 = arith.constant 0 : index
    %c0_48 = arith.constant 0 : index
    %c0_49 = arith.constant 0 : index
    %226 = vector.load %arg13[%c0_47, %c0_48, %c0_49] : memref<2x1x128xf32, #tpu.memory_space<vmem>>, vector<1x1x128xf32>
    %227 = vector.shape_cast %226 : vector<1x1x128xf32> to vector<1x128xf32>
    %c0_50 = arith.constant 0 : index
    %c0_51 = arith.constant 0 : index
    %c0_52 = arith.constant 0 : index
    %228 = vector.load %arg14[%c0_50, %c0_51, %c0_52] : memref<2x1x128xf32, #tpu.memory_space<vmem>>, vector<1x1x128xf32>
    %229 = vector.shape_cast %228 : vector<1x1x128xf32> to vector<1x128xf32>
    %cst_53 = arith.constant dense<0.000000e+00> : vector<32xf32>
    %230 = vector.multi_reduction <add>, %225, %cst_53 [1] : vector<32x128xf32> to vector<32xf32>
    %231 = vector.shape_cast %230 : vector<32xf32> to vector<32x1xf32>
    %cst_54 = arith.constant 1.280000e+02 : f32
    %232 = vector.broadcast %cst_54 : f32 to vector<32x1xf32>
    %233 = arith.divf %231, %232 : vector<32x1xf32>
    %234 = vector.broadcast %233 : vector<32x1xf32> to vector<32x128xf32>
    %235 = arith.subf %225, %234 : vector<32x128xf32>
    %236 = vector.broadcast %233 : vector<32x1xf32> to vector<32x128xf32>
    %237 = arith.subf %225, %236 : vector<32x128xf32>
    %238 = arith.mulf %235, %237 : vector<32x128xf32>
    %cst_55 = arith.constant dense<0.000000e+00> : vector<32xf32>
    %239 = vector.multi_reduction <add>, %238, %cst_55 [1] : vector<32x128xf32> to vector<32xf32>
    %240 = vector.shape_cast %239 : vector<32xf32> to vector<32x1xf32>
    %cst_56 = arith.constant 1.280000e+02 : f32
    %241 = vector.broadcast %cst_56 : f32 to vector<32x1xf32>
    %242 = arith.divf %240, %241 : vector<32x1xf32>
    %243 = vector.broadcast %233 : vector<32x1xf32> to vector<32x128xf32>
    %244 = arith.subf %225, %243 : vector<32x128xf32>
    %cst_57 = arith.constant 9.99999974E-6 : f32
    %245 = vector.broadcast %cst_57 : f32 to vector<32x1xf32>
    %246 = arith.addf %242, %245 : vector<32x1xf32>
    %247 = math.rsqrt %246 : vector<32x1xf32>
    %248 = vector.broadcast %247 : vector<32x1xf32> to vector<32x128xf32>
    %249 = arith.mulf %244, %248 : vector<32x128xf32>
    %250 = vector.broadcast %227 : vector<1x128xf32> to vector<32x128xf32>
    %251 = arith.mulf %249, %250 : vector<32x128xf32>
    %252 = vector.broadcast %229 : vector<1x128xf32> to vector<32x128xf32>
    %253 = arith.addf %251, %252 : vector<32x128xf32>
    %254 = arith.truncf %253 : vector<32x128xf32> to vector<32x128xbf16>
    %c1 = arith.constant 1 : index
    %c0_58 = arith.constant 0 : index
    %c0_59 = arith.constant 0 : index
    %255 = vector.load %arg3[%c1, %c0_58, %c0_59] : memref<2x128x384xbf16, #tpu.memory_space<vmem>>, vector<1x128x384xbf16>
    %256 = vector.shape_cast %255 : vector<1x128x384xbf16> to vector<128x384xbf16>
    %cst_60 = arith.constant dense<0.000000e+00> : vector<32x384xf32>
    %257 = tpu.matmul %254, %256, %cst_60 {dimension_numbers = #tpu.dot_dimension_numbers<[1], [0], [0], [1], [0, 0, 1, 1], [], []>} : vector<32x128xbf16>, vector<128x384xbf16>, vector<32x384xf32> -> vector<32x384xf32>
    %c1_61 = arith.constant 1 : index
    %c0_62 = arith.constant 0 : index
    %c0_63 = arith.constant 0 : index
    %258 = vector.load %arg4[%c1_61, %c0_62, %c0_63] : memref<2x1x384xf32, #tpu.memory_space<vmem>>, vector<1x1x384xf32>
    %259 = vector.shape_cast %258 : vector<1x1x384xf32> to vector<1x384xf32>
    %260 = vector.broadcast %259 : vector<1x384xf32> to vector<32x384xf32>
    %261 = arith.addf %257, %260 : vector<32x384xf32>
    %262 = vector.extract_strided_slice %261 {offsets = [0, 0], sizes = [32, 128], strides = [1, 1]} : vector<32x384xf32> to vector<32x128xf32>
    %263 = vector.extract_strided_slice %262 {offsets = [0, 0], sizes = [16, 16], strides = [1, 1]} : vector<32x128xf32> to vector<16x16xf32>
    %264 = vector.extract_strided_slice %262 {offsets = [16, 0], sizes = [16, 16], strides = [1, 1]} : vector<32x128xf32> to vector<16x16xf32>
    %265 = vector.extract_strided_slice %262 {offsets = [0, 16], sizes = [16, 16], strides = [1, 1]} : vector<32x128xf32> to vector<16x16xf32>
    %266 = vector.extract_strided_slice %262 {offsets = [16, 16], sizes = [16, 16], strides = [1, 1]} : vector<32x128xf32> to vector<16x16xf32>
    %267 = vector.extract_strided_slice %262 {offsets = [0, 32], sizes = [16, 16], strides = [1, 1]} : vector<32x128xf32> to vector<16x16xf32>
    %268 = vector.extract_strided_slice %262 {offsets = [16, 32], sizes = [16, 16], strides = [1, 1]} : vector<32x128xf32> to vector<16x16xf32>
    %269 = vector.extract_strided_slice %262 {offsets = [0, 48], sizes = [16, 16], strides = [1, 1]} : vector<32x128xf32> to vector<16x16xf32>
    %270 = vector.extract_strided_slice %262 {offsets = [16, 48], sizes = [16, 16], strides = [1, 1]} : vector<32x128xf32> to vector<16x16xf32>
    %271 = vector.extract_strided_slice %262 {offsets = [0, 64], sizes = [16, 16], strides = [1, 1]} : vector<32x128xf32> to vector<16x16xf32>
    %272 = vector.extract_strided_slice %262 {offsets = [16, 64], sizes = [16, 16], strides = [1, 1]} : vector<32x128xf32> to vector<16x16xf32>
    %273 = vector.extract_strided_slice %262 {offsets = [0, 80], sizes = [16, 16], strides = [1, 1]} : vector<32x128xf32> to vector<16x16xf32>
    %274 = vector.extract_strided_slice %262 {offsets = [16, 80], sizes = [16, 16], strides = [1, 1]} : vector<32x128xf32> to vector<16x16xf32>
    %275 = vector.extract_strided_slice %262 {offsets = [0, 96], sizes = [16, 16], strides = [1, 1]} : vector<32x128xf32> to vector<16x16xf32>
    %276 = vector.extract_strided_slice %262 {offsets = [16, 96], sizes = [16, 16], strides = [1, 1]} : vector<32x128xf32> to vector<16x16xf32>
    %277 = vector.extract_strided_slice %262 {offsets = [0, 112], sizes = [16, 16], strides = [1, 1]} : vector<32x128xf32> to vector<16x16xf32>
    %278 = vector.extract_strided_slice %262 {offsets = [16, 112], sizes = [16, 16], strides = [1, 1]} : vector<32x128xf32> to vector<16x16xf32>
    %279 = vector.shape_cast %263 : vector<16x16xf32> to vector<1x16x16xf32>
    %280 = vector.shape_cast %264 : vector<16x16xf32> to vector<1x16x16xf32>
    %281 = vector.shape_cast %265 : vector<16x16xf32> to vector<1x16x16xf32>
    %282 = vector.shape_cast %266 : vector<16x16xf32> to vector<1x16x16xf32>
    %283 = vector.shape_cast %267 : vector<16x16xf32> to vector<1x16x16xf32>
    %284 = vector.shape_cast %268 : vector<16x16xf32> to vector<1x16x16xf32>
    %285 = vector.shape_cast %269 : vector<16x16xf32> to vector<1x16x16xf32>
    %286 = vector.shape_cast %270 : vector<16x16xf32> to vector<1x16x16xf32>
    %287 = vector.shape_cast %271 : vector<16x16xf32> to vector<1x16x16xf32>
    %288 = vector.shape_cast %272 : vector<16x16xf32> to vector<1x16x16xf32>
    %289 = vector.shape_cast %273 : vector<16x16xf32> to vector<1x16x16xf32>
    %290 = vector.shape_cast %274 : vector<16x16xf32> to vector<1x16x16xf32>
    %291 = vector.shape_cast %275 : vector<16x16xf32> to vector<1x16x16xf32>
    %292 = vector.shape_cast %276 : vector<16x16xf32> to vector<1x16x16xf32>
    %293 = vector.shape_cast %277 : vector<16x16xf32> to vector<1x16x16xf32>
    %294 = vector.shape_cast %278 : vector<16x16xf32> to vector<1x16x16xf32>
    %295 = tpu.concatenate %279, %280, %281, %282, %283, %284, %285, %286, %287, %288, %289, %290, %291, %292, %293, %294 in 0 : vector<1x16x16xf32>, vector<1x16x16xf32>, vector<1x16x16xf32>, vector<1x16x16xf32>, vector<1x16x16xf32>, vector<1x16x16xf32>, vector<1x16x16xf32>, vector<1x16x16xf32>, vector<1x16x16xf32>, vector<1x16x16xf32>, vector<1x16x16xf32>, vector<1x16x16xf32>, vector<1x16x16xf32>, vector<1x16x16xf32>, vector<1x16x16xf32>, vector<1x16x16xf32> -> vector<16x16x16xf32>
    %296 = arith.truncf %295 : vector<16x16x16xf32> to vector<16x16x16xbf16>
    %297 = vector.extract_strided_slice %261 {offsets = [0, 128], sizes = [32, 128], strides = [1, 1]} : vector<32x384xf32> to vector<32x128xf32>
    %298 = vector.extract_strided_slice %297 {offsets = [0, 0], sizes = [16, 16], strides = [1, 1]} : vector<32x128xf32> to vector<16x16xf32>
    %299 = vector.extract_strided_slice %297 {offsets = [16, 0], sizes = [16, 16], strides = [1, 1]} : vector<32x128xf32> to vector<16x16xf32>
    %300 = vector.extract_strided_slice %297 {offsets = [0, 16], sizes = [16, 16], strides = [1, 1]} : vector<32x128xf32> to vector<16x16xf32>
    %301 = vector.extract_strided_slice %297 {offsets = [16, 16], sizes = [16, 16], strides = [1, 1]} : vector<32x128xf32> to vector<16x16xf32>
    %302 = vector.extract_strided_slice %297 {offsets = [0, 32], sizes = [16, 16], strides = [1, 1]} : vector<32x128xf32> to vector<16x16xf32>
    %303 = vector.extract_strided_slice %297 {offsets = [16, 32], sizes = [16, 16], strides = [1, 1]} : vector<32x128xf32> to vector<16x16xf32>
    %304 = vector.extract_strided_slice %297 {offsets = [0, 48], sizes = [16, 16], strides = [1, 1]} : vector<32x128xf32> to vector<16x16xf32>
    %305 = vector.extract_strided_slice %297 {offsets = [16, 48], sizes = [16, 16], strides = [1, 1]} : vector<32x128xf32> to vector<16x16xf32>
    %306 = vector.extract_strided_slice %297 {offsets = [0, 64], sizes = [16, 16], strides = [1, 1]} : vector<32x128xf32> to vector<16x16xf32>
    %307 = vector.extract_strided_slice %297 {offsets = [16, 64], sizes = [16, 16], strides = [1, 1]} : vector<32x128xf32> to vector<16x16xf32>
    %308 = vector.extract_strided_slice %297 {offsets = [0, 80], sizes = [16, 16], strides = [1, 1]} : vector<32x128xf32> to vector<16x16xf32>
    %309 = vector.extract_strided_slice %297 {offsets = [16, 80], sizes = [16, 16], strides = [1, 1]} : vector<32x128xf32> to vector<16x16xf32>
    %310 = vector.extract_strided_slice %297 {offsets = [0, 96], sizes = [16, 16], strides = [1, 1]} : vector<32x128xf32> to vector<16x16xf32>
    %311 = vector.extract_strided_slice %297 {offsets = [16, 96], sizes = [16, 16], strides = [1, 1]} : vector<32x128xf32> to vector<16x16xf32>
    %312 = vector.extract_strided_slice %297 {offsets = [0, 112], sizes = [16, 16], strides = [1, 1]} : vector<32x128xf32> to vector<16x16xf32>
    %313 = vector.extract_strided_slice %297 {offsets = [16, 112], sizes = [16, 16], strides = [1, 1]} : vector<32x128xf32> to vector<16x16xf32>
    %314 = vector.shape_cast %298 : vector<16x16xf32> to vector<1x16x16xf32>
    %315 = vector.shape_cast %299 : vector<16x16xf32> to vector<1x16x16xf32>
    %316 = vector.shape_cast %300 : vector<16x16xf32> to vector<1x16x16xf32>
    %317 = vector.shape_cast %301 : vector<16x16xf32> to vector<1x16x16xf32>
    %318 = vector.shape_cast %302 : vector<16x16xf32> to vector<1x16x16xf32>
    %319 = vector.shape_cast %303 : vector<16x16xf32> to vector<1x16x16xf32>
    %320 = vector.shape_cast %304 : vector<16x16xf32> to vector<1x16x16xf32>
    %321 = vector.shape_cast %305 : vector<16x16xf32> to vector<1x16x16xf32>
    %322 = vector.shape_cast %306 : vector<16x16xf32> to vector<1x16x16xf32>
    %323 = vector.shape_cast %307 : vector<16x16xf32> to vector<1x16x16xf32>
    %324 = vector.shape_cast %308 : vector<16x16xf32> to vector<1x16x16xf32>
    %325 = vector.shape_cast %309 : vector<16x16xf32> to vector<1x16x16xf32>
    %326 = vector.shape_cast %310 : vector<16x16xf32> to vector<1x16x16xf32>
    %327 = vector.shape_cast %311 : vector<16x16xf32> to vector<1x16x16xf32>
    %328 = vector.shape_cast %312 : vector<16x16xf32> to vector<1x16x16xf32>
    %329 = vector.shape_cast %313 : vector<16x16xf32> to vector<1x16x16xf32>
    %330 = tpu.concatenate %314, %315, %316, %317, %318, %319, %320, %321, %322, %323, %324, %325, %326, %327, %328, %329 in 0 : vector<1x16x16xf32>, vector<1x16x16xf32>, vector<1x16x16xf32>, vector<1x16x16xf32>, vector<1x16x16xf32>, vector<1x16x16xf32>, vector<1x16x16xf32>, vector<1x16x16xf32>, vector<1x16x16xf32>, vector<1x16x16xf32>, vector<1x16x16xf32>, vector<1x16x16xf32>, vector<1x16x16xf32>, vector<1x16x16xf32>, vector<1x16x16xf32>, vector<1x16x16xf32> -> vector<16x16x16xf32>
    %331 = arith.truncf %330 : vector<16x16x16xf32> to vector<16x16x16xbf16>
    %332 = vector.extract_strided_slice %261 {offsets = [0, 256], sizes = [32, 128], strides = [1, 1]} : vector<32x384xf32> to vector<32x128xf32>
    %333 = vector.extract_strided_slice %332 {offsets = [0, 0], sizes = [16, 16], strides = [1, 1]} : vector<32x128xf32> to vector<16x16xf32>
    %334 = vector.extract_strided_slice %332 {offsets = [16, 0], sizes = [16, 16], strides = [1, 1]} : vector<32x128xf32> to vector<16x16xf32>
    %335 = vector.extract_strided_slice %332 {offsets = [0, 16], sizes = [16, 16], strides = [1, 1]} : vector<32x128xf32> to vector<16x16xf32>
    %336 = vector.extract_strided_slice %332 {offsets = [16, 16], sizes = [16, 16], strides = [1, 1]} : vector<32x128xf32> to vector<16x16xf32>
    %337 = vector.extract_strided_slice %332 {offsets = [0, 32], sizes = [16, 16], strides = [1, 1]} : vector<32x128xf32> to vector<16x16xf32>
    %338 = vector.extract_strided_slice %332 {offsets = [16, 32], sizes = [16, 16], strides = [1, 1]} : vector<32x128xf32> to vector<16x16xf32>
    %339 = vector.extract_strided_slice %332 {offsets = [0, 48], sizes = [16, 16], strides = [1, 1]} : vector<32x128xf32> to vector<16x16xf32>
    %340 = vector.extract_strided_slice %332 {offsets = [16, 48], sizes = [16, 16], strides = [1, 1]} : vector<32x128xf32> to vector<16x16xf32>
    %341 = vector.extract_strided_slice %332 {offsets = [0, 64], sizes = [16, 16], strides = [1, 1]} : vector<32x128xf32> to vector<16x16xf32>
    %342 = vector.extract_strided_slice %332 {offsets = [16, 64], sizes = [16, 16], strides = [1, 1]} : vector<32x128xf32> to vector<16x16xf32>
    %343 = vector.extract_strided_slice %332 {offsets = [0, 80], sizes = [16, 16], strides = [1, 1]} : vector<32x128xf32> to vector<16x16xf32>
    %344 = vector.extract_strided_slice %332 {offsets = [16, 80], sizes = [16, 16], strides = [1, 1]} : vector<32x128xf32> to vector<16x16xf32>
    %345 = vector.extract_strided_slice %332 {offsets = [0, 96], sizes = [16, 16], strides = [1, 1]} : vector<32x128xf32> to vector<16x16xf32>
    %346 = vector.extract_strided_slice %332 {offsets = [16, 96], sizes = [16, 16], strides = [1, 1]} : vector<32x128xf32> to vector<16x16xf32>
    %347 = vector.extract_strided_slice %332 {offsets = [0, 112], sizes = [16, 16], strides = [1, 1]} : vector<32x128xf32> to vector<16x16xf32>
    %348 = vector.extract_strided_slice %332 {offsets = [16, 112], sizes = [16, 16], strides = [1, 1]} : vector<32x128xf32> to vector<16x16xf32>
    %349 = vector.shape_cast %333 : vector<16x16xf32> to vector<1x16x16xf32>
    %350 = vector.shape_cast %334 : vector<16x16xf32> to vector<1x16x16xf32>
    %351 = vector.shape_cast %335 : vector<16x16xf32> to vector<1x16x16xf32>
    %352 = vector.shape_cast %336 : vector<16x16xf32> to vector<1x16x16xf32>
    %353 = vector.shape_cast %337 : vector<16x16xf32> to vector<1x16x16xf32>
    %354 = vector.shape_cast %338 : vector<16x16xf32> to vector<1x16x16xf32>
    %355 = vector.shape_cast %339 : vector<16x16xf32> to vector<1x16x16xf32>
    %356 = vector.shape_cast %340 : vector<16x16xf32> to vector<1x16x16xf32>
    %357 = vector.shape_cast %341 : vector<16x16xf32> to vector<1x16x16xf32>
    %358 = vector.shape_cast %342 : vector<16x16xf32> to vector<1x16x16xf32>
    %359 = vector.shape_cast %343 : vector<16x16xf32> to vector<1x16x16xf32>
    %360 = vector.shape_cast %344 : vector<16x16xf32> to vector<1x16x16xf32>
    %361 = vector.shape_cast %345 : vector<16x16xf32> to vector<1x16x16xf32>
    %362 = vector.shape_cast %346 : vector<16x16xf32> to vector<1x16x16xf32>
    %363 = vector.shape_cast %347 : vector<16x16xf32> to vector<1x16x16xf32>
    %364 = vector.shape_cast %348 : vector<16x16xf32> to vector<1x16x16xf32>
    %365 = tpu.concatenate %349, %350, %351, %352, %353, %354, %355, %356, %357, %358, %359, %360, %361, %362, %363, %364 in 0 : vector<1x16x16xf32>, vector<1x16x16xf32>, vector<1x16x16xf32>, vector<1x16x16xf32>, vector<1x16x16xf32>, vector<1x16x16xf32>, vector<1x16x16xf32>, vector<1x16x16xf32>, vector<1x16x16xf32>, vector<1x16x16xf32>, vector<1x16x16xf32>, vector<1x16x16xf32>, vector<1x16x16xf32>, vector<1x16x16xf32>, vector<1x16x16xf32>, vector<1x16x16xf32> -> vector<16x16x16xf32>
    %366 = arith.truncf %365 : vector<16x16x16xf32> to vector<16x16x16xbf16>
    "tpu.trace_start"() <{level = 10 : i32, message = "gqd,gkd->gqk"}> : () -> ()
    %cst_64 = arith.constant dense<0.000000e+00> : vector<16x16x16xf32>
    %367 = tpu.matmul %296, %331, %cst_64 {dimension_numbers = #tpu.dot_dimension_numbers<[2], [2], [1], [1], [0, 0, 0, 1, 1, 1], [0], [0]>} : vector<16x16x16xbf16>, vector<16x16x16xbf16>, vector<16x16x16xf32> -> vector<16x16x16xf32>
    "tpu.trace_stop"() : () -> ()
    %cst_65 = arith.constant dense<0xFF800000> : vector<16x16xf32>
    %368 = vector.multi_reduction <maximumf>, %367, %cst_65 [2] : vector<16x16x16xf32> to vector<16x16xf32>
    %369 = vector.shape_cast %368 : vector<16x16xf32> to vector<16x16x1xf32>
    %370 = vector.broadcast %369 : vector<16x16x1xf32> to vector<16x16x16xf32>
    %371 = arith.subf %367, %370 : vector<16x16x16xf32>
    %372 = math.exp %371 : vector<16x16x16xf32>
    %cst_66 = arith.constant dense<0.000000e+00> : vector<16x16xf32>
    %373 = vector.multi_reduction <add>, %372, %cst_66 [2] : vector<16x16x16xf32> to vector<16x16xf32>
    %374 = vector.shape_cast %373 : vector<16x16xf32> to vector<16x16x1xf32>
    %375 = tpu.reciprocal %374 {approx = true} : vector<16x16x1xf32> -> vector<16x16x1xf32>
    %376 = vector.broadcast %375 : vector<16x16x1xf32> to vector<16x16x16xf32>
    %377 = arith.mulf %372, %376 : vector<16x16x16xf32>
    %378 = arith.truncf %377 : vector<16x16x16xf32> to vector<16x16x16xbf16>
    "tpu.trace_start"() <{level = 10 : i32, message = "gqk,gkd->gqd"}> : () -> ()
    %cst_67 = arith.constant dense<0.000000e+00> : vector<16x16x16xf32>
    %379 = tpu.matmul %378, %366, %cst_67 {dimension_numbers = #tpu.dot_dimension_numbers<[2], [1], [1], [2], [0, 0, 0, 1, 1, 2], [0], [0]>} : vector<16x16x16xbf16>, vector<16x16x16xbf16>, vector<16x16x16xf32> -> vector<16x16x16xf32>
    "tpu.trace_stop"() : () -> ()
    %380 = vector.extract_strided_slice %379 {offsets = [0, 0, 0], sizes = [1, 16, 16], strides = [1, 1, 1]} : vector<16x16x16xf32> to vector<1x16x16xf32>
    %381 = vector.shape_cast %380 : vector<1x16x16xf32> to vector<16x16xf32>
    %382 = vector.extract_strided_slice %379 {offsets = [2, 0, 0], sizes = [1, 16, 16], strides = [1, 1, 1]} : vector<16x16x16xf32> to vector<1x16x16xf32>
    %383 = vector.shape_cast %382 : vector<1x16x16xf32> to vector<16x16xf32>
    %384 = vector.extract_strided_slice %379 {offsets = [4, 0, 0], sizes = [1, 16, 16], strides = [1, 1, 1]} : vector<16x16x16xf32> to vector<1x16x16xf32>
    %385 = vector.shape_cast %384 : vector<1x16x16xf32> to vector<16x16xf32>
    %386 = vector.extract_strided_slice %379 {offsets = [6, 0, 0], sizes = [1, 16, 16], strides = [1, 1, 1]} : vector<16x16x16xf32> to vector<1x16x16xf32>
    %387 = vector.shape_cast %386 : vector<1x16x16xf32> to vector<16x16xf32>
    %388 = vector.extract_strided_slice %379 {offsets = [8, 0, 0], sizes = [1, 16, 16], strides = [1, 1, 1]} : vector<16x16x16xf32> to vector<1x16x16xf32>
    %389 = vector.shape_cast %388 : vector<1x16x16xf32> to vector<16x16xf32>
    %390 = vector.extract_strided_slice %379 {offsets = [10, 0, 0], sizes = [1, 16, 16], strides = [1, 1, 1]} : vector<16x16x16xf32> to vector<1x16x16xf32>
    %391 = vector.shape_cast %390 : vector<1x16x16xf32> to vector<16x16xf32>
    %392 = vector.extract_strided_slice %379 {offsets = [12, 0, 0], sizes = [1, 16, 16], strides = [1, 1, 1]} : vector<16x16x16xf32> to vector<1x16x16xf32>
    %393 = vector.shape_cast %392 : vector<1x16x16xf32> to vector<16x16xf32>
    %394 = vector.extract_strided_slice %379 {offsets = [14, 0, 0], sizes = [1, 16, 16], strides = [1, 1, 1]} : vector<16x16x16xf32> to vector<1x16x16xf32>
    %395 = vector.shape_cast %394 : vector<1x16x16xf32> to vector<16x16xf32>
    %396 = tpu.concatenate %381, %383, %385, %387, %389, %391, %393, %395 in 1 : vector<16x16xf32>, vector<16x16xf32>, vector<16x16xf32>, vector<16x16xf32>, vector<16x16xf32>, vector<16x16xf32>, vector<16x16xf32>, vector<16x16xf32> -> vector<16x128xf32>
    %397 = vector.extract_strided_slice %379 {offsets = [1, 0, 0], sizes = [1, 16, 16], strides = [1, 1, 1]} : vector<16x16x16xf32> to vector<1x16x16xf32>
    %398 = vector.shape_cast %397 : vector<1x16x16xf32> to vector<16x16xf32>
    %399 = vector.extract_strided_slice %379 {offsets = [3, 0, 0], sizes = [1, 16, 16], strides = [1, 1, 1]} : vector<16x16x16xf32> to vector<1x16x16xf32>
    %400 = vector.shape_cast %399 : vector<1x16x16xf32> to vector<16x16xf32>
    %401 = vector.extract_strided_slice %379 {offsets = [5, 0, 0], sizes = [1, 16, 16], strides = [1, 1, 1]} : vector<16x16x16xf32> to vector<1x16x16xf32>
    %402 = vector.shape_cast %401 : vector<1x16x16xf32> to vector<16x16xf32>
    %403 = vector.extract_strided_slice %379 {offsets = [7, 0, 0], sizes = [1, 16, 16], strides = [1, 1, 1]} : vector<16x16x16xf32> to vector<1x16x16xf32>
    %404 = vector.shape_cast %403 : vector<1x16x16xf32> to vector<16x16xf32>
    %405 = vector.extract_strided_slice %379 {offsets = [9, 0, 0], sizes = [1, 16, 16], strides = [1, 1, 1]} : vector<16x16x16xf32> to vector<1x16x16xf32>
    %406 = vector.shape_cast %405 : vector<1x16x16xf32> to vector<16x16xf32>
    %407 = vector.extract_strided_slice %379 {offsets = [11, 0, 0], sizes = [1, 16, 16], strides = [1, 1, 1]} : vector<16x16x16xf32> to vector<1x16x16xf32>
    %408 = vector.shape_cast %407 : vector<1x16x16xf32> to vector<16x16xf32>
    %409 = vector.extract_strided_slice %379 {offsets = [13, 0, 0], sizes = [1, 16, 16], strides = [1, 1, 1]} : vector<16x16x16xf32> to vector<1x16x16xf32>
    %410 = vector.shape_cast %409 : vector<1x16x16xf32> to vector<16x16xf32>
    %411 = vector.extract_strided_slice %379 {offsets = [15, 0, 0], sizes = [1, 16, 16], strides = [1, 1, 1]} : vector<16x16x16xf32> to vector<1x16x16xf32>
    %412 = vector.shape_cast %411 : vector<1x16x16xf32> to vector<16x16xf32>
    %413 = tpu.concatenate %398, %400, %402, %404, %406, %408, %410, %412 in 1 : vector<16x16xf32>, vector<16x16xf32>, vector<16x16xf32>, vector<16x16xf32>, vector<16x16xf32>, vector<16x16xf32>, vector<16x16xf32>, vector<16x16xf32> -> vector<16x128xf32>
    %414 = tpu.concatenate %396, %413 in 0 : vector<16x128xf32>, vector<16x128xf32> -> vector<32x128xf32>
    %415 = arith.truncf %414 : vector<32x128xf32> to vector<32x128xbf16>
    %c1_68 = arith.constant 1 : index
    %c0_69 = arith.constant 0 : index
    %c0_70 = arith.constant 0 : index
    %416 = vector.load %arg5[%c1_68, %c0_69, %c0_70] : memref<2x128x128xbf16, #tpu.memory_space<vmem>>, vector<1x128x128xbf16>
    %417 = vector.shape_cast %416 : vector<1x128x128xbf16> to vector<128x128xbf16>
    %cst_71 = arith.constant dense<0.000000e+00> : vector<32x128xf32>
    %418 = tpu.matmul %415, %417, %cst_71 {dimension_numbers = #tpu.dot_dimension_numbers<[1], [0], [0], [1], [0, 0, 1, 1], [], []>} : vector<32x128xbf16>, vector<128x128xbf16>, vector<32x128xf32> -> vector<32x128xf32>
    %c1_72 = arith.constant 1 : index
    %c0_73 = arith.constant 0 : index
    %c0_74 = arith.constant 0 : index
    %419 = vector.load %arg6[%c1_72, %c0_73, %c0_74] : memref<2x1x128xf32, #tpu.memory_space<vmem>>, vector<1x1x128xf32>
    %420 = vector.shape_cast %419 : vector<1x1x128xf32> to vector<1x128xf32>
    %421 = vector.broadcast %420 : vector<1x128xf32> to vector<32x128xf32>
    %422 = arith.addf %418, %421 : vector<32x128xf32>
    %423 = arith.addf %253, %422 : vector<32x128xf32>
    %c1_75 = arith.constant 1 : index
    %c0_76 = arith.constant 0 : index
    %c0_77 = arith.constant 0 : index
    %424 = vector.load %arg11[%c1_75, %c0_76, %c0_77] : memref<2x1x128xf32, #tpu.memory_space<vmem>>, vector<1x1x128xf32>
    %425 = vector.shape_cast %424 : vector<1x1x128xf32> to vector<1x128xf32>
    %c1_78 = arith.constant 1 : index
    %c0_79 = arith.constant 0 : index
    %c0_80 = arith.constant 0 : index
    %426 = vector.load %arg12[%c1_78, %c0_79, %c0_80] : memref<2x1x128xf32, #tpu.memory_space<vmem>>, vector<1x1x128xf32>
    %427 = vector.shape_cast %426 : vector<1x1x128xf32> to vector<1x128xf32>
    %cst_81 = arith.constant dense<0.000000e+00> : vector<32xf32>
    %428 = vector.multi_reduction <add>, %423, %cst_81 [1] : vector<32x128xf32> to vector<32xf32>
    %429 = vector.shape_cast %428 : vector<32xf32> to vector<32x1xf32>
    %cst_82 = arith.constant 1.280000e+02 : f32
    %430 = vector.broadcast %cst_82 : f32 to vector<32x1xf32>
    %431 = arith.divf %429, %430 : vector<32x1xf32>
    %432 = vector.broadcast %431 : vector<32x1xf32> to vector<32x128xf32>
    %433 = arith.subf %423, %432 : vector<32x128xf32>
    %434 = vector.broadcast %431 : vector<32x1xf32> to vector<32x128xf32>
    %435 = arith.subf %423, %434 : vector<32x128xf32>
    %436 = arith.mulf %433, %435 : vector<32x128xf32>
    %cst_83 = arith.constant dense<0.000000e+00> : vector<32xf32>
    %437 = vector.multi_reduction <add>, %436, %cst_83 [1] : vector<32x128xf32> to vector<32xf32>
    %438 = vector.shape_cast %437 : vector<32xf32> to vector<32x1xf32>
    %cst_84 = arith.constant 1.280000e+02 : f32
    %439 = vector.broadcast %cst_84 : f32 to vector<32x1xf32>
    %440 = arith.divf %438, %439 : vector<32x1xf32>
    %441 = vector.broadcast %431 : vector<32x1xf32> to vector<32x128xf32>
    %442 = arith.subf %423, %441 : vector<32x128xf32>
    %cst_85 = arith.constant 9.99999974E-6 : f32
    %443 = vector.broadcast %cst_85 : f32 to vector<32x1xf32>
    %444 = arith.addf %440, %443 : vector<32x1xf32>
    %445 = math.rsqrt %444 : vector<32x1xf32>
    %446 = vector.broadcast %445 : vector<32x1xf32> to vector<32x128xf32>
    %447 = arith.mulf %442, %446 : vector<32x128xf32>
    %448 = vector.broadcast %425 : vector<1x128xf32> to vector<32x128xf32>
    %449 = arith.mulf %447, %448 : vector<32x128xf32>
    %450 = vector.broadcast %427 : vector<1x128xf32> to vector<32x128xf32>
    %451 = arith.addf %449, %450 : vector<32x128xf32>
    %452 = arith.truncf %451 : vector<32x128xf32> to vector<32x128xbf16>
    %c1_86 = arith.constant 1 : index
    %c0_87 = arith.constant 0 : index
    %c0_88 = arith.constant 0 : index
    %453 = vector.load %arg7[%c1_86, %c0_87, %c0_88] : memref<2x128x512xbf16, #tpu.memory_space<vmem>>, vector<1x128x512xbf16>
    %454 = vector.shape_cast %453 : vector<1x128x512xbf16> to vector<128x512xbf16>
    %cst_89 = arith.constant dense<0.000000e+00> : vector<32x512xf32>
    %455 = tpu.matmul %452, %454, %cst_89 {dimension_numbers = #tpu.dot_dimension_numbers<[1], [0], [0], [1], [0, 0, 1, 1], [], []>} : vector<32x128xbf16>, vector<128x512xbf16>, vector<32x512xf32> -> vector<32x512xf32>
    %c1_90 = arith.constant 1 : index
    %c0_91 = arith.constant 0 : index
    %c0_92 = arith.constant 0 : index
    %456 = vector.load %arg8[%c1_90, %c0_91, %c0_92] : memref<2x1x512xf32, #tpu.memory_space<vmem>>, vector<1x1x512xf32>
    %457 = vector.shape_cast %456 : vector<1x1x512xf32> to vector<1x512xf32>
    %458 = vector.broadcast %457 : vector<1x512xf32> to vector<32x512xf32>
    %459 = arith.addf %455, %458 : vector<32x512xf32>
    %cst_93 = arith.constant 0.000000e+00 : f32
    %460 = vector.broadcast %cst_93 : f32 to vector<32x512xf32>
    %461 = arith.maximumf %459, %460 : vector<32x512xf32>
    %462 = arith.truncf %461 : vector<32x512xf32> to vector<32x512xbf16>
    %c1_94 = arith.constant 1 : index
    %c0_95 = arith.constant 0 : index
    %c0_96 = arith.constant 0 : index
    %463 = vector.load %arg9[%c1_94, %c0_95, %c0_96] : memref<2x512x128xbf16, #tpu.memory_space<vmem>>, vector<1x512x128xbf16>
    %464 = vector.shape_cast %463 : vector<1x512x128xbf16> to vector<512x128xbf16>
    %cst_97 = arith.constant dense<0.000000e+00> : vector<32x128xf32>
    %465 = tpu.matmul %462, %464, %cst_97 {dimension_numbers = #tpu.dot_dimension_numbers<[1], [0], [0], [1], [0, 0, 1, 1], [], []>} : vector<32x512xbf16>, vector<512x128xbf16>, vector<32x128xf32> -> vector<32x128xf32>
    %c1_98 = arith.constant 1 : index
    %c0_99 = arith.constant 0 : index
    %c0_100 = arith.constant 0 : index
    %466 = vector.load %arg10[%c1_98, %c0_99, %c0_100] : memref<2x1x128xf32, #tpu.memory_space<vmem>>, vector<1x1x128xf32>
    %467 = vector.shape_cast %466 : vector<1x1x128xf32> to vector<1x128xf32>
    %468 = vector.broadcast %467 : vector<1x128xf32> to vector<32x128xf32>
    %469 = arith.addf %465, %468 : vector<32x128xf32>
    %470 = arith.addf %451, %469 : vector<32x128xf32>
    %c1_101 = arith.constant 1 : index
    %c0_102 = arith.constant 0 : index
    %c0_103 = arith.constant 0 : index
    %471 = vector.load %arg13[%c1_101, %c0_102, %c0_103] : memref<2x1x128xf32, #tpu.memory_space<vmem>>, vector<1x1x128xf32>
    %472 = vector.shape_cast %471 : vector<1x1x128xf32> to vector<1x128xf32>
    %c1_104 = arith.constant 1 : index
    %c0_105 = arith.constant 0 : index
    %c0_106 = arith.constant 0 : index
    %473 = vector.load %arg14[%c1_104, %c0_105, %c0_106] : memref<2x1x128xf32, #tpu.memory_space<vmem>>, vector<1x1x128xf32>
    %474 = vector.shape_cast %473 : vector<1x1x128xf32> to vector<1x128xf32>
    %cst_107 = arith.constant dense<0.000000e+00> : vector<32xf32>
    %475 = vector.multi_reduction <add>, %470, %cst_107 [1] : vector<32x128xf32> to vector<32xf32>
    %476 = vector.shape_cast %475 : vector<32xf32> to vector<32x1xf32>
    %cst_108 = arith.constant 1.280000e+02 : f32
    %477 = vector.broadcast %cst_108 : f32 to vector<32x1xf32>
    %478 = arith.divf %476, %477 : vector<32x1xf32>
    %479 = vector.broadcast %478 : vector<32x1xf32> to vector<32x128xf32>
    %480 = arith.subf %470, %479 : vector<32x128xf32>
    %481 = vector.broadcast %478 : vector<32x1xf32> to vector<32x128xf32>
    %482 = arith.subf %470, %481 : vector<32x128xf32>
    %483 = arith.mulf %480, %482 : vector<32x128xf32>
    %cst_109 = arith.constant dense<0.000000e+00> : vector<32xf32>
    %484 = vector.multi_reduction <add>, %483, %cst_109 [1] : vector<32x128xf32> to vector<32xf32>
    %485 = vector.shape_cast %484 : vector<32xf32> to vector<32x1xf32>
    %cst_110 = arith.constant 1.280000e+02 : f32
    %486 = vector.broadcast %cst_110 : f32 to vector<32x1xf32>
    %487 = arith.divf %485, %486 : vector<32x1xf32>
    %488 = vector.broadcast %478 : vector<32x1xf32> to vector<32x128xf32>
    %489 = arith.subf %470, %488 : vector<32x128xf32>
    %cst_111 = arith.constant 9.99999974E-6 : f32
    %490 = vector.broadcast %cst_111 : f32 to vector<32x1xf32>
    %491 = arith.addf %487, %490 : vector<32x1xf32>
    %492 = math.rsqrt %491 : vector<32x1xf32>
    %493 = vector.broadcast %492 : vector<32x1xf32> to vector<32x128xf32>
    %494 = arith.mulf %489, %493 : vector<32x128xf32>
    %495 = vector.broadcast %472 : vector<1x128xf32> to vector<32x128xf32>
    %496 = arith.mulf %494, %495 : vector<32x128xf32>
    %497 = vector.broadcast %474 : vector<1x128xf32> to vector<32x128xf32>
    %498 = arith.addf %496, %497 : vector<32x128xf32>
    %c0_112 = arith.constant 0 : index
    %c0_113 = arith.constant 0 : index
    %499 = vector.load %arg15[%c0_112, %c0_113] : memref<1x128xf32, #tpu.memory_space<vmem>>, vector<1x128xf32>
    %c0_114 = arith.constant 0 : index
    %c0_115 = arith.constant 0 : index
    %500 = vector.load %arg16[%c0_114, %c0_115] : memref<1x128xf32, #tpu.memory_space<vmem>>, vector<1x128xf32>
    %cst_116 = arith.constant dense<0.000000e+00> : vector<32xf32>
    %501 = vector.multi_reduction <add>, %498, %cst_116 [1] : vector<32x128xf32> to vector<32xf32>
    %502 = vector.shape_cast %501 : vector<32xf32> to vector<32x1xf32>
    %cst_117 = arith.constant 1.280000e+02 : f32
    %503 = vector.broadcast %cst_117 : f32 to vector<32x1xf32>
    %504 = arith.divf %502, %503 : vector<32x1xf32>
    %505 = vector.broadcast %504 : vector<32x1xf32> to vector<32x128xf32>
    %506 = arith.subf %498, %505 : vector<32x128xf32>
    %507 = vector.broadcast %504 : vector<32x1xf32> to vector<32x128xf32>
    %508 = arith.subf %498, %507 : vector<32x128xf32>
    %509 = arith.mulf %506, %508 : vector<32x128xf32>
    %cst_118 = arith.constant dense<0.000000e+00> : vector<32xf32>
    %510 = vector.multi_reduction <add>, %509, %cst_118 [1] : vector<32x128xf32> to vector<32xf32>
    %511 = vector.shape_cast %510 : vector<32xf32> to vector<32x1xf32>
    %cst_119 = arith.constant 1.280000e+02 : f32
    %512 = vector.broadcast %cst_119 : f32 to vector<32x1xf32>
    %513 = arith.divf %511, %512 : vector<32x1xf32>
    %514 = vector.broadcast %504 : vector<32x1xf32> to vector<32x128xf32>
    %515 = arith.subf %498, %514 : vector<32x128xf32>
    %cst_120 = arith.constant 9.99999974E-6 : f32
    %516 = vector.broadcast %cst_120 : f32 to vector<32x1xf32>
    %517 = arith.addf %513, %516 : vector<32x1xf32>
    %518 = math.rsqrt %517 : vector<32x1xf32>
    %519 = vector.broadcast %518 : vector<32x1xf32> to vector<32x128xf32>
    %520 = arith.mulf %515, %519 : vector<32x128xf32>
    %521 = vector.broadcast %499 : vector<1x128xf32> to vector<32x128xf32>
    %522 = arith.mulf %520, %521 : vector<32x128xf32>
    %523 = vector.broadcast %500 : vector<1x128xf32> to vector<32x128xf32>
    %524 = arith.addf %522, %523 : vector<32x128xf32>
    %c0_121 = arith.constant 0 : index
    %c0_122 = arith.constant 0 : index
    %525 = vector.load %arg19[%c0_121, %c0_122] : memref<32x128xf32, #tpu.memory_space<vmem>>, vector<32x128xf32>
    tpu.vector_store %arg19[%c0_121, %c0_122], %524 {strides = array<i32>} : memref<32x128xf32, #tpu.memory_space<vmem>>, vector<32x128xf32>,
    %526 = arith.truncf %524 : vector<32x128xf32> to vector<32x128xbf16>
    %c0_123 = arith.constant 0 : index
    %c0_124 = arith.constant 0 : index
    %527 = vector.load %arg17[%c0_123, %c0_124] : memref<128x256xbf16, #tpu.memory_space<vmem>>, vector<128x256xbf16>
    %cst_125 = arith.constant dense<0.000000e+00> : vector<32x256xf32>
    %528 = tpu.matmul %526, %527, %cst_125 {dimension_numbers = #tpu.dot_dimension_numbers<[1], [0], [0], [1], [0, 0, 1, 1], [], []>} : vector<32x128xbf16>, vector<128x256xbf16>, vector<32x256xf32> -> vector<32x256xf32>
    %c0_126 = arith.constant 0 : index
    %c0_127 = arith.constant 0 : index
    %529 = vector.load %arg18[%c0_126, %c0_127] : memref<1x256xf32, #tpu.memory_space<vmem>>, vector<1x256xf32>
    %530 = vector.broadcast %529 : vector<1x256xf32> to vector<32x256xf32>
    %531 = arith.addf %528, %530 : vector<32x256xf32>
    %c0_128 = arith.constant 0 : index
    %c0_129 = arith.constant 0 : index
    %532 = vector.load %arg20[%c0_128, %c0_129] : memref<32x256xf32, #tpu.memory_space<vmem>>, vector<32x256xf32>
    tpu.vector_store %arg20[%c0_128, %c0_129], %531 {strides = array<i32>} : memref<32x256xf32, #tpu.memory_space<vmem>>, vector<32x256xf32>,
    %c0_130 = arith.constant 0 : index
    %c0_131 = arith.constant 0 : index
    %533 = vector.load %arg1[%c0_130, %c0_131] : memref<32x1xi32, #tpu.memory_space<vmem>>, vector<32x1xi32>
    %cst_132 = arith.constant dense<0xFF800000> : vector<32xf32>
    %534 = vector.multi_reduction <maximumf>, %531, %cst_132 [1] : vector<32x256xf32> to vector<32xf32>
    %535 = vector.shape_cast %534 : vector<32xf32> to vector<32x1xf32>
    %536 = vector.broadcast %535 : vector<32x1xf32> to vector<32x256xf32>
    %537 = arith.subf %531, %536 : vector<32x256xf32>
    %538 = math.exp %537 : vector<32x256xf32>
    %cst_133 = arith.constant dense<0.000000e+00> : vector<32xf32>
    %539 = vector.multi_reduction <add>, %538, %cst_133 [1] : vector<32x256xf32> to vector<32xf32>
    %540 = vector.shape_cast %539 : vector<32xf32> to vector<32x1xf32>
    %541 = math.log %540 : vector<32x1xf32>
    %542 = arith.addf %535, %541 : vector<32x1xf32>
    %543 = vector.broadcast %533 : vector<32x1xi32> to vector<32x256xi32>
    %544 = arith.cmpi eq, %1, %543 : vector<32x256xi32>
    %545 = arith.extui %544 : vector<32x256xi1> to vector<32x256xi32>
    %546 = arith.sitofp %545 : vector<32x256xi32> to vector<32x256xf32>
    %547 = arith.mulf %531, %546 : vector<32x256xf32>
    %cst_134 = arith.constant dense<0.000000e+00> : vector<32xf32>
    %548 = vector.multi_reduction <add>, %547, %cst_134 [1] : vector<32x256xf32> to vector<32xf32>
    %549 = vector.shape_cast %548 : vector<32xf32> to vector<32x1xf32>
    %550 = arith.subf %542, %549 : vector<32x1xf32>
    %cst_135 = arith.constant dense<0.000000e+00> : vector<1xf32>
    %551 = vector.multi_reduction <add>, %550, %cst_135 [0] : vector<32x1xf32> to vector<1xf32>
    %552 = vector.shape_cast %551 : vector<1xf32> to vector<1x1xf32>
    %cst_136 = arith.constant 3.125000e-02 : f32
    %553 = vector.broadcast %cst_136 : f32 to vector<1x1xf32>
    %554 = arith.mulf %552, %553 : vector<1x1xf32>
    %c0_137 = arith.constant 0 : index
    %c0_138 = arith.constant 0 : index
    %555 = vector.load %arg21[%c0_137, %c0_138] : memref<1x1xf32, #tpu.memory_space<vmem>>, vector<1x1xf32>
    tpu.vector_store %arg21[%c0_137, %c0_138], %554 {strides = array<i32>} : memref<1x1xf32, #tpu.memory_space<vmem>>, vector<1x1xf32>,
    return
  }
}

</mosaic_0001>

<bundles_post_ra>
// kernel: mock_model_forward.1
= control target key start
LH: loop header
LB: loop body
LE: loop exit
PB: predicated region body
PF: predicated region fallthrough
CT: control target
= control target key end

     0   :  { %s12267_s0 = inlined_call_operand.vmem [shape: s32[32,1], index: 0, kind: input, shape index: {}]   ;;  %s12268_s1 = inlined_call_operand.vmem [shape: s32[32,1], index: 1, kind: input, shape index: {}]   ;;  %s12269_s2 = inlined_call_operand.hbm [shape: bf16[256,128], index: 2, kind: input, shape index: {}]   ;;  %s12270_s3 = inlined_call_operand.hbm [shape: bf16[2,128,384], index: 3, kind: input, shape index: {}]   ;;  %s12271_s4 = inlined_call_operand.vmem [shape: f32[2,1,384], index: 4, kind: input, shape index: {}]   ;;  %s12272_s5 = inlined_call_operand.hbm [shape: bf16[2,128,128], index: 5, kind: input, shape index: {}]   ;;  %s12273_s6 = inlined_call_operand.vmem [shape: f32[2,1,128], index: 6, kind: input, shape index: {}]   ;;  %s12274_s7 = inlined_call_operand.hbm [shape: bf16[2,128,512], index: 7, kind: input, shape index: {}]   ;;  %s12275_s8 = inlined_call_operand.vmem [shape: f32[2,1,512], index: 8, kind: input, shape index: {}]   ;;  %s12276_s9 = inlined_call_operand.hbm [shape: bf16[2,512,128], index: 9, kind: input, shape index: {}]   ;;  %s12277_s10 = inlined_call_operand.vmem [shape: f32[2,1,128], index: 10, kind: input, shape index: {}]   ;;  %s12278_s11 = inlined_call_operand.vmem [shape: f32[2,1,128], index: 11, kind: input, shape index: {}]   ;;  %s12279_s12 = inlined_call_operand.vmem [shape: f32[2,1,128], index: 12, kind: input, shape index: {}]   ;;  %s12280_s13 = inlined_call_operand.vmem [shape: f32[2,1,128], index: 13, kind: input, shape index: {}]   ;;  %s12281_s14 = inlined_call_operand.vmem [shape: f32[2,1,128], index: 14, kind: input, shape index: {}]   ;;  %s12282_s15 = inlined_call_operand.vmem [shape: f32[1,128], index: 15, kind: input, shape index: {}]   ;;  %s12283_s16 = inlined_call_operand.vmem [shape: f32[1,128], index: 16, kind: input, shape index: {}]   ;;  %s12284_s17 = inlined_call_operand.hbm [shape: bf16[128,256], index: 17, kind: input, shape index: {}]   ;;  %s12285_s18 = inlined_call_operand.vmem [shape: f32[1,256], index: 18, kind: input, shape index: {}]   ;;  %s12286_s19 = inlined_call_operand.vmem [shape: f32[32,128], index: 19, kind: output, shape index: {0}]   ;;  %s12287_s20 = inlined_call_operand.hbm [shape: f32[32,256], index: 20, kind: output, shape index: {1}]   ;;  %s12288_s21 = inlined_call_operand.hbm [shape: f32[1,1], index: 21, kind: output, shape index: {2}]  }
   0x1   :  { %12313 = sst [smem:[#allocation27_spill]] %s12267_s0 }
   0x2   :  { %12314 = sst [smem:[#allocation28_spill]] %s12268_s1 }
   0x3   :  { %12315 = sst [smem:[#allocation29_spill]] %s12269_s2 }
   0x4   :  { %12316 = sst [smem:[#allocation30_spill]] %s12270_s3 }
   0x5   :  { %12317 = sst [smem:[#allocation31_spill]] %s12271_s4 }
   0x6   :  { %12318 = sst [smem:[#allocation32_spill]] %s12272_s5 }
   0x7   :  { %12319 = sst [smem:[#allocation33_spill]] %s12287_s20 }
   0x8   :  { %12320 = sst [smem:[#allocation34_spill]] %s12288_s21 }
   0x9   :  { %27 = vsyncpa [#allocation3], 0 }
   0xa   :  { %28 = vsyncpa [#allocation6], 0 }
   0xb   :  { %29 = vsyncpa [#allocation9], 0 }
   0xc   :  { %30 = vsyncpa [#allocation12], 0 }
   0xd   :  { %31 = vsyncpa [#allocation4], 0 }
   0xe   :  { %32 = vsyncpa [#allocation15], 0  ;;  %s10342_s2 = smov [#allocation5]   ;;  %s12321_s3 = sld [smem:[#allocation30_spill]] }
   0xf   :  { %s54_s25 = sshll.u32 %s10342_s2, 4  ;;  %s55_s25 = int_to_ptr.vmem [resolvable:$true] %s54_s25 }
  0x14   :  { %s10154_s28 = scalar_lea.hbm %s12321_s3, 6144 }
  0x15   :  { %p10155_p0 = scmp.ne.s32.totalorder %s12321_s3, %s10154_s28  ;;  %p10158_p1 = scmp.lt.u32.totalorder %s10154_s28, %s12321_s3 }
  0x17   :  { %p10160_p2 = pnand %p10158_p1, %p10155_p0 }
  0x19   :  { %10163 = shalt.err (!%p10160_p2)
}
  0x1a   :  { %s10164_s5 = scalar_lea.vmem %s55_s25, 6144  ;;  %p10169_p4 = scmp.lt.s32.totalorder %s55_s25, %s55_s25 }
  0x1b   :  { %p10165_p3 = scmp.ne.s32.totalorder %s55_s25, %s10164_s5  ;;  %p10170_p5 = scmp.lt.s32.totalorder %s10164_s5, %s10164_s5 }
  0x1d   :  { %p10171_p6 = por %p10170_p5, %p10169_p4 }
  0x1f   :  { %p10172_p7 = pnand %p10171_p6, %p10165_p3 }
  0x21   :  { %10175 = shalt.err (!%p10172_p7)
}
  0x22   :  { %s10343_s22 = smov 192   ;;  %s10344_s23 = smov 12  }
  0x23   :  { %60 = dma.hbm_to_vmem [thread:$0]  %s12321_s3, 6144, %s55_s25, [#allocation6], %s10343_s22, %s10343_s22, %s10344_s23  }
  0x24   :  { %s10345_s2 = smov [#allocation8]   ;;  %s10176_s29 = scalar_lea.hbm %s12274_s7, 8192 }
  0x25   :  { %s82_s26 = sshll.u32 %s10345_s2, 4  ;;  %p10177_p8 = scmp.ne.s32.totalorder %s12274_s7, %s10176_s29  ;;  %s83_s26 = int_to_ptr.vmem [resolvable:$true] %s82_s26 }
  0x26   :  { %p10180_p9 = scmp.lt.u32.totalorder %s10176_s29, %s12274_s7 }
  0x28   :  { %p10182_p10 = pnand %p10180_p9, %p10177_p8 }
  0x2a   :  { %10185 = shalt.err (!%p10182_p10)
}
  0x2b   :  { %s10186_s21 = scalar_lea.vmem %s83_s26, 8192  ;;  %p10191_p12 = scmp.lt.s32.totalorder %s83_s26, %s83_s26 }
  0x2c   :  { %p10187_p11 = scmp.ne.s32.totalorder %s83_s26, %s10186_s21  ;;  %p10192_p13 = scmp.lt.s32.totalorder %s10186_s21, %s10186_s21 }
  0x2e   :  { %p10193_p0 = por %p10192_p13, %p10191_p12 }
  0x30   :  { %p10194_p1 = pnand %p10193_p0, %p10187_p11 }
  0x32   :  { %10197 = shalt.err (!%p10194_p1)
}
  0x33   :  { %s12296_s25 = smov 256   ;;  %s12297_s3 = smov 16  }
  0x34   :  { %88 = dma.hbm_to_vmem [thread:$0]  %s12274_s7, 8192, %s83_s26, [#allocation9], %s12296_s25, %s12296_s25, %s12297_s3  }
  0x35   :  { %s10348_s1 = smov [#allocation2]   ;;  %s12322_s28 = sld [smem:[#allocation29_spill]] }
  0x36   :  { %s42_s24 = sshll.u32 %s10348_s1, 4  ;;  %s43_s24 = int_to_ptr.vmem [resolvable:$true] %s42_s24 }
  0x3b   :  { %s10198_s29 = scalar_lea.hbm %s12322_s28, 2048 }
  0x3c   :  { %p10199_p2 = scmp.ne.s32.totalorder %s12322_s28, %s10198_s29  ;;  %p10202_p3 = scmp.lt.u32.totalorder %s10198_s29, %s12322_s28 }
  0x3e   :  { %p10204_p4 = pnand %p10202_p3, %p10199_p2 }
  0x40   :  { %10207 = shalt.err (!%p10204_p4)
}
  0x41   :  { %s10208_s5 = scalar_lea.vmem %s43_s24, 2048  ;;  %p10213_p6 = scmp.lt.s32.totalorder %s43_s24, %s43_s24 }
  0x42   :  { %p10209_p5 = scmp.ne.s32.totalorder %s43_s24, %s10208_s5  ;;  %p10214_p7 = scmp.lt.s32.totalorder %s10208_s5, %s10208_s5 }
  0x44   :  { %p10215_p8 = por %p10214_p7, %p10213_p6 }
  0x46   :  { %p10216_p9 = pnand %p10215_p8, %p10209_p5 }
  0x48   :  { %10219 = shalt.err (!%p10216_p9)
}
  0x49   :  { %s10349_s7 = smov 64   ;;  %s10350_s26 = smov 4  }
  0x4a   :  { %48 = dma.hbm_to_vmem [thread:$0]  %s12322_s28, 2048, %s43_s24, [#allocation3], %s10349_s7, %s10349_s7, %s10350_s26  }
  0x4b   :  { %s10351_s1 = smov [#allocation7]   ;;  %s10352_s27 = smov [#allocation10]  }
  0x4c   :  { %s68_s2 = sshll.u32 %s10351_s1, 4  ;;  %s96_s29 = sshll.u32 %s10352_s27, 4  ;;  %s69_s2 = int_to_ptr.vmem [resolvable:$true] %s68_s2  ;;  %s97_s29 = int_to_ptr.vmem [resolvable:$true] %s96_s29 }
  0x4d   :  { %s12323_s4 = sld [smem:[#allocation32_spill]] }
  0x53   :  { %s10220_s30 = scalar_lea.hbm %s12323_s4, 2048 }
  0x54   :  { %p10221_p10 = scmp.ne.s32.totalorder %s12323_s4, %s10220_s30  ;;  %p10224_p11 = scmp.lt.u32.totalorder %s10220_s30, %s12323_s4 }
  0x56   :  { %p10226_p12 = pnand %p10224_p11, %p10221_p10 }
  0x58   :  { %10229 = shalt.err (!%p10226_p12)
}
  0x59   :  { %s10230_s24 = scalar_lea.vmem %s69_s2, 2048  ;;  %p10235_p0 = scmp.lt.s32.totalorder %s69_s2, %s69_s2 }
  0x5a   :  { %p10231_p13 = scmp.ne.s32.totalorder %s69_s2, %s10230_s24  ;;  %p10236_p1 = scmp.lt.s32.totalorder %s10230_s24, %s10230_s24 }
  0x5c   :  { %p10237_p2 = por %p10236_p1, %p10235_p0 }
  0x5e   :  { %p10238_p3 = pnand %p10237_p2, %p10231_p13 }
  0x60   :  { %10241 = shalt.err (!%p10238_p3)
}
  0x61   :  { %74 = dma.hbm_to_vmem [thread:$0]  %s12323_s4, 2048, %s69_s2, [#allocation6], %s10349_s7, %s10349_s7, %s10350_s26  }
  0x62   :  { %s10242_s3 = scalar_lea.hbm %s12276_s9, 8192 }
  0x63   :  { %p10243_p4 = scmp.ne.s32.totalorder %s12276_s9, %s10242_s3  ;;  %p10246_p5 = scmp.lt.u32.totalorder %s10242_s3, %s12276_s9 }
  0x65   :  { %p10248_p6 = pnand %p10246_p5, %p10243_p4 }
  0x67   :  { %10251 = shalt.err (!%p10248_p6)
}
  0x68   :  { %s10252_s0 = scalar_lea.vmem %s97_s29, 8192  ;;  %p10257_p8 = scmp.lt.s32.totalorder %s97_s29, %s97_s29 }
  0x69   :  { %p10253_p7 = scmp.ne.s32.totalorder %s97_s29, %s10252_s0  ;;  %p10258_p9 = scmp.lt.s32.totalorder %s10252_s0, %s10252_s0 }
  0x6b   :  { %p10259_p10 = por %p10258_p9, %p10257_p8 }
  0x6d   :  { %p10260_p11 = pnand %p10259_p10, %p10253_p7 }
  0x6f   :  { %10263 = shalt.err (!%p10260_p11)
}
  0x70   :  { %102 = dma.hbm_to_vmem [thread:$0]  %s12276_s9, 8192, %s97_s29, [#allocation9], %s10349_s7, %s10349_s7, %s10350_s26  }
  0x71   :  { %s10353_s30 = smov [#allocation11]   ;;  %s10264_s22 = scalar_lea.hbm %s12284_s17, 2048 }
  0x72   :  { %s122_s5 = sshll.u32 %s10353_s30, 4  ;;  %p10265_p12 = scmp.ne.s32.totalorder %s12284_s17, %s10264_s22  ;;  %s123_s5 = int_to_ptr.vmem [resolvable:$true] %s122_s5 }
  0x73   :  { %p10268_p13 = scmp.lt.u32.totalorder %s10264_s22, %s12284_s17 }
  0x75   :  { %p10270_p0 = pnand %p10268_p13, %p10265_p12 }
  0x77   :  { %10273 = shalt.err (!%p10270_p0)
}
  0x78   :  { %s10274_s1 = scalar_lea.vmem %s123_s5, 2048  ;;  %p10279_p2 = scmp.lt.s32.totalorder %s123_s5, %s123_s5 }
  0x79   :  { %p10275_p1 = scmp.ne.s32.totalorder %s123_s5, %s10274_s1  ;;  %p10280_p3 = scmp.lt.s32.totalorder %s10274_s1, %s10274_s1 }
  0x7b   :  { %p10281_p4 = por %p10280_p3, %p10279_p2 }
  0x7d   :  { %p10282_p5 = pnand %p10281_p4, %p10275_p1 }
  0x7f   :  { %10285 = shalt.err (!%p10282_p5)
}
  0x80   :  { %s10354_s9 = smov 128   ;;  %s10355_s26 = smov 8  }
  0x81   :  { %128 = dma.hbm_to_vmem [thread:$0]  %s12284_s17, 2048, %s123_s5, [#allocation12], %s10354_s9, %s10354_s9, %s10355_s26  }
  0x82   :  { %10330 = dma.done.wait [#allocation3], 2048  }
  0x83   :  { %10331 = vsyncadd [#allocation3], 4294965248 }
  0x84   :  { %10332 = dma.done.wait [#allocation6], 8192  }
  0x85   :  { %10333 = vsyncadd [#allocation6], 4294959104 }
  0x86   :  { %10334 = dma.done.wait [#allocation9], 16384  }
  0x87   :  { %10335 = vsyncadd [#allocation9], 4294950912 }
  0x88   :  { %10336 = dma.done.wait [#allocation12], 2048  }
  0x89   :  { %10337 = vsyncadd [#allocation12], 4294965248  ;;  %v12300_v0 = vmov 0   ;;  %s12324_s2 = sld [smem:[#allocation27_spill]]  ;;  %v9554_v5 = vld [vmem:[#allocation2 + $0x40] sm:$0xff]   ;;  %v9556_v7 = vld [vmem:[#allocation2 + $0x48] sm:$0xff]   ;;  %v154_v34 = vlaneseq }
  0x8a   :  { %8992 = vset.pattern.permute.xlu0 %v12300_v0  ;;  %8993 = vset.pattern.permute.xlu1 %v12300_v0  ;;  %v9555_v6 = vld [vmem:[#allocation2] sm:$0xff]   ;;  %v9557_v8 = vld [vmem:[#allocation2 + $0x8] sm:$0xff]   ;;  %v9558_v9 = vld [vmem:[#allocation2 + $0x50] sm:$0xff]   ;;  %v10357_v42 = vmov 1.0|1.0   ;;  %vm10359_vm12 = vmmov 0  }
  0x8b   :  { %585 = vmatprep.mubr.bf16.mxu1 %v12300_v0  ;;  %8195 = vmatprep.subr.bf16.mxu0 %v9554_v5  ;;  %v9559_v10 = vld [vmem:[#allocation2 + $0x10] sm:$0xff]   ;;  %v9560_v11 = vld [vmem:[#allocation2 + $0x58] sm:$0xff]   ;;  %v9562_v13 = vld [vmem:[#allocation2 + $0x60] sm:$0xff]   ;;  %v10577_v35 = vand.u32 127, %v154_v34  ;;  %v10610_v5 = vshrl.u32 %v154_v34, 7  ;;  %s12328_s20 = sld [smem:[#allocation31_spill]] }
  0x8c   :  { %8196 = vmatpush3.bf16.msra.mxu0 %v9555_v6  ;;  %v9561_v12 = vld [vmem:[#allocation2 + $0x18] sm:$0xff]   ;;  %v9563_v14 = vld [vmem:[#allocation2 + $0x20] sm:$0xff]   ;;  %v9564_v17 = vld [vmem:[#allocation2 + $0x68] sm:$0xff]   ;;  %vm967_vm13 = vcmask 130048   ;;  %s10360_s3 = smov 112   ;;  %s10361_s23 = smov 96  }
  0x8d   :  { %8197 = vmatprep.subr.bf16.mxu0 %v9556_v7  ;;  %v9570_v15 = vld [vmem:[#allocation5 + $0x4] ss:$12 sps:$4 sm:$0xff]   ;;  %v9572_v16 = vld [vmem:[#allocation5] ss:$12 sps:$4 sm:$0xff]   ;;  %v9573_v18 = vld [vmem:[#allocation5 + $0x1c] ss:$12 sps:$4 sm:$0xff]  }
  0x8e   :  { %v9565_v19 = vld [vmem:[#allocation2 + $0x28] sm:$0xff]   ;;  %553 = vmatprep.subr.bf16.mxu1 %v9570_v15  ;;  %v9575_v20 = vld [vmem:[#allocation5 + $0x18] ss:$12 sps:$4 sm:$0xff]   ;;  %v9576_v21 = vld [vmem:[#allocation5 + $0x34] ss:$12 sps:$4 sm:$0xff]   ;;  %12325 = vst [vmem:[#allocation22_spill] sm:$0xff] %v10577_v35 }
  0x8f   :  { %v150_v1 = vld [vmem:[%s12324_s2] sm:$0xff]  ;;  %v152_v2 = vld [vmem:[%s12324_s2 + $0x10] sm:$0xff]  ;;  %v151_v3 = vld [vmem:[%s12324_s2 + $0x8] sm:$0xff]  ;;  %554 = vmatpush1.bf16.msra.mxu1 %v9572_v16  ;;  %v10580_v38 = vadd.s32 128, %v10577_v35  ;;  %12327 = vst [vmem:[#allocation24_spill] sm:$0xff] %v10610_v5  ;;  %v10613_v6 = vsub.s32 0, %v10610_v5 }
  0x90   :  { %158 = vperm.xlu0 %8992, %v150_v1   ;;  %164 = vperm.xlu1 %8993, %v152_v2   ;;  %v153_v4 = vld [vmem:[%s12324_s2 + $0x18] sm:$0xff]  ;;  %v9566_v22 = vld [vmem:[#allocation2 + $0x70] sm:$0xff]   ;;  %v9587_v31 = vld [vmem:[#allocation5 + $0x60] ss:$12 sps:$4 sm:$0xff]   ;;  %s10362_s1 = smov 80   ;;  %s10363_s9 = smov 48  }
  0x91   :  { %8198 = vmatpush3.bf16.msra.mxu0 %v9557_v8  ;;  %555 = vmatprep.subr.bf16.mxu1 %v9573_v18  ;;  %v9579_v23 = vld [vmem:[#allocation5 + $0x30] ss:$12 sps:$4 sm:$0xff]   ;;  %v9580_v25 = vld [vmem:[#allocation5 + $0x4c] ss:$12 sps:$4 sm:$0xff]   ;;  %v9583_v28 = vld [vmem:[#allocation5 + $0x48] ss:$12 sps:$4 sm:$0xff]  }
  0x92   :  { %8199 = vmatprep.subr.bf16.mxu0 %v9558_v9  ;;  %v9567_v24 = vld [vmem:[#allocation2 + $0x30] sm:$0xff]   ;;  %v9568_v26 = vld [vmem:[#allocation2 + $0x78] sm:$0xff]   ;;  %12326 = vst [vmem:[#allocation23_spill] sm:$0xff] %v10580_v38  ;;  %v9582_v41 = vld [vmem:[#allocation5 + $0x20] ss:$12 sps:$4 sm:$0xff]   ;;  %v10619_v8 = vsub.s32 1, %v10610_v5 }
  0x93   :  { %556 = vmatpush1.bf16.msra.mxu1 %v9575_v20  ;;  %v9569_v27 = vld [vmem:[#allocation2 + $0x38] sm:$0xff]   ;;  %v9578_v29 = vld [vmem:[#allocation5 + $0x8] ss:$12 sps:$4 sm:$0xff]   ;;  %v9584_v30 = vld [vmem:[#allocation5 + $0x64] ss:$12 sps:$4 sm:$0xff]   ;;  %s10364_s26 = smov 32  }
  0x94   :  { %161 = vperm.xlu0 %8992, %v151_v3   ;;  %167 = vperm.xlu1 %8993, %v153_v4   ;;  %v9588_v32 = vld [vmem:[#allocation5 + $0x7c] ss:$12 sps:$4 sm:$0xff]   ;;  %v9591_v33 = vld [vmem:[#allocation5 + $0x78] ss:$12 sps:$4 sm:$0xff]   ;;  %v9592_v45 = vld [vmem:[#allocation5 + $0x94] ss:$12 sps:$4 sm:$0xff]  }
  0x95   :  { %8200 = vmatpush3.bf16.msra.mxu0 %v9559_v10  ;;  %557 = vmatprep.subr.bf16.mxu1 %v9576_v21  ;;  %v9586_v43 = vld [vmem:[#allocation5 + $0x38] ss:$12 sps:$4 sm:$0xff]   ;;  %v9590_v44 = vld [vmem:[#allocation5 + $0x50] ss:$12 sps:$4 sm:$0xff]   ;;  %v9594_v46 = vld [vmem:[#allocation5 + $0x68] ss:$12 sps:$4 sm:$0xff]  }
  0x96   :  { %8201 = vmatprep.subr.bf16.mxu0 %v9560_v11  ;;  %v9595_v47 = vld [vmem:[#allocation5 + $0x90] ss:$12 sps:$4 sm:$0xff]   ;;  %v9596_v48 = vld [vmem:[#allocation5 + $0xac] ss:$12 sps:$4 sm:$0xff]   ;;  %v9599_v50 = vld [vmem:[#allocation5 + $0xa8] ss:$12 sps:$4 sm:$0xff]  }
  0x97   :  { %558 = vmatpush1.bf16.msra.mxu1 %v9579_v23  ;;  %v9598_v49 = vld [vmem:[#allocation5 + $0x80] ss:$12 sps:$4 sm:$0xff]   ;;  %v9600_v51 = vld [vmem:[#allocation5 + $0x98] ss:$12 sps:$4 sm:$0xff]   ;;  %v9601_v52 = vld [vmem:[#allocation5 + $0xb0] ss:$12 sps:$4 sm:$0xff]  }
  0x98   :  { %559 = vmatprep.subr.bf16.mxu1 %v9580_v25  ;;  %v12302_v4 = vmov 0.0   ;;  %v408_v7 = vld [vmem:[%s12328_s20] sm:$0x7]  ;;  %12329 = vst [vmem:[#allocation25_spill] sm:$0xff] %v10619_v8  ;;  %s12331_s29 = smov 16   ;;  %vm2850_vm14 = vcmask 261120  }
  0x99   :  { %8202 = vmatpush3.bf16.msra.mxu0 %v9561_v12  ;;  %v413_v9 = vrot.slane %v408_v7, %v10613_v6  ;;  %v417_v11 = vrot.slane %v408_v7, %v10619_v8  ;;  %v10624_v12 = vsub.s32 2, %v10610_v5  ;;  %vm2853_vm15 = vcmask 392192  }
  0x9a   :  { %8203 = vmatprep.subr.bf16.mxu0 %v9562_v13 }
  0x9b   :  { %560 = vmatpush1.bf16.msra.mxu1 %v9583_v28  ;;  %12330 = vst [vmem:[#allocation26_spill] sm:$0xff] %v10624_v12  ;;  %v421_v20 = vrot.slane %v408_v7, %v10624_v12 }
  0x9c   :  { %561 = vmatprep.subr.bf16.mxu1 %v9584_v30 }
  0x9d   :  { %8204 = vmatpush3.bf16.msra.mxu0 %v9563_v14 }
  0x9e   :  { %8205 = vmatprep.subr.bf16.mxu0 %v9564_v17 }
  0x9f   :  { %562 = vmatpush1.bf16.msra.mxu1 %v9587_v31 }
  0xa0   :  { %563 = vmatprep.subr.bf16.mxu1 %v9588_v32 }
  0xa1   :  { %8206 = vmatpush3.bf16.msra.mxu0 %v9565_v19 }
  0xa2   :  { %8207 = vmatprep.subr.bf16.mxu0 %v9566_v22 }
  0xa3   :  { %564 = vmatpush1.bf16.msra.mxu1 %v9591_v33 }
  0xa4   :  { %565 = vmatprep.subr.bf16.mxu1 %v9592_v45 }
  0xa5   :  { %8208 = vmatpush3.bf16.msra.mxu0 %v9567_v24 }
  0xa6   :  { %8209 = vmatprep.subr.bf16.mxu0 %v9568_v26 }
  0xa7   :  { %566 = vmatpush1.bf16.msra.mxu1 %v9595_v47 }
  0xa8   :  { %567 = vmatprep.subr.bf16.mxu1 %v9596_v48 }
  0xa9   :  { %8210 = vmatpush3.bf16.msra.mxu0 %v9569_v27 }
  0xaa   :  { %8503 = vmatprep.subr.bf16.mxu0 %v9578_v29 }
  0xab   :  { %568 = vmatpush1.bf16.msra.mxu1 %v9599_v50 }
  0xac   :  { %8523 = vmatprep.subr.bf16.mxu1 %v12302_v4 }
 0x10f   :  { %v159_v36 = vpop.permute.xlu0 %158  ;;  %v165_v37 = vpop.permute.xlu1 %164 }
 0x110   :  { %vm174_vm0 = vcmp.eq.s32.totalorder %v10580_v38, %v165_v37  ;;  %vm170_vm2 = vcmp.eq.s32.totalorder %v10580_v38, %v159_v36  ;;  %vm169_vm5 = vcmp.eq.s32.totalorder %v10577_v35, %v159_v36  ;;  %vm173_vm9 = vcmp.eq.s32.totalorder %v10577_v35, %v165_v37 }
 0x113   :  { %v162_v39 = vpop.permute.xlu0 %161  ;;  %v168_v40 = vpop.permute.xlu1 %167 }
 0x114   :  { %vm171_vm1 = vcmp.eq.s32.totalorder %v10577_v35, %v162_v39  ;;  %vm172_vm3 = vcmp.eq.s32.totalorder %v10580_v38, %v162_v39  ;;  %vm176_vm4 = vcmp.eq.s32.totalorder %v10580_v38, %v168_v40  ;;  %vm175_vm10 = vcmp.eq.s32.totalorder %v10577_v35, %v168_v40 }
 0x115   :  { %vm7885_vm6 = vmpackc.low %vm172_vm3, %vm170_vm2  ;;  %vm2862_vm2 = vcmask 785408   ;;  %vm2865_vm3 = vcmask 916480  }
 0x116   :  { %7886 = vmatprep.mubr.msk.bf16.mxu0 %vm7885_vm6, %v10357_v42  ;;  %vm7887_vm7 = vmpackc.low %vm171_vm1, %vm169_vm5  ;;  %vm2859_vm1 = vcmask 654336  }
 0x117   :  { %7888 = vmatmul.mubr.msk.bf16.vlgmr.msra.gmra.mrb[0].mxu0 %vm7887_vm7, %v10357_v42  ;;  %vm7889_vm8 = vmpackc.low %vm176_vm4, %vm174_vm0  ;;  %vm2856_vm0 = vcmask 523264  }
 0x118   :  { %7890 = vmatprep.mubr.msk.bf16.mxu0 %vm7889_vm8, %v10357_v42  ;;  %8504 = vmatpush3.bf16.msra.mxu0 %v9578_v29  ;;  %vm7891_vm11 = vmpackc.low %vm175_vm10, %vm173_vm9 }
 0x119   :  { %8505 = vmatprep.subr.bf16.mxu0 %v9582_v41 }
 0x11c   :  { %8506 = vmatpush3.bf16.msra.mxu0 %v9582_v41 }
 0x11d   :  { %8507 = vmatprep.subr.bf16.mxu0 %v9586_v43 }
 0x11f   :  { %7892 = vmatmul.mubr.msk.bf16.gmra.mrb[4].mxu0 %vm7891_vm11, %v10357_v42 }
 0x120   :  { %8508 = vmatpush3.bf16.msra.mxu0 %v9586_v43 }
 0x121   :  { %8509 = vmatprep.subr.bf16.mxu0 %v9590_v44 }
 0x124   :  { %8510 = vmatpush3.bf16.msra.mxu0 %v9590_v44 }
 0x125   :  { %8511 = vmatprep.subr.bf16.mxu0 %v9594_v46 }
 0x128   :  { %8512 = vmatpush3.bf16.msra.mxu0 %v9594_v46 }
 0x129   :  { %8513 = vmatprep.subr.bf16.mxu0 %v9598_v49 }
 0x12c   :  { %8514 = vmatpush3.bf16.msra.mxu0 %v9598_v49 }
 0x12d   :  { %8515 = vmatprep.subr.bf16.mxu0 %v9600_v51 }
 0x130   :  { %8516 = vmatpush3.bf16.msra.mxu0 %v9600_v51 }
 0x131   :  { %8517 = vmatprep.subr.bf16.mxu0 %v9601_v52 }
 0x134   :  { %8518 = vmatpush3.bf16.msra.mxu0 %v9601_v52 }
 0x135   :  { %8541 = vmatprep.subr.bf16.mxu0 %v12302_v4 }
 0x1ea   :  { %v8211_v53 = vpop.f32.mrb[0].mxu0 }
 0x1eb   :  { %v8212_v54 = vpop.f32.mrb[1].mxu0 }
 0x1ec   :  { %v10590_v55 = vadd.f32 %v8212_v54, %v8211_v53  ;;  %v8214_v56 = vpop.f32.mrb[2].mxu0 }
 0x1ed   :  { %v8215_v57 = vpop.f32.mrb[3].mxu0 }
 0x1ee   :  { %v10592_v58 = vadd.f32 %v8215_v57, %v8214_v56 }
 0x1f0   :  { %v374_v59 = vpack.c.bf16 %v10592_v58, %v10590_v55 }
 0x1f2   :  { %v8217_v60 = vpop.f32.mrb[4].mxu0  ;;  %586 = vmatmul.mubr.bf16.vlgmr.msra.gmra.mrb[0].mxu1 %v374_v59  ;;  %8519 = vmatprep.mubr.bf16.mxu0 %v374_v59 }
 0x1f3   :  { %v8218_v61 = vpop.f32.mrb[5].mxu0  ;;  %595 = vmatprep.mubr.bf16.mxu1 %v12300_v0 }
 0x1f4   :  { %v10597_v62 = vadd.f32 %v8218_v61, %v8217_v60  ;;  %v8220_v63 = vpop.f32.mrb[6].mxu0 }
 0x1f5   :  { %v8221_v1 = vpop.f32.mrb[7].mxu0 }
 0x1f6   :  { %v10599_v2 = vadd.f32 %v8221_v1, %v8220_v63 }
 0x1f8   :  { %v375_v3 = vpack.c.bf16 %v10599_v2, %v10597_v62 }
 0x1fa   :  { %596 = vmatmul.mubr.bf16.gmra.mrb[4].mxu1 %v375_v3  ;;  %8520 = vmatmul.mubr.bf16.vlgmr.msra.gmra.mrb[8].mxu0 %v375_v3 }
 0x1fb   :  { %8525 = vmatprep.mubr.msk.bf16.mxu1 %vm10359_vm12, %v12302_v4  ;;  %8543 = vmatprep.mubr.msk.bf16.mxu0 %vm10359_vm12, %v12302_v4 }
 0x2c5   :  { %v587_v10 = vpop.f32.mrb[0].mxu1 }
 0x2c6   :  { %v589_v13 = vpop.f32.mrb[1].mxu1  ;;  %v588_v15 = vadd.f32 %v587_v10, %v413_v9 }
 0x2c7   :  { %v591_v14 = vpop.f32.mrb[2].mxu1  ;;  %v590_v18 = vadd.f32 %v589_v13, %v417_v11 }
 0x2c8   :  { %v592_v16 = vadd.f32 %v591_v14, %v413_v9  ;;  %v593_v17 = vpop.f32.mrb[3].mxu1 }
 0x2c9   :  { %v594_v19 = vadd.f32 %v593_v17, %v417_v11 }
 0x2ca   :  { %v10627_v21 = vpack.i.bf16 %v592_v16, %v588_v15  ;;  %v743_v22 = vpack.c.bf16 %v592_v16, %v588_v15 }
 0x2cb   :  { %v10629_v23 = vpack.i.bf16 %v594_v19, %v590_v18  ;;  %v847_v24 = vpack.c.bf16 %v594_v19, %v590_v18 }
 0x2cd   :  { %v597_v25 = vpop.f32.mrb[4].mxu1  ;;  %v8521_v26 = vpop.f32.mrb[8].mxu0  ;;  %8995 = vrot.lane.b32.xlu0 %v10629_v23, %s10360_s3  ;;  %v972_v27 = vsel %vm967_vm13, %v847_v24, 0 }
 0x2ce   :  { %v599_v28 = vpop.f32.mrb[5].mxu1  ;;  %v640_v29 = vpop.f32.mrb[9].mxu0  ;;  %8524 = vmatpush3.bf16.xpose.msra.mxu1 %v972_v27  ;;  %v598_v32 = vadd.f32 %v597_v25, %v413_v9  ;;  %v10635_v33 = vadd.f32 %v8521_v26, %v421_v20 }
 0x2cf   :  { %v601_v30 = vpop.f32.mrb[6].mxu1  ;;  %v8522_v31 = vpop.f32.mrb[10].mxu0  ;;  %8529 = vmatprep.subr.bf16.mxu1 %v12302_v4  ;;  %v600_v34 = vadd.f32 %v599_v28, %v417_v11  ;;  %v10637_v40 = vadd.f32 %v640_v29, %v421_v20 }
 0x2d0   :  { %v602_v36 = vadd.f32 %v601_v30, %v413_v9  ;;  %v603_v37 = vpop.f32.mrb[7].mxu1  ;;  %v643_v39 = vpop.f32.mrb[11].mxu0  ;;  %v10639_v41 = vadd.f32 %v8522_v31, %v421_v20 }
 0x2d1   :  { %v604_v42 = vadd.f32 %v603_v37, %v417_v11  ;;  %v10641_v43 = vadd.f32 %v643_v39, %v421_v20  ;;  %9000 = vrot.lane.b32.xlu0 %v10627_v21, %s10360_s3 }
 0x2d2   :  { %v9014_v44 = vpack.i.bf16 %v602_v36, %v598_v32  ;;  %v744_v45 = vpack.c.bf16 %v602_v36, %v598_v32  ;;  %v10651_v49 = vpack.i.bf16 %v10639_v41, %v10635_v33  ;;  %v952_v52 = vpack.c.bf16 %v10639_v41, %v10635_v33 }
 0x2d3   :  { %v9004_v46 = vpack.i.bf16 %v604_v42, %v600_v34  ;;  %v848_v47 = vpack.c.bf16 %v604_v42, %v600_v34  ;;  %v10655_v50 = vpack.i.bf16 %v10641_v43, %v10637_v40  ;;  %v951_v51 = vpack.c.bf16 %v10641_v43, %v10637_v40 }
 0x2d5   :  { %9005 = vrot.lane.b32.xlu1 %v9004_v46, %s10360_s3  ;;  %9015 = vrot.lane.b32.xlu0 %v9014_v44, %s10360_s3  ;;  %v1019_v48 = vsel %vm967_vm13, %v848_v47, 0 }
 0x2d6   :  { %8526 = vmatmul.mubr.msk.bf16.vlgmr.msra.gmra.mrb[8].mxu1 %vm967_vm13, %v743_v22 }
 0x2d7   :  { %8530 = vmatpush3.bf16.xpose.msra.mxu1 %v1019_v48  ;;  %8531 = vmatprep.mubr.msk.bf16.mxu1 %vm10359_vm12, %v12302_v4 }
 0x2d8   :  { %8535 = vmatprep.subr.bf16.mxu1 %v12302_v4 }
 0x2d9   :  { %9010 = vrot.lane.b32.xlu1 %v10629_v23, %s10361_s23  ;;  %9020 = vrot.lane.b32.xlu0 %v10627_v21, %s10361_s23 }
 0x2dd   :  { %9025 = vrot.lane.b32.xlu1 %v9004_v46, %s10361_s23  ;;  %9035 = vrot.lane.b32.xlu0 %v9014_v44, %s10361_s23 }
 0x2de   :  { %8532 = vmatmul.mubr.msk.bf16.vlgmr.msra.gmra.mrb[12].mxu1 %vm967_vm13, %v744_v45 }
 0x2df   :  { %8537 = vmatprep.mubr.msk.bf16.mxu1 %vm10359_vm12, %v12302_v4 }
 0x2e1   :  { %9030 = vrot.lane.b32.xlu1 %v10629_v23, %s10362_s1  ;;  %9040 = vrot.lane.b32.xlu0 %v10627_v21, %s10362_s1 }
 0x2e5   :  { %9045 = vrot.lane.b32.xlu1 %v9004_v46, %s10362_s1  ;;  %9055 = vrot.lane.b32.xlu0 %v9014_v44, %s10362_s1 }
 0x2e9   :  { %9050 = vrot.lane.b32.xlu1 %v10629_v23, %s10349_s7  ;;  %9060 = vrot.lane.b32.xlu0 %v10627_v21, %s10349_s7 }
 0x2ed   :  { %9065 = vrot.lane.b32.xlu1 %v9004_v46, %s10349_s7  ;;  %9075 = vrot.lane.b32.xlu0 %v9014_v44, %s10349_s7 }
 0x2f1   :  { %9070 = vrot.lane.b32.xlu1 %v10629_v23, %s10363_s9  ;;  %9080 = vrot.lane.b32.xlu0 %v10627_v21, %s10363_s9 }
 0x2f5   :  { %9085 = vrot.lane.b32.xlu1 %v9004_v46, %s10363_s9  ;;  %9095 = vrot.lane.b32.xlu0 %v9014_v44, %s10363_s9 }
 0x2f9   :  { %9090 = vrot.lane.b32.xlu1 %v10629_v23, %s10364_s26  ;;  %9100 = vrot.lane.b32.xlu0 %v10627_v21, %s10364_s26 }
 0x2fd   :  { %9105 = vrot.lane.b32.xlu1 %v9004_v46, %s10364_s26  ;;  %9115 = vrot.lane.b32.xlu0 %v9014_v44, %s10364_s26 }
 0x301   :  { %9110 = vrot.lane.b32.xlu1 %v10629_v23, %s12331_s29  ;;  %9125 = vrot.lane.b32.xlu0 %v10627_v21, %s12331_s29 }
 0x305   :  { %9120 = vrot.lane.b32.xlu1 %v9004_v46, %s12331_s29  ;;  %9135 = vrot.lane.b32.xlu0 %v10651_v49, %s10360_s3 }
 0x309   :  { %9130 = vrot.lane.b32.xlu1 %v9014_v44, %s12331_s29  ;;  %9160 = vrot.lane.b32.xlu0 %v10655_v50, %s10362_s1 }
 0x30d   :  { %9140 = vrot.lane.b32.xlu1 %v10651_v49, %s10361_s23  ;;  %9165 = vrot.lane.b32.xlu0 %v10655_v50, %s10349_s7 }
 0x311   :  { %9145 = vrot.lane.b32.xlu1 %v10651_v49, %s10362_s1 }
 0x315   :  { %9150 = vrot.lane.b32.xlu1 %v10655_v50, %s10360_s3 }
 0x319   :  { %9155 = vrot.lane.b32.xlu1 %v10655_v50, %s10361_s23 }
 0x33f   :  { %v8996_v53 = vpop.permute.xlu0 %8995 }
 0x340   :  { %v8998_v54 = vunpack.i.h.bf16 %v8996_v53  ;;  %v8997_v56 = vunpack.i.l.bf16 %v8996_v53 }
 0x342   :  { %v849_v57 = vpack.c.bf16 %v8998_v54, %v8997_v56 }
 0x343   :  { %v9001_v59 = vpop.permute.xlu0 %9000 }
 0x344   :  { %v1066_v60 = vsel %vm967_vm13, %v849_v57, 0  ;;  %v9003_v61 = vunpack.i.h.bf16 %v9001_v59  ;;  %v9002_v63 = vunpack.i.l.bf16 %v9001_v59 }
 0x345   :  { %8536 = vmatpush3.bf16.xpose.msra.mxu1 %v1066_v60 }
 0x346   :  { %8547 = vmatprep.subr.bf16.mxu1 %v12302_v4  ;;  %v745_v10 = vpack.c.bf16 %v9003_v61, %v9002_v63 }
 0x347   :  { %v9006_v1 = vpop.permute.xlu1 %9005  ;;  %v9016_v3 = vpop.permute.xlu0 %9015 }
 0x348   :  { %v9008_v7 = vunpack.i.h.bf16 %v9006_v1  ;;  %v9007_v9 = vunpack.i.l.bf16 %v9006_v1  ;;  %v9018_v19 = vunpack.i.h.bf16 %v9016_v3  ;;  %v9017_v20 = vunpack.i.l.bf16 %v9016_v3 }
 0x34a   :  { %v850_v11 = vpack.c.bf16 %v9008_v7, %v9007_v9  ;;  %v746_v27 = vpack.c.bf16 %v9018_v19, %v9017_v20 }
 0x34b   :  { %v9011_v13 = vpop.permute.xlu1 %9010  ;;  %v9021_v14 = vpop.permute.xlu0 %9020 }
 0x34c   :  { %v9013_v15 = vunpack.i.h.bf16 %v9011_v13  ;;  %v9012_v16 = vunpack.i.l.bf16 %v9011_v13  ;;  %8538 = vmatmul.mubr.msk.bf16.vlgmr.msra.gmra.mrb[16].mxu1 %vm967_vm13, %v745_v10  ;;  %v1113_v17 = vsel %vm967_vm13, %v850_v11, 0  ;;  %v9023_v28 = vunpack.i.h.bf16 %v9021_v14 }
 0x34d   :  { %8549 = vmatprep.mubr.msk.bf16.mxu1 %vm10359_vm12, %v12302_v4  ;;  %8542 = vmatpush3.bf16.xpose.msra.mxu0 %v1113_v17  ;;  %v9022_v29 = vunpack.i.l.bf16 %v9021_v14 }
 0x34e   :  { %v851_v18 = vpack.c.bf16 %v9013_v15, %v9012_v16  ;;  %8553 = vmatprep.subr.bf16.mxu0 %v12302_v4 }
 0x34f   :  { %v9026_v21 = vpop.permute.xlu1 %9025  ;;  %v9036_v22 = vpop.permute.xlu0 %9035  ;;  %v747_v39 = vpack.c.bf16 %v9023_v28, %v9022_v29 }
 0x350   :  { %v9028_v23 = vunpack.i.h.bf16 %v9026_v21  ;;  %v9027_v24 = vunpack.i.l.bf16 %v9026_v21  ;;  %v1160_v25 = vsel %vm967_vm13, %v851_v18, 0  ;;  %v9038_v42 = vunpack.i.h.bf16 %v9036_v22 }
 0x351   :  { %8548 = vmatpush3.bf16.xpose.msra.mxu1 %v1160_v25  ;;  %v9037_v44 = vunpack.i.l.bf16 %v9036_v22 }
 0x352   :  { %v852_v26 = vpack.c.bf16 %v9028_v23, %v9027_v24  ;;  %8559 = vmatprep.subr.bf16.mxu1 %v12302_v4 }
 0x353   :  { %v9031_v30 = vpop.permute.xlu1 %9030  ;;  %v9041_v31 = vpop.permute.xlu0 %9040  ;;  %v748_v56 = vpack.c.bf16 %v9038_v42, %v9037_v44 }
 0x354   :  { %v9033_v32 = vunpack.i.h.bf16 %v9031_v30  ;;  %v9032_v34 = vunpack.i.l.bf16 %v9031_v30  ;;  %8544 = vmatmul.mubr.msk.bf16.vlgmr.msra.gmra.mrb[12].mxu0 %vm967_vm13, %v746_v27  ;;  %v1207_v36 = vsel %vm967_vm13, %v852_v26, 0  ;;  %v9043_v57 = vunpack.i.h.bf16 %v9041_v31 }
 0x355   :  { %8554 = vmatpush3.bf16.xpose.msra.mxu0 %v1207_v36  ;;  %8555 = vmatprep.mubr.msk.bf16.mxu0 %vm10359_vm12, %v12302_v4  ;;  %v9042_v59 = vunpack.i.l.bf16 %v9041_v31 }
 0x356   :  { %v853_v37 = vpack.c.bf16 %v9033_v32, %v9032_v34  ;;  %8565 = vmatprep.subr.bf16.mxu0 %v12302_v4 }
 0x357   :  { %v9046_v45 = vpop.permute.xlu1 %9045  ;;  %v9056_v46 = vpop.permute.xlu0 %9055  ;;  %v749_v9 = vpack.c.bf16 %v9043_v57, %v9042_v59 }
 0x358   :  { %v9048_v47 = vunpack.i.h.bf16 %v9046_v45  ;;  %v9047_v48 = vunpack.i.l.bf16 %v9046_v45  ;;  %8550 = vmatmul.mubr.msk.bf16.vlgmr.msra.gmra.mrb[20].mxu1 %vm967_vm13, %v747_v39  ;;  %v1254_v53 = vsel %vm967_vm13, %v853_v37, 0  ;;  %v9058_v10 = vunpack.i.h.bf16 %v9056_v46 }
 0x359   :  { %8560 = vmatpush3.bf16.xpose.msra.mxu1 %v1254_v53  ;;  %8561 = vmatprep.mubr.msk.bf16.mxu1 %vm10359_vm12, %v12302_v4  ;;  %v9057_v11 = vunpack.i.l.bf16 %v9056_v46 }
 0x35a   :  { %v854_v54 = vpack.c.bf16 %v9048_v47, %v9047_v48  ;;  %8571 = vmatprep.subr.bf16.mxu1 %v12302_v4 }
 0x35b   :  { %v9051_v60 = vpop.permute.xlu1 %9050  ;;  %v9061_v61 = vpop.permute.xlu0 %9060  ;;  %v750_v19 = vpack.c.bf16 %v9058_v10, %v9057_v11 }
 0x35c   :  { %v9053_v63 = vunpack.i.h.bf16 %v9051_v60  ;;  %v9052_v1 = vunpack.i.l.bf16 %v9051_v60  ;;  %8556 = vmatmul.mubr.msk.bf16.vlgmr.msra.gmra.mrb[16].mxu0 %vm967_vm13, %v748_v56  ;;  %v1301_v3 = vsel %vm967_vm13, %v854_v54, 0  ;;  %v9063_v20 = vunpack.i.h.bf16 %v9061_v61 }
 0x35d   :  { %8566 = vmatpush3.bf16.xpose.msra.mxu0 %v1301_v3  ;;  %8567 = vmatprep.mubr.msk.bf16.mxu0 %vm10359_vm12, %v12302_v4  ;;  %v9062_v21 = vunpack.i.l.bf16 %v9061_v61 }
 0x35e   :  { %v855_v7 = vpack.c.bf16 %v9053_v63, %v9052_v1  ;;  %8577 = vmatprep.subr.bf16.mxu0 %v12302_v4 }
 0x35f   :  { %v9066_v13 = vpop.permute.xlu1 %9065  ;;  %v9076_v14 = vpop.permute.xlu0 %9075  ;;  %v751_v28 = vpack.c.bf16 %v9063_v20, %v9062_v21 }
 0x360   :  { %v9068_v15 = vunpack.i.h.bf16 %v9066_v13  ;;  %v9067_v16 = vunpack.i.l.bf16 %v9066_v13  ;;  %8562 = vmatmul.mubr.msk.bf16.vlgmr.msra.gmra.mrb[24].mxu1 %vm967_vm13, %v749_v9  ;;  %v1348_v17 = vsel %vm967_vm13, %v855_v7, 0  ;;  %v9078_v29 = vunpack.i.h.bf16 %v9076_v14 }
 0x361   :  { %8572 = vmatpush3.bf16.xpose.msra.mxu1 %v1348_v17  ;;  %8573 = vmatprep.mubr.msk.bf16.mxu1 %vm10359_vm12, %v12302_v4  ;;  %v9077_v30 = vunpack.i.l.bf16 %v9076_v14 }
 0x362   :  { %v856_v18 = vpack.c.bf16 %v9068_v15, %v9067_v16  ;;  %8583 = vmatprep.subr.bf16.mxu1 %v12302_v4 }
 0x363   :  { %v9071_v22 = vpop.permute.xlu1 %9070  ;;  %v9081_v23 = vpop.permute.xlu0 %9080  ;;  %v752_v42 = vpack.c.bf16 %v9078_v29, %v9077_v30 }
 0x364   :  { %v9073_v24 = vunpack.i.h.bf16 %v9071_v22  ;;  %v9072_v25 = vunpack.i.l.bf16 %v9071_v22  ;;  %8568 = vmatmul.mubr.msk.bf16.vlgmr.msra.gmra.mrb[20].mxu0 %vm967_vm13, %v750_v19  ;;  %v1395_v26 = vsel %vm967_vm13, %v856_v18, 0  ;;  %v9083_v44 = vunpack.i.h.bf16 %v9081_v23 }
 0x365   :  { %8578 = vmatpush3.bf16.xpose.msra.mxu0 %v1395_v26  ;;  %8579 = vmatprep.mubr.msk.bf16.mxu0 %vm10359_vm12, %v12302_v4  ;;  %v9082_v45 = vunpack.i.l.bf16 %v9081_v23 }
 0x366   :  { %v857_v27 = vpack.c.bf16 %v9073_v24, %v9072_v25  ;;  %8589 = vmatprep.subr.bf16.mxu0 %v12302_v4 }
 0x367   :  { %v9086_v31 = vpop.permute.xlu1 %9085  ;;  %v9096_v32 = vpop.permute.xlu0 %9095  ;;  %v753_v57 = vpack.c.bf16 %v9083_v44, %v9082_v45 }
 0x368   :  { %v9088_v34 = vunpack.i.h.bf16 %v9086_v31  ;;  %v9087_v36 = vunpack.i.l.bf16 %v9086_v31  ;;  %8574 = vmatmul.mubr.msk.bf16.vlgmr.msra.gmra.mrb[28].mxu1 %vm967_vm13, %v751_v28  ;;  %v1442_v37 = vsel %vm967_vm13, %v857_v27, 0  ;;  %v9098_v59 = vunpack.i.h.bf16 %v9096_v32 }
 0x369   :  { %8584 = vmatpush3.bf16.xpose.msra.mxu1 %v1442_v37  ;;  %8585 = vmatprep.mubr.msk.bf16.mxu1 %vm10359_vm12, %v12302_v4  ;;  %v9097_v60 = vunpack.i.l.bf16 %v9096_v32 }
 0x36a   :  { %v858_v39 = vpack.c.bf16 %v9088_v34, %v9087_v36  ;;  %8595 = vmatprep.subr.bf16.mxu1 %v12302_v4 }
 0x36b   :  { %v9091_v46 = vpop.permute.xlu1 %9090  ;;  %v9101_v53 = vpop.permute.xlu0 %9100  ;;  %v754_v10 = vpack.c.bf16 %v9098_v59, %v9097_v60 }
 0x36c   :  { %v9093_v47 = vunpack.i.h.bf16 %v9091_v46  ;;  %v9092_v48 = vunpack.i.l.bf16 %v9091_v46  ;;  %8580 = vmatmul.mubr.msk.bf16.vlgmr.msra.gmra.mrb[24].mxu0 %vm967_vm13, %v752_v42  ;;  %v1489_v54 = vsel %vm967_vm13, %v858_v39, 0  ;;  %v9103_v11 = vunpack.i.h.bf16 %v9101_v53 }
 0x36d   :  { %8590 = vmatpush3.bf16.xpose.msra.mxu0 %v1489_v54  ;;  %8591 = vmatprep.mubr.msk.bf16.mxu0 %vm10359_vm12, %v12302_v4  ;;  %v9102_v13 = vunpack.i.l.bf16 %v9101_v53 }
 0x36e   :  { %v859_v56 = vpack.c.bf16 %v9093_v47, %v9092_v48  ;;  %8601 = vmatprep.subr.bf16.mxu0 %v12302_v4 }
 0x36f   :  { %v9106_v61 = vpop.permute.xlu1 %9105  ;;  %v9116_v7 = vpop.permute.xlu0 %9115  ;;  %v755_v19 = vpack.c.bf16 %v9103_v11, %v9102_v13 }
 0x370   :  { %v9108_v63 = vunpack.i.h.bf16 %v9106_v61  ;;  %v9107_v1 = vunpack.i.l.bf16 %v9106_v61  ;;  %8586 = vmatmul.mubr.msk.bf16.vlgmr.msra.gmra.mrb[32].mxu1 %vm967_vm13, %v753_v57  ;;  %v1536_v3 = vsel %vm967_vm13, %v859_v56, 0  ;;  %v9118_v20 = vunpack.i.h.bf16 %v9116_v7 }
 0x371   :  { %8596 = vmatpush3.bf16.xpose.msra.mxu1 %v1536_v3  ;;  %8597 = vmatprep.mubr.msk.bf16.mxu1 %vm10359_vm12, %v12302_v4  ;;  %v9117_v21 = vunpack.i.l.bf16 %v9116_v7 }
 0x372   :  { %v860_v9 = vpack.c.bf16 %v9108_v63, %v9107_v1  ;;  %8607 = vmatprep.subr.bf16.mxu1 %v12302_v4 }
 0x373   :  { %v9111_v14 = vpop.permute.xlu1 %9110  ;;  %v9126_v23 = vpop.permute.xlu0 %9125  ;;  %v756_v28 = vpack.c.bf16 %v9118_v20, %v9117_v21 }
 0x374   :  { %v9113_v15 = vunpack.i.h.bf16 %v9111_v14  ;;  %v9112_v16 = vunpack.i.l.bf16 %v9111_v14  ;;  %8592 = vmatmul.mubr.msk.bf16.vlgmr.msra.gmra.mrb[28].mxu0 %vm967_vm13, %v754_v10  ;;  %v1583_v17 = vsel %vm967_vm13, %v860_v9, 0  ;;  %v9128_v29 = vunpack.i.h.bf16 %v9126_v23 }
 0x375   :  { %8602 = vmatpush3.bf16.xpose.msra.mxu0 %v1583_v17  ;;  %8603 = vmatprep.mubr.msk.bf16.mxu0 %vm10359_vm12, %v12302_v4  ;;  %v9127_v30 = vunpack.i.l.bf16 %v9126_v23 }
 0x376   :  { %v861_v18 = vpack.c.bf16 %v9113_v15, %v9112_v16  ;;  %8613 = vmatprep.subr.bf16.mxu0 %v12302_v4 }
 0x377   :  { %v9121_v22 = vpop.permute.xlu1 %9120  ;;  %v757_v34 = vpack.c.bf16 %v9128_v29, %v9127_v30  ;;  %v10823_v1 = vpop.permute.xlu0 %9135 }
 0x378   :  { %v9123_v24 = vunpack.i.h.bf16 %v9121_v22  ;;  %v9122_v25 = vunpack.i.l.bf16 %v9121_v22  ;;  %8598 = vmatmul.mubr.msk.bf16.vlgmr.msra.gmra.mrb[36].mxu1 %vm967_vm13, %v755_v19  ;;  %v1630_v26 = vsel %vm967_vm13, %v861_v18, 0 }
 0x379   :  { %8608 = vmatpush3.bf16.xpose.msra.mxu1 %v1630_v26  ;;  %8609 = vmatprep.mubr.msk.bf16.mxu1 %vm10359_vm12, %v12302_v4 }
 0x37a   :  { %v862_v27 = vpack.c.bf16 %v9123_v24, %v9122_v25  ;;  %8619 = vmatprep.subr.bf16.mxu1 %v12302_v4 }
 0x37b   :  { %v9131_v31 = vpop.permute.xlu1 %9130  ;;  %v10839_v18 = vpop.permute.xlu0 %9160 }
 0x37c   :  { %8604 = vmatmul.mubr.msk.bf16.vlgmr.msra.gmra.mrb[32].mxu0 %vm967_vm13, %v756_v28  ;;  %v1677_v32 = vsel %vm967_vm13, %v862_v27, 0  ;;  %v9133_v36 = vunpack.i.h.bf16 %v9131_v31  ;;  %v9132_v37 = vunpack.i.l.bf16 %v9131_v31 }
 0x37d   :  { %8614 = vmatpush3.bf16.xpose.msra.mxu0 %v1677_v32  ;;  %8615 = vmatprep.mubr.msk.bf16.mxu0 %vm10359_vm12, %v12302_v4 }
 0x37e   :  { %8625 = vmatprep.subr.bf16.mxu0 %v12302_v4  ;;  %v758_v39 = vpack.c.bf16 %v9133_v36, %v9132_v37 }
 0x37f   :  { %v10819_v61 = vpop.permute.xlu1 %9140  ;;  %v10855_v29 = vpop.permute.xlu0 %9165 }
 0x380   :  { %8610 = vmatmul.mubr.msk.bf16.vlgmr.msra.gmra.mrb[40].mxu1 %vm967_vm13, %v757_v34 }
 0x381   :  { %8620 = vmatpush3.bf16.msra.mxu1 %v951_v51  ;;  %8621 = vmatprep.mubr.msk.bf16.mxu1 %vm10359_vm12, %v12302_v4 }
 0x382   :  { %8631 = vmatprep.subr.bf16.mxu1 %v12302_v4 }
 0x383   :  { %v10829_v10 = vpop.permute.xlu1 %9145 }
 0x384   :  { %8616 = vmatmul.mubr.msk.bf16.vlgmr.msra.gmra.mrb[36].mxu0 %vm967_vm13, %v758_v39 }
 0x385   :  { %8626 = vmatpush3.bf16.msra.mxu0 %v952_v52  ;;  %8627 = vmatprep.mubr.msk.bf16.mxu0 %vm10359_vm12, %v12302_v4 }
 0x386   :  { %8637 = vmatprep.subr.bf16.mxu0 %v12302_v4 }
 0x387   :  { %v10845_v22 = vpop.permute.xlu1 %9150 }
 0x38b   :  { %v10861_v34 = vpop.permute.xlu1 %9155 }
 0x3a9   :  { %v10795_v42 = vpop.f32.mrb[8].mxu1 }
 0x3aa   :  { %v8527_v40 = vpop.f32.mrb[9].mxu1  ;;  %v1720_v43 = vsel %vm967_vm13, %v10795_v42, -inf }
 0x3ab   :  { %1721 = vmax.xlane.f32.xlu0 %v1720_v43  ;;  %v10799_v51 = vpop.f32.mrb[10].mxu1 }
 0x3ac   :  { %v8528_v44 = vpop.f32.mrb[11].mxu1  ;;  %v1723_v45 = vsel %vm967_vm13, %v10799_v51, -inf }
 0x3ad   :  { %1724 = vmax.xlane.f32.xlu1 %v1723_v45 }
 0x3b1   :  { %v10803_v33 = vpop.f32.mrb[12].mxu1 }
 0x3b2   :  { %v8533_v41 = vpop.f32.mrb[13].mxu1  ;;  %v1726_v52 = vsel %vm967_vm13, %v10803_v33, -inf }
 0x3b3   :  { %1727 = vmax.xlane.f32.xlu0 %v1726_v52  ;;  %v10807_v46 = vpop.f32.mrb[14].mxu1 }
 0x3b4   :  { %v8534_v47 = vpop.f32.mrb[15].mxu1  ;;  %v1729_v48 = vsel %vm967_vm13, %v10807_v46, -inf }
 0x3b7   :  { %1730 = vmax.xlane.f32.xlu0 %v1729_v48 }
 0x41f   :  { %v10811_v53 = vpop.f32.mrb[16].mxu1 }
 0x420   :  { %v8539_v54 = vpop.f32.mrb[17].mxu1  ;;  %v1732_v56 = vsel %vm967_vm13, %v10811_v53, -inf }
 0x421   :  { %1733 = vmax.xlane.f32.xlu1 %v1732_v56  ;;  %v10815_v57 = vpop.f32.mrb[18].mxu1 }
 0x422   :  { %v8540_v59 = vpop.f32.mrb[19].mxu1  ;;  %v1735_v60 = vsel %vm967_vm13, %v10815_v57, -inf }
 0x423   :  { %1736 = vmax.xlane.f32.xlu0 %v1735_v60 }
 0x427   :  { %v10821_v63 = vpop.f32.mrb[12].mxu0 }
 0x428   :  { %v8545_v3 = vpop.f32.mrb[13].mxu0  ;;  %v1738_v7 = vsel %vm967_vm13, %v10821_v63, -inf }
 0x429   :  { %v10827_v9 = vpop.f32.mrb[14].mxu0  ;;  %1739 = vmax.xlane.f32.xlu1 %v1738_v7 }
 0x42a   :  { %v8546_v11 = vpop.f32.mrb[15].mxu0  ;;  %v1741_v13 = vsel %vm967_vm13, %v10827_v9, -inf }
 0x42b   :  { %1742 = vmax.xlane.f32.xlu0 %v1741_v13  ;;  %v10833_v14 = vpop.f32.mrb[20].mxu1 }
 0x42c   :  { %v8551_v15 = vpop.f32.mrb[21].mxu1  ;;  %v1744_v16 = vsel %vm967_vm13, %v10833_v14, -inf }
 0x42d   :  { %1745 = vmax.xlane.f32.xlu1 %v1744_v16  ;;  %v10837_v17 = vpop.f32.mrb[22].mxu1 }
 0x42e   :  { %v8552_v19 = vpop.f32.mrb[23].mxu1  ;;  %v1747_v20 = vsel %vm967_vm13, %v10837_v17, -inf }
 0x42f   :  { %v10843_v21 = vpop.f32.mrb[16].mxu0  ;;  %1748 = vmax.xlane.f32.xlu0 %v1747_v20 }
 0x430   :  { %v8557_v23 = vpop.f32.mrb[17].mxu0  ;;  %v1750_v24 = vsel %vm967_vm13, %v10843_v21, -inf }
 0x431   :  { %v10849_v25 = vpop.f32.mrb[18].mxu0  ;;  %1751 = vmax.xlane.f32.xlu1 %v1750_v24 }
 0x432   :  { %v8558_v26 = vpop.f32.mrb[19].mxu0  ;;  %v1753_v27 = vsel %vm967_vm13, %v10849_v25, -inf }
 0x433   :  { %1754 = vmax.xlane.f32.xlu0 %v1753_v27  ;;  %v10853_v28 = vpop.f32.mrb[24].mxu1 }
 0x434   :  { %v8563_v30 = vpop.f32.mrb[25].mxu1  ;;  %v1756_v31 = vsel %vm967_vm13, %v10853_v28, -inf }
 0x435   :  { %1757 = vmax.xlane.f32.xlu1 %v1756_v31  ;;  %v10859_v32 = vpop.f32.mrb[26].mxu1 }
 0x436   :  { %v8564_v36 = vpop.f32.mrb[27].mxu1  ;;  %v1759_v37 = vsel %vm967_vm13, %v10859_v32, -inf }
 0x437   :  { %v10865_v39 = vpop.f32.mrb[20].mxu0  ;;  %1760 = vmax.xlane.f32.xlu0 %v1759_v37 }
 0x438   :  { %v1722_v40 = vpop.xlane.xlu0 %1721  ;;  %v8569_v43 = vpop.f32.mrb[21].mxu0  ;;  %v1762_v44 = vsel %vm967_vm13, %v10865_v39, -inf }
 0x439   :  { %v10869_v45 = vpop.f32.mrb[22].mxu0  ;;  %1763 = vmax.xlane.f32.xlu1 %v1762_v44  ;;  %v1816_v48 = vsub.f32 %v10795_v42, %v1722_v40 }
 0x43a   :  { %v1725_v41 = vpop.xlane.xlu1 %1724  ;;  %v8570_v52 = vpop.f32.mrb[23].mxu0  ;;  %v1765_v47 = vsel %vm967_vm13, %v10869_v45, -inf }
 0x43b   :  { %1766 = vmax.xlane.f32.xlu0 %v1765_v47  ;;  %v10874_v54 = vpop.f32.mrb[28].mxu1  ;;  %v1817_v60 = vsub.f32 %v10799_v51, %v1725_v41  ;;  %v1848_v13 = vmul.f32 1.442695, %v1816_v48 }
 0x43c   :  { %v8575_v56 = vpop.f32.mrb[29].mxu1  ;;  %v1768_v59 = vsel %vm967_vm13, %v10874_v54, -inf }
 0x43d   :  { %1769 = vmax.xlane.f32.xlu1 %v1768_v59  ;;  %v10879_v3 = vpop.f32.mrb[30].mxu1  ;;  %v1850_v20 = vmul.f32 1.442695, %v1817_v60  ;;  %9834 = vpow2.f32 %v1848_v13 }
 0x43e   :  { %v8576_v7 = vpop.f32.mrb[31].mxu1  ;;  %v1771_v11 = vsel %vm967_vm13, %v10879_v3, -inf }
 0x43f   :  { %v10883_v15 = vpop.f32.mrb[24].mxu0  ;;  %1772 = vmax.xlane.f32.xlu0 %v1771_v11  ;;  %9836 = vpow2.f32 %v1850_v20 }
 0x440   :  { %v1728_v42 = vpop.xlane.xlu0 %1727  ;;  %v8581_v16 = vpop.f32.mrb[25].mxu0  ;;  %v1774_v19 = vsel %vm967_vm13, %v10883_v15, -inf }
 0x441   :  { %v10887_v23 = vpop.f32.mrb[26].mxu0  ;;  %1775 = vmax.xlane.f32.xlu1 %v1774_v19  ;;  %v1818_v43 = vsub.f32 %v10803_v33, %v1728_v42 }
 0x442   :  { %v8582_v51 = vpop.f32.mrb[27].mxu0  ;;  %v1777_v24 = vsel %vm967_vm13, %v10887_v23, -inf }
 0x443   :  { %1778 = vmax.xlane.f32.xlu0 %v1777_v24  ;;  %v10891_v26 = vpop.f32.mrb[32].mxu1  ;;  %v1852_v60 = vmul.f32 1.442695, %v1818_v43 }
 0x444   :  { %v8587_v27 = vpop.f32.mrb[33].mxu1  ;;  %v1780_v30 = vsel %vm967_vm13, %v10891_v26, -inf  ;;  %v1731_v36 = vpop.xlane.xlu0 %1730 }
 0x445   :  { %1781 = vmax.xlane.f32.xlu1 %v1780_v30  ;;  %v10895_v31 = vpop.f32.mrb[34].mxu1  ;;  %v1819_v47 = vsub.f32 %v10807_v46, %v1731_v36  ;;  %9838 = vpow2.f32 %v1852_v60 }
 0x446   :  { %v8588_v37 = vpop.f32.mrb[35].mxu1  ;;  %v1783_v40 = vsel %vm967_vm13, %v10895_v31, -inf }
 0x447   :  { %v10900_v44 = vpop.f32.mrb[28].mxu0  ;;  %1784 = vmax.xlane.f32.xlu0 %v1783_v40  ;;  %v10913_v13 = vpop.eup %9834  ;;  %v1854_v42 = vmul.f32 1.442695, %v1819_v47 }
 0x448   :  { %v8593_v41 = vpop.f32.mrb[29].mxu0  ;;  %v1786_v52 = vsel %vm967_vm13, %v10900_v44, -inf  ;;  %v1912_v27 = vsel %vm967_vm13, %v10913_v13, 0.0 }
 0x449   :  { %v10905_v48 = vpop.f32.mrb[30].mxu0  ;;  %1787 = vmax.xlane.f32.xlu1 %v1786_v52  ;;  %v10919_v20 = vpop.eup %9836  ;;  %9840 = vpow2.f32 %v1854_v42 }
 0x44a   :  { %v8594_v56 = vpop.f32.mrb[31].mxu0  ;;  %v1789_v59 = vsel %vm967_vm13, %v10905_v48, -inf  ;;  %v1915_v37 = vsel %vm967_vm13, %v10919_v20, 0.0 }
 0x44b   :  { %1790 = vmax.xlane.f32.xlu0 %v1789_v59  ;;  %v10909_v7 = vpop.f32.mrb[36].mxu1 }
 0x44c   :  { %v8599_v33 = vpop.f32.mrb[37].mxu1  ;;  %v1792_v11 = vsel %vm967_vm13, %v10909_v7, -inf }
 0x44d   :  { %1793 = vmax.xlane.f32.xlu1 %v1792_v11  ;;  %v10915_v46 = vpop.f32.mrb[38].mxu1 }
 0x44e   :  { %v8600_v16 = vpop.f32.mrb[39].mxu1  ;;  %v1795_v19 = vsel %vm967_vm13, %v10915_v46, -inf }
 0x44f   :  { %v10921_v51 = vpop.f32.mrb[32].mxu0  ;;  %1796 = vmax.xlane.f32.xlu0 %v1795_v19  ;;  %v10941_v11 = vpop.eup %9838 }
 0x450   :  { %v8605_v24 = vpop.f32.mrb[33].mxu0  ;;  %v1798_v41 = vsel %vm967_vm13, %v10921_v51, -inf }
 0x451   :  { %v10925_v30 = vpop.f32.mrb[34].mxu0  ;;  %1913 = vadd.xlane.f32.xlu1 %v1912_v27  ;;  %v1918_v27 = vsel %vm967_vm13, %v10941_v11, 0.0 }
 0x452   :  { %v8606_v36 = vpop.f32.mrb[35].mxu0  ;;  %v1801_v56 = vsel %vm967_vm13, %v10925_v30, -inf }
 0x453   :  { %1916 = vadd.xlane.f32.xlu0 %v1915_v37  ;;  %v10929_v40 = vpop.f32.mrb[40].mxu1  ;;  %v10947_v24 = vpop.eup %9840 }
 0x454   :  { %v8611_v43 = vpop.f32.mrb[41].mxu1  ;;  %v1804_v33 = vsel %vm967_vm13, %v10929_v40, -inf  ;;  %v1921_v36 = vsel %vm967_vm13, %v10947_v24, 0.0 }
 0x455   :  { %1799 = vmax.xlane.f32.xlu1 %v1798_v41  ;;  %v10933_v52 = vpop.f32.mrb[42].mxu1 }
 0x456   :  { %v8612_v47 = vpop.f32.mrb[43].mxu1  ;;  %v1807_v19 = vsel %vm967_vm13, %v10933_v52, -inf }
 0x457   :  { %v10937_v59 = vpop.f32.mrb[36].mxu0  ;;  %1802 = vmax.xlane.f32.xlu0 %v1801_v56 }
 0x458   :  { %v8617_v60 = vpop.f32.mrb[37].mxu0  ;;  %v1810_v37 = vsel %vm967_vm13, %v10937_v59, -inf }
 0x459   :  { %v10943_v42 = vpop.f32.mrb[38].mxu0  ;;  %1805 = vmax.xlane.f32.xlu1 %v1804_v33 }
 0x45a   :  { %v8618_v16 = vpop.f32.mrb[39].mxu0  ;;  %v1813_v43 = vsel %vm967_vm13, %v10943_v42, -inf }
 0x45b   :  { %1808 = vmax.xlane.f32.xlu0 %v1807_v19 }
 0x45d   :  { %1919 = vadd.xlane.f32.xlu1 %v1918_v27 }
 0x45f   :  { %1922 = vadd.xlane.f32.xlu0 %v1921_v36 }
 0x461   :  { %1811 = vmax.xlane.f32.xlu1 %v1810_v37 }
 0x472   :  { %9170 = vrot.lane.b32.xlu1 %v10651_v49, %s10349_s7 }
 0x475   :  { %9175 = vrot.lane.b32.xlu0 %v10655_v50, %s10363_s9 }
 0x479   :  { %9180 = vrot.lane.b32.xlu0 %v10651_v49, %s10363_s9 }
 0x47d   :  { %9185 = vrot.lane.b32.xlu0 %v10655_v50, %s10364_s26 }
 0x49c   :  { %1814 = vmax.xlane.f32.xlu0 %v1813_v43 }
 0x4ae   :  { %v1734_v41 = vpop.xlane.xlu1 %1733 }
 0x4af   :  { %v1820_v47 = vsub.f32 %v10811_v53, %v1734_v41 }
 0x4b0   :  { %v1737_v60 = vpop.xlane.xlu0 %1736 }
 0x4b1   :  { %v1856_v56 = vmul.f32 1.442695, %v1820_v47  ;;  %v1821_v36 = vsub.f32 %v10815_v57, %v1737_v60 }
 0x4b2   :  { %9190 = vrot.lane.b32.xlu0 %v10651_v49, %s10364_s26 }
 0x4b3   :  { %9842 = vpow2.f32 %v1856_v56  ;;  %v1858_v56 = vmul.f32 1.442695, %v1821_v36 }
 0x4b6   :  { %v1740_v33 = vpop.xlane.xlu1 %1739 }
 0x4b7   :  { %v1822_v16 = vsub.f32 %v10821_v63, %v1740_v33 }
 0x4b8   :  { %v1743_v19 = vpop.xlane.xlu0 %1742 }
 0x4b9   :  { %v1860_v27 = vmul.f32 1.442695, %v1822_v16  ;;  %v1823_v4 = vsub.f32 %v10827_v9, %v1743_v19 }
 0x4ba   :  { %v1746_v37 = vpop.xlane.xlu1 %1745 }
 0x4bb   :  { %9844 = vpow2.f32 %v1860_v27  ;;  %v1824_v43 = vsub.f32 %v10833_v14, %v1746_v37  ;;  %v1862_v33 = vmul.f32 1.442695, %v1823_v4 }
 0x4bc   :  { %v1749_v53 = vpop.xlane.xlu0 %1748 }
 0x4bd   :  { %v10971_v0 = vpop.eup %9842  ;;  %v1864_v41 = vmul.f32 1.442695, %v1824_v43  ;;  %v1825_v14 = vsub.f32 %v10837_v17, %v1749_v53 }
 0x4be   :  { %v1924_v47 = vsel %vm967_vm13, %v10971_v0, 0.0  ;;  %v1752_v38 = vpop.xlane.xlu1 %1751 }
 0x4bf   :  { %1925 = vadd.xlane.f32.xlu1 %v1924_v47  ;;  %9846 = vpow2.f32 %v1864_v41  ;;  %v1826_v63 = vsub.f32 %v10843_v21, %v1752_v38  ;;  %v1866_v9 = vmul.f32 1.442695, %v1825_v14 }
 0x4c0   :  { %v1755_v57 = vpop.xlane.xlu0 %1754  ;;  %9848 = vpow2.f32 %v1858_v56 }
 0x4c1   :  { %v1868_v60 = vmul.f32 1.442695, %v1826_v63  ;;  %v1827_v21 = vsub.f32 %v10849_v25, %v1755_v57 }
 0x4c2   :  { %v1758_v16 = vpop.xlane.xlu1 %1757 }
 0x4c3   :  { %9850 = vpow2.f32 %v1868_v60  ;;  %v1828_v27 = vsub.f32 %v10853_v28, %v1758_v16  ;;  %v1870_v63 = vmul.f32 1.442695, %v1827_v21 }
 0x4c4   :  { %v1761_v37 = vpop.xlane.xlu0 %1760  ;;  %9852 = vpow2.f32 %v1862_v33 }
 0x4c5   :  { %v10979_v43 = vpop.eup %9844  ;;  %v1872_v36 = vmul.f32 1.442695, %v1828_v27  ;;  %v1829_v41 = vsub.f32 %v10859_v32, %v1761_v37 }
 0x4c6   :  { %v1764_v19 = vpop.xlane.xlu1 %1763  ;;  %v1930_v38 = vsel %vm967_vm13, %v10979_v43, 0.0 }
 0x4c7   :  { %9854 = vpow2.f32 %v1872_v36  ;;  %v1830_v4 = vsub.f32 %v10865_v39, %v1764_v19  ;;  %1931 = vadd.xlane.f32.xlu1 %v1930_v38  ;;  %v1874_v39 = vmul.f32 1.442695, %v1829_v41 }
 0x4c8   :  { %v1767_v17 = vpop.xlane.xlu0 %1766  ;;  %9856 = vpow2.f32 %v1866_v9 }
 0x4c9   :  { %v10985_v53 = vpop.eup %9846  ;;  %v1876_v28 = vmul.f32 1.442695, %v1830_v4 }
 0x4ca   :  { %v1770_v47 = vpop.xlane.xlu1 %1769  ;;  %v1936_v56 = vsel %vm967_vm13, %v10985_v53, 0.0  ;;  %v10990_v60 = vpop.eup %9848 }
 0x4cb   :  { %9858 = vpow2.f32 %v1876_v28  ;;  %1937 = vadd.xlane.f32.xlu1 %v1936_v56  ;;  %v1832_v32 = vsub.f32 %v10874_v54, %v1770_v47  ;;  %v1927_v36 = vsel %vm967_vm13, %v10990_v60, 0.0  ;;  %v1831_v54 = vsub.f32 %v10869_v45, %v1767_v17 }
 0x4cc   :  { %v1773_v25 = vpop.xlane.xlu0 %1772  ;;  %9860 = vpow2.f32 %v1870_v63 }
 0x4cd   :  { %v10992_v57 = vpop.eup %9850  ;;  %9862 = vpow2.f32 %v1874_v39  ;;  %v1880_v4 = vmul.f32 1.442695, %v1832_v32  ;;  %v1878_v39 = vmul.f32 1.442695, %v1831_v54  ;;  %v1833_v45 = vsub.f32 %v10879_v3, %v1773_v25 }
 0x4ce   :  { %v1776_v33 = vpop.xlane.xlu1 %1775  ;;  %v1942_v14 = vsel %vm967_vm13, %v10992_v57, 0.0  ;;  %v10998_v27 = vpop.eup %9852 }
 0x4cf   :  { %v1834_v16 = vsub.f32 %v10883_v15, %v1776_v33  ;;  %1943 = vadd.xlane.f32.xlu1 %v1942_v14  ;;  %v1933_v41 = vsel %vm967_vm13, %v10998_v27, 0.0 }
 0x4d0   :  { %v1779_v37 = vpop.xlane.xlu0 %1778 }
 0x4d1   :  { %v11002_v9 = vpop.eup %9854  ;;  %v1884_v19 = vmul.f32 1.442695, %v1834_v16  ;;  %1928 = vadd.xlane.f32.xlu0 %v1927_v36  ;;  %v1882_v36 = vmul.f32 1.442695, %v1833_v45 }
 0x4d2   :  { %v1782_v38 = vpop.xlane.xlu1 %1781  ;;  %v1948_v21 = vsel %vm967_vm13, %v11002_v9, 0.0  ;;  %v11007_v15 = vpop.eup %9856 }
 0x4d3   :  { %9864 = vpow2.f32 %v1884_v19  ;;  %1949 = vadd.xlane.f32.xlu1 %v1948_v21  ;;  %v1939_v33 = vsel %vm967_vm13, %v11007_v15, 0.0  ;;  %v1836_v19 = vsub.f32 %v10891_v26, %v1782_v38  ;;  %v1835_v26 = vsub.f32 %v10887_v23, %v1779_v37 }
 0x4d4   :  { %v1785_v28 = vpop.xlane.xlu0 %1784  ;;  %9866 = vpow2.f32 %v1880_v4 }
 0x4d5   :  { %v11011_v47 = vpop.eup %9858  ;;  %1934 = vadd.xlane.f32.xlu0 %v1933_v41  ;;  %9868 = vpow2.f32 %v1878_v39  ;;  %v1888_v38 = vmul.f32 1.442695, %v1836_v19 }
 0x4d6   :  { %v11013_v56 = vpop.xlane.xlu1 %1787  ;;  %v1954_v63 = vsel %vm967_vm13, %v11011_v47, 0.0  ;;  %v11020_v14 = vpop.eup %9860 }
 0x4d7   :  { %1955 = vadd.xlane.f32.xlu1 %v1954_v63  ;;  %v11026_v54 = vpop.eup %9862  ;;  %v1945_v25 = vsel %vm967_vm13, %v11020_v14, 0.0 }
 0x4d8   :  { %v1791_v17 = vpop.xlane.xlu0 %1790 }
 0x4d9   :  { %v1839_v32 = vsub.f32 %v10905_v48, %v1791_v17  ;;  %1940 = vadd.xlane.f32.xlu0 %v1939_v33  ;;  %v1951_v17 = vsel %vm967_vm13, %v11026_v54, 0.0 }
 0x4da   :  { %v11023_v16 = vpop.xlane.xlu1 %1793 }
 0x4db   :  { %v1894_v21 = vmul.f32 1.442695, %v1839_v32  ;;  %v1886_v32 = vmul.f32 1.442695, %v1835_v26 }
 0x4dc   :  { %v1797_v3 = vpop.xlane.xlu0 %1796 }
 0x4dd   :  { %v11030_v4 = vpop.eup %9864  ;;  %9870 = vpow2.f32 %v1894_v21  ;;  %v1841_v41 = vsub.f32 %v10915_v46, %v1797_v3  ;;  %1946 = vadd.xlane.f32.xlu0 %v1945_v25 }
 0x4de   :  { %v1914_v48 = vpop.xlane.xlu1 %1913  ;;  %v1966_v63 = vsel %vm967_vm13, %v11030_v4, 0.0  ;;  %9872 = vpow2.f32 %v1882_v36  ;;  %v11038_v33 = vpop.eup %9866  ;;  %v1837_v36 = vsub.f32 %v10895_v31, %v1785_v28 }
 0x4df   :  { %v1898_v39 = vmul.f32 1.442695, %v1841_v41  ;;  %1967 = vadd.xlane.f32.xlu1 %v1966_v63  ;;  %9874 = vrcp.f32 %v1914_v48  ;;  %v1960_v23 = vsel %vm967_vm13, %v11038_v33, 0.0  ;;  %v11043_v37 = vpop.eup %9868  ;;  %v1838_v48 = vsub.f32 %v10900_v44, %v11013_v56 }
 0x4e0   :  { %v1917_v45 = vpop.xlane.xlu0 %1916  ;;  %v1890_v41 = vmul.f32 1.442695, %v1837_v36  ;;  %v1957_v28 = vsel %vm967_vm13, %v11043_v37, 0.0 }
 0x4e1   :  { %9876 = vpow2.f32 %v1898_v39  ;;  %1952 = vadd.xlane.f32.xlu0 %v1951_v17  ;;  %v1892_v56 = vmul.f32 1.442695, %v1838_v48 }
 0x4e2   :  { %9878 = vrcp.f32 %v1917_v45  ;;  %v1800_v46 = vpop.xlane.xlu1 %1799  ;;  %v9153_v45 = vunpack.i.h.bf16 %v10845_v22 }
 0x4e3   :  { %9880 = vpow2.f32 %v1888_v38 }
 0x4e4   :  { %v1803_v21 = vpop.xlane.xlu0 %1802  ;;  %9882 = vpow2.f32 %v1886_v32  ;;  %v1840_v32 = vsub.f32 %v10909_v7, %v11023_v16  ;;  %v1842_v7 = vsub.f32 %v10921_v51, %v1800_v46 }
 0x4e5   :  { %v1843_v19 = vsub.f32 %v10925_v30, %v1803_v21  ;;  %1961 = vadd.xlane.f32.xlu0 %v1960_v23  ;;  %v9152_v23 = vunpack.i.l.bf16 %v10845_v22 }
 0x4e6   :  { %v1806_v3 = vpop.xlane.xlu1 %1805  ;;  %v1896_v22 = vmul.f32 1.442695, %v1840_v32 }
 0x4e7   :  { %v11046_v25 = vpop.eup %9870  ;;  %v1902_v63 = vmul.f32 1.442695, %v1843_v19  ;;  %v1844_v51 = vsub.f32 %v10929_v40, %v1806_v3 }
 0x4e8   :  { %v1809_v26 = vpop.xlane.xlu0 %1808  ;;  %v1981_v31 = vsel %vm967_vm13, %v11046_v25, 0.0  ;;  %v11054_v38 = vpop.eup %9872 }
 0x4e9   :  { %9884 = vpow2.f32 %v1902_v63  ;;  %v1845_v30 = vsub.f32 %v10933_v52, %v1809_v26  ;;  %1982 = vadd.xlane.f32.xlu1 %v1981_v31  ;;  %1958 = vadd.xlane.f32.xlu0 %v1957_v28  ;;  %v9875_v39 = vpop.eup %9874  ;;  %v1963_v63 = vsel %vm967_vm13, %v11054_v38, 0.0  ;;  %v953_v31 = vpack.c.bf16 %v9153_v45, %v9152_v23 }
 0x4ea   :  { %v1920_v17 = vpop.xlane.xlu1 %1919  ;;  %9886 = vpow2.f32 %v1890_v41  ;;  %v2040_v41 = vmul.f32 %v9875_v39, %v10913_v13  ;;  %v12332_v13 = vmov 0.0   ;;  %v1900_v39 = vmul.f32 1.442695, %v1842_v7 }
 0x4eb   :  { %v11058_v44 = vpop.eup %9876  ;;  %v1906_v36 = vmul.f32 1.442695, %v1845_v30  ;;  %9888 = vrcp.f32 %v1920_v17  ;;  %v9138_v23 = vunpack.i.h.bf16 %v10823_v1 }
 0x4ec   :  { %v9879_v21 = vpop.eup %9878  ;;  %v1923_v19 = vpop.xlane.xlu0 %1922  ;;  %v1987_v52 = vsel %vm967_vm13, %v11058_v44, 0.0 }
 0x4ed   :  { %v11067_v26 = vpop.eup %9880  ;;  %v2041_v48 = vmul.f32 %v9879_v21, %v10919_v20  ;;  %9890 = vpow2.f32 %v1906_v36  ;;  %1988 = vadd.xlane.f32.xlu1 %v1987_v52  ;;  %1964 = vadd.xlane.f32.xlu0 %v1963_v63  ;;  %v1904_v21 = vmul.f32 1.442695, %v1844_v51 }
 0x4ee   :  { %9892 = vrcp.f32 %v1923_v19  ;;  %v1972_v28 = vsel %vm967_vm13, %v11067_v26, 0.0  ;;  %v11074_v30 = vpop.eup %9882  ;;  %v1812_v46 = vpop.xlane.xlu1 %1811  ;;  %v9137_v19 = vunpack.i.l.bf16 %v10823_v1 }
 0x4ef   :  { %9894 = vpow2.f32 %v1892_v56  ;;  %v2072_v16 = vpack.c.bf16 %v2041_v48, %v2040_v41  ;;  %v1969_v17 = vsel %vm967_vm13, %v11074_v30, 0.0  ;;  %v1846_v40 = vsub.f32 %v10937_v59, %v1812_v46 }
 0x4f0   :  { %9896 = vpow2.f32 %v1896_v22 }
 0x4f1   :  { %8622 = vmatmul.mubr.msk.bf16.vlgmr.msra.gmra.mrb[44].mxu1 %vm967_vm13, %v2072_v16  ;;  %1973 = vadd.xlane.f32.xlu0 %v1972_v28  ;;  %9898 = vpow2.f32 %v1900_v39  ;;  %v1908_v59 = vmul.f32 1.442695, %v1846_v40  ;;  %v954_v16 = vpack.c.bf16 %v9138_v23, %v9137_v19 }
 0x4f2   :  { %8632 = vmatpush3.bf16.msra.mxu1 %v953_v31  ;;  %8633 = vmatprep.mubr.msk.bf16.mxu1 %vm10359_vm12, %v12332_v13  ;;  %9900 = vpow2.f32 %v1904_v21 }
 0x4f3   :  { %v11079_v20 = vpop.eup %9884  ;;  %8643 = vmatprep.subr.bf16.mxu1 %v12332_v13  ;;  %9902 = vpow2.f32 %v1908_v59 }
 0x4f4   :  { %v1993_v45 = vsel %vm967_vm13, %v11079_v20, 0.0  ;;  %v11087_v56 = vpop.eup %9886 }
 0x4f5   :  { %1994 = vadd.xlane.f32.xlu1 %v1993_v45  ;;  %1970 = vadd.xlane.f32.xlu0 %v1969_v17  ;;  %v9889_v32 = vpop.eup %9888  ;;  %v1975_v52 = vsel %vm967_vm13, %v11087_v56, 0.0  ;;  %v11124_v17 = vpop.permute.xlu0 %9175 }
 0x4f6   :  { %v2042_v48 = vmul.f32 %v9889_v32, %v10941_v11 }
 0x4f7   :  { %v11089_v36 = vpop.eup %9890 }
 0x4f8   :  { %v9893_v3 = vpop.eup %9892  ;;  %v1999_v63 = vsel %vm967_vm13, %v11089_v36, 0.0 }
 0x4f9   :  { %v11098_v41 = vpop.eup %9894  ;;  %v2043_v22 = vmul.f32 %v9893_v3, %v10947_v24  ;;  %1976 = vadd.xlane.f32.xlu0 %v1975_v52  ;;  %2000 = vadd.xlane.f32.xlu1 %v1999_v63  ;;  %v11126_v32 = vpop.permute.xlu0 %9180 }
 0x4fa   :  { %v1978_v1 = vsel %vm967_vm13, %v11098_v41, 0.0  ;;  %v11104_v31 = vpop.eup %9896  ;;  %v11139_v63 = vpop.permute.xlu1 %9170 }
 0x4fb   :  { %v2073_v7 = vpack.c.bf16 %v2043_v22, %v2042_v48  ;;  %v1984_v11 = vsel %vm967_vm13, %v11104_v31, 0.0  ;;  %v11112_v24 = vpop.eup %9898 }
 0x4fc   :  { %v1990_v28 = vsel %vm967_vm13, %v11112_v24, 0.0  ;;  %v11116_v39 = vpop.eup %9900 }
 0x4fd   :  { %8628 = vmatmul.mubr.msk.bf16.vlgmr.msra.gmra.mrb[40].mxu0 %vm967_vm13, %v2073_v7  ;;  %1979 = vadd.xlane.f32.xlu0 %v1978_v1  ;;  %v1996_v51 = vsel %vm967_vm13, %v11116_v39, 0.0  ;;  %v11120_v46 = vpop.eup %9902  ;;  %v11130_v21 = vpop.permute.xlu0 %9185 }
 0x4fe   :  { %8638 = vmatpush3.bf16.msra.mxu0 %v954_v16  ;;  %8639 = vmatprep.mubr.msk.bf16.mxu0 %vm10359_vm12, %v12332_v13  ;;  %v2002_v45 = vsel %vm967_vm13, %v11120_v46, 0.0 }
 0x4ff   :  { %8649 = vmatprep.subr.bf16.mxu0 %v12332_v13 }
 0x501   :  { %1985 = vadd.xlane.f32.xlu0 %v1984_v11 }
 0x505   :  { %1991 = vadd.xlane.f32.xlu0 %v1990_v28 }
 0x509   :  { %1997 = vadd.xlane.f32.xlu0 %v1996_v51  ;;  %v9157_v51 = vunpack.i.l.bf16 %v10861_v34 }
 0x50d   :  { %2003 = vadd.xlane.f32.xlu0 %v2002_v45 }
 0x523   :  { %9195 = vrot.lane.b32.xlu0 %v10655_v50, %s12331_s29 }
 0x529   :  { %v1815_v40 = vpop.xlane.xlu0 %1814 }
 0x52a   :  { %v1847_v3 = vsub.f32 %v10943_v42, %v1815_v40 }
 0x52c   :  { %v1910_v23 = vmul.f32 1.442695, %v1847_v3 }
 0x52d   :  { %v11141_v22 = vpop.permute.xlu0 %9190 }
 0x52e   :  { %9904 = vpow2.f32 %v1910_v23 }
 0x538   :  { %v11133_v19 = vpop.eup %9904 }
 0x539   :  { %v2005_v52 = vsel %vm967_vm13, %v11133_v19, 0.0 }
 0x53a   :  { %2006 = vadd.xlane.f32.xlu1 %v2005_v52 }
 0x54b   :  { %9200 = vrot.lane.b32.xlu1 %v10651_v49, %s12331_s29  ;;  %v9158_v49 = vunpack.i.h.bf16 %v10861_v34 }
 0x54c   :  { %v1926_v48 = vpop.xlane.xlu1 %1925 }
 0x54d   :  { %9906 = vrcp.f32 %v1926_v48 }
 0x554   :  { %v1932_v50 = vpop.xlane.xlu1 %1931 }
 0x557   :  { %v9907_v11 = vpop.eup %9906 }
 0x558   :  { %v1938_v59 = vpop.xlane.xlu1 %1937  ;;  %v2044_v45 = vmul.f32 %v9907_v11, %v10971_v0 }
 0x55c   :  { %v1944_v16 = vpop.xlane.xlu1 %1943 }
 0x55e   :  { %v1929_v42 = vpop.xlane.xlu0 %1928 }
 0x55f   :  { %9908 = vrcp.f32 %v1929_v42  ;;  %v9142_v42 = vunpack.i.l.bf16 %v10819_v61 }
 0x560   :  { %9910 = vrcp.f32 %v1932_v50  ;;  %v1950_v3 = vpop.xlane.xlu1 %1949 }
 0x562   :  { %v1935_v7 = vpop.xlane.xlu0 %1934 }
 0x563   :  { %9912 = vrcp.f32 %v1935_v7  ;;  %v955_v7 = vpack.c.bf16 %v9158_v49, %v9157_v51 }
 0x564   :  { %9914 = vrcp.f32 %v1938_v59  ;;  %v9143_v59 = vunpack.i.h.bf16 %v10819_v61  ;;  %v9163_v61 = vunpack.i.h.bf16 %v10839_v18 }
 0x566   :  { %v1941_v1 = vpop.xlane.xlu0 %1940 }
 0x567   :  { %9916 = vrcp.f32 %v1941_v1 }
 0x568   :  { %9918 = vrcp.f32 %v1944_v16 }
 0x569   :  { %v9909_v28 = vpop.eup %9908 }
 0x56a   :  { %v2045_v40 = vmul.f32 %v9909_v28, %v10990_v60  ;;  %v1947_v23 = vpop.xlane.xlu0 %1946  ;;  %v9911_v52 = vpop.eup %9910  ;;  %v9162_v28 = vunpack.i.l.bf16 %v10839_v18  ;;  %v9148_v18 = vunpack.i.h.bf16 %v10829_v10 }
 0x56b   :  { %9920 = vrcp.f32 %v1947_v23  ;;  %v2046_v1 = vmul.f32 %v9911_v52, %v10979_v43  ;;  %v956_v43 = vpack.c.bf16 %v9143_v59, %v9142_v42 }
 0x56c   :  { %v2074_v48 = vpack.c.bf16 %v2045_v40, %v2044_v45  ;;  %9922 = vrcp.f32 %v1950_v3  ;;  %v1956_v40 = vpop.xlane.xlu1 %1955  ;;  %v957_v52 = vpack.c.bf16 %v9163_v61, %v9162_v28  ;;  %v9173_v61 = vunpack.i.h.bf16 %v11139_v63 }
 0x56d   :  { %v9913_v50 = vpop.eup %9912  ;;  %v9172_v28 = vunpack.i.l.bf16 %v11139_v63 }
 0x56e   :  { %v2047_v34 = vmul.f32 %v9913_v50, %v10998_v27  ;;  %8634 = vmatmul.mubr.msk.bf16.vlgmr.msra.gmra.mrb[48].mxu1 %vm967_vm13, %v2074_v48  ;;  %v1953_v0 = vpop.xlane.xlu0 %1952  ;;  %v9915_v60 = vpop.eup %9914 }
 0x56f   :  { %8644 = vmatpush3.bf16.msra.mxu1 %v955_v7  ;;  %9924 = vrcp.f32 %v1953_v0  ;;  %8645 = vmatprep.mubr.msk.bf16.mxu1 %vm10359_vm12, %v12332_v13  ;;  %v2048_v27 = vmul.f32 %v9915_v60, %v10985_v53  ;;  %v9147_v53 = vunpack.i.l.bf16 %v10829_v10  ;;  %v9168_v10 = vunpack.i.h.bf16 %v10855_v29 }
 0x570   :  { %v2075_v16 = vpack.c.bf16 %v2047_v34, %v2046_v1  ;;  %8655 = vmatprep.subr.bf16.mxu1 %v12332_v13  ;;  %9926 = vrcp.f32 %v1956_v40 }
 0x571   :  { %v9917_v11 = vpop.eup %9916  ;;  %v958_v1 = vpack.c.bf16 %v9148_v18, %v9147_v53  ;;  %v960_v18 = vpack.c.bf16 %v9173_v61, %v9172_v28  ;;  %v9193_v61 = vunpack.i.h.bf16 %v11141_v22  ;;  %v9192_v28 = vunpack.i.l.bf16 %v11141_v22 }
 0x572   :  { %v2049_v49 = vmul.f32 %v9917_v11, %v11007_v15  ;;  %8640 = vmatmul.mubr.msk.bf16.vlgmr.msra.gmra.mrb[44].mxu0 %vm967_vm13, %v2075_v16  ;;  %v1962_v51 = vpop.xlane.xlu0 %1961  ;;  %v9919_v45 = vpop.eup %9918 }
 0x573   :  { %8650 = vmatpush3.bf16.msra.mxu0 %v956_v43  ;;  %8651 = vmatprep.mubr.msk.bf16.mxu0 %vm10359_vm12, %v12332_v13  ;;  %v2050_v15 = vmul.f32 %v9919_v45, %v10992_v57  ;;  %v9167_v57 = vunpack.i.l.bf16 %v10855_v29  ;;  %v1968_v11 = vpop.xlane.xlu1 %1967 }
 0x574   :  { %v2076_v3 = vpack.c.bf16 %v2049_v49, %v2048_v27  ;;  %8661 = vmatprep.subr.bf16.mxu0 %v12332_v13 }
 0x575   :  { %v9921_v23 = vpop.eup %9920  ;;  %v959_v16 = vpack.c.bf16 %v9168_v10, %v9167_v57 }
 0x576   :  { %v2051_v48 = vmul.f32 %v9921_v23, %v11020_v14  ;;  %8646 = vmatmul.mubr.msk.bf16.vlgmr.msra.gmra.mrb[52].mxu1 %vm967_vm13, %v2076_v3  ;;  %v1959_v50 = vpop.xlane.xlu0 %1958  ;;  %v9923_v59 = vpop.eup %9922  ;;  %v9178_v23 = vunpack.i.h.bf16 %v11124_v17 }
 0x577   :  { %8656 = vmatpush3.bf16.msra.mxu1 %v957_v52  ;;  %8657 = vmatprep.mubr.msk.bf16.mxu1 %vm10359_vm12, %v12332_v13  ;;  %9928 = vrcp.f32 %v1959_v50  ;;  %v2052_v14 = vmul.f32 %v9923_v59, %v11002_v9  ;;  %v1983_v43 = vpop.xlane.xlu1 %1982  ;;  %v9177_v52 = vunpack.i.l.bf16 %v11124_v17  ;;  %v9183_v59 = vunpack.i.h.bf16 %v11126_v32 }
 0x578   :  { %v2077_v42 = vpack.c.bf16 %v2051_v48, %v2050_v15  ;;  %8667 = vmatprep.subr.bf16.mxu1 %v12332_v13  ;;  %9930 = vrcp.f32 %v1962_v51 }
 0x579   :  { %v9925_v7 = vpop.eup %9924  ;;  %v961_v17 = vpack.c.bf16 %v9178_v23, %v9177_v52 }
 0x57a   :  { %v2053_v34 = vmul.f32 %v9925_v7, %v11026_v54  ;;  %8652 = vmatmul.mubr.msk.bf16.vlgmr.msra.gmra.mrb[48].mxu0 %vm967_vm13, %v2077_v42  ;;  %v1965_v0 = vpop.xlane.xlu0 %1964  ;;  %v9927_v9 = vpop.eup %9926  ;;  %v9182_v42 = vunpack.i.l.bf16 %v11126_v32 }
 0x57b   :  { %8662 = vmatpush3.bf16.msra.mxu0 %v958_v1  ;;  %8663 = vmatprep.mubr.msk.bf16.mxu0 %vm10359_vm12, %v12332_v13  ;;  %9932 = vrcp.f32 %v1965_v0  ;;  %v2054_v49 = vmul.f32 %v9927_v9, %v11011_v47  ;;  %v1989_v47 = vpop.xlane.xlu1 %1988 }
 0x57c   :  { %v2078_v60 = vpack.c.bf16 %v2053_v34, %v2052_v14  ;;  %8673 = vmatprep.subr.bf16.mxu0 %v12332_v13  ;;  %9934 = vrcp.f32 %v1968_v11  ;;  %v9188_v14 = vunpack.i.h.bf16 %v11130_v21  ;;  %v9187_v34 = vunpack.i.l.bf16 %v11130_v21 }
 0x57e   :  { %8658 = vmatmul.mubr.msk.bf16.vlgmr.msra.gmra.mrb[56].mxu1 %vm967_vm13, %v2078_v60  ;;  %v1974_v29 = vpop.xlane.xlu0 %1973 }
 0x57f   :  { %8668 = vmatpush3.bf16.msra.mxu1 %v959_v16  ;;  %8669 = vmatprep.mubr.msk.bf16.mxu1 %vm10359_vm12, %v12332_v13  ;;  %v962_v16 = vpack.c.bf16 %v9183_v59, %v9182_v42 }
 0x580   :  { %8679 = vmatprep.subr.bf16.mxu1 %v12332_v13 }
 0x581   :  { %v9929_v54 = vpop.eup %9928 }
 0x582   :  { %v1971_v27 = vpop.xlane.xlu0 %1970  ;;  %v2055_v51 = vmul.f32 %v9929_v54, %v11043_v37  ;;  %v9931_v45 = vpop.eup %9930 }
 0x583   :  { %9936 = vrcp.f32 %v1971_v27  ;;  %v2056_v63 = vmul.f32 %v9931_v45, %v11038_v33  ;;  %v1995_v50 = vpop.xlane.xlu1 %1994  ;;  %v964_v45 = vpack.c.bf16 %v9193_v61, %v9192_v28 }
 0x584   :  { %v2079_v40 = vpack.c.bf16 %v2055_v51, %v2054_v49  ;;  %9938 = vrcp.f32 %v1974_v29 }
 0x585   :  { %v9933_v3 = vpop.eup %9932 }
 0x586   :  { %v1977_v53 = vpop.xlane.xlu0 %1976  ;;  %v2057_v15 = vmul.f32 %v9933_v3, %v11054_v38  ;;  %8664 = vmatmul.mubr.msk.bf16.vlgmr.msra.gmra.mrb[52].mxu0 %vm967_vm13, %v2079_v40  ;;  %v9935_v33 = vpop.eup %9934 }
 0x587   :  { %8674 = vmatpush3.bf16.msra.mxu0 %v960_v18  ;;  %9940 = vrcp.f32 %v1977_v53  ;;  %8675 = vmatprep.mubr.msk.bf16.mxu0 %vm10359_vm12, %v12332_v13  ;;  %v2058_v10 = vmul.f32 %v9935_v33, %v11030_v4  ;;  %v2001_v11 = vpop.xlane.xlu1 %2000 }
 0x588   :  { %9942 = vrcp.f32 %v1983_v43  ;;  %v2080_v37 = vpack.c.bf16 %v2057_v15, %v2056_v63  ;;  %8685 = vmatprep.subr.bf16.mxu0 %v12332_v13 }
 0x58a   :  { %v1980_v48 = vpop.xlane.xlu0 %1979  ;;  %8670 = vmatmul.mubr.msk.bf16.vlgmr.msra.gmra.mrb[60].mxu1 %vm967_vm13, %v2080_v37 }
 0x58b   :  { %9944 = vrcp.f32 %v1980_v48  ;;  %8680 = vmatpush3.bf16.msra.mxu1 %v961_v17  ;;  %8681 = vmatprep.mubr.msk.bf16.mxu1 %vm10359_vm12, %v12332_v13 }
 0x58c   :  { %9946 = vrcp.f32 %v1989_v47  ;;  %8691 = vmatprep.subr.bf16.mxu1 %v12332_v13 }
 0x58d   :  { %v9937_v38 = vpop.eup %9936 }
 0x58e   :  { %v1986_v7 = vpop.xlane.xlu0 %1985  ;;  %v2059_v57 = vmul.f32 %v9937_v38, %v11074_v30  ;;  %v9939_v1 = vpop.eup %9938  ;;  %v963_v30 = vpack.c.bf16 %v9188_v14, %v9187_v34 }
 0x58f   :  { %9948 = vrcp.f32 %v1986_v7  ;;  %v2060_v32 = vmul.f32 %v9939_v1, %v11067_v26 }
 0x590   :  { %9950 = vrcp.f32 %v1995_v50  ;;  %v2081_v0 = vpack.c.bf16 %v2059_v57, %v2058_v10 }
 0x591   :  { %v9941_v60 = vpop.eup %9940 }
 0x592   :  { %v1992_v29 = vpop.xlane.xlu0 %1991  ;;  %v9943_v9 = vpop.eup %9942  ;;  %v2061_v54 = vmul.f32 %v9941_v60, %v11087_v56  ;;  %8676 = vmatmul.mubr.msk.bf16.vlgmr.msra.gmra.mrb[56].mxu0 %vm967_vm13, %v2081_v0 }
 0x593   :  { %9952 = vrcp.f32 %v1992_v29  ;;  %8686 = vmatpush3.bf16.msra.mxu0 %v962_v16  ;;  %8687 = vmatprep.mubr.msk.bf16.mxu0 %vm10359_vm12, %v12332_v13  ;;  %v2063_v26 = vmul.f32 %v9943_v9, %v11046_v25  ;;  %v12333_v29 = vmov 0  }
 0x594   :  { %9954 = vrcp.f32 %v2001_v11  ;;  %v2082_v21 = vpack.c.bf16 %v2061_v54, %v2060_v32  ;;  %8697 = vmatprep.subr.bf16.mxu0 %v12332_v13 }
 0x595   :  { %v9945_v4 = vpop.eup %9944 }
 0x596   :  { %v2062_v56 = vmul.f32 %v9945_v4, %v11098_v41  ;;  %v1998_v43 = vpop.xlane.xlu0 %1997  ;;  %v9947_v27 = vpop.eup %9946  ;;  %8682 = vmatmul.mubr.msk.bf16.vlgmr.msra.gmra.mrb[64].mxu1 %vm967_vm13, %v2082_v21 }
 0x597   :  { %9956 = vrcp.f32 %v1998_v43  ;;  %8692 = vmatpush3.bf16.msra.mxu1 %v963_v30  ;;  %8693 = vmatprep.mubr.msk.bf16.mxu1 %vm10359_vm12, %v12332_v13  ;;  %v2065_v22 = vmul.f32 %v9947_v27, %v11058_v44 }
 0x598   :  { %v2083_v49 = vpack.c.bf16 %v2063_v26, %v2062_v56  ;;  %8703 = vmatprep.subr.bf16.mxu1 %v12332_v13 }
 0x599   :  { %v9949_v51 = vpop.eup %9948 }
 0x59a   :  { %v2064_v25 = vmul.f32 %v9949_v51, %v11104_v31  ;;  %v2004_v40 = vpop.xlane.xlu0 %2003  ;;  %v9951_v41 = vpop.eup %9950  ;;  %8688 = vmatmul.mubr.msk.bf16.vlgmr.msra.gmra.mrb[60].mxu0 %vm967_vm13, %v2083_v49 }
 0x59b   :  { %8698 = vmatpush3.bf16.msra.mxu0 %v964_v45  ;;  %8699 = vmatprep.mubr.msk.bf16.mxu0 %vm10359_vm12, %v12332_v13  ;;  %v2067_v52 = vmul.f32 %v9951_v41, %v11079_v20  ;;  %9958 = vrcp.f32 %v2004_v40 }
 0x59c   :  { %v2084_v3 = vpack.c.bf16 %v2065_v22, %v2064_v25  ;;  %8709 = vmatprep.subr.bf16.mxu0 %v12332_v13 }
 0x59d   :  { %v9953_v23 = vpop.eup %9952 }
 0x59e   :  { %v2066_v18 = vmul.f32 %v9953_v23, %v11112_v24  ;;  %v9196_v53 = vpop.permute.xlu0 %9195  ;;  %v9955_v44 = vpop.eup %9954  ;;  %8694 = vmatmul.mubr.msk.bf16.vlgmr.msra.gmra.mrb[68].mxu1 %vm967_vm13, %v2084_v3 }
 0x59f   :  { %v9198_v63 = vunpack.i.h.bf16 %v9196_v53  ;;  %v9197_v31 = vunpack.i.l.bf16 %v9196_v53  ;;  %8705 = vmatprep.mubr.msk.bf16.mxu1 %vm10359_vm12, %v12332_v13  ;;  %v2069_v17 = vmul.f32 %v9955_v44, %v11089_v36 }
 0x5a0   :  { %v2085_v15 = vpack.c.bf16 %v2067_v52, %v2066_v18 }
 0x5a1   :  { %v9957_v47 = vpop.eup %9956  ;;  %v965_v37 = vpack.c.bf16 %v9198_v63, %v9197_v31 }
 0x5a2   :  { %v2068_v48 = vmul.f32 %v9957_v47, %v11116_v39  ;;  %8700 = vmatmul.mubr.msk.bf16.vlgmr.msra.gmra.mrb[64].mxu0 %vm967_vm13, %v2085_v15 }
 0x5a3   :  { %8704 = vmatpush3.bf16.msra.mxu1 %v965_v37  ;;  %8711 = vmatprep.mubr.msk.bf16.mxu0 %vm10359_vm12, %v12332_v13 }
 0x5a4   :  { %v2086_v20 = vpack.c.bf16 %v2069_v17, %v2068_v48 }
 0x5a5   :  { %v9959_v10 = vpop.eup %9958 }
 0x5a6   :  { %8706 = vmatmul.mubr.msk.bf16.vlgmr.msra.gmra.mrb[72].mxu1 %vm967_vm13, %v2086_v20  ;;  %v2070_v0 = vmul.f32 %v9959_v10, %v11120_v46 }
 0x5c4   :  { %v11236_v24 = vpop.f32.mrb[44].mxu1 }
 0x5c5   :  { %v8623_v33 = vpop.f32.mrb[45].mxu1 }
 0x5c6   :  { %v11238_v50 = vpop.f32.mrb[46].mxu1 }
 0x5c7   :  { %v8624_v38 = vpop.f32.mrb[47].mxu1  ;;  %v2007_v59 = vpop.xlane.xlu1 %2006 }
 0x5c8   :  { %9960 = vrcp.f32 %v2007_v59 }
 0x5cb   :  { %v9201_v36 = vpop.permute.xlu1 %9200 }
 0x5cc   :  { %v9203_v39 = vunpack.i.h.bf16 %v9201_v36  ;;  %v9202_v42 = vunpack.i.l.bf16 %v9201_v36 }
 0x5ce   :  { %v966_v7 = vpack.c.bf16 %v9203_v39, %v9202_v42 }
 0x5d0   :  { %v11240_v57 = vpop.f32.mrb[40].mxu0  ;;  %8710 = vmatpush3.bf16.msra.mxu0 %v966_v7 }
 0x5d1   :  { %v8629_v1 = vpop.f32.mrb[41].mxu0 }
 0x5d2   :  { %v9961_v14 = vpop.eup %9960  ;;  %v11242_v34 = vpop.f32.mrb[42].mxu0 }
 0x5d3   :  { %v2071_v60 = vmul.f32 %v9961_v14, %v11133_v19  ;;  %v8630_v16 = vpop.f32.mrb[43].mxu0 }
 0x5d5   :  { %v2087_v11 = vpack.c.bf16 %v2071_v60, %v2070_v0 }
 0x5d7   :  { %8712 = vmatmul.mubr.msk.bf16.vlgmr.msra.gmra.mrb[68].mxu0 %vm967_vm13, %v2087_v11 }
 0x5d8   :  { %3379 = vmatprep.mubr.bf16.mxu0 %v12333_v29 }
 0x641   :  { %v2213_v9 = vpop.f32.mrb[48].mxu1 }
 0x642   :  { %v8635_v32 = vpop.f32.mrb[49].mxu1 }
 0x643   :  { %v2216_v54 = vpop.f32.mrb[50].mxu1 }
 0x644   :  { %v9204_v4 = vpack.i.bf16 %v2216_v54, %v2213_v9  ;;  %v8636_v30 = vpop.f32.mrb[51].mxu1 }
 0x645   :  { %v2257_v21 = vpop.f32.mrb[44].mxu0 }
 0x646   :  { %v8641_v61 = vpop.f32.mrb[45].mxu0  ;;  %9205 = vrot.lane.b32.xlu0 %v9204_v4, %s12331_s29 }
 0x647   :  { %v2260_v28 = vpop.f32.mrb[46].mxu0 }
 0x648   :  { %v9214_v26 = vpack.i.bf16 %v2260_v28, %v2257_v21  ;;  %v8642_v46 = vpop.f32.mrb[47].mxu0 }
 0x649   :  { %v2301_v56 = vpop.f32.mrb[52].mxu1  ;;  %v9603_v46 = vld [vmem:[#allocation7 + $0x8] sm:$0xff]  }
 0x64a   :  { %v8647_v19 = vpop.f32.mrb[53].mxu1 }
 0x64b   :  { %v2304_v43 = vpop.f32.mrb[54].mxu1 }
 0x64c   :  { %v9209_v27 = vpack.i.bf16 %v2304_v43, %v2301_v56  ;;  %v8648_v49 = vpop.f32.mrb[55].mxu1 }
 0x64d   :  { %v2345_v51 = vpop.f32.mrb[48].mxu0 }
 0x64e   :  { %v8653_v45 = vpop.f32.mrb[49].mxu0  ;;  %9210 = vrot.lane.b32.xlu0 %v9209_v27, %s10364_s26 }
 0x64f   :  { %v2348_v22 = vpop.f32.mrb[50].mxu0 }
 0x650   :  { %v9224_v25 = vpack.i.bf16 %v2348_v22, %v2345_v51  ;;  %v8654_v40 = vpop.f32.mrb[51].mxu0  ;;  %v9604_v51 = vld [vmem:[#allocation7 + $0x10] sm:$0xff]  }
 0x651   :  { %v2389_v41 = vpop.f32.mrb[56].mxu1  ;;  %v9605_v40 = vld [vmem:[#allocation7 + $0x18] sm:$0xff]  }
 0x652   :  { %9225 = vrot.lane.b32.xlu1 %v9224_v25, %s10364_s26  ;;  %9215 = vrot.lane.b32.xlu0 %v9214_v26, %s12331_s29  ;;  %v8659_v3 = vpop.f32.mrb[57].mxu1  ;;  %v9602_v26 = vld [vmem:[#allocation7] sm:$0xff]  }
 0x653   :  { %v2392_v23 = vpop.f32.mrb[58].mxu1  ;;  %8715 = vmatprep.subr.bf16.mxu1 %v9602_v26  ;;  %v9607_v3 = vld [vmem:[#allocation7 + $0x28] sm:$0xff]  }
 0x654   :  { %v9219_v52 = vpack.i.bf16 %v2392_v23, %v2389_v41  ;;  %v8660_v18 = vpop.f32.mrb[59].mxu1  ;;  %8716 = vmatpush3.bf16.msra.mxu1 %v9602_v26  ;;  %v9606_v41 = vld [vmem:[#allocation7 + $0x20] sm:$0xff]   ;;  %v9608_v23 = vld [vmem:[#allocation7 + $0x30] sm:$0xff]  }
 0x655   :  { %8717 = vmatprep.subr.bf16.mxu1 %v9603_v46 }
 0x656   :  { %9220 = vrot.lane.b32.xlu0 %v9219_v52, %s10363_s9  ;;  %v9609_v52 = vld [vmem:[#allocation7 + $0x38] sm:$0xff]  }
 0x658   :  { %8718 = vmatpush3.bf16.msra.mxu1 %v9603_v46 }
 0x659   :  { %v2433_v53 = vpop.f32.mrb[52].mxu0  ;;  %8719 = vmatprep.subr.bf16.mxu1 %v9604_v51 }
 0x65a   :  { %v8665_v44 = vpop.f32.mrb[53].mxu0 }
 0x65b   :  { %v2436_v63 = vpop.f32.mrb[54].mxu0 }
 0x65c   :  { %v9234_v31 = vpack.i.bf16 %v2436_v63, %v2433_v53  ;;  %v8666_v15 = vpop.f32.mrb[55].mxu0  ;;  %8720 = vmatpush3.bf16.msra.mxu1 %v9604_v51 }
 0x65d   :  { %v2477_v47 = vpop.f32.mrb[60].mxu1  ;;  %8721 = vmatprep.subr.bf16.mxu1 %v9605_v40 }
 0x65e   :  { %9235 = vrot.lane.b32.xlu1 %v9234_v31, %s10363_s9  ;;  %v8671_v37 = vpop.f32.mrb[61].mxu1 }
 0x65f   :  { %v2480_v17 = vpop.f32.mrb[62].mxu1 }
 0x660   :  { %v9229_v48 = vpack.i.bf16 %v2480_v17, %v2477_v47  ;;  %v8672_v20 = vpop.f32.mrb[63].mxu1  ;;  %8722 = vmatpush3.bf16.msra.mxu1 %v9605_v40 }
 0x661   :  { %8723 = vmatprep.subr.bf16.mxu1 %v9606_v41 }
 0x662   :  { %9230 = vrot.lane.b32.xlu0 %v9229_v48, %s10349_s7 }
 0x664   :  { %8724 = vmatpush3.bf16.msra.mxu1 %v9606_v41 }
 0x665   :  { %v2521_v33 = vpop.f32.mrb[56].mxu0  ;;  %8725 = vmatprep.subr.bf16.mxu1 %v9607_v3 }
 0x666   :  { %v8677_v38 = vpop.f32.mrb[57].mxu0 }
 0x667   :  { %v2524_v59 = vpop.f32.mrb[58].mxu0 }
 0x668   :  { %v9244_v36 = vpack.i.bf16 %v2524_v59, %v2521_v33  ;;  %v8678_v39 = vpop.f32.mrb[59].mxu0  ;;  %8726 = vmatpush3.bf16.msra.mxu1 %v9607_v3 }
 0x669   :  { %v2565_v42 = vpop.f32.mrb[64].mxu1  ;;  %8727 = vmatprep.subr.bf16.mxu1 %v9608_v23 }
 0x66a   :  { %9245 = vrot.lane.b32.xlu1 %v9244_v36, %s10349_s7  ;;  %v8683_v7 = vpop.f32.mrb[65].mxu1 }
 0x66b   :  { %v2568_v10 = vpop.f32.mrb[66].mxu1 }
 0x66c   :  { %v9239_v1 = vpack.i.bf16 %v2568_v10, %v2565_v42  ;;  %v8684_v14 = vpop.f32.mrb[67].mxu1  ;;  %8728 = vmatpush3.bf16.msra.mxu1 %v9608_v23 }
 0x66d   :  { %v2609_v0 = vpop.f32.mrb[60].mxu0  ;;  %8729 = vmatprep.subr.bf16.mxu1 %v9609_v52 }
 0x66e   :  { %v8689_v60 = vpop.f32.mrb[61].mxu0  ;;  %9240 = vrot.lane.b32.xlu0 %v9239_v1, %s10362_s1 }
 0x66f   :  { %v2612_v16 = vpop.f32.mrb[62].mxu0 }
 0x670   :  { %v9254_v11 = vpack.i.bf16 %v2612_v16, %v2609_v0  ;;  %v8690_v9 = vpop.f32.mrb[63].mxu0  ;;  %8730 = vmatpush3.bf16.msra.mxu1 %v9609_v52 }
 0x671   :  { %v2653_v32 = vpop.f32.mrb[68].mxu1 }
 0x672   :  { %9255 = vrot.lane.b32.xlu1 %v9254_v11, %s10362_s1  ;;  %v8695_v54 = vpop.f32.mrb[69].mxu1 }
 0x673   :  { %v2656_v4 = vpop.f32.mrb[70].mxu1 }
 0x674   :  { %v9249_v30 = vpack.i.bf16 %v2656_v4, %v2653_v32  ;;  %v8696_v21 = vpop.f32.mrb[71].mxu1 }
 0x675   :  { %v2697_v61 = vpop.f32.mrb[64].mxu0 }
 0x676   :  { %v8701_v28 = vpop.f32.mrb[65].mxu0  ;;  %9250 = vrot.lane.b32.xlu0 %v9249_v30, %s10361_s23 }
 0x677   :  { %v2700_v56 = vpop.f32.mrb[66].mxu0 }
 0x678   :  { %v9264_v19 = vpack.i.bf16 %v2700_v56, %v2697_v61  ;;  %v8702_v43 = vpop.f32.mrb[67].mxu0 }
 0x679   :  { %v2741_v27 = vpop.f32.mrb[72].mxu1 }
 0x67a   :  { %9265 = vrot.lane.b32.xlu1 %v9264_v19, %s10361_s23  ;;  %v8707_v49 = vpop.f32.mrb[73].mxu1 }
 0x67b   :  { %v2744_v45 = vpop.f32.mrb[74].mxu1 }
 0x67c   :  { %v9259_v22 = vpack.i.bf16 %v2744_v45, %v2741_v27  ;;  %v8708_v25 = vpop.f32.mrb[75].mxu1 }
 0x67e   :  { %9260 = vrot.lane.b32.xlu0 %v9259_v22, %s10360_s3 }
 0x6aa   :  { %v2785_v18 = vpop.f32.mrb[68].mxu0 }
 0x6ab   :  { %v8713_v53 = vpop.f32.mrb[69].mxu0 }
 0x6ac   :  { %v2788_v44 = vpop.f32.mrb[70].mxu0 }
 0x6ad   :  { %v9269_v63 = vpack.i.bf16 %v2788_v44, %v2785_v18  ;;  %v8714_v31 = vpop.f32.mrb[71].mxu0 }
 0x6af   :  { %9270 = vrot.lane.b32.xlu0 %v9269_v63, %s10360_s3 }
 0x6b8   :  { %v9206_v15 = vpop.permute.xlu0 %9205 }
 0x6b9   :  { %v9208_v33 = vunpack.i.h.bf16 %v9206_v15  ;;  %v9207_v38 = vunpack.i.l.bf16 %v9206_v15 }
 0x6bb   :  { %v2849_v14 = vsel %vm967_vm13, %v11238_v50, %v9208_v33  ;;  %v2848_v0 = vsel %vm967_vm13, %v11236_v24, %v9207_v38 }
 0x6c0   :  { %v9211_v47 = vpop.permute.xlu0 %9210 }
 0x6c1   :  { %v9213_v59 = vunpack.i.h.bf16 %v9211_v47  ;;  %v9212_v36 = vunpack.i.l.bf16 %v9211_v47 }
 0x6c3   :  { %v2852_v11 = vsel %vm2850_vm14, %v2849_v14, %v9213_v59  ;;  %v2851_v9 = vsel %vm2850_vm14, %v2848_v0, %v9212_v36 }
 0x6c4   :  { %v9216_v37 = vpop.permute.xlu0 %9215  ;;  %v9226_v51 = vpop.permute.xlu1 %9225 }
 0x6c5   :  { %v9218_v25 = vunpack.i.h.bf16 %v9216_v37  ;;  %v9217_v40 = vunpack.i.l.bf16 %v9216_v37  ;;  %v9228_v3 = vunpack.i.h.bf16 %v9226_v51  ;;  %v9227_v23 = vunpack.i.l.bf16 %v9226_v51  ;;  %v9616_v51 = vld [vmem:[#allocation8 + $0x20] ss:$16 sps:$4 sm:$0xff]  }
 0x6c7   :  { %v2925_v52 = vsel %vm967_vm13, %v11242_v34, %v9218_v25  ;;  %v2924_v18 = vsel %vm967_vm13, %v11240_v57, %v9217_v40 }
 0x6c8   :  { %v9221_v17 = vpop.permute.xlu0 %9220  ;;  %v2927_v37 = vsel %vm2850_vm14, %v2925_v52, %v9228_v3 }
 0x6c9   :  { %v9223_v39 = vunpack.i.h.bf16 %v9221_v17  ;;  %v9222_v42 = vunpack.i.l.bf16 %v9221_v17 }
 0x6cb   :  { %v2855_v4 = vsel %vm2853_vm15, %v2852_v11, %v9223_v39  ;;  %v2854_v30 = vsel %vm2853_vm15, %v2851_v9, %v9222_v42  ;;  %v7949_v11 = vld [vmem:[%s12273_s6] ss:$0 sm:$0xff] }
 0x6d0   :  { %v9236_v45 = vpop.permute.xlu1 %9235 }
 0x6d1   :  { %v9238_v53 = vunpack.i.h.bf16 %v9236_v45  ;;  %v9237_v44 = vunpack.i.l.bf16 %v9236_v45 }
 0x6d3   :  { %v2929_v34 = vsel %vm2853_vm15, %v2927_v37, %v9238_v53  ;;  %v9627_v37 = vld [vmem:[#allocation8 + $0x4c] ss:$16 sps:$4 sm:$0xff]  }
 0x6d4   :  { %v9231_v48 = vpop.permute.xlu0 %9230 }
 0x6d5   :  { %v9233_v10 = vunpack.i.h.bf16 %v9231_v48  ;;  %v9232_v1 = vunpack.i.l.bf16 %v9231_v48  ;;  %v2926_v48 = vsel %vm2850_vm14, %v2924_v18, %v9227_v23 }
 0x6d6   :  { %v2928_v38 = vsel %vm2853_vm15, %v2926_v48, %v9237_v44  ;;  %v9625_v48 = vld [vmem:[#allocation8 + $0x48] ss:$16 sps:$4 sm:$0xff]  }
 0x6d7   :  { %v2858_v21 = vsel %vm2856_vm0, %v2855_v4, %v9233_v10  ;;  %v2857_v50 = vsel %vm2856_vm0, %v2854_v30, %v9232_v1 }
 0x6dc   :  { %v9246_v22 = vpop.permute.xlu1 %9245 }
 0x6dd   :  { %v9248_v31 = vunpack.i.h.bf16 %v9246_v22  ;;  %v9247_v15 = vunpack.i.l.bf16 %v9246_v22 }
 0x6df   :  { %v2930_v59 = vsel %vm2856_vm0, %v2928_v38, %v9247_v15  ;;  %v2931_v57 = vsel %vm2856_vm0, %v2929_v34, %v9248_v31  ;;  %v9633_v38 = vld [vmem:[#allocation8 + $0x6c] ss:$16 sps:$4 sm:$0xff]   ;;  %v9631_v34 = vld [vmem:[#allocation8 + $0x68] ss:$16 sps:$4 sm:$0xff]  }
 0x6e0   :  { %v9241_v20 = vpop.permute.xlu0 %9240 }
 0x6e1   :  { %v9243_v60 = vunpack.i.h.bf16 %v9241_v20  ;;  %v9242_v16 = vunpack.i.l.bf16 %v9241_v20 }
 0x6e3   :  { %v2861_v24 = vsel %vm2859_vm1, %v2858_v21, %v9243_v60  ;;  %v2860_v28 = vsel %vm2859_vm1, %v2857_v50, %v9242_v16 }
 0x6e4   :  { %v9256_v41 = vpop.permute.xlu1 %9255 }
 0x6e5   :  { %v9258_v47 = vunpack.i.h.bf16 %v9256_v41  ;;  %v9257_v17 = vunpack.i.l.bf16 %v9256_v41 }
 0x6e7   :  { %v2932_v39 = vsel %vm2859_vm1, %v2930_v59, %v9257_v17  ;;  %v2933_v42 = vsel %vm2859_vm1, %v2931_v57, %v9258_v47  ;;  %v9622_v47 = vld [vmem:[#allocation8 + $0x40] ss:$16 sps:$4 sm:$0xff]   ;;  %v9624_v17 = vld [vmem:[#allocation8 + $0x44] ss:$16 sps:$4 sm:$0xff]  }
 0x6e8   :  { %v9251_v7 = vpop.permute.xlu0 %9250  ;;  %v9634_v59 = vld [vmem:[#allocation8 + $0x80] ss:$16 sps:$4 sm:$0xff]   ;;  %v9636_v57 = vld [vmem:[#allocation8 + $0x84] ss:$16 sps:$4 sm:$0xff]  }
 0x6e9   :  { %v9253_v32 = vunpack.i.h.bf16 %v9251_v7  ;;  %v9252_v54 = vunpack.i.l.bf16 %v9251_v7 }
 0x6eb   :  { %v2863_v56 = vsel %vm2862_vm2, %v2860_v28, %v9252_v54  ;;  %v2864_v19 = vsel %vm2862_vm2, %v2861_v24, %v9253_v32 }
 0x6ec   :  { %v9266_v63 = vpop.permute.xlu1 %9265 }
 0x6ed   :  { %v9268_v20 = vunpack.i.h.bf16 %v9266_v63  ;;  %v9267_v33 = vunpack.i.l.bf16 %v9266_v63 }
 0x6ef   :  { %v2934_v1 = vsel %vm2862_vm2, %v2932_v39, %v9267_v33  ;;  %v2935_v14 = vsel %vm2862_vm2, %v2933_v42, %v9268_v20  ;;  %v9630_v20 = vld [vmem:[#allocation8 + $0x64] ss:$16 sps:$4 sm:$0xff]   ;;  %v9628_v33 = vld [vmem:[#allocation8 + $0x60] ss:$16 sps:$4 sm:$0xff]   ;;  %v9639_v39 = vld [vmem:[#allocation8 + $0x8c] ss:$16 sps:$4 sm:$0xff]  }
 0x6f0   :  { %v9261_v61 = vpop.permute.xlu0 %9260  ;;  %v9642_v42 = vld [vmem:[#allocation8 + $0xa4] ss:$16 sps:$4 sm:$0xff]  }
 0x6f1   :  { %v9263_v26 = vunpack.i.h.bf16 %v9261_v61  ;;  %v9262_v46 = vunpack.i.l.bf16 %v9261_v61 }
 0x6f3   :  { %v2866_v43 = vsel %vm2865_vm3, %v2863_v56, %v9262_v46  ;;  %v2867_v27 = vsel %vm2865_vm3, %v2864_v19, %v9263_v26  ;;  %v9610_v56 = vld [vmem:[#allocation8] ss:$16 sps:$4 sm:$0xff]   ;;  %v9612_v19 = vld [vmem:[#allocation8 + $0x4] ss:$16 sps:$4 sm:$0xff]  }
 0x6f4   :  { %v2938_v49 = vpack.c.bf16 %v2867_v27, %v2866_v43  ;;  %v9613_v43 = vld [vmem:[#allocation8 + $0x8] ss:$16 sps:$4 sm:$0xff]   ;;  %v9615_v27 = vld [vmem:[#allocation8 + $0xc] ss:$16 sps:$4 sm:$0xff]   ;;  %3347 = vmatprep.subr.bf16.mxu0 %v9612_v19 }
 0x6f5   :  { %3400 = vmatprep.subr.bf16.mxu1 %v9615_v27  ;;  %3348 = vmatpush1.bf16.msra.mxu0 %v9610_v56 }
 0x6f6   :  { %8731 = vmatprep.mubr.bf16.mxu1 %v2938_v49  ;;  %v9618_v49 = vld [vmem:[#allocation8 + $0x24] ss:$16 sps:$4 sm:$0xff]  }
 0x6f7   :  { %3349 = vmatprep.subr.bf16.mxu0 %v9618_v49 }
 0x6f9   :  { %3350 = vmatpush1.bf16.msra.mxu0 %v9616_v51  ;;  %v7958_v51 = vld [vmem:[%s12278_s11] ss:$0 sm:$0xff] }
 0x6fa   :  { %3351 = vmatprep.subr.bf16.mxu0 %v9624_v17 }
 0x6fd   :  { %3352 = vmatpush1.bf16.msra.mxu0 %v9622_v47  ;;  %v9661_v47 = vld [vmem:[#allocation10 + $0x80] sm:$0xff]  }
 0x6fe   :  { %3353 = vmatprep.subr.bf16.mxu0 %v9630_v20 }
 0x701   :  { %3354 = vmatpush1.bf16.msra.mxu0 %v9628_v33  ;;  %v9665_v33 = vld [vmem:[#allocation10 + $0x88] sm:$0xff]  }
 0x702   :  { %3355 = vmatprep.subr.bf16.mxu0 %v9636_v57  ;;  %v9668_v57 = vld [vmem:[#allocation10 + $0x10] sm:$0xff]  }
 0x705   :  { %3356 = vmatpush1.bf16.msra.mxu0 %v9634_v59 }
 0x706   :  { %3357 = vmatprep.subr.bf16.mxu0 %v9642_v42  ;;  %v9671_v42 = vld [vmem:[#allocation10 + $0xd8] sm:$0xff]  }
 0x721   :  { %v9271_v36 = vpop.permute.xlu0 %9270 }
 0x722   :  { %v9273_v7 = vunpack.i.h.bf16 %v9271_v36  ;;  %v9272_v10 = vunpack.i.l.bf16 %v9271_v36  ;;  %v9637_v36 = vld [vmem:[#allocation8 + $0x88] ss:$16 sps:$4 sm:$0xff]  }
 0x724   :  { %v2937_v0 = vsel %vm2865_vm3, %v2935_v14, %v9273_v7  ;;  %v2936_v60 = vsel %vm2865_vm3, %v2934_v1, %v9272_v10  ;;  %v9645_v7 = vld [vmem:[#allocation8 + $0xac] ss:$16 sps:$4 sm:$0xff]   ;;  %v9640_v10 = vld [vmem:[#allocation8 + $0xa0] ss:$16 sps:$4 sm:$0xff]   ;;  %v9643_v1 = vld [vmem:[#allocation8 + $0xa8] ss:$16 sps:$4 sm:$0xff]  }
 0x725   :  { %v2939_v16 = vpack.c.bf16 %v2937_v0, %v2936_v60  ;;  %v9648_v14 = vld [vmem:[#allocation8 + $0xc4] ss:$16 sps:$4 sm:$0xff]   ;;  %v9651_v0 = vld [vmem:[#allocation8 + $0xcc] ss:$16 sps:$4 sm:$0xff]   ;;  %3358 = vmatpush1.bf16.msra.mxu0 %v9640_v10  ;;  %v9646_v60 = vld [vmem:[#allocation8 + $0xc0] ss:$16 sps:$4 sm:$0xff]  }
 0x726   :  { %3359 = vmatprep.subr.bf16.mxu0 %v9648_v14  ;;  %v9673_v10 = vld [vmem:[#allocation10 + $0x98] sm:$0xff]   ;;  %v9675_v14 = vld [vmem:[#allocation10 + $0xe0] sm:$0xff]  }
 0x727   :  { %8732 = vmatmul.mubr.bf16.vlgmr.msra.gmra.mrb[76].mxu1 %v2939_v16  ;;  %v9649_v16 = vld [vmem:[#allocation8 + $0xc8] ss:$16 sps:$4 sm:$0xff]  }
 0x728   :  { %3432 = vmatprep.mubr.bf16.mxu1 %v12333_v29  ;;  %3401 = vmatpush1.bf16.msra.mxu1 %v9613_v43 }
 0x729   :  { %3360 = vmatpush1.bf16.msra.mxu0 %v9646_v60  ;;  %v9677_v60 = vld [vmem:[#allocation10 + $0xa0] sm:$0xff]  }
 0x7fa   :  { %v8733_v9 = vpop.f32.mrb[76].mxu1 }
 0x7fb   :  { %v3045_v32 = vpop.f32.mrb[77].mxu1  ;;  %v3054_v24 = vadd.f32 %v8733_v9, %v7949_v11  ;;  %v9657_v9 = vld [vmem:[#allocation8 + $0xec] ss:$16 sps:$4 sm:$0xff]  }
 0x7fc   :  { %v3046_v54 = vadd.f32 %v7949_v11, %v3045_v32  ;;  %v8734_v4 = vpop.f32.mrb[78].mxu1  ;;  %v9652_v32 = vld [vmem:[#allocation8 + $0xe0] ss:$16 sps:$4 sm:$0xff]  }
 0x7fd   :  { %v3048_v30 = vpop.f32.mrb[79].mxu1  ;;  %v3057_v50 = vadd.f32 %v8734_v4, %v7949_v11  ;;  %v3062_v46 = vadd.f32 %v10597_v62, %v3054_v24  ;;  %v9658_v4 = vld [vmem:[#allocation10 + $0x40] sm:$0xff]  }
 0x7fe   :  { %v3060_v21 = vadd.f32 %v10590_v55, %v3046_v54  ;;  %v3049_v61 = vadd.f32 %v7949_v11, %v3048_v30  ;;  %v9621_v55 = vld [vmem:[#allocation8 + $0x2c] ss:$16 sps:$4 sm:$0xff]   ;;  %v9654_v11 = vld [vmem:[#allocation8 + $0xe4] ss:$16 sps:$4 sm:$0xff]   ;;  %v9655_v54 = vld [vmem:[#allocation8 + $0xe8] ss:$16 sps:$4 sm:$0xff]  }
 0x7ff   :  { %v3063_v26 = vadd.f32 %v10599_v2, %v3057_v50  ;;  %3402 = vmatprep.subr.bf16.mxu1 %v9621_v55  ;;  %3361 = vmatprep.subr.bf16.mxu0 %v9654_v11  ;;  %v9659_v30 = vld [vmem:[#allocation10 + $0xc0] sm:$0xff]   ;;  %v9679_v11 = vld [vmem:[#allocation10 + $0xe8] sm:$0xff]  }
 0x800   :  { %v3061_v28 = vadd.f32 %v10592_v58, %v3049_v61  ;;  %3066 = vadd.xlane.f32.xlu1 %v3060_v21  ;;  %v9619_v58 = vld [vmem:[#allocation8 + $0x28] ss:$16 sps:$4 sm:$0xff]   ;;  %3362 = vmatpush1.bf16.msra.mxu0 %v9652_v32 }
 0x801   :  { %3403 = vmatpush1.bf16.msra.mxu1 %v9619_v58  ;;  %8307 = vmatprep.subr.bf16.mxu0 %v9658_v4  ;;  %v9681_v32 = vld [vmem:[#allocation10 + $0xa8] sm:$0xff]   ;;  %v9683_v4 = vld [vmem:[#allocation10 + $0xf0] sm:$0xff]  }
 0x802   :  { %3068 = vadd.xlane.f32.xlu0 %v3061_v28  ;;  %3404 = vmatprep.subr.bf16.mxu1 %v9627_v37  ;;  %v9663_v37 = vld [vmem:[#allocation10 + $0xc8] sm:$0xff]  }
 0x804   :  { %3072 = vadd.xlane.f32.xlu1 %v3063_v26 }
 0x805   :  { %3405 = vmatpush1.bf16.msra.mxu1 %v9625_v48  ;;  %v9662_v48 = vld [vmem:[#allocation10 + $0x48] sm:$0xff]  }
 0x806   :  { %3070 = vadd.xlane.f32.xlu0 %v3062_v46  ;;  %3406 = vmatprep.subr.bf16.mxu1 %v9633_v38  ;;  %v9666_v38 = vld [vmem:[#allocation10 + $0x50] sm:$0xff]  }
 0x809   :  { %3407 = vmatpush1.bf16.msra.mxu1 %v9631_v34  ;;  %v9667_v34 = vld [vmem:[#allocation10 + $0xd0] sm:$0xff]  }
 0x80a   :  { %3408 = vmatprep.subr.bf16.mxu1 %v9639_v39  ;;  %v9670_v39 = vld [vmem:[#allocation10 + $0x58] sm:$0xff]  }
 0x80d   :  { %3409 = vmatpush1.bf16.msra.mxu1 %v9637_v36  ;;  %v9669_v36 = vld [vmem:[#allocation10 + $0x90] sm:$0xff]  }
 0x80e   :  { %3410 = vmatprep.subr.bf16.mxu1 %v9645_v7  ;;  %v9672_v7 = vld [vmem:[#allocation10 + $0x18] sm:$0xff]  }
 0x811   :  { %3411 = vmatpush1.bf16.msra.mxu1 %v9643_v1  ;;  %v9674_v1 = vld [vmem:[#allocation10 + $0x60] sm:$0xff]  }
 0x812   :  { %3412 = vmatprep.subr.bf16.mxu1 %v9651_v0  ;;  %v9676_v0 = vld [vmem:[#allocation10 + $0x20] sm:$0xff]  }
 0x815   :  { %3413 = vmatpush1.bf16.msra.mxu1 %v9649_v16  ;;  %v9678_v16 = vld [vmem:[#allocation10 + $0x68] sm:$0xff]  }
 0x816   :  { %3414 = vmatprep.subr.bf16.mxu1 %v9657_v9  ;;  %v9680_v9 = vld [vmem:[#allocation10 + $0x28] sm:$0xff]  }
 0x819   :  { %3415 = vmatpush1.bf16.msra.mxu1 %v9655_v54  ;;  %v9682_v54 = vld [vmem:[#allocation10 + $0x70] sm:$0xff]  }
 0x81a   :  { %8335 = vmatprep.subr.bf16.mxu1 %v9659_v30  ;;  %v9684_v30 = vld [vmem:[#allocation10 + $0x30] sm:$0xff]  }
 0x88d   :  { %v3067_v2 = vpop.xlane.xlu1 %3066 }
 0x88e   :  { %v3075_v62 = vmul.f32 0.0078125, %v3067_v2 }
 0x88f   :  { %v3069_v45 = vpop.xlane.xlu0 %3068 }
 0x890   :  { %v11302_v22 = vsub.f32 %v3060_v21, %v3075_v62  ;;  %v3076_v25 = vmul.f32 0.0078125, %v3069_v45 }
 0x891   :  { %v3073_v40 = vpop.xlane.xlu1 %3072 }
 0x892   :  { %v11304_v41 = vsub.f32 %v3061_v28, %v3076_v25  ;;  %v3078_v3 = vmul.f32 0.0078125, %v3073_v40  ;;  %v3083_v23 = vmul.f32 %v11302_v22, %v11302_v22  ;;  %v7959_v25 = vld [vmem:[%s12279_s12] ss:$0 sm:$0xff] }
 0x893   :  { %v3071_v52 = vpop.xlane.xlu0 %3070 }
 0x894   :  { %v11308_v18 = vsub.f32 %v3063_v26, %v3078_v3  ;;  %v3077_v53 = vmul.f32 0.0078125, %v3071_v52  ;;  %3087 = vadd.xlane.f32.xlu0 %v3083_v23  ;;  %v3084_v44 = vmul.f32 %v11304_v41, %v11304_v41 }
 0x896   :  { %v11312_v63 = vsub.f32 %v3062_v46, %v3077_v53  ;;  %3089 = vadd.xlane.f32.xlu1 %v3084_v44  ;;  %v3086_v15 = vmul.f32 %v11308_v18, %v11308_v18 }
 0x898   :  { %v3085_v31 = vmul.f32 %v11312_v63, %v11312_v63 }
 0x89a   :  { %3091 = vadd.xlane.f32.xlu0 %v3085_v31  ;;  %3093 = vadd.xlane.f32.xlu1 %v3086_v15  ;;  %v9660_v15 = vld [vmem:[#allocation10] sm:$0xff]  }
 0x921   :  { %v3088_v21 = vpop.xlane.xlu0 %3087 }
 0x922   :  { %v3095_v50 = vmul.f32 0.0078125, %v3088_v21  ;;  %v9685_v21 = vld [vmem:[#allocation10 + $0xb0] sm:$0xff]  }
 0x923   :  { %v3090_v61 = vpop.xlane.xlu1 %3089 }
 0x924   :  { %v3099_v24 = vadd.f32 1e-05, %v3095_v50  ;;  %v3096_v28 = vmul.f32 0.0078125, %v3090_v61  ;;  %v9686_v50 = vld [vmem:[#allocation10 + $0x78] sm:$0xff]  }
 0x925   :  { %v9687_v61 = vld [vmem:[#allocation10 + $0xf8] sm:$0xff]  }
 0x926   :  { %9962 = vrsqrt.f32 %v3099_v24  ;;  %v3100_v26 = vadd.f32 1e-05, %v3096_v28  ;;  %v9688_v24 = vld [vmem:[#allocation10 + $0x38] sm:$0xff]  }
 0x927   :  { %v3092_v46 = vpop.xlane.xlu0 %3091  ;;  %v3094_v56 = vpop.xlane.xlu1 %3093  ;;  %v9689_v28 = vld [vmem:[#allocation10 + $0xb8] sm:$0xff]  }
 0x928   :  { %9964 = vrsqrt.f32 %v3100_v26  ;;  %v3097_v19 = vmul.f32 0.0078125, %v3092_v46  ;;  %v3098_v43 = vmul.f32 0.0078125, %v3094_v56  ;;  %v3165_v26 = vld [vmem:[%s12275_s8] sm:$0xf]  ;;  %v12306_v46 = vsub.s32 3, %v10610_v5 }
 0x929   :  { %v3170_v56 = vrot.slane %v3165_v26, %v10613_v6 }
 0x92a   :  { %v3101_v27 = vadd.f32 1e-05, %v3097_v19  ;;  %v3102_v49 = vadd.f32 1e-05, %v3098_v43  ;;  %v3178_v19 = vrot.slane %v3165_v26, %v10624_v12  ;;  %v3174_v43 = vrot.slane %v3165_v26, %v10619_v8 }
 0x92c   :  { %9966 = vrsqrt.f32 %v3101_v27  ;;  %v3182_v27 = vrot.slane %v3165_v26, %v12306_v46 }
 0x92d   :  { %9968 = vrsqrt.f32 %v3102_v49 }
 0x930   :  { %v9963_v55 = vpop.eup %9962 }
 0x931   :  { %v3107_v58 = vmul.f32 %v9963_v55, %v11302_v22 }
 0x932   :  { %v9965_v2 = vpop.eup %9964 }
 0x933   :  { %v3108_v62 = vmul.f32 %v9965_v2, %v11304_v41  ;;  %v3117_v45 = vmul.f32 %v7958_v51, %v3107_v58 }
 0x935   :  { %v3118_v40 = vmul.f32 %v7958_v51, %v3108_v62  ;;  %v11326_v52 = vadd.f32 %v7959_v25, %v3117_v45 }
 0x936   :  { %v9967_v3 = vpop.eup %9966 }
 0x937   :  { %v9969_v23 = vpop.eup %9968  ;;  %v11328_v53 = vadd.f32 %v7959_v25, %v3118_v40  ;;  %v3109_v44 = vmul.f32 %v9967_v3, %v11312_v63 }
 0x938   :  { %v3110_v31 = vmul.f32 %v9969_v23, %v11308_v18  ;;  %v9664_v18 = vld [vmem:[#allocation10 + $0x8] sm:$0xff]  }
 0x939   :  { %v3131_v22 = vpack.c.bf16 %v11328_v53, %v11326_v52  ;;  %v3119_v41 = vmul.f32 %v7958_v51, %v3109_v44 }
 0x93a   :  { %v3120_v17 = vmul.f32 %v7958_v51, %v3110_v31 }
 0x93b   :  { %3380 = vmatmul.mubr.bf16.vlgmr.msra.gmra.mrb[72].mxu0 %v3131_v22  ;;  %3433 = vmatmul.mubr.bf16.vlgmr.msra.gmra.mrb[80].mxu1 %v3131_v22  ;;  %v11336_v20 = vadd.f32 %v7959_v25, %v3119_v41 }
 0x93c   :  { %3389 = vmatprep.mubr.bf16.mxu0 %v12333_v29  ;;  %3442 = vmatprep.mubr.bf16.mxu1 %v12333_v29  ;;  %v11338_v63 = vadd.f32 %v7959_v25, %v3120_v17 }
 0x93d   :  { %8308 = vmatpush3.bf16.msra.mxu0 %v9660_v15  ;;  %8336 = vmatpush3.bf16.msra.mxu1 %v9661_v47 }
 0x93e   :  { %8309 = vmatprep.subr.bf16.mxu0 %v9662_v48  ;;  %8337 = vmatprep.subr.bf16.mxu1 %v9663_v37  ;;  %v3132_v59 = vpack.c.bf16 %v11338_v63, %v11336_v20 }
 0x941   :  { %8310 = vmatpush3.bf16.msra.mxu0 %v9664_v18  ;;  %8338 = vmatpush3.bf16.msra.mxu1 %v9665_v33 }
 0x942   :  { %8311 = vmatprep.subr.bf16.mxu0 %v9666_v38  ;;  %8339 = vmatprep.subr.bf16.mxu1 %v9667_v34 }
 0x943   :  { %3390 = vmatmul.mubr.bf16.gmra.mrb[76].mxu0 %v3132_v59  ;;  %3443 = vmatmul.mubr.bf16.gmra.mrb[84].mxu1 %v3132_v59 }
 0x945   :  { %8312 = vmatpush3.bf16.msra.mxu0 %v9668_v57  ;;  %8340 = vmatpush3.bf16.msra.mxu1 %v9669_v36 }
 0x946   :  { %8313 = vmatprep.subr.bf16.mxu0 %v9670_v39  ;;  %8341 = vmatprep.subr.bf16.mxu1 %v9671_v42 }
 0x949   :  { %8314 = vmatpush3.bf16.msra.mxu0 %v9672_v7  ;;  %8342 = vmatpush3.bf16.msra.mxu1 %v9673_v10 }
 0x94a   :  { %8315 = vmatprep.subr.bf16.mxu0 %v9674_v1  ;;  %8343 = vmatprep.subr.bf16.mxu1 %v9675_v14 }
 0x94d   :  { %8316 = vmatpush3.bf16.msra.mxu0 %v9676_v0  ;;  %8344 = vmatpush3.bf16.msra.mxu1 %v9677_v60 }
 0x94e   :  { %8317 = vmatprep.subr.bf16.mxu0 %v9678_v16  ;;  %8345 = vmatprep.subr.bf16.mxu1 %v9679_v11 }
 0x951   :  { %8318 = vmatpush3.bf16.msra.mxu0 %v9680_v9  ;;  %8346 = vmatpush3.bf16.msra.mxu1 %v9681_v32 }
 0x952   :  { %8319 = vmatprep.subr.bf16.mxu0 %v9682_v54  ;;  %8347 = vmatprep.subr.bf16.mxu1 %v9683_v4 }
 0x955   :  { %8320 = vmatpush3.bf16.msra.mxu0 %v9684_v30  ;;  %8348 = vmatpush3.bf16.msra.mxu1 %v9685_v21 }
 0x956   :  { %8321 = vmatprep.subr.bf16.mxu0 %v9686_v50  ;;  %8349 = vmatprep.subr.bf16.mxu1 %v9687_v61 }
 0x959   :  { %8322 = vmatpush3.bf16.msra.mxu0 %v9688_v24  ;;  %8350 = vmatpush3.bf16.msra.mxu1 %v9689_v28 }
 0xa0e   :  { %v3381_v49 = vpop.f32.mrb[72].mxu0  ;;  %v3434_v55 = vpop.f32.mrb[80].mxu1 }
 0xa0f   :  { %v3382_v51 = vadd.f32 %v3381_v49, %v3170_v56  ;;  %v3435_v58 = vadd.f32 %v3434_v55, %v3178_v19  ;;  %v3383_v2 = vpop.f32.mrb[73].mxu0  ;;  %v3436_v62 = vpop.f32.mrb[81].mxu1 }
 0xa10   :  { %v3384_v45 = vadd.f32 %v3383_v2, %v3174_v43  ;;  %v3437_v25 = vadd.f32 %v3436_v62, %v3182_v27  ;;  %v3385_v40 = vpop.f32.mrb[74].mxu0  ;;  %v3438_v3 = vpop.f32.mrb[82].mxu1 }
 0xa11   :  { %v3386_v23 = vadd.f32 %v3385_v40, %v3170_v56  ;;  %v3439_v44 = vadd.f32 %v3438_v3, %v3178_v19  ;;  %v3387_v31 = vpop.f32.mrb[75].mxu0  ;;  %v3440_v22 = vpop.f32.mrb[83].mxu1  ;;  %v3453_v47 = vmax.f32 %v3382_v51, 0.0  ;;  %v3455_v17 = vmax.f32 %v3435_v58, 0.0 }
 0xa12   :  { %v3388_v41 = vadd.f32 %v3387_v31, %v3174_v43  ;;  %v3441_v15 = vadd.f32 %v3440_v22, %v3182_v27  ;;  %v3454_v18 = vmax.f32 %v3384_v45, 0.0  ;;  %v3456_v33 = vmax.f32 %v3437_v25, 0.0 }
 0xa13   :  { %v3457_v48 = vmax.f32 %v3386_v23, 0.0  ;;  %v3459_v37 = vmax.f32 %v3439_v44, 0.0 }
 0xa14   :  { %v3458_v38 = vmax.f32 %v3388_v41, 0.0  ;;  %v3460_v34 = vmax.f32 %v3441_v15, 0.0 }
 0xa15   :  { %v3469_v59 = vpack.c.bf16 %v3457_v48, %v3453_v47  ;;  %v3471_v57 = vpack.c.bf16 %v3459_v37, %v3455_v17 }
 0xa16   :  { %v3470_v36 = vpack.c.bf16 %v3458_v38, %v3454_v18  ;;  %v3472_v39 = vpack.c.bf16 %v3460_v34, %v3456_v33  ;;  %v3391_v42 = vpop.f32.mrb[76].mxu0  ;;  %v3444_v7 = vpop.f32.mrb[84].mxu1 }
 0xa17   :  { %v3392_v10 = vadd.f32 %v3391_v42, %v3170_v56  ;;  %v3445_v1 = vadd.f32 %v3444_v7, %v3178_v19  ;;  %v3393_v14 = vpop.f32.mrb[77].mxu0  ;;  %v3446_v0 = vpop.f32.mrb[85].mxu1 }
 0xa18   :  { %v3394_v60 = vadd.f32 %v3393_v14, %v3174_v43  ;;  %v3447_v16 = vadd.f32 %v3446_v0, %v3182_v27  ;;  %v3395_v11 = vpop.f32.mrb[78].mxu0  ;;  %v3448_v9 = vpop.f32.mrb[86].mxu1  ;;  %3772 = vmatprep.mubr.bf16.mxu0 %v3470_v36  ;;  %3821 = vmatprep.mubr.bf16.mxu1 %v3472_v39 }
 0xa19   :  { %v3396_v32 = vadd.f32 %v3395_v11, %v3170_v56  ;;  %v3449_v54 = vadd.f32 %v3448_v9, %v3178_v19  ;;  %v3397_v4 = vpop.f32.mrb[79].mxu0  ;;  %v3450_v30 = vpop.f32.mrb[87].mxu1  ;;  %3773 = vmatmul.mubr.bf16.vlgmr.msra.gmra.mrb[80].mxu0 %v3469_v59  ;;  %3822 = vmatmul.mubr.bf16.vlgmr.msra.gmra.mrb[88].mxu1 %v3471_v57  ;;  %v3461_v61 = vmax.f32 %v3392_v10, 0.0  ;;  %v3463_v24 = vmax.f32 %v3445_v1, 0.0 }
 0xa1a   :  { %v3398_v21 = vadd.f32 %v3397_v4, %v3174_v43  ;;  %v3451_v50 = vadd.f32 %v3450_v30, %v3182_v27  ;;  %v3462_v49 = vmax.f32 %v3394_v60, 0.0  ;;  %v3464_v55 = vmax.f32 %v3447_v16, 0.0  ;;  %v7992_v43 = vld [vmem:[%s12277_s10] ss:$0 sm:$0xff]  ;;  %v9692_v30 = vld [vmem:[#allocation5 + $0xc4] ss:$12 sps:$4 sm:$0xff]  }
 0xa1b   :  { %v3465_v28 = vmax.f32 %v3396_v32, 0.0  ;;  %v3467_v26 = vmax.f32 %v3449_v54, 0.0  ;;  %v9690_v4 = vld [vmem:[#allocation5 + $0xc0] ss:$12 sps:$4 sm:$0xff]   ;;  %4089 = vmatprep.subr.bf16.mxu0 %v9692_v30 }
 0xa1c   :  { %v3466_v51 = vmax.f32 %v3398_v21, 0.0  ;;  %v3468_v58 = vmax.f32 %v3451_v50, 0.0  ;;  %v9695_v21 = vld [vmem:[#allocation5 + $0xdc] ss:$12 sps:$4 sm:$0xff]   ;;  %4090 = vmatpush1.bf16.msra.mxu0 %v9690_v4 }
 0xa1d   :  { %v3473_v2 = vpack.c.bf16 %v3465_v28, %v3461_v61  ;;  %v3475_v62 = vpack.c.bf16 %v3467_v26, %v3463_v24  ;;  %4091 = vmatprep.subr.bf16.mxu0 %v9695_v21  ;;  %v8026_v21 = vld [vmem:[%s12281_s14] ss:$0 sm:$0xff] }
 0xa1e   :  { %v3474_v45 = vpack.c.bf16 %v3466_v51, %v3462_v49  ;;  %v3476_v25 = vpack.c.bf16 %v3468_v58, %v3464_v55 }
 0xa20   :  { %3780 = vmatprep.mubr.bf16.mxu0 %v3474_v45  ;;  %3829 = vmatprep.mubr.bf16.mxu1 %v3476_v25 }
 0xa21   :  { %3781 = vmatmul.mubr.bf16.gmra.mrb[84].mxu0 %v3473_v2  ;;  %3830 = vmatmul.mubr.bf16.gmra.mrb[92].mxu1 %v3475_v62 }
 0xa22   :  { %4121 = vmatprep.mubr.bf16.mxu0 %v12333_v29 }
 0xaec   :  { %v8323_v56 = vpop.f32.mrb[80].mxu0  ;;  %v8351_v19 = vpop.f32.mrb[88].mxu1 }
 0xaed   :  { %v8324_v27 = vpop.f32.mrb[81].mxu0  ;;  %v8352_v40 = vpop.f32.mrb[89].mxu1 }
 0xaee   :  { %v8325_v3 = vadd.f32 %v8324_v27, %v8323_v56  ;;  %v8353_v23 = vadd.f32 %v8352_v40, %v8351_v19  ;;  %v8326_v44 = vpop.f32.mrb[82].mxu0  ;;  %v8354_v31 = vpop.f32.mrb[90].mxu1  ;;  %v9698_v19 = vld [vmem:[#allocation5 + $0xf4] ss:$12 sps:$4 sm:$0xff]   ;;  %v9696_v27 = vld [vmem:[#allocation5 + $0xf0] ss:$12 sps:$4 sm:$0xff]  }
 0xaef   :  { %v8327_v22 = vpop.f32.mrb[83].mxu0  ;;  %v8355_v41 = vpop.f32.mrb[91].mxu1  ;;  %v9702_v40 = vld [vmem:[#allocation5 + $0x10c] ss:$12 sps:$4 sm:$0xff]  }
 0xaf0   :  { %v3775_v15 = vadd.f32 %v8325_v3, %v7992_v43  ;;  %v8328_v47 = vadd.f32 %v8327_v22, %v8326_v44  ;;  %v8356_v17 = vadd.f32 %v8355_v41, %v8354_v31  ;;  %v9703_v3 = vld [vmem:[#allocation5 + $0xe0] ss:$12 sps:$4 sm:$0xff]   ;;  %v9706_v44 = vld [vmem:[#allocation5 + $0x124] ss:$12 sps:$4 sm:$0xff]   ;;  %v9710_v41 = vld [vmem:[#allocation5 + $0x13c] ss:$12 sps:$4 sm:$0xff]  }
 0xaf1   :  { %v9707_v31 = vld [vmem:[#allocation5 + $0xf8] ss:$12 sps:$4 sm:$0xff]   ;;  %v9704_v22 = vld [vmem:[#allocation5 + $0x120] ss:$12 sps:$4 sm:$0xff]  }
 0xaf2   :  { %v3824_v48 = vadd.f32 %v8353_v23, %v3775_v15  ;;  %v3778_v37 = vadd.f32 %v8328_v47, %v7992_v43  ;;  %v9700_v23 = vld [vmem:[#allocation5 + $0x108] ss:$12 sps:$4 sm:$0xff]   ;;  %v9711_v15 = vld [vmem:[#allocation5 + $0x110] ss:$12 sps:$4 sm:$0xff]   ;;  %v9708_v47 = vld [vmem:[#allocation5 + $0x138] ss:$12 sps:$4 sm:$0xff]  }
 0xaf4   :  { %v3827_v18 = vadd.f32 %v8356_v17, %v3778_v37  ;;  %v8329_v33 = vpop.f32.mrb[84].mxu0  ;;  %v8357_v38 = vpop.f32.mrb[92].mxu1  ;;  %v3838_v34 = vadd.f32 %v3824_v48, %v11326_v52  ;;  %v9714_v17 = vld [vmem:[#allocation5 + $0x154] ss:$12 sps:$4 sm:$0xff]   ;;  %v9712_v37 = vld [vmem:[#allocation5 + $0x150] ss:$12 sps:$4 sm:$0xff]  }
 0xaf5   :  { %v8330_v59 = vpop.f32.mrb[85].mxu0  ;;  %v8358_v57 = vpop.f32.mrb[93].mxu1  ;;  %v9715_v48 = vld [vmem:[#allocation5 + $0x128] ss:$12 sps:$4 sm:$0xff]  }
 0xaf6   :  { %v8331_v36 = vadd.f32 %v8330_v59, %v8329_v33  ;;  %v8359_v39 = vadd.f32 %v8358_v57, %v8357_v38  ;;  %v8360_v42 = vpop.f32.mrb[94].mxu1  ;;  %3844 = vadd.xlane.f32.xlu0 %v3838_v34  ;;  %v8332_v7 = vpop.f32.mrb[86].mxu0  ;;  %v3839_v10 = vadd.f32 %v3827_v18, %v11328_v53  ;;  %v9693_v53 = vld [vmem:[#allocation5 + $0xd8] ss:$12 sps:$4 sm:$0xff]   ;;  %v9719_v33 = vld [vmem:[#allocation5 + $0x140] ss:$12 sps:$4 sm:$0xff]  }
 0xaf7   :  { %v8333_v1 = vpop.f32.mrb[87].mxu0  ;;  %v8361_v14 = vpop.f32.mrb[95].mxu1  ;;  %4092 = vmatpush1.bf16.msra.mxu0 %v9693_v53  ;;  %v9718_v18 = vld [vmem:[#allocation5 + $0x16c] ss:$12 sps:$4 sm:$0xff]   ;;  %v9716_v38 = vld [vmem:[#allocation5 + $0x168] ss:$12 sps:$4 sm:$0xff]  }
 0xaf8   :  { %v3783_v0 = vadd.f32 %v8331_v36, %v7992_v43  ;;  %v8334_v60 = vadd.f32 %v8333_v1, %v8332_v7  ;;  %v8362_v16 = vadd.f32 %v8361_v14, %v8360_v42  ;;  %3846 = vadd.xlane.f32.xlu1 %v3839_v10  ;;  %4093 = vmatprep.subr.bf16.mxu0 %v9698_v19  ;;  %v9721_v59 = vld [vmem:[#allocation5 + $0x170] ss:$12 sps:$4 sm:$0xff]  }
 0xafa   :  { %v3832_v11 = vadd.f32 %v8359_v39, %v3783_v0  ;;  %v3786_v9 = vadd.f32 %v8334_v60, %v7992_v43  ;;  %v9699_v43 = vld [vmem:[#allocation5 + $0xc8] ss:$12 sps:$4 sm:$0xff]  }
 0xafb   :  { %8735 = vmatprep.subr.bf16.mxu1 %v9699_v43  ;;  %4094 = vmatpush1.bf16.msra.mxu0 %v9696_v27 }
 0xafc   :  { %v3835_v32 = vadd.f32 %v8362_v16, %v3786_v9  ;;  %v3840_v52 = vadd.f32 %v3832_v11, %v11336_v20  ;;  %8736 = vmatpush3.bf16.msra.mxu1 %v9699_v43  ;;  %4095 = vmatprep.subr.bf16.mxu0 %v9702_v40 }
 0xafd   :  { %8737 = vmatprep.subr.bf16.mxu1 %v9703_v3 }
 0xafe   :  { %3848 = vadd.xlane.f32.xlu0 %v3840_v52  ;;  %v3841_v54 = vadd.f32 %v3835_v32, %v11338_v63  ;;  %v8025_v32 = vld [vmem:[%s12280_s13] ss:$0 sm:$0xff] }
 0xaff   :  { %4096 = vmatpush1.bf16.msra.mxu0 %v9700_v23 }
 0xb00   :  { %3850 = vadd.xlane.f32.xlu1 %v3841_v54  ;;  %8738 = vmatpush3.bf16.msra.mxu1 %v9703_v3 }
 0xb01   :  { %4097 = vmatprep.subr.bf16.mxu0 %v9706_v44  ;;  %8739 = vmatprep.subr.bf16.mxu1 %v9707_v31 }
 0xb03   :  { %4098 = vmatpush1.bf16.msra.mxu0 %v9704_v22 }
 0xb04   :  { %8740 = vmatpush3.bf16.msra.mxu1 %v9707_v31  ;;  %4099 = vmatprep.subr.bf16.mxu0 %v9710_v41 }
 0xb05   :  { %8741 = vmatprep.subr.bf16.mxu1 %v9711_v15 }
 0xb07   :  { %4100 = vmatpush1.bf16.msra.mxu0 %v9708_v47 }
 0xb08   :  { %8742 = vmatpush3.bf16.msra.mxu1 %v9711_v15  ;;  %4101 = vmatprep.subr.bf16.mxu0 %v9714_v17 }
 0xb09   :  { %8743 = vmatprep.subr.bf16.mxu1 %v9715_v48 }
 0xb0b   :  { %4102 = vmatpush1.bf16.msra.mxu0 %v9712_v37 }
 0xb0c   :  { %8744 = vmatpush3.bf16.msra.mxu1 %v9715_v48  ;;  %4103 = vmatprep.subr.bf16.mxu0 %v9718_v18 }
 0xb0d   :  { %8745 = vmatprep.subr.bf16.mxu1 %v9719_v33 }
 0xb0f   :  { %4104 = vmatpush1.bf16.msra.mxu0 %v9716_v38 }
 0xb10   :  { %8746 = vmatpush3.bf16.msra.mxu1 %v9719_v33  ;;  %8755 = vmatprep.subr.bf16.mxu0 %v12332_v13 }
 0xb83   :  { %v3845_v50 = vpop.xlane.xlu0 %3844 }
 0xb84   :  { %v3852_v61 = vmul.f32 0.0078125, %v3845_v50 }
 0xb85   :  { %v3847_v24 = vpop.xlane.xlu1 %3846 }
 0xb86   :  { %v11359_v28 = vsub.f32 %v3838_v34, %v3852_v61  ;;  %v3853_v26 = vmul.f32 0.0078125, %v3847_v24  ;;  %v9720_v34 = vld [vmem:[#allocation5 + $0x158] ss:$12 sps:$4 sm:$0xff]  }
 0xb87   :  { %8747 = vmatprep.subr.bf16.mxu1 %v9720_v34 }
 0xb88   :  { %v11361_v49 = vsub.f32 %v3839_v10, %v3853_v26  ;;  %v3860_v20 = vmul.f32 %v11359_v28, %v11359_v28  ;;  %8748 = vmatpush3.bf16.msra.mxu1 %v9720_v34 }
 0xb89   :  { %8749 = vmatprep.subr.bf16.mxu1 %v9721_v59 }
 0xb8a   :  { %3864 = vadd.xlane.f32.xlu0 %v3860_v20  ;;  %v3861_v63 = vmul.f32 %v11361_v49, %v11361_v49 }
 0xb8b   :  { %v3849_v55 = vpop.xlane.xlu0 %3848 }
 0xb8c   :  { %v3854_v51 = vmul.f32 0.0078125, %v3849_v55  ;;  %3866 = vadd.xlane.f32.xlu1 %v3861_v63  ;;  %8750 = vmatpush3.bf16.msra.mxu1 %v9721_v59 }
 0xb8d   :  { %v3851_v58 = vpop.xlane.xlu1 %3850  ;;  %8773 = vmatprep.subr.bf16.mxu1 %v12332_v13 }
 0xb8e   :  { %v11367_v2 = vsub.f32 %v3840_v52, %v3854_v51  ;;  %v3855_v62 = vmul.f32 0.0078125, %v3851_v58 }
 0xb90   :  { %v11369_v45 = vsub.f32 %v3841_v54, %v3855_v62  ;;  %v3862_v25 = vmul.f32 %v11367_v2, %v11367_v2 }
 0xb92   :  { %3868 = vadd.xlane.f32.xlu0 %v3862_v25  ;;  %v3863_v56 = vmul.f32 %v11369_v45, %v11369_v45 }
 0xb94   :  { %3870 = vadd.xlane.f32.xlu1 %v3863_v56 }
 0xc17   :  { %v3865_v57 = vpop.xlane.xlu0 %3864 }
 0xc18   :  { %v3872_v36 = vmul.f32 0.0078125, %v3865_v57 }
 0xc19   :  { %v3867_v39 = vpop.xlane.xlu1 %3866 }
 0xc1a   :  { %v3876_v42 = vadd.f32 1e-05, %v3872_v36  ;;  %v3873_v7 = vmul.f32 0.0078125, %v3867_v39 }
 0xc1c   :  { %9970 = vrsqrt.f32 %v3876_v42  ;;  %v3877_v10 = vadd.f32 1e-05, %v3873_v7 }
 0xc1e   :  { %9972 = vrsqrt.f32 %v3877_v10 }
 0xc1f   :  { %v3869_v1 = vpop.xlane.xlu0 %3868 }
 0xc20   :  { %v3874_v14 = vmul.f32 0.0078125, %v3869_v1 }
 0xc21   :  { %v3871_v0 = vpop.xlane.xlu1 %3870 }
 0xc22   :  { %v3878_v60 = vadd.f32 1e-05, %v3874_v14  ;;  %v3875_v16 = vmul.f32 0.0078125, %v3871_v0 }
 0xc24   :  { %9974 = vrsqrt.f32 %v3878_v60  ;;  %v3879_v11 = vadd.f32 1e-05, %v3875_v16 }
 0xc26   :  { %v9971_v9 = vpop.eup %9970  ;;  %9976 = vrsqrt.f32 %v3879_v11 }
 0xc27   :  { %v3884_v52 = vmul.f32 %v9971_v9, %v11359_v28 }
 0xc28   :  { %v9973_v54 = vpop.eup %9972 }
 0xc29   :  { %v3894_v4 = vmul.f32 %v8025_v32, %v3884_v52  ;;  %v3885_v30 = vmul.f32 %v9973_v54, %v11361_v49 }
 0xc2b   :  { %v3895_v53 = vmul.f32 %v8025_v32, %v3885_v30  ;;  %v11385_v50 = vadd.f32 %v8026_v21, %v3894_v4 }
 0xc2d   :  { %v11387_v61 = vadd.f32 %v8026_v21, %v3895_v53 }
 0xc2e   :  { %v9975_v24 = vpop.eup %9974 }
 0xc2f   :  { %v3908_v26 = vpack.c.bf16 %v11387_v61, %v11385_v50  ;;  %v3886_v20 = vmul.f32 %v9975_v24, %v11367_v2  ;;  %v8027_v2 = vld [vmem:[%s12328_s20 + $0x3] sm:$0x7] }
 0xc30   :  { %v9977_v28 = vpop.eup %9976  ;;  %v3953_v56 = vrot.slane %v8027_v2, %v10619_v8  ;;  %v3957_v31 = vrot.slane %v8027_v2, %v10624_v12 }
 0xc31   :  { %4122 = vmatmul.mubr.bf16.vlgmr.msra.gmra.mrb[88].mxu0 %v3908_v26  ;;  %8751 = vmatprep.mubr.bf16.mxu1 %v3908_v26  ;;  %v3887_v49 = vmul.f32 %v9977_v28, %v11369_v45  ;;  %v3896_v63 = vmul.f32 %v8025_v32, %v3886_v20  ;;  %v3949_v45 = vrot.slane %v8027_v2, %v10613_v6 }
 0xc32   :  { %4131 = vmatprep.mubr.bf16.mxu0 %v12333_v29 }
 0xc33   :  { %v3897_v55 = vmul.f32 %v8025_v32, %v3887_v49  ;;  %v11394_v51 = vadd.f32 %v8026_v21, %v3896_v63 }
 0xc35   :  { %v11396_v58 = vadd.f32 %v8026_v21, %v3897_v55 }
 0xc37   :  { %v3909_v62 = vpack.c.bf16 %v11396_v58, %v11394_v51 }
 0xc39   :  { %4132 = vmatmul.mubr.bf16.gmra.mrb[92].mxu0 %v3909_v62  ;;  %8752 = vmatmul.mubr.bf16.vlgmr.msra.gmra.mrb[96].mxu1 %v3909_v62 }
 0xc3a   :  { %8757 = vmatprep.mubr.msk.bf16.mxu0 %vm10359_vm12, %v12332_v13  ;;  %8775 = vmatprep.mubr.msk.bf16.mxu1 %vm10359_vm12, %v12332_v13 }
 0xd04   :  { %v4123_v25 = vpop.f32.mrb[88].mxu0 }
 0xd05   :  { %v4125_v19 = vpop.f32.mrb[89].mxu0  ;;  %v4124_v27 = vadd.f32 %v4123_v25, %v3949_v45 }
 0xd06   :  { %v4127_v43 = vpop.f32.mrb[90].mxu0  ;;  %v4126_v23 = vadd.f32 %v4125_v19, %v3953_v56 }
 0xd07   :  { %v4128_v40 = vadd.f32 %v4127_v43, %v3949_v45  ;;  %v4129_v3 = vpop.f32.mrb[91].mxu0 }
 0xd08   :  { %v4130_v44 = vadd.f32 %v4129_v3, %v3953_v56 }
 0xd09   :  { %v4279_v22 = vpack.c.bf16 %v4128_v40, %v4124_v27  ;;  %v11410_v41 = vpack.i.bf16 %v4128_v40, %v4124_v27 }
 0xd0a   :  { %v9274_v15 = vpack.i.bf16 %v4130_v44, %v4126_v23  ;;  %v4383_v47 = vpack.c.bf16 %v4130_v44, %v4126_v23 }
 0xd0c   :  { %9275 = vrot.lane.b32.xlu0 %v9274_v15, %s10360_s3  ;;  %v4133_v17 = vpop.f32.mrb[92].mxu0  ;;  %v8753_v48 = vpop.f32.mrb[96].mxu1  ;;  %v4507_v37 = vsel %vm967_vm13, %v4383_v47, 0 }
 0xd0d   :  { %v4135_v18 = vpop.f32.mrb[93].mxu0  ;;  %v4176_v33 = vpop.f32.mrb[97].mxu1  ;;  %8756 = vmatpush3.bf16.xpose.msra.mxu0 %v4507_v37  ;;  %v4134_v59 = vadd.f32 %v4133_v17, %v3949_v45  ;;  %v11415_v57 = vadd.f32 %v8753_v48, %v3957_v31 }
 0xd0e   :  { %v4137_v38 = vpop.f32.mrb[94].mxu0  ;;  %v8754_v34 = vpop.f32.mrb[98].mxu1  ;;  %8761 = vmatprep.subr.bf16.mxu0 %v12332_v13  ;;  %v4136_v36 = vadd.f32 %v4135_v18, %v3953_v56  ;;  %v11417_v10 = vadd.f32 %v4176_v33, %v3957_v31 }
 0xd0f   :  { %v4138_v39 = vadd.f32 %v4137_v38, %v3949_v45  ;;  %v4139_v42 = vpop.f32.mrb[95].mxu0  ;;  %v4179_v7 = vpop.f32.mrb[99].mxu1  ;;  %v11419_v1 = vadd.f32 %v8754_v34, %v3957_v31 }
 0xd10   :  { %v4140_v14 = vadd.f32 %v4139_v42, %v3953_v56  ;;  %v11421_v0 = vadd.f32 %v4179_v7, %v3957_v31  ;;  %9290 = vrot.lane.b32.xlu0 %v9274_v15, %s10361_s23 }
 0xd11   :  { %v9294_v60 = vpack.i.bf16 %v4138_v39, %v4134_v59  ;;  %v4280_v16 = vpack.c.bf16 %v4138_v39, %v4134_v59  ;;  %v11436_v54 = vpack.i.bf16 %v11419_v1, %v11415_v57  ;;  %v4488_v30 = vpack.c.bf16 %v11419_v1, %v11415_v57 }
 0xd12   :  { %v9304_v11 = vpack.i.bf16 %v4140_v14, %v4136_v36  ;;  %v4384_v9 = vpack.c.bf16 %v4140_v14, %v4136_v36  ;;  %v11430_v52 = vpack.i.bf16 %v11421_v0, %v11417_v10  ;;  %v4487_v4 = vpack.c.bf16 %v11421_v0, %v11417_v10 }
 0xd14   :  { %8758 = vmatmul.mubr.msk.bf16.vlgmr.msra.gmra.mrb[96].mxu0 %vm967_vm13, %v4279_v22  ;;  %9305 = vrot.lane.b32.xlu0 %v9304_v11, %s10361_s23  ;;  %v4554_v32 = vsel %vm967_vm13, %v4384_v9, 0 }
 0xd15   :  { %9280 = vrot.lane.b32.xlu1 %v9304_v11, %s10360_s3  ;;  %8762 = vmatpush3.bf16.xpose.msra.mxu0 %v4554_v32 }
 0xd16   :  { %8763 = vmatprep.mubr.msk.bf16.mxu0 %vm10359_vm12, %v12332_v13  ;;  %8767 = vmatprep.subr.bf16.mxu0 %v12332_v13 }
 0xd18   :  { %9310 = vrot.lane.b32.xlu0 %v9274_v15, %s10362_s1 }
 0xd19   :  { %9285 = vrot.lane.b32.xlu1 %v11410_v41, %s10360_s3 }
 0xd1c   :  { %9325 = vrot.lane.b32.xlu0 %v9304_v11, %s10362_s1  ;;  %8764 = vmatmul.mubr.msk.bf16.vlgmr.msra.gmra.mrb[100].mxu0 %vm967_vm13, %v4280_v16 }
 0xd1d   :  { %9295 = vrot.lane.b32.xlu1 %v9294_v60, %s10360_s3  ;;  %8769 = vmatprep.mubr.msk.bf16.mxu0 %vm10359_vm12, %v12332_v13 }
 0xd20   :  { %9330 = vrot.lane.b32.xlu0 %v9274_v15, %s10349_s7 }
 0xd21   :  { %9300 = vrot.lane.b32.xlu1 %v11410_v41, %s10361_s23 }
 0xd24   :  { %9345 = vrot.lane.b32.xlu0 %v9304_v11, %s10349_s7 }
 0xd25   :  { %9315 = vrot.lane.b32.xlu1 %v9294_v60, %s10361_s23 }
 0xd28   :  { %9350 = vrot.lane.b32.xlu0 %v9274_v15, %s10363_s9 }
 0xd29   :  { %9320 = vrot.lane.b32.xlu1 %v11410_v41, %s10362_s1 }
 0xd2c   :  { %9365 = vrot.lane.b32.xlu0 %v9304_v11, %s10363_s9 }
 0xd2d   :  { %9335 = vrot.lane.b32.xlu1 %v9294_v60, %s10362_s1 }
 0xd30   :  { %9370 = vrot.lane.b32.xlu0 %v9274_v15, %s10364_s26 }
 0xd31   :  { %9340 = vrot.lane.b32.xlu1 %v11410_v41, %s10349_s7 }
 0xd34   :  { %9385 = vrot.lane.b32.xlu0 %v9304_v11, %s10364_s26 }
 0xd35   :  { %9355 = vrot.lane.b32.xlu1 %v9294_v60, %s10349_s7 }
 0xd38   :  { %9390 = vrot.lane.b32.xlu0 %v9274_v15, %s12331_s29 }
 0xd39   :  { %9360 = vrot.lane.b32.xlu1 %v11410_v41, %s10363_s9 }
 0xd3c   :  { %9400 = vrot.lane.b32.xlu0 %v9304_v11, %s12331_s29 }
 0xd3d   :  { %9375 = vrot.lane.b32.xlu1 %v9294_v60, %s10363_s9 }
 0xd40   :  { %9410 = vrot.lane.b32.xlu0 %v9294_v60, %s12331_s29 }
 0xd41   :  { %9380 = vrot.lane.b32.xlu1 %v11410_v41, %s10364_s26 }
 0xd44   :  { %9435 = vrot.lane.b32.xlu0 %v11430_v52, %s10360_s3 }
 0xd45   :  { %9395 = vrot.lane.b32.xlu1 %v9294_v60, %s10364_s26 }
 0xd48   :  { %9440 = vrot.lane.b32.xlu0 %v11430_v52, %s10361_s23 }
 0xd49   :  { %9405 = vrot.lane.b32.xlu1 %v11410_v41, %s12331_s29 }
 0xd4c   :  { %9445 = vrot.lane.b32.xlu0 %v11430_v52, %s10362_s1 }
 0xd4d   :  { %9415 = vrot.lane.b32.xlu1 %v11436_v54, %s10360_s3 }
 0xd50   :  { %9450 = vrot.lane.b32.xlu0 %v11430_v52, %s10349_s7 }
 0xd51   :  { %9420 = vrot.lane.b32.xlu1 %v11436_v54, %s10361_s23 }
 0xd54   :  { %9455 = vrot.lane.b32.xlu0 %v11430_v52, %s10363_s9 }
 0xd55   :  { %9425 = vrot.lane.b32.xlu1 %v11436_v54, %s10362_s1 }
 0xd59   :  { %9430 = vrot.lane.b32.xlu1 %v11436_v54, %s10349_s7 }
 0xd7e   :  { %v9276_v21 = vpop.permute.xlu0 %9275 }
 0xd7f   :  { %v9278_v53 = vunpack.i.h.bf16 %v9276_v21  ;;  %v9277_v24 = vunpack.i.l.bf16 %v9276_v21 }
 0xd81   :  { %v4385_v26 = vpack.c.bf16 %v9278_v53, %v9277_v24 }
 0xd82   :  { %v9291_v20 = vpop.permute.xlu0 %9290 }
 0xd83   :  { %v4601_v28 = vsel %vm967_vm13, %v4385_v26, 0  ;;  %v9293_v63 = vunpack.i.h.bf16 %v9291_v20  ;;  %v9292_v55 = vunpack.i.l.bf16 %v9291_v20 }
 0xd84   :  { %8768 = vmatpush3.bf16.xpose.msra.mxu0 %v4601_v28 }
 0xd85   :  { %8779 = vmatprep.subr.bf16.mxu0 %v12332_v13  ;;  %v4387_v40 = vpack.c.bf16 %v9293_v63, %v9292_v55 }
 0xd86   :  { %v9306_v49 = vpop.permute.xlu0 %9305 }
 0xd87   :  { %v9281_v62 = vpop.permute.xlu1 %9280  ;;  %v9308_v19 = vunpack.i.h.bf16 %v9306_v49  ;;  %v9307_v43 = vunpack.i.l.bf16 %v9306_v49  ;;  %v4695_v15 = vsel %vm967_vm13, %v4387_v40, 0 }
 0xd88   :  { %v9283_v2 = vunpack.i.h.bf16 %v9281_v62  ;;  %v9282_v45 = vunpack.i.l.bf16 %v9281_v62 }
 0xd89   :  { %v4388_v47 = vpack.c.bf16 %v9308_v19, %v9307_v43 }
 0xd8a   :  { %v9311_v25 = vpop.permute.xlu0 %9310  ;;  %v4386_v56 = vpack.c.bf16 %v9283_v2, %v9282_v45 }
 0xd8b   :  { %v9286_v27 = vpop.permute.xlu1 %9285  ;;  %v9313_v17 = vunpack.i.h.bf16 %v9311_v25  ;;  %v9312_v48 = vunpack.i.l.bf16 %v9311_v25  ;;  %v4742_v7 = vsel %vm967_vm13, %v4388_v47, 0 }
 0xd8c   :  { %v9288_v3 = vunpack.i.h.bf16 %v9286_v27  ;;  %v9287_v23 = vunpack.i.l.bf16 %v9286_v27  ;;  %v4648_v44 = vsel %vm967_vm13, %v4386_v56, 0 }
 0xd8d   :  { %8774 = vmatpush3.bf16.xpose.msra.mxu1 %v4648_v44  ;;  %v4389_v14 = vpack.c.bf16 %v9313_v17, %v9312_v48 }
 0xd8e   :  { %v4281_v31 = vpack.c.bf16 %v9288_v3, %v9287_v23  ;;  %v9326_v22 = vpop.permute.xlu0 %9325  ;;  %8785 = vmatprep.subr.bf16.mxu1 %v12332_v13 }
 0xd8f   :  { %v9296_v41 = vpop.permute.xlu1 %9295  ;;  %v9328_v34 = vunpack.i.h.bf16 %v9326_v22  ;;  %v9327_v59 = vunpack.i.l.bf16 %v9326_v22  ;;  %v4789_v26 = vsel %vm967_vm13, %v4389_v14, 0 }
 0xd90   :  { %v9298_v37 = vunpack.i.h.bf16 %v9296_v41  ;;  %v9297_v18 = vunpack.i.l.bf16 %v9296_v41  ;;  %8770 = vmatmul.mubr.msk.bf16.vlgmr.msra.gmra.mrb[104].mxu0 %vm967_vm13, %v4281_v31 }
 0xd91   :  { %8780 = vmatpush3.bf16.xpose.msra.mxu0 %v4695_v15  ;;  %8781 = vmatprep.mubr.msk.bf16.mxu0 %vm10359_vm12, %v12332_v13  ;;  %v4390_v21 = vpack.c.bf16 %v9328_v34, %v9327_v59 }
 0xd92   :  { %v4282_v33 = vpack.c.bf16 %v9298_v37, %v9297_v18  ;;  %v9331_v38 = vpop.permute.xlu0 %9330  ;;  %8791 = vmatprep.subr.bf16.mxu0 %v12332_v13 }
 0xd93   :  { %v9301_v36 = vpop.permute.xlu1 %9300  ;;  %v9333_v11 = vunpack.i.h.bf16 %v9331_v38  ;;  %v9332_v9 = vunpack.i.l.bf16 %v9331_v38  ;;  %v4836_v63 = vsel %vm967_vm13, %v4390_v21, 0 }
 0xd94   :  { %v9303_v39 = vunpack.i.h.bf16 %v9301_v36  ;;  %v9302_v42 = vunpack.i.l.bf16 %v9301_v36  ;;  %8776 = vmatmul.mubr.msk.bf16.vlgmr.msra.gmra.mrb[100].mxu1 %vm967_vm13, %v4282_v33 }
 0xd95   :  { %8786 = vmatpush3.bf16.xpose.msra.mxu1 %v4742_v7  ;;  %8787 = vmatprep.mubr.msk.bf16.mxu1 %vm10359_vm12, %v12332_v13  ;;  %v4391_v55 = vpack.c.bf16 %v9333_v11, %v9332_v9 }
 0xd96   :  { %v4283_v60 = vpack.c.bf16 %v9303_v39, %v9302_v42  ;;  %v9346_v16 = vpop.permute.xlu0 %9345  ;;  %8797 = vmatprep.subr.bf16.mxu1 %v12332_v13 }
 0xd97   :  { %v9316_v32 = vpop.permute.xlu1 %9315  ;;  %v9348_v62 = vunpack.i.h.bf16 %v9346_v16  ;;  %v9347_v2 = vunpack.i.l.bf16 %v9346_v16  ;;  %v4883_v44 = vsel %vm967_vm13, %v4391_v55, 0 }
 0xd98   :  { %v9318_v53 = vunpack.i.h.bf16 %v9316_v32  ;;  %v9317_v24 = vunpack.i.l.bf16 %v9316_v32  ;;  %8782 = vmatmul.mubr.msk.bf16.vlgmr.msra.gmra.mrb[108].mxu0 %vm967_vm13, %v4283_v60 }
 0xd99   :  { %8792 = vmatpush3.bf16.xpose.msra.mxu0 %v4789_v26  ;;  %8793 = vmatprep.mubr.msk.bf16.mxu0 %vm10359_vm12, %v12332_v13  ;;  %v4392_v31 = vpack.c.bf16 %v9348_v62, %v9347_v2 }
 0xd9a   :  { %v4284_v20 = vpack.c.bf16 %v9318_v53, %v9317_v24  ;;  %v9351_v28 = vpop.permute.xlu0 %9350  ;;  %8803 = vmatprep.subr.bf16.mxu0 %v12332_v13 }
 0xd9b   :  { %v9321_v49 = vpop.permute.xlu1 %9320  ;;  %v9353_v43 = vunpack.i.h.bf16 %v9351_v28  ;;  %v9352_v27 = vunpack.i.l.bf16 %v9351_v28  ;;  %v4930_v33 = vsel %vm967_vm13, %v4392_v31, 0 }
 0xd9c   :  { %v9323_v45 = vunpack.i.h.bf16 %v9321_v49  ;;  %v9322_v25 = vunpack.i.l.bf16 %v9321_v49  ;;  %8788 = vmatmul.mubr.msk.bf16.vlgmr.msra.gmra.mrb[104].mxu1 %vm967_vm13, %v4284_v20 }
 0xd9d   :  { %8798 = vmatpush3.bf16.xpose.msra.mxu1 %v4836_v63  ;;  %8799 = vmatprep.mubr.msk.bf16.mxu1 %vm10359_vm12, %v12332_v13  ;;  %v4393_v48 = vpack.c.bf16 %v9353_v43, %v9352_v27 }
 0xd9e   :  { %v4285_v56 = vpack.c.bf16 %v9323_v45, %v9322_v25  ;;  %v9366_v19 = vpop.permute.xlu0 %9365  ;;  %8809 = vmatprep.subr.bf16.mxu1 %v12332_v13 }
 0xd9f   :  { %v9336_v40 = vpop.permute.xlu1 %9335  ;;  %v9368_v15 = vunpack.i.h.bf16 %v9366_v19  ;;  %v9367_v47 = vunpack.i.l.bf16 %v9366_v19  ;;  %v4977_v36 = vsel %vm967_vm13, %v4393_v48, 0 }
 0xda0   :  { %v9338_v3 = vunpack.i.h.bf16 %v9336_v40  ;;  %v9337_v23 = vunpack.i.l.bf16 %v9336_v40  ;;  %8794 = vmatmul.mubr.msk.bf16.vlgmr.msra.gmra.mrb[112].mxu0 %vm967_vm13, %v4285_v56 }
 0xda1   :  { %8804 = vmatpush3.bf16.xpose.msra.mxu0 %v4883_v44  ;;  %8805 = vmatprep.mubr.msk.bf16.mxu0 %vm10359_vm12, %v12332_v13  ;;  %v4394_v39 = vpack.c.bf16 %v9368_v15, %v9367_v47 }
 0xda2   :  { %v4286_v22 = vpack.c.bf16 %v9338_v3, %v9337_v23  ;;  %v9371_v41 = vpop.permute.xlu0 %9370  ;;  %8815 = vmatprep.subr.bf16.mxu0 %v12332_v13 }
 0xda3   :  { %v9341_v17 = vpop.permute.xlu1 %9340  ;;  %v9373_v42 = vunpack.i.h.bf16 %v9371_v41  ;;  %v9372_v7 = vunpack.i.l.bf16 %v9371_v41  ;;  %v5024_v26 = vsel %vm967_vm13, %v4394_v39, 0 }
 0xda4   :  { %v9343_v37 = vunpack.i.h.bf16 %v9341_v17  ;;  %v9342_v18 = vunpack.i.l.bf16 %v9341_v17  ;;  %8800 = vmatmul.mubr.msk.bf16.vlgmr.msra.gmra.mrb[108].mxu1 %vm967_vm13, %v4286_v22 }
 0xda5   :  { %8810 = vmatpush3.bf16.xpose.msra.mxu1 %v4930_v33  ;;  %8811 = vmatprep.mubr.msk.bf16.mxu1 %vm10359_vm12, %v12332_v13  ;;  %v4395_v20 = vpack.c.bf16 %v9373_v42, %v9372_v7 }
 0xda6   :  { %v4287_v38 = vpack.c.bf16 %v9343_v37, %v9342_v18  ;;  %v9386_v34 = vpop.permute.xlu0 %9385  ;;  %8821 = vmatprep.subr.bf16.mxu1 %v12332_v13 }
 0xda7   :  { %v9356_v59 = vpop.permute.xlu1 %9355  ;;  %v9388_v11 = vunpack.i.h.bf16 %v9386_v34  ;;  %v9387_v9 = vunpack.i.l.bf16 %v9386_v34  ;;  %v5071_v25 = vsel %vm967_vm13, %v4395_v20, 0 }
 0xda8   :  { %v9358_v14 = vunpack.i.h.bf16 %v9356_v59  ;;  %v9357_v60 = vunpack.i.l.bf16 %v9356_v59  ;;  %8806 = vmatmul.mubr.msk.bf16.vlgmr.msra.gmra.mrb[116].mxu0 %vm967_vm13, %v4287_v38 }
 0xda9   :  { %8816 = vmatpush3.bf16.xpose.msra.mxu0 %v4977_v36  ;;  %8817 = vmatprep.mubr.msk.bf16.mxu0 %vm10359_vm12, %v12332_v13  ;;  %v4396_v62 = vpack.c.bf16 %v9388_v11, %v9387_v9 }
 0xdaa   :  { %v4288_v16 = vpack.c.bf16 %v9358_v14, %v9357_v60  ;;  %8827 = vmatprep.subr.bf16.mxu0 %v12332_v13  ;;  %v9391_v21 = vpop.permute.xlu0 %9390 }
 0xdab   :  { %v9361_v32 = vpop.permute.xlu1 %9360  ;;  %v9393_v49 = vunpack.i.h.bf16 %v9391_v21  ;;  %v9392_v63 = vunpack.i.l.bf16 %v9391_v21  ;;  %v5118_v27 = vsel %vm967_vm13, %v4396_v62, 0 }
 0xdac   :  { %v9363_v53 = vunpack.i.h.bf16 %v9361_v32  ;;  %v9362_v24 = vunpack.i.l.bf16 %v9361_v32  ;;  %8812 = vmatmul.mubr.msk.bf16.vlgmr.msra.gmra.mrb[112].mxu1 %vm967_vm13, %v4288_v16 }
 0xdad   :  { %8822 = vmatpush3.bf16.xpose.msra.mxu1 %v5024_v26  ;;  %8823 = vmatprep.mubr.msk.bf16.mxu1 %vm10359_vm12, %v12332_v13  ;;  %v4397_v40 = vpack.c.bf16 %v9393_v49, %v9392_v63 }
 0xdae   :  { %v4289_v28 = vpack.c.bf16 %v9363_v53, %v9362_v24  ;;  %8833 = vmatprep.subr.bf16.mxu1 %v12332_v13  ;;  %v9401_v56 = vpop.permute.xlu0 %9400 }
 0xdaf   :  { %v9376_v55 = vpop.permute.xlu1 %9375  ;;  %v9403_v3 = vunpack.i.h.bf16 %v9401_v56  ;;  %v9402_v23 = vunpack.i.l.bf16 %v9401_v56  ;;  %v5165_v17 = vsel %vm967_vm13, %v4397_v40, 0 }
 0xdb0   :  { %v9378_v2 = vunpack.i.h.bf16 %v9376_v55  ;;  %v9377_v45 = vunpack.i.l.bf16 %v9376_v55  ;;  %8818 = vmatmul.mubr.msk.bf16.vlgmr.msra.gmra.mrb[120].mxu0 %vm967_vm13, %v4289_v28 }
 0xdb1   :  { %8828 = vmatpush3.bf16.xpose.msra.mxu0 %v5071_v25  ;;  %8829 = vmatprep.mubr.msk.bf16.mxu0 %vm10359_vm12, %v12332_v13  ;;  %v4398_v48 = vpack.c.bf16 %v9403_v3, %v9402_v23 }
 0xdb2   :  { %v4290_v19 = vpack.c.bf16 %v9378_v2, %v9377_v45  ;;  %8839 = vmatprep.subr.bf16.mxu0 %v12332_v13  ;;  %v9411_v18 = vpop.permute.xlu0 %9410 }
 0xdb3   :  { %v9381_v43 = vpop.permute.xlu1 %9380  ;;  %v5212_v59 = vsel %vm967_vm13, %v4398_v48, 0  ;;  %v9413_v36 = vunpack.i.h.bf16 %v9411_v18  ;;  %v9412_v39 = vunpack.i.l.bf16 %v9411_v18 }
 0xdb4   :  { %v9383_v44 = vunpack.i.h.bf16 %v9381_v43  ;;  %v9382_v31 = vunpack.i.l.bf16 %v9381_v43  ;;  %8824 = vmatmul.mubr.msk.bf16.vlgmr.msra.gmra.mrb[116].mxu1 %vm967_vm13, %v4290_v19 }
 0xdb5   :  { %8834 = vmatpush3.bf16.xpose.msra.mxu1 %v5118_v27  ;;  %8835 = vmatprep.mubr.msk.bf16.mxu1 %vm10359_vm12, %v12332_v13  ;;  %v4294_v7 = vpack.c.bf16 %v9413_v36, %v9412_v39 }
 0xdb6   :  { %v4291_v22 = vpack.c.bf16 %v9383_v44, %v9382_v31  ;;  %8845 = vmatprep.subr.bf16.mxu1 %v12332_v13  ;;  %v11589_v21 = vpop.permute.xlu0 %9435 }
 0xdb7   :  { %v9396_v41 = vpop.permute.xlu1 %9395 }
 0xdb8   :  { %v9398_v15 = vunpack.i.h.bf16 %v9396_v41  ;;  %v9397_v47 = vunpack.i.l.bf16 %v9396_v41  ;;  %8830 = vmatmul.mubr.msk.bf16.vlgmr.msra.gmra.mrb[124].mxu0 %vm967_vm13, %v4291_v22 }
 0xdb9   :  { %8840 = vmatpush3.bf16.xpose.msra.mxu0 %v5165_v17  ;;  %8841 = vmatprep.mubr.msk.bf16.mxu0 %vm10359_vm12, %v12332_v13 }
 0xdba   :  { %v4292_v37 = vpack.c.bf16 %v9398_v15, %v9397_v47  ;;  %8851 = vmatprep.subr.bf16.mxu0 %v12332_v13  ;;  %v11595_v26 = vpop.permute.xlu0 %9440 }
 0xdbb   :  { %v9406_v33 = vpop.permute.xlu1 %9405 }
 0xdbc   :  { %v9408_v38 = vunpack.i.h.bf16 %v9406_v33  ;;  %v9407_v34 = vunpack.i.l.bf16 %v9406_v33  ;;  %8836 = vmatmul.mubr.msk.bf16.vlgmr.msra.gmra.mrb[120].mxu1 %vm967_vm13, %v4292_v37 }
 0xdbd   :  { %8846 = vmatpush3.bf16.xpose.msra.mxu1 %v5212_v59  ;;  %8847 = vmatprep.mubr.msk.bf16.mxu1 %vm10359_vm12, %v12332_v13 }
 0xdbe   :  { %v4293_v42 = vpack.c.bf16 %v9408_v38, %v9407_v34  ;;  %8857 = vmatprep.subr.bf16.mxu1 %v12332_v13  ;;  %v11611_v19 = vpop.permute.xlu0 %9445 }
 0xdbf   :  { %v11591_v53 = vpop.permute.xlu1 %9415 }
 0xdc0   :  { %8842 = vmatmul.mubr.msk.bf16.vlgmr.msra.gmra.mrb[128].mxu0 %vm967_vm13, %v4293_v42 }
 0xdc1   :  { %8852 = vmatpush3.bf16.msra.mxu0 %v4487_v4  ;;  %8853 = vmatprep.mubr.msk.bf16.mxu0 %vm10359_vm12, %v12332_v13 }
 0xdc2   :  { %8863 = vmatprep.subr.bf16.mxu0 %v12332_v13  ;;  %v11627_v47 = vpop.permute.xlu0 %9450 }
 0xdc3   :  { %v11605_v2 = vpop.permute.xlu1 %9420 }
 0xdc4   :  { %8848 = vmatmul.mubr.msk.bf16.vlgmr.msra.gmra.mrb[124].mxu1 %vm967_vm13, %v4294_v7 }
 0xdc5   :  { %8858 = vmatpush3.bf16.msra.mxu1 %v4488_v30  ;;  %8859 = vmatprep.mubr.msk.bf16.mxu1 %vm10359_vm12, %v12332_v13 }
 0xdc6   :  { %8869 = vmatprep.subr.bf16.mxu1 %v12332_v13  ;;  %v11643_v42 = vpop.permute.xlu0 %9455 }
 0xdc7   :  { %v11621_v31 = vpop.permute.xlu1 %9425 }
 0xdcb   :  { %v11637_v34 = vpop.permute.xlu1 %9430 }
 0xde7   :  { %v11573_v14 = vpop.f32.mrb[96].mxu0 }
 0xde8   :  { %v8759_v10 = vpop.f32.mrb[97].mxu0  ;;  %v5255_v0 = vsel %vm967_vm13, %v11573_v14, -inf }
 0xde9   :  { %v11577_v4 = vpop.f32.mrb[98].mxu0  ;;  %5256 = vmax.xlane.f32.xlu1 %v5255_v0 }
 0xdea   :  { %v8760_v60 = vpop.f32.mrb[99].mxu0  ;;  %v5258_v16 = vsel %vm967_vm13, %v11577_v4, -inf }
 0xdeb   :  { %5259 = vmax.xlane.f32.xlu0 %v5258_v16 }
 0xdef   :  { %v11581_v57 = vpop.f32.mrb[100].mxu0 }
 0xdf0   :  { %v8765_v1 = vpop.f32.mrb[101].mxu0  ;;  %v5261_v30 = vsel %vm967_vm13, %v11581_v57, -inf }
 0xdf1   :  { %5262 = vmax.xlane.f32.xlu0 %v5261_v30  ;;  %v11585_v11 = vpop.f32.mrb[102].mxu0 }
 0xdf2   :  { %v8766_v9 = vpop.f32.mrb[103].mxu0  ;;  %v5264_v32 = vsel %vm967_vm13, %v11585_v11, -inf }
 0xdf3   :  { %5265 = vmax.xlane.f32.xlu1 %v5264_v32 }
 0xe63   :  { %v11593_v24 = vpop.f32.mrb[104].mxu0 }
 0xe64   :  { %v8771_v20 = vpop.f32.mrb[105].mxu0  ;;  %v5267_v28 = vsel %vm967_vm13, %v11593_v24, -inf }
 0xe65   :  { %5268 = vmax.xlane.f32.xlu0 %v5267_v28  ;;  %v11599_v49 = vpop.f32.mrb[106].mxu0 }
 0xe66   :  { %v8772_v63 = vpop.f32.mrb[107].mxu0  ;;  %v5270_v55 = vsel %vm967_vm13, %v11599_v49, -inf }
 0xe67   :  { %v11603_v62 = vpop.f32.mrb[100].mxu1  ;;  %5271 = vmax.xlane.f32.xlu1 %v5270_v55 }
 0xe68   :  { %v8777_v45 = vpop.f32.mrb[101].mxu1  ;;  %v5273_v25 = vsel %vm967_vm13, %v11603_v62, -inf }
 0xe69   :  { %v11609_v56 = vpop.f32.mrb[102].mxu1  ;;  %5274 = vmax.xlane.f32.xlu0 %v5273_v25 }
 0xe6a   :  { %v8778_v43 = vpop.f32.mrb[103].mxu1  ;;  %v5276_v27 = vsel %vm967_vm13, %v11609_v56, -inf }
 0xe6b   :  { %5277 = vmax.xlane.f32.xlu1 %v5276_v27  ;;  %v11615_v40 = vpop.f32.mrb[108].mxu0 }
 0xe6c   :  { %v8783_v3 = vpop.f32.mrb[109].mxu0  ;;  %v5279_v23 = vsel %vm967_vm13, %v11615_v40, -inf }
 0xe6d   :  { %5280 = vmax.xlane.f32.xlu0 %v5279_v23  ;;  %v11619_v44 = vpop.f32.mrb[110].mxu0 }
 0xe6e   :  { %v8784_v22 = vpop.f32.mrb[111].mxu0  ;;  %v5282_v41 = vsel %vm967_vm13, %v11619_v44, -inf }
 0xe6f   :  { %v11625_v15 = vpop.f32.mrb[104].mxu1  ;;  %5283 = vmax.xlane.f32.xlu1 %v5282_v41 }
 0xe70   :  { %v8789_v17 = vpop.f32.mrb[105].mxu1  ;;  %v5285_v48 = vsel %vm967_vm13, %v11625_v15, -inf }
 0xe71   :  { %v11631_v37 = vpop.f32.mrb[106].mxu1  ;;  %5286 = vmax.xlane.f32.xlu0 %v5285_v48 }
 0xe72   :  { %v8790_v18 = vpop.f32.mrb[107].mxu1  ;;  %v5288_v33 = vsel %vm967_vm13, %v11631_v37, -inf }
 0xe73   :  { %5289 = vmax.xlane.f32.xlu1 %v5288_v33  ;;  %v11635_v38 = vpop.f32.mrb[112].mxu0 }
 0xe74   :  { %v8795_v59 = vpop.f32.mrb[113].mxu0  ;;  %v5291_v36 = vsel %vm967_vm13, %v11635_v38, -inf }
 0xe75   :  { %5292 = vmax.xlane.f32.xlu0 %v5291_v36  ;;  %v11641_v39 = vpop.f32.mrb[114].mxu0 }
 0xe76   :  { %v8796_v7 = vpop.f32.mrb[115].mxu0  ;;  %v5294_v10 = vsel %vm967_vm13, %v11641_v39, -inf  ;;  %v5257_v60 = vpop.xlane.xlu1 %5256 }
 0xe77   :  { %v11647_v0 = vpop.f32.mrb[108].mxu1  ;;  %5295 = vmax.xlane.f32.xlu1 %v5294_v10  ;;  %v5351_v28 = vsub.f32 %v11573_v14, %v5257_v60 }
 0xe78   :  { %v8801_v16 = vpop.f32.mrb[109].mxu1  ;;  %v5297_v1 = vsel %vm967_vm13, %v11647_v0, -inf  ;;  %v5260_v9 = vpop.xlane.xlu0 %5259 }
 0xe79   :  { %v11651_v30 = vpop.f32.mrb[110].mxu1  ;;  %5298 = vmax.xlane.f32.xlu0 %v5297_v1  ;;  %v5352_v25 = vsub.f32 %v11577_v4, %v5260_v9  ;;  %v5383_v23 = vmul.f32 1.442695, %v5351_v28 }
 0xe7a   :  { %v8802_v32 = vpop.f32.mrb[111].mxu1  ;;  %v5300_v20 = vsel %vm967_vm13, %v11651_v30, -inf }
 0xe7b   :  { %5301 = vmax.xlane.f32.xlu1 %v5300_v20  ;;  %v11656_v63 = vpop.f32.mrb[116].mxu0  ;;  %v5385_v17 = vmul.f32 1.442695, %v5352_v25  ;;  %9978 = vpow2.f32 %v5383_v23 }
 0xe7c   :  { %v8807_v55 = vpop.f32.mrb[117].mxu0  ;;  %v5303_v45 = vsel %vm967_vm13, %v11656_v63, -inf }
 0xe7d   :  { %5304 = vmax.xlane.f32.xlu0 %v5303_v45  ;;  %v11661_v43 = vpop.f32.mrb[118].mxu0  ;;  %9980 = vpow2.f32 %v5385_v17 }
 0xe7e   :  { %v8808_v27 = vpop.f32.mrb[119].mxu0  ;;  %v5306_v3 = vsel %vm967_vm13, %v11661_v43, -inf  ;;  %v5263_v59 = vpop.xlane.xlu0 %5262 }
 0xe7f   :  { %v11665_v22 = vpop.f32.mrb[112].mxu1  ;;  %5307 = vmax.xlane.f32.xlu1 %v5306_v3  ;;  %v5353_v9 = vsub.f32 %v11581_v57, %v5263_v59 }
 0xe80   :  { %v8813_v14 = vpop.f32.mrb[113].mxu1  ;;  %v5309_v41 = vsel %vm967_vm13, %v11665_v22, -inf  ;;  %v5266_v60 = vpop.xlane.xlu1 %5265 }
 0xe81   :  { %v11669_v48 = vpop.f32.mrb[114].mxu1  ;;  %5310 = vmax.xlane.f32.xlu0 %v5309_v41  ;;  %v5354_v55 = vsub.f32 %v11585_v11, %v5266_v60  ;;  %v5387_v3 = vmul.f32 1.442695, %v5353_v9 }
 0xe82   :  { %v8814_v4 = vpop.f32.mrb[115].mxu1  ;;  %v5312_v18 = vsel %vm967_vm13, %v11669_v48, -inf }
 0xe83   :  { %5313 = vmax.xlane.f32.xlu1 %v5312_v18  ;;  %v11673_v33 = vpop.f32.mrb[120].mxu0  ;;  %v5389_v17 = vmul.f32 1.442695, %v5354_v55  ;;  %9982 = vpow2.f32 %v5387_v3 }
 0xe84   :  { %v8819_v36 = vpop.f32.mrb[121].mxu0  ;;  %v5315_v7 = vsel %vm967_vm13, %v11673_v33, -inf }
 0xe85   :  { %5316 = vmax.xlane.f32.xlu0 %v5315_v7  ;;  %v11677_v10 = vpop.f32.mrb[122].mxu0  ;;  %v11695_v41 = vpop.eup %9978  ;;  %9984 = vpow2.f32 %v5389_v17 }
 0xe86   :  { %v8820_v16 = vpop.f32.mrb[123].mxu0  ;;  %v5318_v1 = vsel %vm967_vm13, %v11677_v10, -inf  ;;  %v5447_v60 = vsel %vm967_vm13, %v11695_v41, 0.0 }
 0xe87   :  { %v11682_v32 = vpop.f32.mrb[116].mxu1  ;;  %5319 = vmax.xlane.f32.xlu1 %v5318_v1  ;;  %v11701_v59 = vpop.eup %9980 }
 0xe88   :  { %v8825_v20 = vpop.f32.mrb[117].mxu1  ;;  %v5321_v28 = vsel %vm967_vm13, %v11682_v32, -inf  ;;  %v5450_v9 = vsel %vm967_vm13, %v11701_v59, 0.0 }
 0xe89   :  { %v11687_v45 = vpop.f32.mrb[118].mxu1  ;;  %5322 = vmax.xlane.f32.xlu0 %v5321_v28 }
 0xe8a   :  { %v8826_v25 = vpop.f32.mrb[119].mxu1  ;;  %v5324_v27 = vsel %vm967_vm13, %v11687_v45, -inf }
 0xe8b   :  { %5325 = vmax.xlane.f32.xlu1 %v5324_v27  ;;  %v11691_v23 = vpop.f32.mrb[124].mxu0 }
 0xe8c   :  { %v8831_v57 = vpop.f32.mrb[125].mxu0  ;;  %v5327_v14 = vsel %vm967_vm13, %v11691_v23, -inf }
 0xe8d   :  { %5328 = vmax.xlane.f32.xlu0 %v5327_v14  ;;  %v11697_v11 = vpop.f32.mrb[126].mxu0 }
 0xe8e   :  { %v8832_v4 = vpop.f32.mrb[127].mxu0  ;;  %v5330_v18 = vsel %vm967_vm13, %v11697_v11, -inf }
 0xe8f   :  { %v11703_v36 = vpop.f32.mrb[120].mxu1  ;;  %5331 = vmax.xlane.f32.xlu1 %v5330_v18  ;;  %v11723_v4 = vpop.eup %9982 }
 0xe90   :  { %v8837_v7 = vpop.f32.mrb[121].mxu1  ;;  %v5333_v55 = vsel %vm967_vm13, %v11703_v36, -inf }
 0xe91   :  { %v11707_v16 = vpop.f32.mrb[122].mxu1  ;;  %5448 = vadd.xlane.f32.xlu0 %v5447_v60 }
 0xe92   :  { %v8838_v1 = vpop.f32.mrb[123].mxu1  ;;  %v5336_v3 = vsel %vm967_vm13, %v11707_v16, -inf }
 0xe93   :  { %5451 = vadd.xlane.f32.xlu1 %v5450_v9  ;;  %v11711_v20 = vpop.f32.mrb[128].mxu0  ;;  %v11729_v1 = vpop.eup %9984  ;;  %v5453_v9 = vsel %vm967_vm13, %v11723_v4, 0.0 }
 0xe94   :  { %v8843_v28 = vpop.f32.mrb[129].mxu0  ;;  %v5339_v17 = vsel %vm967_vm13, %v11711_v20, -inf }
 0xe95   :  { %5334 = vmax.xlane.f32.xlu0 %v5333_v55  ;;  %v11715_v25 = vpop.f32.mrb[130].mxu0  ;;  %v5456_v28 = vsel %vm967_vm13, %v11729_v1, 0.0 }
 0xe96   :  { %v8844_v27 = vpop.f32.mrb[131].mxu0  ;;  %v5342_v60 = vsel %vm967_vm13, %v11715_v25, -inf }
 0xe97   :  { %v11719_v57 = vpop.f32.mrb[124].mxu1  ;;  %5337 = vmax.xlane.f32.xlu1 %v5336_v3 }
 0xe98   :  { %v8849_v14 = vpop.f32.mrb[125].mxu1  ;;  %v5345_v55 = vsel %vm967_vm13, %v11719_v57, -inf }
 0xe99   :  { %v11725_v18 = vpop.f32.mrb[126].mxu1  ;;  %5340 = vmax.xlane.f32.xlu0 %v5339_v17 }
 0xe9a   :  { %v8850_v7 = vpop.f32.mrb[127].mxu1  ;;  %v5348_v27 = vsel %vm967_vm13, %v11725_v18, -inf }
 0xe9b   :  { %5343 = vmax.xlane.f32.xlu1 %v5342_v60 }
 0xe9d   :  { %5454 = vadd.xlane.f32.xlu0 %v5453_v9 }
 0xe9f   :  { %5457 = vadd.xlane.f32.xlu1 %v5456_v28 }
 0xea1   :  { %5346 = vmax.xlane.f32.xlu0 %v5345_v55 }
 0xea3   :  { %5349 = vmax.xlane.f32.xlu1 %v5348_v27 }
 0xef2   :  { %v5269_v3 = vpop.xlane.xlu0 %5268 }
 0xef3   :  { %v5355_v14 = vsub.f32 %v11593_v24, %v5269_v3 }
 0xef4   :  { %v5272_v17 = vpop.xlane.xlu1 %5271 }
 0xef5   :  { %v5391_v7 = vmul.f32 1.442695, %v5355_v14  ;;  %v5356_v60 = vsub.f32 %v11599_v49, %v5272_v17 }
 0xef6   :  { %v5275_v9 = vpop.xlane.xlu0 %5274 }
 0xef7   :  { %9986 = vpow2.f32 %v5391_v7  ;;  %v5393_v46 = vmul.f32 1.442695, %v5356_v60  ;;  %v5357_v28 = vsub.f32 %v11603_v62, %v5275_v9 }
 0xef8   :  { %v5278_v35 = vpop.xlane.xlu1 %5277 }
 0xef9   :  { %9988 = vpow2.f32 %v5393_v46  ;;  %v5395_v5 = vmul.f32 1.442695, %v5357_v28  ;;  %v5358_v55 = vsub.f32 %v11609_v56, %v5278_v35 }
 0xefa   :  { %v5281_v8 = vpop.xlane.xlu0 %5280 }
 0xefb   :  { %9990 = vpow2.f32 %v5395_v5  ;;  %v5397_v27 = vmul.f32 1.442695, %v5358_v55  ;;  %v5359_v12 = vsub.f32 %v11615_v40, %v5281_v8 }
 0xefc   :  { %v5284_v24 = vpop.xlane.xlu1 %5283 }
 0xefd   :  { %9992 = vpow2.f32 %v5397_v27  ;;  %v5399_v3 = vmul.f32 1.442695, %v5359_v12  ;;  %v5360_v49 = vsub.f32 %v11619_v44, %v5284_v24 }
 0xefe   :  { %v5287_v14 = vpop.xlane.xlu0 %5286 }
 0xeff   :  { %9994 = vpow2.f32 %v5399_v3  ;;  %v5401_v17 = vmul.f32 1.442695, %v5360_v49  ;;  %v5361_v62 = vsub.f32 %v11625_v15, %v5287_v14 }
 0xf00   :  { %v5290_v7 = vpop.xlane.xlu1 %5289 }
 0xf01   :  { %v11746_v46 = vpop.eup %9986  ;;  %9996 = vpow2.f32 %v5401_v17  ;;  %v5403_v35 = vmul.f32 1.442695, %v5361_v62  ;;  %v5362_v5 = vsub.f32 %v11631_v37, %v5290_v7 }
 0xf02   :  { %v5293_v56 = vpop.xlane.xlu0 %5292  ;;  %v5459_v8 = vsel %vm967_vm13, %v11746_v46, 0.0 }
 0xf03   :  { %v11751_v40 = vpop.eup %9988  ;;  %9998 = vpow2.f32 %v5403_v35  ;;  %v5405_v12 = vmul.f32 1.442695, %v5362_v5  ;;  %v5363_v44 = vsub.f32 %v11635_v38, %v5293_v56  ;;  %5460 = vadd.xlane.f32.xlu0 %v5459_v8 }
 0xf04   :  { %v5296_v60 = vpop.xlane.xlu1 %5295  ;;  %v5462_v15 = vsel %vm967_vm13, %v11751_v40, 0.0 }
 0xf05   :  { %v11756_v9 = vpop.eup %9990  ;;  %10000 = vpow2.f32 %v5405_v12  ;;  %v5407_v28 = vmul.f32 1.442695, %v5363_v44  ;;  %v5364_v37 = vsub.f32 %v11641_v39, %v5296_v60  ;;  %5463 = vadd.xlane.f32.xlu1 %v5462_v15 }
 0xf06   :  { %v5299_v55 = vpop.xlane.xlu0 %5298  ;;  %v5465_v27 = vsel %vm967_vm13, %v11756_v9, 0.0 }
 0xf07   :  { %v11761_v24 = vpop.eup %9992  ;;  %10002 = vpow2.f32 %v5407_v28  ;;  %v5409_v38 = vmul.f32 1.442695, %v5364_v37  ;;  %v5365_v3 = vsub.f32 %v11647_v0, %v5299_v55  ;;  %5466 = vadd.xlane.f32.xlu0 %v5465_v27 }
 0xf08   :  { %v5302_v49 = vpop.xlane.xlu1 %5301  ;;  %v5468_v14 = vsel %vm967_vm13, %v11761_v24, 0.0 }
 0xf09   :  { %v11766_v17 = vpop.eup %9994  ;;  %10004 = vpow2.f32 %v5409_v38  ;;  %v5411_v39 = vmul.f32 1.442695, %v5365_v3  ;;  %v5366_v62 = vsub.f32 %v11651_v30, %v5302_v49  ;;  %5469 = vadd.xlane.f32.xlu1 %v5468_v14 }
 0xf0a   :  { %v5305_v7 = vpop.xlane.xlu0 %5304  ;;  %v5471_v35 = vsel %vm967_vm13, %v11766_v17, 0.0 }
 0xf0b   :  { %v11771_v5 = vpop.eup %9996  ;;  %10006 = vpow2.f32 %v5411_v39  ;;  %v5367_v0 = vsub.f32 %v11656_v63, %v5305_v7  ;;  %5472 = vadd.xlane.f32.xlu0 %v5471_v35  ;;  %v5413_v44 = vmul.f32 1.442695, %v5366_v62 }
 0xf0c   :  { %v5308_v56 = vpop.xlane.xlu1 %5307  ;;  %v5474_v8 = vsel %vm967_vm13, %v11771_v5, 0.0 }
 0xf0d   :  { %v11776_v12 = vpop.eup %9998  ;;  %v5415_v60 = vmul.f32 1.442695, %v5367_v0  ;;  %v5368_v30 = vsub.f32 %v11661_v43, %v5308_v56  ;;  %5475 = vadd.xlane.f32.xlu1 %v5474_v8 }
 0xf0e   :  { %v5311_v15 = vpop.xlane.xlu0 %5310  ;;  %v5477_v28 = vsel %vm967_vm13, %v11776_v12, 0.0 }
 0xf0f   :  { %v11781_v37 = vpop.eup %10000  ;;  %10008 = vpow2.f32 %v5415_v60  ;;  %v5369_v63 = vsub.f32 %v11665_v22, %v5311_v15  ;;  %5478 = vadd.xlane.f32.xlu0 %v5477_v28  ;;  %v5417_v3 = vmul.f32 1.442695, %v5368_v30 }
 0xf10   :  { %v5314_v55 = vpop.xlane.xlu1 %5313  ;;  %v5480_v27 = vsel %vm967_vm13, %v11781_v37, 0.0  ;;  %10010 = vpow2.f32 %v5413_v44 }
 0xf11   :  { %v11786_v38 = vpop.eup %10002  ;;  %v5419_v43 = vmul.f32 1.442695, %v5369_v63  ;;  %5481 = vadd.xlane.f32.xlu1 %v5480_v27  ;;  %v5370_v0 = vsub.f32 %v11669_v48, %v5314_v55 }
 0xf12   :  { %v5317_v49 = vpop.xlane.xlu0 %5316  ;;  %v5483_v14 = vsel %vm967_vm13, %v11786_v38, 0.0 }
 0xf13   :  { %v11790_v39 = vpop.eup %10004  ;;  %10012 = vpow2.f32 %v5419_v43  ;;  %v5371_v22 = vsub.f32 %v11673_v33, %v5317_v49  ;;  %5484 = vadd.xlane.f32.xlu0 %v5483_v14  ;;  %v5421_v28 = vmul.f32 1.442695, %v5370_v0 }
 0xf14   :  { %v5320_v62 = vpop.xlane.xlu1 %5319  ;;  %v5486_v7 = vsel %vm967_vm13, %v11790_v39, 0.0  ;;  %10014 = vpow2.f32 %v5417_v3 }
 0xf15   :  { %v11795_v35 = vpop.eup %10006  ;;  %v5423_v56 = vmul.f32 1.442695, %v5371_v22  ;;  %5487 = vadd.xlane.f32.xlu1 %v5486_v7  ;;  %v5372_v60 = vsub.f32 %v11677_v10, %v5320_v62 }
 0xf16   :  { %v5323_v8 = vpop.xlane.xlu0 %5322  ;;  %v5489_v44 = vsel %vm967_vm13, %v11795_v35, 0.0 }
 0xf17   :  { %v5373_v33 = vsub.f32 %v11682_v32, %v5323_v8  ;;  %5490 = vadd.xlane.f32.xlu0 %v5489_v44  ;;  %10016 = vpow2.f32 %v5423_v56  ;;  %v5425_v3 = vmul.f32 1.442695, %v5372_v60 }
 0xf18   :  { %v5326_v30 = vpop.xlane.xlu1 %5325 }
 0xf19   :  { %v11802_v15 = vpop.eup %10008  ;;  %v5427_v63 = vmul.f32 1.442695, %v5373_v33  ;;  %v5374_v56 = vsub.f32 %v11687_v45, %v5326_v30 }
 0xf1a   :  { %v5329_v27 = vpop.xlane.xlu0 %5328  ;;  %v5495_v48 = vsel %vm967_vm13, %v11802_v15, 0.0  ;;  %v11806_v55 = vpop.eup %10010 }
 0xf1b   :  { %10018 = vpow2.f32 %v5427_v63  ;;  %5496 = vadd.xlane.f32.xlu1 %v5495_v48  ;;  %v5375_v32 = vsub.f32 %v11691_v23, %v5329_v27  ;;  %v5492_v62 = vsel %vm967_vm13, %v11806_v55, 0.0 }
 0xf1c   :  { %v5332_v43 = vpop.xlane.xlu1 %5331  ;;  %10020 = vpow2.f32 %v5421_v28  ;;  %v5429_v28 = vmul.f32 1.442695, %v5374_v56 }
 0xf1d   :  { %v11808_v10 = vpop.eup %10012  ;;  %v5376_v49 = vsub.f32 %v11697_v11, %v5332_v43  ;;  %10022 = vpow2.f32 %v5425_v3  ;;  %v5431_v23 = vmul.f32 1.442695, %v5375_v32 }
 0xf1e   :  { %v5449_v14 = vpop.xlane.xlu0 %5448  ;;  %v5501_v22 = vsel %vm967_vm13, %v11808_v10, 0.0  ;;  %v11816_v7 = vpop.eup %10014 }
 0xf1f   :  { %v5433_v0 = vmul.f32 1.442695, %v5376_v49  ;;  %5502 = vadd.xlane.f32.xlu0 %v5501_v22  ;;  %5493 = vadd.xlane.f32.xlu1 %v5492_v62  ;;  %10024 = vrcp.f32 %v5449_v14  ;;  %v5498_v44 = vsel %vm967_vm13, %v11816_v7, 0.0 }
 0xf20   :  { %v5452_v8 = vpop.xlane.xlu1 %5451 }
 0xf21   :  { %10026 = vpow2.f32 %v5433_v0  ;;  %v11821_v60 = vpop.eup %10016 }
 0xf22   :  { %10028 = vrcp.f32 %v5452_v8  ;;  %v5335_v11 = vpop.xlane.xlu0 %5334  ;;  %v5507_v3 = vsel %vm967_vm13, %v11821_v60, 0.0 }
 0xf23   :  { %v5377_v33 = vsub.f32 %v11703_v36, %v5335_v11  ;;  %5499 = vadd.xlane.f32.xlu1 %v5498_v44  ;;  %10030 = vpow2.f32 %v5431_v23  ;;  %v9438_v44 = vunpack.i.h.bf16 %v11589_v21 }
 0xf24   :  { %v5338_v63 = vpop.xlane.xlu1 %5337  ;;  %10032 = vpow2.f32 %v5429_v28 }
 0xf25   :  { %v11824_v27 = vpop.eup %10018  ;;  %v5378_v45 = vsub.f32 %v11707_v16, %v5338_v63  ;;  %v5435_v32 = vmul.f32 1.442695, %v5377_v33  ;;  %v9437_v33 = vunpack.i.l.bf16 %v11589_v21 }
 0xf26   :  { %v5341_v30 = vpop.xlane.xlu0 %5340  ;;  %v5513_v48 = vsel %vm967_vm13, %v11824_v27, 0.0  ;;  %v11831_v43 = vpop.eup %10020 }
 0xf27   :  { %v5437_v49 = vmul.f32 1.442695, %v5378_v45  ;;  %5514 = vadd.xlane.f32.xlu0 %v5513_v48  ;;  %5508 = vadd.xlane.f32.xlu1 %v5507_v3  ;;  %v11833_v14 = vpop.eup %10022  ;;  %v5379_v16 = vsub.f32 %v11711_v20, %v5341_v30  ;;  %v5504_v56 = vsel %vm967_vm13, %v11831_v43, 0.0 }
 0xf28   :  { %v5344_v36 = vpop.xlane.xlu1 %5343  ;;  %v5510_v48 = vsel %vm967_vm13, %v11833_v14, 0.0 }
 0xf29   :  { %10034 = vpow2.f32 %v5437_v49  ;;  %v5380_v22 = vsub.f32 %v11715_v25, %v5344_v36  ;;  %v10025_v62 = vpop.eup %10024  ;;  %v5439_v45 = vmul.f32 1.442695, %v5379_v16  ;;  %v4489_v49 = vpack.c.bf16 %v9438_v44, %v9437_v33 }
 0xf2a   :  { %v5455_v0 = vpop.xlane.xlu0 %5454  ;;  %10036 = vpow2.f32 %v5435_v32  ;;  %v5575_v25 = vmul.f32 %v10025_v62, %v11695_v41  ;;  %v9417_v44 = vunpack.i.l.bf16 %v11591_v53 }
 0xf2b   :  { %v11839_v8 = vpop.eup %10026  ;;  %v5441_v23 = vmul.f32 1.442695, %v5380_v22  ;;  %5505 = vadd.xlane.f32.xlu1 %v5504_v56  ;;  %10038 = vrcp.f32 %v5455_v0 }
 0xf2c   :  { %v10029_v11 = vpop.eup %10028  ;;  %v5458_v28 = vpop.xlane.xlu1 %5457  ;;  %v5522_v20 = vsel %vm967_vm13, %v11839_v8, 0.0 }
 0xf2d   :  { %v5576_v63 = vmul.f32 %v10029_v11, %v11701_v59  ;;  %10040 = vpow2.f32 %v5441_v23  ;;  %5523 = vadd.xlane.f32.xlu0 %v5522_v20  ;;  %v11849_v3 = vpop.eup %10030  ;;  %v9418_v11 = vunpack.i.h.bf16 %v11591_v53 }
 0xf2e   :  { %10042 = vrcp.f32 %v5458_v28  ;;  %v5347_v30 = vpop.xlane.xlu0 %5346  ;;  %v11853_v41 = vpop.eup %10032  ;;  %v5519_v59 = vsel %vm967_vm13, %v11849_v3, 0.0 }
 0xf2f   :  { %v5381_v21 = vsub.f32 %v11719_v57, %v5347_v30  ;;  %5511 = vadd.xlane.f32.xlu1 %v5510_v48  ;;  %v5607_v32 = vpack.c.bf16 %v5576_v63, %v5575_v25  ;;  %10044 = vpow2.f32 %v5439_v45  ;;  %v5516_v0 = vsel %vm967_vm13, %v11853_v41, 0.0 }
 0xf30   :  { %v4490_v30 = vpack.c.bf16 %v9418_v11, %v9417_v44  ;;  %v5350_v48 = vpop.xlane.xlu1 %5349 }
 0xf31   :  { %v5443_v36 = vmul.f32 1.442695, %v5381_v21  ;;  %8854 = vmatmul.mubr.msk.bf16.vlgmr.msra.gmra.mrb[132].mxu0 %vm967_vm13, %v5607_v32  ;;  %v5382_v21 = vsub.f32 %v11725_v18, %v5350_v48 }
 0xf32   :  { %8864 = vmatpush3.bf16.msra.mxu0 %v4489_v49  ;;  %8865 = vmatprep.mubr.msk.bf16.mxu0 %vm10359_vm12, %v12332_v13 }
 0xf33   :  { %v11859_v16 = vpop.eup %10034  ;;  %5520 = vadd.xlane.f32.xlu1 %v5519_v59  ;;  %8875 = vmatprep.subr.bf16.mxu0 %v12332_v13  ;;  %10046 = vpow2.f32 %v5443_v36  ;;  %v5445_v32 = vmul.f32 1.442695, %v5382_v21  ;;  %v9423_v21 = vunpack.i.h.bf16 %v11605_v2 }
 0xf34   :  { %v5528_v57 = vsel %vm967_vm13, %v11859_v16, 0.0  ;;  %v11864_v22 = vpop.eup %10036 }
 0xf35   :  { %5529 = vadd.xlane.f32.xlu0 %v5528_v57  ;;  %v10039_v62 = vpop.eup %10038  ;;  %v5525_v25 = vsel %vm967_vm13, %v11864_v22, 0.0  ;;  %10048 = vpow2.f32 %v5445_v32  ;;  %v9422_v32 = vunpack.i.l.bf16 %v11605_v2  ;;  %v9448_v2 = vunpack.i.h.bf16 %v11611_v19 }
 0xf36   :  { %v5577_v28 = vmul.f32 %v10039_v62, %v11723_v4 }
 0xf37   :  { %v11868_v56 = vpop.eup %10040  ;;  %5517 = vadd.xlane.f32.xlu1 %v5516_v0 }
 0xf38   :  { %v10043_v23 = vpop.eup %10042  ;;  %v5534_v33 = vsel %vm967_vm13, %v11868_v56, 0.0 }
 0xf39   :  { %v5578_v20 = vmul.f32 %v10043_v23, %v11729_v1  ;;  %5535 = vadd.xlane.f32.xlu0 %v5534_v33  ;;  %v11878_v63 = vpop.eup %10044  ;;  %v9443_v33 = vunpack.i.h.bf16 %v11595_v26 }
 0xf3a   :  { %v5531_v53 = vsel %vm967_vm13, %v11878_v63, 0.0 }
 0xf3b   :  { %5526 = vadd.xlane.f32.xlu1 %v5525_v25  ;;  %v5608_v45 = vpack.c.bf16 %v5578_v20, %v5577_v28  ;;  %v9442_v28 = vunpack.i.l.bf16 %v11595_v26 }
 0xf3d   :  { %8860 = vmatmul.mubr.msk.bf16.vlgmr.msra.gmra.mrb[128].mxu1 %vm967_vm13, %v5608_v45  ;;  %v11885_v4 = vpop.eup %10046  ;;  %v4491_v48 = vpack.c.bf16 %v9443_v33, %v9442_v28  ;;  %v9427_v33 = vunpack.i.l.bf16 %v11621_v31 }
 0xf3e   :  { %8870 = vmatpush3.bf16.msra.mxu1 %v4490_v30  ;;  %8871 = vmatprep.mubr.msk.bf16.mxu1 %vm10359_vm12, %v12332_v13  ;;  %v5537_v1 = vsel %vm967_vm13, %v11885_v4, 0.0 }
 0xf3f   :  { %5532 = vadd.xlane.f32.xlu1 %v5531_v53  ;;  %8881 = vmatprep.subr.bf16.mxu1 %v12332_v13  ;;  %v11899_v49 = vpop.eup %10048 }
 0xf40   :  { %v5540_v36 = vsel %vm967_vm13, %v11899_v49, 0.0 }
 0xf43   :  { %5538 = vadd.xlane.f32.xlu1 %v5537_v1 }
 0xf4f   :  { %9465 = vrot.lane.b32.xlu0 %v11430_v52, %s10364_s26 }
 0xf53   :  { %9470 = vrot.lane.b32.xlu0 %v11436_v54, %s10364_s26 }
 0xf54   :  { %9460 = vrot.lane.b32.xlu1 %v11436_v54, %s10363_s9 }
 0xf57   :  { %9475 = vrot.lane.b32.xlu0 %v11430_v52, %s12331_s29 }
 0xf76   :  { %5541 = vadd.xlane.f32.xlu0 %v5540_v36 }
 0xf8c   :  { %9480 = vrot.lane.b32.xlu0 %v11436_v54, %s12331_s29 }
 0xf90   :  { %v5461_v59 = vpop.xlane.xlu0 %5460 }
 0xf91   :  { %10050 = vrcp.f32 %v5461_v59 }
 0xf92   :  { %v5464_v57 = vpop.xlane.xlu1 %5463 }
 0xf93   :  { %10052 = vrcp.f32 %v5464_v57 }
 0xf94   :  { %v5467_v62 = vpop.xlane.xlu0 %5466 }
 0xf95   :  { %10054 = vrcp.f32 %v5467_v62  ;;  %v9447_v62 = vunpack.i.l.bf16 %v11611_v19  ;;  %v9428_v19 = vunpack.i.h.bf16 %v11621_v31  ;;  %v9453_v31 = vunpack.i.h.bf16 %v11627_v47 }
 0xf96   :  { %v5470_v52 = vpop.xlane.xlu1 %5469 }
 0xf97   :  { %10056 = vrcp.f32 %v5470_v52 }
 0xf98   :  { %v5473_v18 = vpop.xlane.xlu0 %5472 }
 0xf99   :  { %10058 = vrcp.f32 %v5473_v18 }
 0xf9a   :  { %v5476_v0 = vpop.xlane.xlu1 %5475 }
 0xf9b   :  { %v10051_v23 = vpop.eup %10050  ;;  %10060 = vrcp.f32 %v5476_v0 }
 0xf9c   :  { %v5479_v11 = vpop.xlane.xlu0 %5478  ;;  %v5579_v54 = vmul.f32 %v10051_v23, %v11746_v46 }
 0xf9d   :  { %v10053_v44 = vpop.eup %10052  ;;  %10062 = vrcp.f32 %v5479_v11 }
 0xf9e   :  { %v5580_v20 = vmul.f32 %v10053_v44, %v11751_v40  ;;  %v5482_v25 = vpop.xlane.xlu1 %5481  ;;  %v4493_v44 = vpack.c.bf16 %v9448_v2, %v9447_v62 }
 0xf9f   :  { %v10055_v45 = vpop.eup %10054  ;;  %10064 = vrcp.f32 %v5482_v25 }
 0xfa0   :  { %v5485_v30 = vpop.xlane.xlu0 %5484  ;;  %v5609_v53 = vpack.c.bf16 %v5580_v20, %v5579_v54  ;;  %v5581_v36 = vmul.f32 %v10055_v45, %v11756_v9  ;;  %v4492_v9 = vpack.c.bf16 %v9423_v21, %v9422_v32 }
 0xfa1   :  { %v10057_v1 = vpop.eup %10056  ;;  %10066 = vrcp.f32 %v5485_v30  ;;  %v9452_v30 = vunpack.i.l.bf16 %v11627_v47 }
 0xfa2   :  { %v5582_v26 = vmul.f32 %v10057_v1, %v11761_v24  ;;  %8866 = vmatmul.mubr.msk.bf16.vlgmr.msra.gmra.mrb[136].mxu0 %vm967_vm13, %v5609_v53  ;;  %v5488_v46 = vpop.xlane.xlu1 %5487 }
 0xfa3   :  { %v10059_v40 = vpop.eup %10058  ;;  %8876 = vmatpush3.bf16.msra.mxu0 %v4491_v48  ;;  %10068 = vrcp.f32 %v5488_v46  ;;  %8877 = vmatprep.mubr.msk.bf16.mxu0 %vm10359_vm12, %v12332_v13  ;;  %v4495_v21 = vpack.c.bf16 %v9453_v31, %v9452_v30 }
 0xfa4   :  { %v5610_v59 = vpack.c.bf16 %v5582_v26, %v5581_v36  ;;  %8887 = vmatprep.subr.bf16.mxu0 %v12332_v13  ;;  %v5583_v24 = vmul.f32 %v10059_v40, %v11766_v17  ;;  %v5491_v17 = vpop.xlane.xlu0 %5490  ;;  %v9433_v36 = vunpack.i.h.bf16 %v11637_v34  ;;  %v9432_v26 = vunpack.i.l.bf16 %v11637_v34 }
 0xfa5   :  { %v10061_v57 = vpop.eup %10060  ;;  %10070 = vrcp.f32 %v5491_v17 }
 0xfa6   :  { %v5584_v52 = vmul.f32 %v10061_v57, %v11771_v5  ;;  %8872 = vmatmul.mubr.msk.bf16.vlgmr.msra.gmra.mrb[132].mxu1 %vm967_vm13, %v5610_v59 }
 0xfa7   :  { %v10063_v18 = vpop.eup %10062  ;;  %8882 = vmatpush3.bf16.msra.mxu1 %v4492_v9  ;;  %8883 = vmatprep.mubr.msk.bf16.mxu1 %vm10359_vm12, %v12332_v13  ;;  %v9458_v9 = vunpack.i.h.bf16 %v11643_v42 }
 0xfa8   :  { %v5497_v0 = vpop.xlane.xlu1 %5496  ;;  %v5611_v23 = vpack.c.bf16 %v5584_v52, %v5583_v24  ;;  %8893 = vmatprep.subr.bf16.mxu1 %v12332_v13  ;;  %v5585_v5 = vmul.f32 %v10063_v18, %v11776_v12  ;;  %v4494_v12 = vpack.c.bf16 %v9428_v19, %v9427_v33  ;;  %v9457_v24 = vunpack.i.l.bf16 %v11643_v42 }
 0xfa9   :  { %v10065_v11 = vpop.eup %10064  ;;  %v4496_v18 = vpack.c.bf16 %v9433_v36, %v9432_v26 }
 0xfaa   :  { %v5586_v28 = vmul.f32 %v10065_v11, %v11781_v37  ;;  %8878 = vmatmul.mubr.msk.bf16.vlgmr.msra.gmra.mrb[140].mxu0 %vm967_vm13, %v5611_v23  ;;  %v4497_v11 = vpack.c.bf16 %v9458_v9, %v9457_v24 }
 0xfab   :  { %v10067_v54 = vpop.eup %10066  ;;  %8888 = vmatpush3.bf16.msra.mxu0 %v4493_v44  ;;  %8889 = vmatprep.mubr.msk.bf16.mxu0 %vm10359_vm12, %v12332_v13 }
 0xfac   :  { %v5494_v20 = vpop.xlane.xlu1 %5493  ;;  %v5612_v25 = vpack.c.bf16 %v5586_v28, %v5585_v5  ;;  %8899 = vmatprep.subr.bf16.mxu0 %v12332_v13  ;;  %v5587_v37 = vmul.f32 %v10067_v54, %v11786_v38  ;;  %v5503_v47 = vpop.xlane.xlu0 %5502 }
 0xfad   :  { %v10069_v45 = vpop.eup %10068  ;;  %10072 = vrcp.f32 %v5494_v20 }
 0xfae   :  { %v5588_v53 = vmul.f32 %v10069_v45, %v11790_v39  ;;  %8884 = vmatmul.mubr.msk.bf16.vlgmr.msra.gmra.mrb[136].mxu1 %vm967_vm13, %v5612_v25  ;;  %10074 = vrcp.f32 %v5497_v0 }
 0xfaf   :  { %8894 = vmatpush3.bf16.msra.mxu1 %v4494_v12  ;;  %8895 = vmatprep.mubr.msk.bf16.mxu1 %vm10359_vm12, %v12332_v13  ;;  %v10071_v39 = vpop.eup %10070 }
 0xfb0   :  { %v5500_v1 = vpop.xlane.xlu1 %5499  ;;  %v5613_v48 = vpack.c.bf16 %v5588_v53, %v5587_v37  ;;  %8905 = vmatprep.subr.bf16.mxu1 %v12332_v13  ;;  %v5589_v59 = vmul.f32 %v10071_v39, %v11795_v35 }
 0xfb1   :  { %10076 = vrcp.f32 %v5500_v1 }
 0xfb2   :  { %8890 = vmatmul.mubr.msk.bf16.vlgmr.msra.gmra.mrb[144].mxu0 %vm967_vm13, %v5613_v48  ;;  %10078 = vrcp.f32 %v5503_v47 }
 0xfb3   :  { %8900 = vmatpush3.bf16.msra.mxu0 %v4495_v21  ;;  %8901 = vmatprep.mubr.msk.bf16.mxu0 %vm10359_vm12, %v12332_v13 }
 0xfb4   :  { %v5509_v38 = vpop.xlane.xlu1 %5508  ;;  %8911 = vmatprep.subr.bf16.mxu0 %v12332_v13  ;;  %v5515_v2 = vpop.xlane.xlu0 %5514 }
 0xfb7   :  { %v10073_v32 = vpop.eup %10072 }
 0xfb8   :  { %v5506_v46 = vpop.xlane.xlu1 %5505  ;;  %v10075_v40 = vpop.eup %10074  ;;  %v5590_v57 = vmul.f32 %v10073_v32, %v11806_v55 }
 0xfb9   :  { %10080 = vrcp.f32 %v5506_v46  ;;  %v5591_v0 = vmul.f32 %v10075_v40, %v11802_v15 }
 0xfba   :  { %10082 = vrcp.f32 %v5509_v38  ;;  %v5614_v52 = vpack.c.bf16 %v5590_v57, %v5589_v59  ;;  %v5524_v35 = vpop.xlane.xlu0 %5523 }
 0xfbb   :  { %v10077_v62 = vpop.eup %10076 }
 0xfbc   :  { %v5592_v34 = vmul.f32 %v10077_v62, %v11816_v7  ;;  %v5512_v23 = vpop.xlane.xlu1 %5511  ;;  %8896 = vmatmul.mubr.msk.bf16.vlgmr.msra.gmra.mrb[140].mxu1 %vm967_vm13, %v5614_v52  ;;  %v10079_v44 = vpop.eup %10078 }
 0xfbd   :  { %10084 = vrcp.f32 %v5512_v23  ;;  %8906 = vmatpush3.bf16.msra.mxu1 %v4496_v18  ;;  %8907 = vmatprep.mubr.msk.bf16.mxu1 %vm10359_vm12, %v12332_v13  ;;  %v5593_v19 = vmul.f32 %v10079_v44, %v11808_v10 }
 0xfbe   :  { %v5615_v55 = vpack.c.bf16 %v5592_v34, %v5591_v0  ;;  %8917 = vmatprep.subr.bf16.mxu1 %v12332_v13 }
 0xfc0   :  { %8902 = vmatmul.mubr.msk.bf16.vlgmr.msra.gmra.mrb[148].mxu0 %vm967_vm13, %v5615_v55  ;;  %v5521_v42 = vpop.xlane.xlu1 %5520 }
 0xfc1   :  { %8912 = vmatpush3.bf16.msra.mxu0 %v4497_v11  ;;  %10086 = vrcp.f32 %v5521_v42  ;;  %8913 = vmatprep.mubr.msk.bf16.mxu0 %vm10359_vm12, %v12332_v13 }
 0xfc2   :  { %v5530_v15 = vpop.xlane.xlu0 %5529  ;;  %8923 = vmatprep.subr.bf16.mxu0 %v12332_v13  ;;  %10088 = vrcp.f32 %v5524_v35 }
 0xfc3   :  { %v10081_v7 = vpop.eup %10080 }
 0xfc4   :  { %v5594_v33 = vmul.f32 %v10081_v7, %v11831_v43  ;;  %v5518_v17 = vpop.xlane.xlu1 %5517  ;;  %v10083_v5 = vpop.eup %10082 }
 0xfc5   :  { %v5595_v25 = vmul.f32 %v10083_v5, %v11821_v60  ;;  %10090 = vrcp.f32 %v5518_v17 }
 0xfc6   :  { %v5536_v28 = vpop.xlane.xlu0 %5535  ;;  %v5616_v54 = vpack.c.bf16 %v5594_v33, %v5593_v19  ;;  %10092 = vrcp.f32 %v5515_v2 }
 0xfc7   :  { %v10085_v20 = vpop.eup %10084  ;;  %10094 = vrcp.f32 %v5536_v28 }
 0xfc8   :  { %v5596_v45 = vmul.f32 %v10085_v20, %v11833_v14  ;;  %8908 = vmatmul.mubr.msk.bf16.vlgmr.msra.gmra.mrb[144].mxu1 %vm967_vm13, %v5616_v54  ;;  %v5527_v31 = vpop.xlane.xlu1 %5526 }
 0xfc9   :  { %8919 = vmatprep.mubr.msk.bf16.mxu1 %vm10359_vm12, %v12332_v13 }
 0xfca   :  { %v9466_v10 = vpop.permute.xlu0 %9465  ;;  %v5617_v30 = vpack.c.bf16 %v5596_v45, %v5595_v25 }
 0xfcb   :  { %v10087_v43 = vpop.eup %10086  ;;  %v9468_v12 = vunpack.i.h.bf16 %v9466_v10  ;;  %v9467_v37 = vunpack.i.l.bf16 %v9466_v10 }
 0xfcc   :  { %8914 = vmatmul.mubr.msk.bf16.vlgmr.msra.gmra.mrb[152].mxu0 %vm967_vm13, %v5617_v30  ;;  %v5533_v53 = vpop.xlane.xlu1 %5532  ;;  %v10089_v60 = vpop.eup %10088  ;;  %v5599_v14 = vmul.f32 %v10087_v43, %v11849_v3 }
 0xfcd   :  { %v4499_v1 = vpack.c.bf16 %v9468_v12, %v9467_v37  ;;  %10096 = vrcp.f32 %v5533_v53  ;;  %8925 = vmatprep.mubr.msk.bf16.mxu0 %vm10359_vm12, %v12332_v13  ;;  %v5600_v21 = vmul.f32 %v10089_v60, %v11839_v8 }
 0xfce   :  { %v9471_v48 = vpop.permute.xlu0 %9470  ;;  %10098 = vrcp.f32 %v5527_v31 }
 0xfcf   :  { %8924 = vmatpush3.bf16.msra.mxu0 %v4499_v1  ;;  %v5619_v39 = vpack.c.bf16 %v5600_v21, %v5599_v14  ;;  %v10091_v32 = vpop.eup %10090  ;;  %10100 = vrcp.f32 %v5530_v15  ;;  %v9473_v9 = vunpack.i.h.bf16 %v9471_v48  ;;  %v9472_v24 = vunpack.i.l.bf16 %v9471_v48 }
 0xfd0   :  { %v5539_v47 = vpop.xlane.xlu1 %5538  ;;  %8935 = vmatprep.subr.bf16.mxu0 %v12332_v13  ;;  %v10093_v46 = vpop.eup %10092  ;;  %v5598_v8 = vmul.f32 %v10091_v32, %v11853_v41 }
 0xfd1   :  { %v10095_v59 = vpop.eup %10094  ;;  %v5597_v18 = vmul.f32 %v10093_v46, %v11824_v27  ;;  %v4500_v11 = vpack.c.bf16 %v9473_v9, %v9472_v24  ;;  %10102 = vrcp.f32 %v5539_v47 }
 0xfd2   :  { %v9476_v38 = vpop.permute.xlu0 %9475  ;;  %v5604_v0 = vmul.f32 %v10095_v59, %v11868_v56 }
 0xfd3   :  { %v9478_v36 = vunpack.i.h.bf16 %v9476_v38  ;;  %v9477_v26 = vunpack.i.l.bf16 %v9476_v38  ;;  %v5618_v23 = vpack.c.bf16 %v5598_v8, %v5597_v18 }
 0xfd4   :  { %8926 = vmatmul.mubr.msk.bf16.vlgmr.msra.gmra.mrb[156].mxu0 %vm967_vm13, %v5619_v39  ;;  %v9461_v40 = vpop.permute.xlu1 %9460 }
 0xfd5   :  { %v4501_v3 = vpack.c.bf16 %v9478_v36, %v9477_v26  ;;  %v9463_v57 = vunpack.i.h.bf16 %v9461_v40  ;;  %v9462_v2 = vunpack.i.l.bf16 %v9461_v40  ;;  %8937 = vmatprep.mubr.msk.bf16.mxu0 %vm10359_vm12, %v12332_v13 }
 0xfd7   :  { %v10097_v62 = vpop.eup %10096  ;;  %v4498_v52 = vpack.c.bf16 %v9463_v57, %v9462_v2  ;;  %8936 = vmatpush3.bf16.msra.mxu0 %v4501_v3 }
 0xfd8   :  { %v5603_v34 = vmul.f32 %v10097_v62, %v11878_v63  ;;  %v10099_v55 = vpop.eup %10098 }
 0xfd9   :  { %8918 = vmatpush3.bf16.msra.mxu1 %v4498_v52  ;;  %v10101_v41 = vpop.eup %10100  ;;  %v5601_v27 = vmul.f32 %v10099_v55, %v11864_v22 }
 0xfda   :  { %8929 = vmatprep.subr.bf16.mxu1 %v12332_v13  ;;  %v5621_v35 = vpack.c.bf16 %v5604_v0, %v5603_v34  ;;  %v5602_v56 = vmul.f32 %v10101_v41, %v11859_v16 }
 0xfdb   :  { %v10103_v16 = vpop.eup %10102 }
 0xfdc   :  { %8920 = vmatmul.mubr.msk.bf16.vlgmr.msra.gmra.mrb[148].mxu1 %vm967_vm13, %v5618_v23  ;;  %8938 = vmatmul.mubr.msk.bf16.vlgmr.msra.gmra.mrb[160].mxu0 %vm967_vm13, %v5621_v35  ;;  %v5620_v63 = vpack.c.bf16 %v5602_v56, %v5601_v27  ;;  %v5605_v54 = vmul.f32 %v10103_v16, %v11885_v4 }
 0xfdd   :  { %8930 = vmatpush3.bf16.msra.mxu1 %v4500_v11  ;;  %8931 = vmatprep.mubr.msk.bf16.mxu1 %vm10359_vm12, %v12332_v13 }
 0xfde   :  { %8941 = vmatprep.subr.bf16.mxu1 %v12332_v13 }
 0xfe4   :  { %8932 = vmatmul.mubr.msk.bf16.vlgmr.msra.gmra.mrb[152].mxu1 %vm967_vm13, %v5620_v63 }
 0xfe5   :  { %8943 = vmatprep.mubr.msk.bf16.mxu1 %vm10359_vm12, %v12332_v13 }
0x1003   :  { %v5542_v42 = vpop.xlane.xlu0 %5541 }
0x1004   :  { %10104 = vrcp.f32 %v5542_v42  ;;  %v11992_v44 = vpop.f32.mrb[132].mxu0 }
0x1005   :  { %v8855_v15 = vpop.f32.mrb[133].mxu0 }
0x1006   :  { %v11994_v7 = vpop.f32.mrb[134].mxu0 }
0x1007   :  { %v8856_v19 = vpop.f32.mrb[135].mxu0  ;;  %v9481_v22 = vpop.permute.xlu0 %9480 }
0x1008   :  { %v9483_v33 = vunpack.i.h.bf16 %v9481_v22  ;;  %v9482_v17 = vunpack.i.l.bf16 %v9481_v22 }
0x100a   :  { %v4502_v5 = vpack.c.bf16 %v9483_v33, %v9482_v17 }
0x100c   :  { %8942 = vmatpush3.bf16.msra.mxu1 %v4502_v5 }
0x100e   :  { %v10105_v28 = vpop.eup %10104 }
0x100f   :  { %v5606_v20 = vmul.f32 %v10105_v28, %v11899_v49 }
0x1010   :  { %v11998_v25 = vpop.f32.mrb[128].mxu1 }
0x1011   :  { %v8861_v45 = vpop.f32.mrb[129].mxu1  ;;  %v5622_v31 = vpack.c.bf16 %v5606_v20, %v5605_v54 }
0x1012   :  { %v12000_v10 = vpop.f32.mrb[130].mxu1 }
0x1013   :  { %v8862_v30 = vpop.f32.mrb[131].mxu1  ;;  %8944 = vmatmul.mubr.msk.bf16.vlgmr.msra.gmra.mrb[156].mxu1 %vm967_vm13, %v5622_v31 }
0x1014   :  { %6913 = vmatprep.mubr.bf16.mxu1 %v12333_v29 }
0x1075   :  { %v5748_v43 = vpop.f32.mrb[136].mxu0 }
0x1076   :  { %v8867_v12 = vpop.f32.mrb[137].mxu0 }
0x1077   :  { %v5751_v37 = vpop.f32.mrb[138].mxu0 }
0x1078   :  { %v9484_v53 = vpack.i.bf16 %v5751_v37, %v5748_v43  ;;  %v8868_v60 = vpop.f32.mrb[139].mxu0 }
0x1079   :  { %v5792_v1 = vpop.f32.mrb[132].mxu1 }
0x107a   :  { %v8873_v4 = vpop.f32.mrb[133].mxu1  ;;  %9485 = vrot.lane.b32.xlu1 %v9484_v53, %s12331_s29  ;;  %v9722_v53 = vld [vmem:[#allocation7 + $0x40] sm:$0xff]  }
0x107b   :  { %v5795_v49 = vpop.f32.mrb[134].mxu1  ;;  %8947 = vmatprep.subr.bf16.mxu0 %v9722_v53 }
0x107c   :  { %v9494_v14 = vpack.i.bf16 %v5795_v49, %v5792_v1  ;;  %v8874_v48 = vpop.f32.mrb[135].mxu1  ;;  %8948 = vmatpush3.bf16.msra.mxu0 %v9722_v53 }
0x107d   :  { %v5836_v21 = vpop.f32.mrb[140].mxu0  ;;  %v9724_v48 = vld [vmem:[#allocation7 + $0x50] sm:$0xff]  }
0x107e   :  { %9495 = vrot.lane.b32.xlu1 %v9494_v14, %s12331_s29  ;;  %v8879_v47 = vpop.f32.mrb[141].mxu0  ;;  %v9723_v14 = vld [vmem:[#allocation7 + $0x48] sm:$0xff]  }
0x107f   :  { %v5839_v38 = vpop.f32.mrb[142].mxu0  ;;  %8949 = vmatprep.subr.bf16.mxu0 %v9723_v14 }
0x1080   :  { %v9489_v39 = vpack.i.bf16 %v5839_v38, %v5836_v21  ;;  %v8880_v32 = vpop.f32.mrb[143].mxu0  ;;  %8950 = vmatpush3.bf16.msra.mxu0 %v9723_v14 }
0x1081   :  { %v5880_v36 = vpop.f32.mrb[136].mxu1  ;;  %8951 = vmatprep.subr.bf16.mxu0 %v9724_v48 }
0x1082   :  { %v8885_v26 = vpop.f32.mrb[137].mxu1  ;;  %9490 = vrot.lane.b32.xlu0 %v9489_v39, %s10364_s26 }
0x1083   :  { %v5883_v46 = vpop.f32.mrb[138].mxu1  ;;  %v9726_v26 = vld [vmem:[#allocation7 + $0x60] sm:$0xff]  }
0x1084   :  { %v9504_v40 = vpack.i.bf16 %v5883_v46, %v5880_v36  ;;  %v8886_v59 = vpop.f32.mrb[139].mxu1  ;;  %v9725_v36 = vld [vmem:[#allocation7 + $0x58] sm:$0xff]   ;;  %8952 = vmatpush3.bf16.msra.mxu0 %v9724_v48  ;;  %v9727_v46 = vld [vmem:[#allocation7 + $0x68] sm:$0xff]  }
0x1085   :  { %v5924_v3 = vpop.f32.mrb[144].mxu0  ;;  %8953 = vmatprep.subr.bf16.mxu0 %v9725_v36  ;;  %v9729_v59 = vld [vmem:[#allocation7 + $0x78] sm:$0xff]  }
0x1086   :  { %9505 = vrot.lane.b32.xlu1 %v9504_v40, %s10364_s26  ;;  %v8891_v57 = vpop.f32.mrb[145].mxu0  ;;  %v9728_v40 = vld [vmem:[#allocation7 + $0x70] sm:$0xff]  }
0x1087   :  { %v5927_v2 = vpop.f32.mrb[146].mxu0 }
0x1088   :  { %v9499_v8 = vpack.i.bf16 %v5927_v2, %v5924_v3  ;;  %v8892_v62 = vpop.f32.mrb[147].mxu0  ;;  %8954 = vmatpush3.bf16.msra.mxu0 %v9725_v36 }
0x1089   :  { %8955 = vmatprep.subr.bf16.mxu0 %v9726_v26 }
0x108a   :  { %9500 = vrot.lane.b32.xlu0 %v9499_v8, %s10363_s9 }
0x108c   :  { %8956 = vmatpush3.bf16.msra.mxu0 %v9726_v26 }
0x108d   :  { %8957 = vmatprep.subr.bf16.mxu0 %v9727_v46 }
0x108f   :  { %v5968_v9 = vpop.f32.mrb[140].mxu1 }
0x1090   :  { %v8897_v24 = vpop.f32.mrb[141].mxu1  ;;  %8958 = vmatpush3.bf16.msra.mxu0 %v9727_v46 }
0x1091   :  { %v5971_v52 = vpop.f32.mrb[142].mxu1  ;;  %8959 = vmatprep.subr.bf16.mxu0 %v9728_v40 }
0x1092   :  { %v9514_v18 = vpack.i.bf16 %v5971_v52, %v5968_v9  ;;  %v8898_v0 = vpop.f32.mrb[143].mxu1 }
0x1093   :  { %v6012_v34 = vpop.f32.mrb[148].mxu0 }
0x1094   :  { %v8903_v23 = vpop.f32.mrb[149].mxu0  ;;  %9515 = vrot.lane.b32.xlu1 %v9514_v18, %s10363_s9  ;;  %8960 = vmatpush3.bf16.msra.mxu0 %v9728_v40 }
0x1095   :  { %v6015_v35 = vpop.f32.mrb[150].mxu0  ;;  %8961 = vmatprep.subr.bf16.mxu0 %v9729_v59 }
0x1096   :  { %v9509_v55 = vpack.i.bf16 %v6015_v35, %v6012_v34  ;;  %v8904_v11 = vpop.f32.mrb[151].mxu0 }
0x1098   :  { %9510 = vrot.lane.b32.xlu0 %v9509_v55, %s10349_s7  ;;  %8962 = vmatpush3.bf16.msra.mxu0 %v9729_v59 }
0x109b   :  { %v6056_v41 = vpop.f32.mrb[144].mxu1 }
0x109c   :  { %v8909_v27 = vpop.f32.mrb[145].mxu1 }
0x109d   :  { %v6059_v56 = vpop.f32.mrb[146].mxu1 }
0x109e   :  { %v9524_v63 = vpack.i.bf16 %v6059_v56, %v6056_v41  ;;  %v8910_v42 = vpop.f32.mrb[147].mxu1 }
0x109f   :  { %v6100_v15 = vpop.f32.mrb[152].mxu0 }
0x10a0   :  { %9525 = vrot.lane.b32.xlu1 %v9524_v63, %s10349_s7  ;;  %v8915_v19 = vpop.f32.mrb[153].mxu0  ;;  %s12338_s7 = sld [smem:[#allocation28_spill]] }
0x10a1   :  { %v6103_v22 = vpop.f32.mrb[154].mxu0 }
0x10a2   :  { %v9519_v33 = vpack.i.bf16 %v6103_v22, %v6100_v15  ;;  %v8916_v17 = vpop.f32.mrb[155].mxu0 }
0x10a4   :  { %9520 = vrot.lane.b32.xlu0 %v9519_v33, %s10362_s1 }
0x10a7   :  { %v6188_v5 = vpop.f32.mrb[156].mxu0 }
0x10a8   :  { %v8927_v16 = vpop.f32.mrb[157].mxu0 }
0x10a9   :  { %v6191_v28 = vpop.f32.mrb[158].mxu0 }
0x10aa   :  { %v9529_v54 = vpack.i.bf16 %v6191_v28, %v6188_v5  ;;  %v8928_v20 = vpop.f32.mrb[159].mxu0 }
0x10ac   :  { %9530 = vrot.lane.b32.xlu0 %v9529_v54, %s10361_s23 }
0x10af   :  { %v6144_v45 = vpop.f32.mrb[148].mxu1  ;;  %v6276_v31 = vpop.f32.mrb[160].mxu0 }
0x10b0   :  { %v8921_v30 = vpop.f32.mrb[149].mxu1  ;;  %v8939_v43 = vpop.f32.mrb[161].mxu0 }
0x10b1   :  { %v6147_v12 = vpop.f32.mrb[150].mxu1  ;;  %v6279_v37 = vpop.f32.mrb[162].mxu0 }
0x10b2   :  { %v9534_v60 = vpack.i.bf16 %v6147_v12, %v6144_v45  ;;  %v9539_v1 = vpack.i.bf16 %v6279_v37, %v6276_v31  ;;  %v8922_v4 = vpop.f32.mrb[151].mxu1  ;;  %v8940_v49 = vpop.f32.mrb[163].mxu0 }
0x10b4   :  { %9535 = vrot.lane.b32.xlu1 %v9534_v60, %s10362_s1  ;;  %9540 = vrot.lane.b32.xlu0 %v9539_v1, %s10360_s3 }
0x10b7   :  { %v6232_v21 = vpop.f32.mrb[152].mxu1 }
0x10b8   :  { %v8933_v47 = vpop.f32.mrb[153].mxu1 }
0x10b9   :  { %v6235_v38 = vpop.f32.mrb[154].mxu1 }
0x10ba   :  { %v9544_v39 = vpack.i.bf16 %v6235_v38, %v6232_v21  ;;  %v8934_v32 = vpop.f32.mrb[155].mxu1 }
0x10bc   :  { %9545 = vrot.lane.b32.xlu1 %v9544_v39, %s10361_s23 }
0x10e6   :  { %v6320_v3 = vpop.f32.mrb[156].mxu1 }
0x10e7   :  { %v8945_v57 = vpop.f32.mrb[157].mxu1 }
0x10e8   :  { %v6323_v2 = vpop.f32.mrb[158].mxu1 }
0x10e9   :  { %v9549_v8 = vpack.i.bf16 %v6323_v2, %v6320_v3  ;;  %v8946_v62 = vpop.f32.mrb[159].mxu1 }
0x10eb   :  { %9550 = vrot.lane.b32.xlu0 %v9549_v8, %s10360_s3 }
0x10ec   :  { %v9486_v18 = vpop.permute.xlu1 %9485 }
0x10ed   :  { %v9488_v34 = vunpack.i.h.bf16 %v9486_v18  ;;  %v9487_v23 = vunpack.i.l.bf16 %v9486_v18 }
0x10ef   :  { %v6384_v42 = vsel %vm967_vm13, %v11994_v7, %v9488_v34  ;;  %v6383_v15 = vsel %vm967_vm13, %v11992_v44, %v9487_v23 }
0x10f0   :  { %v9496_v4 = vpop.permute.xlu1 %9495 }
0x10f1   :  { %v9498_v47 = vunpack.i.h.bf16 %v9496_v4  ;;  %v9497_v38 = vunpack.i.l.bf16 %v9496_v4 }
0x10f3   :  { %v6454_v3 = vsel %vm967_vm13, %v12000_v10, %v9498_v47  ;;  %v6453_v57 = vsel %vm967_vm13, %v11998_v25, %v9497_v38 }
0x10f4   :  { %v9491_v9 = vpop.permute.xlu0 %9490 }
0x10f5   :  { %v9493_v35 = vunpack.i.h.bf16 %v9491_v9  ;;  %v9492_v55 = vunpack.i.l.bf16 %v9491_v9 }
0x10f7   :  { %v6386_v33 = vsel %vm2850_vm14, %v6384_v42, %v9493_v35  ;;  %v6385_v17 = vsel %vm2850_vm14, %v6383_v15, %v9492_v55  ;;  %v8085_v15 = vld [vmem:[%s12273_s6 + $0x1] ss:$0 sm:$0xff] }
0x10f8   :  { %v9506_v49 = vpop.permute.xlu1 %9505 }
0x10f9   :  { %v9508_v39 = vunpack.i.h.bf16 %v9506_v49  ;;  %v9507_v32 = vunpack.i.l.bf16 %v9506_v49 }
0x10fb   :  { %v6455_v62 = vsel %vm2850_vm14, %v6453_v57, %v9507_v32  ;;  %v6456_v9 = vsel %vm2850_vm14, %v6454_v3, %v9508_v39  ;;  %v9742_v3 = vld [vmem:[#allocation8 + $0x140] ss:$16 sps:$4 sm:$0xff]   ;;  %v9745_v57 = vld [vmem:[#allocation8 + $0x148] ss:$16 sps:$4 sm:$0xff]  }
0x10fc   :  { %v9501_v24 = vpop.permute.xlu0 %9500 }
0x10fd   :  { %v9503_v11 = vunpack.i.h.bf16 %v9501_v24  ;;  %v9502_v41 = vunpack.i.l.bf16 %v9501_v24 }
0x10ff   :  { %v6388_v28 = vsel %vm2853_vm15, %v6386_v33, %v9503_v11  ;;  %v6387_v54 = vsel %vm2853_vm15, %v6385_v17, %v9502_v41 }
0x1106   :  { %v9516_v14 = vpop.permute.xlu1 %9515 }
0x1107   :  { %v9518_v36 = vunpack.i.h.bf16 %v9516_v14  ;;  %v9517_v26 = vunpack.i.l.bf16 %v9516_v14 }
0x1109   :  { %v6457_v18 = vsel %vm2853_vm15, %v6455_v62, %v9517_v26  ;;  %v9748_v62 = vld [vmem:[#allocation8 + $0x160] ss:$16 sps:$4 sm:$0xff]  }
0x110a   :  { %v9511_v52 = vpop.permute.xlu0 %9510 }
0x110b   :  { %v9513_v56 = vunpack.i.h.bf16 %v9511_v52  ;;  %v9512_v63 = vunpack.i.l.bf16 %v9511_v52 }
0x110d   :  { %v6390_v20 = vsel %vm2856_vm0, %v6388_v28, %v9513_v56  ;;  %v6389_v45 = vsel %vm2856_vm0, %v6387_v54, %v9512_v63 }
0x1112   :  { %v9526_v48 = vpop.permute.xlu1 %9525 }
0x1113   :  { %v9528_v40 = vunpack.i.h.bf16 %v9526_v48  ;;  %v9527_v59 = vunpack.i.l.bf16 %v9526_v48 }
0x1115   :  { %v6459_v34 = vsel %vm2856_vm0, %v6457_v18, %v9527_v59  ;;  %v9747_v59 = vld [vmem:[#allocation8 + $0x14c] ss:$16 sps:$4 sm:$0xff]   ;;  %v9754_v18 = vld [vmem:[#allocation8 + $0x180] ss:$16 sps:$4 sm:$0xff]  }
0x1116   :  { %v9521_v0 = vpop.permute.xlu0 %9520 }
0x1117   :  { %v9523_v19 = vunpack.i.h.bf16 %v9521_v0  ;;  %v9522_v22 = vunpack.i.l.bf16 %v9521_v0  ;;  %v6458_v0 = vsel %vm2853_vm15, %v6456_v9, %v9518_v36  ;;  %v9751_v9 = vld [vmem:[#allocation8 + $0x168] ss:$16 sps:$4 sm:$0xff]  }
0x1118   :  { %v6460_v23 = vsel %vm2856_vm0, %v6458_v0, %v9528_v40  ;;  %v9744_v40 = vld [vmem:[#allocation8 + $0x144] ss:$16 sps:$4 sm:$0xff]   ;;  %v9757_v0 = vld [vmem:[#allocation8 + $0x188] ss:$16 sps:$4 sm:$0xff]  }
0x1119   :  { %v6392_v31 = vsel %vm2859_vm1, %v6390_v20, %v9523_v19  ;;  %v6391_v44 = vsel %vm2859_vm1, %v6389_v45, %v9522_v22 }
0x111e   :  { %v9531_v27 = vpop.permute.xlu0 %9530 }
0x111f   :  { %v9533_v5 = vunpack.i.h.bf16 %v9531_v27  ;;  %v9532_v16 = vunpack.i.l.bf16 %v9531_v27 }
0x1121   :  { %v6394_v12 = vsel %vm2862_vm2, %v6392_v31, %v9533_v5  ;;  %v6393_v37 = vsel %vm2862_vm2, %v6391_v44, %v9532_v16  ;;  %v9730_v44 = vld [vmem:[#allocation8 + $0x100] ss:$16 sps:$4 sm:$0xff]  }
0x1126   :  { %v9541_v7 = vpop.permute.xlu0 %9540  ;;  %v9536_v21 = vpop.permute.xlu1 %9535 }
0x1127   :  { %v9543_v30 = vunpack.i.h.bf16 %v9541_v7  ;;  %v9542_v43 = vunpack.i.l.bf16 %v9541_v7  ;;  %v9538_v2 = vunpack.i.h.bf16 %v9536_v21  ;;  %v9537_v8 = vunpack.i.l.bf16 %v9536_v21 }
0x1129   :  { %v6395_v53 = vsel %vm2865_vm3, %v6393_v37, %v9542_v43  ;;  %v6396_v60 = vsel %vm2865_vm3, %v6394_v12, %v9543_v30  ;;  %v6461_v35 = vsel %vm2859_vm1, %v6459_v34, %v9537_v8  ;;  %v6462_v25 = vsel %vm2859_vm1, %v6460_v23, %v9538_v2  ;;  %v9732_v30 = vld [vmem:[#allocation8 + $0x104] ss:$16 sps:$4 sm:$0xff]   ;;  %v9733_v43 = vld [vmem:[#allocation8 + $0x108] ss:$16 sps:$4 sm:$0xff]   ;;  %v9735_v12 = vld [vmem:[#allocation8 + $0x10c] ss:$16 sps:$4 sm:$0xff]  }
0x112a   :  { %v6467_v1 = vpack.c.bf16 %v6396_v60, %v6395_v53  ;;  %v9738_v37 = vld [vmem:[#allocation8 + $0x124] ss:$16 sps:$4 sm:$0xff]   ;;  %6881 = vmatprep.subr.bf16.mxu1 %v9732_v30  ;;  %6934 = vmatprep.subr.bf16.mxu0 %v9735_v12  ;;  %v9736_v53 = vld [vmem:[#allocation8 + $0x120] ss:$16 sps:$4 sm:$0xff]   ;;  %v9753_v8 = vld [vmem:[#allocation8 + $0x16c] ss:$16 sps:$4 sm:$0xff]  }
0x112b   :  { %6882 = vmatpush1.bf16.msra.mxu1 %v9730_v44  ;;  %v9750_v2 = vld [vmem:[#allocation8 + $0x164] ss:$16 sps:$4 sm:$0xff]   ;;  %v9760_v34 = vld [vmem:[#allocation8 + $0x1a0] ss:$16 sps:$4 sm:$0xff]  }
0x112c   :  { %8963 = vmatprep.mubr.bf16.mxu0 %v6467_v1  ;;  %6883 = vmatprep.subr.bf16.mxu1 %v9738_v37  ;;  %v9762_v23 = vld [vmem:[#allocation8 + $0x1a4] ss:$16 sps:$4 sm:$0xff]  }
0x112e   :  { %v9546_v46 = vpop.permute.xlu1 %9545 }
0x112f   :  { %v9548_v24 = vunpack.i.h.bf16 %v9546_v46  ;;  %v9547_v52 = vunpack.i.l.bf16 %v9546_v46  ;;  %6884 = vmatpush1.bf16.msra.mxu1 %v9736_v53 }
0x1130   :  { %6885 = vmatprep.subr.bf16.mxu1 %v9744_v40 }
0x1131   :  { %v6463_v41 = vsel %vm2862_vm2, %v6461_v35, %v9547_v52  ;;  %v6464_v27 = vsel %vm2862_vm2, %v6462_v25, %v9548_v24  ;;  %v9756_v24 = vld [vmem:[#allocation8 + $0x184] ss:$16 sps:$4 sm:$0xff]   ;;  %v9759_v52 = vld [vmem:[#allocation8 + $0x18c] ss:$16 sps:$4 sm:$0xff]  }
0x1132   :  { %v9765_v35 = vld [vmem:[#allocation8 + $0x1ac] ss:$16 sps:$4 sm:$0xff]   ;;  %v9768_v25 = vld [vmem:[#allocation8 + $0x1c4] ss:$16 sps:$4 sm:$0xff]  }
0x1133   :  { %6886 = vmatpush1.bf16.msra.mxu1 %v9742_v3  ;;  %v9786_v3 = vld [vmem:[#allocation10 + $0x150] sm:$0xff]  }
0x1134   :  { %6887 = vmatprep.subr.bf16.mxu1 %v9750_v2 }
0x1137   :  { %6888 = vmatpush1.bf16.msra.mxu1 %v9748_v62  ;;  %v9789_v62 = vld [vmem:[#allocation10 + $0x190] sm:$0xff]  }
0x1138   :  { %6889 = vmatprep.subr.bf16.mxu1 %v9756_v24  ;;  %v9791_v24 = vld [vmem:[#allocation10 + $0x1d8] sm:$0xff]  }
0x113b   :  { %6890 = vmatpush1.bf16.msra.mxu1 %v9754_v18  ;;  %v9793_v18 = vld [vmem:[#allocation10 + $0x198] sm:$0xff]  }
0x113c   :  { %6891 = vmatprep.subr.bf16.mxu1 %v9762_v23  ;;  %v9796_v23 = vld [vmem:[#allocation10 + $0x120] sm:$0xff]  }
0x113f   :  { %6892 = vmatpush1.bf16.msra.mxu1 %v9760_v34  ;;  %v9795_v34 = vld [vmem:[#allocation10 + $0x1e0] sm:$0xff]  }
0x1140   :  { %6893 = vmatprep.subr.bf16.mxu1 %v9768_v25  ;;  %v9799_v25 = vld [vmem:[#allocation10 + $0x1e8] sm:$0xff]  }
0x115d   :  { %v9551_v10 = vpop.permute.xlu0 %9550 }
0x115e   :  { %v9553_v55 = vunpack.i.h.bf16 %v9551_v10  ;;  %v9552_v11 = vunpack.i.l.bf16 %v9551_v10  ;;  %v9763_v10 = vld [vmem:[#allocation8 + $0x1a8] ss:$16 sps:$4 sm:$0xff]  }
0x1160   :  { %v6466_v56 = vsel %vm2865_vm3, %v6464_v27, %v9553_v55  ;;  %v6465_v63 = vsel %vm2865_vm3, %v6463_v41, %v9552_v11  ;;  %v9771_v55 = vld [vmem:[#allocation8 + $0x1cc] ss:$16 sps:$4 sm:$0xff]   ;;  %v9766_v11 = vld [vmem:[#allocation8 + $0x1c0] ss:$16 sps:$4 sm:$0xff]   ;;  %v9769_v41 = vld [vmem:[#allocation8 + $0x1c8] ss:$16 sps:$4 sm:$0xff]  }
0x1161   :  { %v6468_v42 = vpack.c.bf16 %v6466_v56, %v6465_v63  ;;  %v9774_v27 = vld [vmem:[#allocation8 + $0x1e4] ss:$16 sps:$4 sm:$0xff]   ;;  %v9777_v56 = vld [vmem:[#allocation8 + $0x1ec] ss:$16 sps:$4 sm:$0xff]   ;;  %6894 = vmatpush1.bf16.msra.mxu1 %v9766_v11  ;;  %v9772_v63 = vld [vmem:[#allocation8 + $0x1e0] ss:$16 sps:$4 sm:$0xff]  }
0x1162   :  { %6895 = vmatprep.subr.bf16.mxu1 %v9774_v27  ;;  %v9801_v11 = vld [vmem:[#allocation10 + $0x1a8] sm:$0xff]   ;;  %v9803_v27 = vld [vmem:[#allocation10 + $0x1f0] sm:$0xff]  }
0x1163   :  { %8964 = vmatmul.mubr.bf16.vlgmr.msra.gmra.mrb[164].mxu0 %v6468_v42  ;;  %v9775_v42 = vld [vmem:[#allocation8 + $0x1e8] ss:$16 sps:$4 sm:$0xff]  }
0x1164   :  { %6966 = vmatprep.mubr.bf16.mxu0 %v12333_v29  ;;  %6935 = vmatpush1.bf16.msra.mxu0 %v9733_v43  ;;  %v8096_v43 = vld [vmem:[%s12278_s11 + $0x1] ss:$0 sm:$0xff] }
0x1165   :  { %6896 = vmatpush1.bf16.msra.mxu1 %v9772_v63  ;;  %v9805_v63 = vld [vmem:[#allocation10 + $0x1b0] sm:$0xff]  }
0x1236   :  { %v8965_v19 = vpop.f32.mrb[164].mxu0 }
0x1237   :  { %v6576_v22 = vpop.f32.mrb[165].mxu0  ;;  %v6585_v20 = vadd.f32 %v8965_v19, %v8085_v15  ;;  %v9779_v19 = vld [vmem:[#allocation10 + $0x1c0] sm:$0xff]  }
0x1238   :  { %v6577_v33 = vadd.f32 %v8085_v15, %v6576_v22  ;;  %v8966_v17 = vpop.f32.mrb[166].mxu0 }
0x1239   :  { %v6579_v5 = vpop.f32.mrb[167].mxu0  ;;  %v6588_v28 = vadd.f32 %v8966_v17, %v8085_v15  ;;  %v6593_v31 = vadd.f32 %v6585_v20, %v11394_v51 }
0x123a   :  { %v6591_v16 = vadd.f32 %v6577_v33, %v11385_v50  ;;  %v6580_v54 = vadd.f32 %v8085_v15, %v6579_v5  ;;  %v9741_v50 = vld [vmem:[#allocation8 + $0x12c] ss:$16 sps:$4 sm:$0xff]   ;;  %v9778_v15 = vld [vmem:[#allocation10 + $0x140] sm:$0xff]  }
0x123b   :  { %v6594_v7 = vadd.f32 %v6588_v28, %v11396_v58  ;;  %6936 = vmatprep.subr.bf16.mxu0 %v9741_v50  ;;  %8447 = vmatprep.subr.bf16.mxu1 %v9778_v15  ;;  %v9807_v15 = vld [vmem:[#allocation10 + $0x1f8] sm:$0xff]  }
0x123c   :  { %v6592_v45 = vadd.f32 %v6580_v54, %v11387_v61  ;;  %6599 = vadd.xlane.f32.xlu1 %v6591_v16  ;;  %v9739_v61 = vld [vmem:[#allocation8 + $0x128] ss:$16 sps:$4 sm:$0xff]  }
0x123d   :  { %6937 = vmatpush1.bf16.msra.mxu0 %v9739_v61  ;;  %v8097_v61 = vld [vmem:[%s12279_s12 + $0x1] ss:$0 sm:$0xff]  ;;  %s10365_s12 = smov [#allocation13]  }
0x123e   :  { %6601 = vadd.xlane.f32.xlu0 %v6592_v45  ;;  %6938 = vmatprep.subr.bf16.mxu0 %v9747_v59  ;;  %v9785_v59 = vld [vmem:[#allocation10 + $0x188] sm:$0xff]  }
0x1240   :  { %6605 = vadd.xlane.f32.xlu1 %v6594_v7 }
0x1241   :  { %6939 = vmatpush1.bf16.msra.mxu0 %v9745_v57  ;;  %v9787_v57 = vld [vmem:[#allocation10 + $0x1d0] sm:$0xff]  }
0x1242   :  { %6603 = vadd.xlane.f32.xlu0 %v6593_v31  ;;  %6940 = vmatprep.subr.bf16.mxu0 %v9753_v8  ;;  %v9788_v8 = vld [vmem:[#allocation10 + $0x110] sm:$0xff]  }
0x1245   :  { %6941 = vmatpush1.bf16.msra.mxu0 %v9751_v9  ;;  %v9790_v9 = vld [vmem:[#allocation10 + $0x158] sm:$0xff]  }
0x1246   :  { %6942 = vmatprep.subr.bf16.mxu0 %v9759_v52  ;;  %v9792_v52 = vld [vmem:[#allocation10 + $0x118] sm:$0xff]  }
0x1249   :  { %6943 = vmatpush1.bf16.msra.mxu0 %v9757_v0  ;;  %v9794_v0 = vld [vmem:[#allocation10 + $0x160] sm:$0xff]  }
0x124a   :  { %6944 = vmatprep.subr.bf16.mxu0 %v9765_v35  ;;  %v9798_v35 = vld [vmem:[#allocation10 + $0x168] sm:$0xff]  }
0x124d   :  { %6945 = vmatpush1.bf16.msra.mxu0 %v9763_v10  ;;  %v9797_v10 = vld [vmem:[#allocation10 + $0x1a0] sm:$0xff]  }
0x124e   :  { %6946 = vmatprep.subr.bf16.mxu0 %v9771_v55  ;;  %v9800_v55 = vld [vmem:[#allocation10 + $0x128] sm:$0xff]  }
0x1251   :  { %6947 = vmatpush1.bf16.msra.mxu0 %v9769_v41  ;;  %v9802_v41 = vld [vmem:[#allocation10 + $0x170] sm:$0xff]  }
0x1252   :  { %6948 = vmatprep.subr.bf16.mxu0 %v9777_v56  ;;  %v9804_v56 = vld [vmem:[#allocation10 + $0x130] sm:$0xff]  }
0x1255   :  { %6949 = vmatpush1.bf16.msra.mxu0 %v9775_v42  ;;  %v9806_v42 = vld [vmem:[#allocation10 + $0x178] sm:$0xff]  }
0x1256   :  { %8475 = vmatprep.subr.bf16.mxu0 %v9779_v19  ;;  %v9808_v19 = vld [vmem:[#allocation10 + $0x138] sm:$0xff]  }
0x12c9   :  { %v6600_v58 = vpop.xlane.xlu1 %6599 }
0x12ca   :  { %v6607_v51 = vmul.f32 0.0078125, %v6600_v58 }
0x12cb   :  { %v6602_v60 = vpop.xlane.xlu0 %6601 }
0x12cc   :  { %v12058_v1 = vsub.f32 %v6591_v16, %v6607_v51  ;;  %v6608_v4 = vmul.f32 0.0078125, %v6602_v60 }
0x12cd   :  { %v6606_v49 = vpop.xlane.xlu1 %6605 }
0x12ce   :  { %v12060_v14 = vsub.f32 %v6592_v45, %v6608_v4  ;;  %v6610_v48 = vmul.f32 0.0078125, %v6606_v49  ;;  %v6615_v21 = vmul.f32 %v12058_v1, %v12058_v1 }
0x12cf   :  { %v6604_v47 = vpop.xlane.xlu0 %6603 }
0x12d0   :  { %v12064_v38 = vsub.f32 %v6594_v7, %v6610_v48  ;;  %v6609_v39 = vmul.f32 0.0078125, %v6604_v47  ;;  %6619 = vadd.xlane.f32.xlu0 %v6615_v21  ;;  %v6616_v32 = vmul.f32 %v12060_v14, %v12060_v14  ;;  %v9780_v47 = vld [vmem:[#allocation10 + $0x100] sm:$0xff]  }
0x12d2   :  { %v12068_v36 = vsub.f32 %v6593_v31, %v6609_v39  ;;  %6621 = vadd.xlane.f32.xlu1 %v6616_v32  ;;  %v6618_v46 = vmul.f32 %v12064_v38, %v12064_v38  ;;  %v9781_v39 = vld [vmem:[#allocation10 + $0x180] sm:$0xff]  }
0x12d4   :  { %v6617_v26 = vmul.f32 %v12068_v36, %v12068_v36 }
0x12d6   :  { %6623 = vadd.xlane.f32.xlu0 %v6617_v26  ;;  %6625 = vadd.xlane.f32.xlu1 %v6618_v46  ;;  %v9782_v26 = vld [vmem:[#allocation10 + $0x148] sm:$0xff]  }
0x12d7   :  { %v9783_v46 = vld [vmem:[#allocation10 + $0x1c8] sm:$0xff]  }
0x135d   :  { %v6620_v22 = vpop.xlane.xlu0 %6619 }
0x135e   :  { %v6627_v33 = vmul.f32 0.0078125, %v6620_v22  ;;  %v9809_v22 = vld [vmem:[#allocation10 + $0x1b8] sm:$0xff]  }
0x135f   :  { %v6622_v17 = vpop.xlane.xlu1 %6621 }
0x1360   :  { %v6631_v5 = vadd.f32 1e-05, %v6627_v33  ;;  %v6628_v16 = vmul.f32 0.0078125, %v6622_v17  ;;  %v8098_v33 = vld [vmem:[%s12275_s8 + $0x4] sm:$0xf]  ;;  %s7830_s8 = sshll.u32 %s10365_s12, 4  ;;  %s7831_s8 = int_to_ptr.vmem [resolvable:$true] %s7830_s8 }
0x1361   :  { %v6704_v17 = vrot.slane %v8098_v33, %v10613_v6  ;;  %s10286_s9 = scalar_lea.vmem %s7831_s8, 1024  ;;  %p10291_p7 = scmp.lt.s32.totalorder %s7831_s8, %s7831_s8 }
0x1362   :  { %10106 = vrsqrt.f32 %v6631_v5  ;;  %v6632_v28 = vadd.f32 1e-05, %v6628_v16  ;;  %v12334_v5 = vld [vmem:[#allocation26_spill] sm:$0xff]  ;;  %p10287_p6 = scmp.ne.s32.totalorder %s7831_s8, %s10286_s9  ;;  %p10292_p8 = scmp.lt.s32.totalorder %s10286_s9, %s10286_s9 }
0x1363   :  { %v6624_v54 = vpop.xlane.xlu0 %6623  ;;  %v6626_v20 = vpop.xlane.xlu1 %6625  ;;  %v6712_v16 = vrot.slane %v8098_v33, %v12334_v5 }
0x1364   :  { %10108 = vrsqrt.f32 %v6632_v28  ;;  %v6629_v45 = vmul.f32 0.0078125, %v6624_v54  ;;  %v6630_v7 = vmul.f32 0.0078125, %v6626_v20  ;;  %v12335_v28 = vld [vmem:[#allocation25_spill] sm:$0xff]  ;;  %v12336_v20 = vld [vmem:[#allocation24_spill] sm:$0xff]  ;;  %p10293_p9 = por %p10292_p8, %p10291_p7 }
0x1365   :  { %v6708_v54 = vrot.slane %v8098_v33, %v12335_v28 }
0x1366   :  { %v6633_v31 = vadd.f32 1e-05, %v6629_v45  ;;  %v6634_v44 = vadd.f32 1e-05, %v6630_v7  ;;  %v12337_v45 = vsub.s32 3, %v12336_v20  ;;  %p10294_p10 = pnand %p10293_p9, %p10287_p6 }
0x1368   :  { %10110 = vrsqrt.f32 %v6633_v31  ;;  %v6716_v7 = vrot.slane %v8098_v33, %v12337_v45 }
0x1369   :  { %10112 = vrsqrt.f32 %v6634_v44 }
0x136c   :  { %v10107_v30 = vpop.eup %10106 }
0x136d   :  { %v6639_v12 = vmul.f32 %v10107_v30, %v12058_v1 }
0x136e   :  { %v10109_v37 = vpop.eup %10108 }
0x136f   :  { %v6640_v50 = vmul.f32 %v10109_v37, %v12060_v14  ;;  %v6649_v53 = vmul.f32 %v8096_v43, %v6639_v12 }
0x1371   :  { %v6650_v58 = vmul.f32 %v8096_v43, %v6640_v50  ;;  %v12082_v4 = vadd.f32 %v8097_v61, %v6649_v53 }
0x1372   :  { %v10111_v51 = vpop.eup %10110 }
0x1373   :  { %v10113_v60 = vpop.eup %10112  ;;  %v12084_v49 = vadd.f32 %v8097_v61, %v6650_v58  ;;  %v6641_v48 = vmul.f32 %v10111_v51, %v12068_v36 }
0x1374   :  { %v6642_v21 = vmul.f32 %v10113_v60, %v12064_v38  ;;  %v9784_v38 = vld [vmem:[#allocation10 + $0x108] sm:$0xff]  }
0x1375   :  { %v6663_v1 = vpack.c.bf16 %v12084_v49, %v12082_v4  ;;  %v6651_v14 = vmul.f32 %v8096_v43, %v6641_v48 }
0x1376   :  { %v6652_v32 = vmul.f32 %v8096_v43, %v6642_v21 }
0x1377   :  { %6914 = vmatmul.mubr.bf16.vlgmr.msra.gmra.mrb[160].mxu1 %v6663_v1  ;;  %6967 = vmatmul.mubr.bf16.vlgmr.msra.gmra.mrb[168].mxu0 %v6663_v1  ;;  %v12092_v40 = vadd.f32 %v8097_v61, %v6651_v14 }
0x1378   :  { %6923 = vmatprep.mubr.bf16.mxu1 %v12333_v29  ;;  %6976 = vmatprep.mubr.bf16.mxu0 %v12333_v29  ;;  %v12094_v36 = vadd.f32 %v8097_v61, %v6652_v32 }
0x1379   :  { %8448 = vmatpush3.bf16.msra.mxu1 %v9780_v47  ;;  %8476 = vmatpush3.bf16.msra.mxu0 %v9781_v39 }
0x137a   :  { %8449 = vmatprep.subr.bf16.mxu1 %v9782_v26  ;;  %8477 = vmatprep.subr.bf16.mxu0 %v9783_v46  ;;  %v6664_v2 = vpack.c.bf16 %v12094_v36, %v12092_v40 }
0x137d   :  { %8450 = vmatpush3.bf16.msra.mxu1 %v9784_v38  ;;  %8478 = vmatpush3.bf16.msra.mxu0 %v9785_v59 }
0x137e   :  { %8451 = vmatprep.subr.bf16.mxu1 %v9786_v3  ;;  %8479 = vmatprep.subr.bf16.mxu0 %v9787_v57 }
0x137f   :  { %6924 = vmatmul.mubr.bf16.gmra.mrb[164].mxu1 %v6664_v2  ;;  %6977 = vmatmul.mubr.bf16.gmra.mrb[172].mxu0 %v6664_v2 }
0x1381   :  { %8452 = vmatpush3.bf16.msra.mxu1 %v9788_v8  ;;  %8480 = vmatpush3.bf16.msra.mxu0 %v9789_v62 }
0x1382   :  { %8453 = vmatprep.subr.bf16.mxu1 %v9790_v9  ;;  %8481 = vmatprep.subr.bf16.mxu0 %v9791_v24 }
0x1385   :  { %8454 = vmatpush3.bf16.msra.mxu1 %v9792_v52  ;;  %8482 = vmatpush3.bf16.msra.mxu0 %v9793_v18 }
0x1386   :  { %8455 = vmatprep.subr.bf16.mxu1 %v9794_v0  ;;  %8483 = vmatprep.subr.bf16.mxu0 %v9795_v34 }
0x1389   :  { %8456 = vmatpush3.bf16.msra.mxu1 %v9796_v23  ;;  %8484 = vmatpush3.bf16.msra.mxu0 %v9797_v10 }
0x138a   :  { %8457 = vmatprep.subr.bf16.mxu1 %v9798_v35  ;;  %8485 = vmatprep.subr.bf16.mxu0 %v9799_v25 }
0x138d   :  { %8458 = vmatpush3.bf16.msra.mxu1 %v9800_v55  ;;  %8486 = vmatpush3.bf16.msra.mxu0 %v9801_v11 }
0x138e   :  { %8459 = vmatprep.subr.bf16.mxu1 %v9802_v41  ;;  %8487 = vmatprep.subr.bf16.mxu0 %v9803_v27 }
0x1391   :  { %8460 = vmatpush3.bf16.msra.mxu1 %v9804_v56  ;;  %8488 = vmatpush3.bf16.msra.mxu0 %v9805_v63 }
0x1392   :  { %8461 = vmatprep.subr.bf16.mxu1 %v9806_v42  ;;  %8489 = vmatprep.subr.bf16.mxu0 %v9807_v15 }
0x1395   :  { %8462 = vmatpush3.bf16.msra.mxu1 %v9808_v19  ;;  %8490 = vmatpush3.bf16.msra.mxu0 %v9809_v22 }
0x144a   :  { %v6915_v31 = vpop.f32.mrb[160].mxu1  ;;  %v6968_v44 = vpop.f32.mrb[168].mxu0 }
0x144b   :  { %v6916_v30 = vadd.f32 %v6915_v31, %v6704_v17  ;;  %v6969_v43 = vadd.f32 %v6968_v44, %v6712_v16  ;;  %v6917_v12 = vpop.f32.mrb[161].mxu1  ;;  %v6970_v37 = vpop.f32.mrb[169].mxu0 }
0x144c   :  { %v6918_v50 = vadd.f32 %v6917_v12, %v6708_v54  ;;  %v6971_v53 = vadd.f32 %v6970_v37, %v6716_v7  ;;  %v6919_v61 = vpop.f32.mrb[162].mxu1  ;;  %v6972_v58 = vpop.f32.mrb[170].mxu0 }
0x144d   :  { %v6920_v51 = vadd.f32 %v6919_v61, %v6704_v17  ;;  %v6973_v60 = vadd.f32 %v6972_v58, %v6712_v16  ;;  %v6921_v48 = vpop.f32.mrb[163].mxu1  ;;  %v6974_v21 = vpop.f32.mrb[171].mxu0  ;;  %v6987_v47 = vmax.f32 %v6916_v30, 0.0  ;;  %v6989_v39 = vmax.f32 %v6969_v43, 0.0 }
0x144e   :  { %v6922_v1 = vadd.f32 %v6921_v48, %v6708_v54  ;;  %v6975_v14 = vadd.f32 %v6974_v21, %v6716_v7  ;;  %v6988_v46 = vmax.f32 %v6918_v50, 0.0  ;;  %v6990_v38 = vmax.f32 %v6971_v53, 0.0 }
0x144f   :  { %v6991_v32 = vmax.f32 %v6920_v51, 0.0  ;;  %v6993_v26 = vmax.f32 %v6973_v60, 0.0 }
0x1450   :  { %v6992_v59 = vmax.f32 %v6922_v1, 0.0  ;;  %v6994_v3 = vmax.f32 %v6975_v14, 0.0 }
0x1451   :  { %v7003_v57 = vpack.c.bf16 %v6991_v32, %v6987_v47  ;;  %v7005_v2 = vpack.c.bf16 %v6993_v26, %v6989_v39 }
0x1452   :  { %v7004_v8 = vpack.c.bf16 %v6992_v59, %v6988_v46  ;;  %v7006_v62 = vpack.c.bf16 %v6994_v3, %v6990_v38  ;;  %v6925_v9 = vpop.f32.mrb[164].mxu1  ;;  %v6978_v24 = vpop.f32.mrb[172].mxu0 }
0x1453   :  { %v6926_v52 = vadd.f32 %v6925_v9, %v6704_v17  ;;  %v6979_v18 = vadd.f32 %v6978_v24, %v6712_v16  ;;  %v6927_v0 = vpop.f32.mrb[165].mxu1  ;;  %v6980_v34 = vpop.f32.mrb[173].mxu0 }
0x1454   :  { %v6928_v23 = vadd.f32 %v6927_v0, %v6708_v54  ;;  %v6981_v10 = vadd.f32 %v6980_v34, %v6716_v7  ;;  %v6929_v35 = vpop.f32.mrb[166].mxu1  ;;  %v6982_v25 = vpop.f32.mrb[174].mxu0  ;;  %7308 = vmatprep.mubr.bf16.mxu1 %v7004_v8  ;;  %7357 = vmatprep.mubr.bf16.mxu0 %v7006_v62 }
0x1455   :  { %v6930_v55 = vadd.f32 %v6929_v35, %v6704_v17  ;;  %v6983_v11 = vadd.f32 %v6982_v25, %v6712_v16  ;;  %v6931_v41 = vpop.f32.mrb[167].mxu1  ;;  %v6984_v27 = vpop.f32.mrb[175].mxu0  ;;  %7309 = vmatmul.mubr.bf16.vlgmr.msra.gmra.mrb[168].mxu1 %v7003_v57  ;;  %7358 = vmatmul.mubr.bf16.vlgmr.msra.gmra.mrb[176].mxu0 %v7005_v2  ;;  %v6995_v42 = vmax.f32 %v6926_v52, 0.0  ;;  %v6997_v15 = vmax.f32 %v6979_v18, 0.0 }
0x1456   :  { %v6932_v56 = vadd.f32 %v6931_v41, %v6708_v54  ;;  %v6985_v63 = vadd.f32 %v6984_v27, %v6716_v7  ;;  %v6996_v33 = vmax.f32 %v6928_v23, 0.0  ;;  %v6998_v5 = vmax.f32 %v6981_v10, 0.0  ;;  %v8132_v54 = vld [vmem:[%s12277_s10 + $0x1] ss:$0 sm:$0xff] }
0x1457   :  { %v6999_v19 = vmax.f32 %v6930_v55, 0.0  ;;  %v7001_v22 = vmax.f32 %v6983_v11, 0.0 }
0x1458   :  { %v7000_v20 = vmax.f32 %v6932_v56, 0.0  ;;  %v7002_v45 = vmax.f32 %v6985_v63, 0.0 }
0x1459   :  { %v7007_v31 = vpack.c.bf16 %v6999_v19, %v6995_v42  ;;  %v7009_v44 = vpack.c.bf16 %v7001_v22, %v6997_v15 }
0x145a   :  { %v7008_v30 = vpack.c.bf16 %v7000_v20, %v6996_v33  ;;  %v7010_v43 = vpack.c.bf16 %v7002_v45, %v6998_v5 }
0x145c   :  { %7316 = vmatprep.mubr.bf16.mxu1 %v7008_v30  ;;  %7365 = vmatprep.mubr.bf16.mxu0 %v7010_v43 }
0x145d   :  { %7317 = vmatmul.mubr.bf16.gmra.mrb[172].mxu1 %v7007_v31  ;;  %7366 = vmatmul.mubr.bf16.gmra.mrb[180].mxu0 %v7009_v44 }
0x145e   :  { %7658 = vmatprep.mubr.bf16.mxu1 %v12333_v29 }
0x1528   :  { %v8463_v17 = vpop.f32.mrb[168].mxu1  ;;  %v8491_v16 = vpop.f32.mrb[176].mxu0 }
0x1529   :  { %v8464_v7 = vpop.f32.mrb[169].mxu1  ;;  %v8492_v12 = vpop.f32.mrb[177].mxu0 }
0x152a   :  { %v8465_v37 = vadd.f32 %v8464_v7, %v8463_v17  ;;  %v8493_v50 = vadd.f32 %v8492_v12, %v8491_v16  ;;  %v8466_v53 = vpop.f32.mrb[170].mxu1  ;;  %v8494_v61 = vpop.f32.mrb[178].mxu0 }
0x152b   :  { %v8467_v58 = vpop.f32.mrb[171].mxu1  ;;  %v8495_v51 = vpop.f32.mrb[179].mxu0 }
0x152c   :  { %v7311_v60 = vadd.f32 %v8465_v37, %v8132_v54  ;;  %v8468_v48 = vadd.f32 %v8467_v58, %v8466_v53  ;;  %v8496_v21 = vadd.f32 %v8495_v51, %v8494_v61  ;;  %v8168_v58 = vld [vmem:[%s12281_s14 + $0x1] ss:$0 sm:$0xff] }
0x152e   :  { %v7360_v1 = vadd.f32 %v8493_v50, %v7311_v60  ;;  %v7314_v14 = vadd.f32 %v8468_v48, %v8132_v54  ;;  %v8167_v50 = vld [vmem:[%s12280_s13 + $0x1] ss:$0 sm:$0xff] }
0x1530   :  { %v7363_v47 = vadd.f32 %v8496_v21, %v7314_v14  ;;  %v8469_v39 = vpop.f32.mrb[172].mxu1  ;;  %v8497_v32 = vpop.f32.mrb[180].mxu0  ;;  %v7374_v26 = vadd.f32 %v7360_v1, %v12082_v4 }
0x1531   :  { %v8470_v46 = vpop.f32.mrb[173].mxu1  ;;  %v8498_v38 = vpop.f32.mrb[181].mxu0 }
0x1532   :  { %v8471_v59 = vadd.f32 %v8470_v46, %v8469_v39  ;;  %v8499_v3 = vadd.f32 %v8498_v38, %v8497_v32  ;;  %v8500_v57 = vpop.f32.mrb[182].mxu0  ;;  %7382 = vadd.xlane.f32.xlu0 %v7374_v26  ;;  %v8472_v2 = vpop.f32.mrb[174].mxu1  ;;  %v7375_v8 = vadd.f32 %v7363_v47, %v12084_v49 }
0x1533   :  { %v8473_v62 = vpop.f32.mrb[175].mxu1  ;;  %v8501_v9 = vpop.f32.mrb[183].mxu0 }
0x1534   :  { %v7319_v24 = vadd.f32 %v8471_v59, %v8132_v54  ;;  %v8474_v52 = vadd.f32 %v8473_v62, %v8472_v2  ;;  %v8502_v18 = vadd.f32 %v8501_v9, %v8500_v57  ;;  %7384 = vadd.xlane.f32.xlu1 %v7375_v8  ;;  %v9812_v57 = vld [vmem:[#allocation11 + $0x4] ss:$8 sps:$4 sm:$0xff]   ;;  %v9815_v2 = vld [vmem:[#allocation11 + $0x14] ss:$8 sps:$4 sm:$0xff]  }
0x1535   :  { %7626 = vmatprep.subr.bf16.mxu1 %v9812_v57 }
0x1536   :  { %v7368_v0 = vadd.f32 %v8499_v3, %v7319_v24  ;;  %v7322_v34 = vadd.f32 %v8474_v52, %v8132_v54  ;;  %v9810_v3 = vld [vmem:[#allocation11] ss:$8 sps:$4 sm:$0xff]  }
0x1537   :  { %7627 = vmatpush1.bf16.msra.mxu1 %v9810_v3 }
0x1538   :  { %v7371_v23 = vadd.f32 %v8502_v18, %v7322_v34  ;;  %v7376_v4 = vadd.f32 %v7368_v0, %v12092_v40  ;;  %7628 = vmatprep.subr.bf16.mxu1 %v9815_v2 }
0x153a   :  { %7386 = vadd.xlane.f32.xlu0 %v7376_v4  ;;  %v7377_v10 = vadd.f32 %v7371_v23, %v12094_v36 }
0x153c   :  { %7388 = vadd.xlane.f32.xlu1 %v7377_v10 }
0x15bf   :  { %v7383_v35 = vpop.xlane.xlu0 %7382 }
0x15c0   :  { %v7390_v25 = vmul.f32 0.0078125, %v7383_v35 }
0x15c1   :  { %v7385_v55 = vpop.xlane.xlu1 %7384 }
0x15c2   :  { %v7394_v11 = vsub.f32 %v7374_v26, %v7390_v25  ;;  %v7391_v49 = vmul.f32 0.0078125, %v7385_v55 }
0x15c4   :  { %v7395_v41 = vsub.f32 %v7375_v8, %v7391_v49  ;;  %v7398_v27 = vmul.f32 %v7394_v11, %v7394_v11  ;;  %v9813_v8 = vld [vmem:[#allocation11 + $0x10] ss:$8 sps:$4 sm:$0xff]  }
0x15c5   :  { %7629 = vmatpush1.bf16.msra.mxu1 %v9813_v8 }
0x15c6   :  { %7402 = vadd.xlane.f32.xlu0 %v7398_v27  ;;  %v7399_v56 = vmul.f32 %v7395_v41, %v7395_v41  ;;  %v9818_v27 = vld [vmem:[#allocation11 + $0x24] ss:$8 sps:$4 sm:$0xff]  }
0x15c7   :  { %v7387_v63 = vpop.xlane.xlu0 %7386  ;;  %7630 = vmatprep.subr.bf16.mxu1 %v9818_v27 }
0x15c8   :  { %v7392_v42 = vmul.f32 0.0078125, %v7387_v63  ;;  %7404 = vadd.xlane.f32.xlu1 %v7399_v56  ;;  %v9816_v56 = vld [vmem:[#allocation11 + $0x20] ss:$8 sps:$4 sm:$0xff]   ;;  %v9821_v63 = vld [vmem:[#allocation11 + $0x34] ss:$8 sps:$4 sm:$0xff]  }
0x15c9   :  { %v7389_v15 = vpop.xlane.xlu1 %7388  ;;  %7631 = vmatpush1.bf16.msra.mxu1 %v9816_v56 }
0x15ca   :  { %v7396_v19 = vsub.f32 %v7376_v4, %v7392_v42  ;;  %v7393_v22 = vmul.f32 0.0078125, %v7389_v15  ;;  %v9819_v42 = vld [vmem:[#allocation11 + $0x30] ss:$8 sps:$4 sm:$0xff]   ;;  %7632 = vmatprep.subr.bf16.mxu1 %v9821_v63  ;;  %v9824_v15 = vld [vmem:[#allocation11 + $0x44] ss:$8 sps:$4 sm:$0xff]  }
0x15cc   :  { %v7397_v40 = vsub.f32 %v7377_v10, %v7393_v22  ;;  %v7400_v33 = vmul.f32 %v7396_v19, %v7396_v19  ;;  %v9827_v22 = vld [vmem:[#allocation11 + $0x54] ss:$8 sps:$4 sm:$0xff]  }
0x15cd   :  { %7633 = vmatpush1.bf16.msra.mxu1 %v9819_v42  ;;  %v7688_v42 = vld [vmem:[%s12338_s7 + $0x8] sm:$0xff] }
0x15ce   :  { %7406 = vadd.xlane.f32.xlu0 %v7400_v33  ;;  %v7401_v36 = vmul.f32 %v7397_v40, %v7397_v40  ;;  %7634 = vmatprep.subr.bf16.mxu1 %v9824_v15  ;;  %v9830_v33 = vld [vmem:[#allocation11 + $0x64] ss:$8 sps:$4 sm:$0xff]  }
0x15cf   :  { %v7687_v15 = vld [vmem:[%s12338_s7] sm:$0xff] }
0x15d0   :  { %7408 = vadd.xlane.f32.xlu1 %v7401_v36  ;;  %v9828_v36 = vld [vmem:[#allocation11 + $0x60] ss:$8 sps:$4 sm:$0xff]  }
0x1653   :  { %v7403_v5 = vpop.xlane.xlu0 %7402 }
0x1654   :  { %v7410_v20 = vmul.f32 0.0078125, %v7403_v5  ;;  %v9833_v5 = vld [vmem:[#allocation11 + $0x74] ss:$8 sps:$4 sm:$0xff]  }
0x1655   :  { %v7405_v45 = vpop.xlane.xlu1 %7404 }
0x1656   :  { %v7414_v31 = vadd.f32 1e-05, %v7410_v20  ;;  %v7411_v44 = vmul.f32 0.0078125, %v7405_v45  ;;  %v9831_v20 = vld [vmem:[#allocation11 + $0x70] ss:$8 sps:$4 sm:$0xff]  }
0x1658   :  { %10114 = vrsqrt.f32 %v7414_v31  ;;  %v7415_v30 = vadd.f32 1e-05, %v7411_v44 }
0x165a   :  { %10116 = vrsqrt.f32 %v7415_v30 }
0x165b   :  { %v7407_v43 = vpop.xlane.xlu0 %7406 }
0x165c   :  { %v7412_v17 = vmul.f32 0.0078125, %v7407_v43 }
0x165d   :  { %v7409_v16 = vpop.xlane.xlu1 %7408 }
0x165e   :  { %v7416_v54 = vadd.f32 1e-05, %v7412_v17  ;;  %v7413_v7 = vmul.f32 0.0078125, %v7409_v16 }
0x1660   :  { %10118 = vrsqrt.f32 %v7416_v54  ;;  %v7417_v12 = vadd.f32 1e-05, %v7413_v7 }
0x1662   :  { %v10115_v37 = vpop.eup %10114  ;;  %10120 = vrsqrt.f32 %v7417_v12 }
0x1663   :  { %v7422_v53 = vmul.f32 %v10115_v37, %v7394_v11 }
0x1664   :  { %v10117_v61 = vpop.eup %10116 }
0x1665   :  { %v7432_v51 = vmul.f32 %v8167_v50, %v7422_v53  ;;  %v7423_v60 = vmul.f32 %v10117_v61, %v7395_v41  ;;  %v8169_v61 = vld [vmem:[%s12282_s15] ss:$0 sm:$0xff] }
0x1667   :  { %v7442_v48 = vadd.f32 %v8168_v58, %v7432_v51  ;;  %v7433_v21 = vmul.f32 %v8167_v50, %v7423_v60  ;;  %v8170_v60 = vld [vmem:[%s12283_s16] ss:$0 sm:$0xff] }
0x1669   :  { %7448 = vadd.xlane.f32.xlu0 %v7442_v48  ;;  %v7443_v1 = vadd.f32 %v8168_v58, %v7433_v21 }
0x166a   :  { %v10119_v14 = vpop.eup %10118 }
0x166b   :  { %7450 = vadd.xlane.f32.xlu1 %v7443_v1  ;;  %v7424_v47 = vmul.f32 %v10119_v14, %v7396_v19  ;;  %v9822_v19 = vld [vmem:[#allocation11 + $0x40] ss:$8 sps:$4 sm:$0xff]  }
0x166c   :  { %v10121_v39 = vpop.eup %10120  ;;  %7635 = vmatpush1.bf16.msra.mxu1 %v9822_v19  ;;  %v7690_v19 = vld [vmem:[%s12338_s7 + $0x18] sm:$0xff] }
0x166d   :  { %v7434_v32 = vmul.f32 %v8167_v50, %v7424_v47  ;;  %v7425_v26 = vmul.f32 %v10121_v39, %v7397_v40  ;;  %v9825_v40 = vld [vmem:[#allocation11 + $0x50] ss:$8 sps:$4 sm:$0xff]   ;;  %7636 = vmatprep.subr.bf16.mxu1 %v9827_v22 }
0x166f   :  { %v7444_v46 = vadd.f32 %v8168_v58, %v7434_v32  ;;  %v7435_v38 = vmul.f32 %v8167_v50, %v7425_v26 }
0x1670   :  { %7637 = vmatpush1.bf16.msra.mxu1 %v9825_v40  ;;  %v7689_v40 = vld [vmem:[%s12338_s7 + $0x10] sm:$0xff] }
0x1671   :  { %7452 = vadd.xlane.f32.xlu0 %v7444_v46  ;;  %v7445_v59 = vadd.f32 %v8168_v58, %v7435_v38  ;;  %7638 = vmatprep.subr.bf16.mxu1 %v9830_v33 }
0x1673   :  { %7454 = vadd.xlane.f32.xlu1 %v7445_v59 }
0x1674   :  { %7639 = vmatpush1.bf16.msra.mxu1 %v9828_v36 }
0x1675   :  { %7640 = vmatprep.subr.bf16.mxu1 %v9833_v5 }
0x1678   :  { %7641 = vmatpush1.bf16.msra.mxu1 %v9831_v20 }
0x16f6   :  { %v7449_v62 = vpop.xlane.xlu0 %7448 }
0x16f7   :  { %v7456_v9 = vmul.f32 0.0078125, %v7449_v62  ;;  %v7534_v62 = vld [vmem:[%s12285_s18] sm:$0x3] }
0x16f8   :  { %v7451_v24 = vpop.xlane.xlu1 %7450 }
0x16f9   :  { %v7460_v52 = vsub.f32 %v7442_v48, %v7456_v9  ;;  %v7457_v18 = vmul.f32 0.0078125, %v7451_v24  ;;  %v7539_v9 = vrot.slane %v7534_v62, %v10613_v6 }
0x16fb   :  { %v7461_v0 = vsub.f32 %v7443_v1, %v7457_v18  ;;  %v7464_v34 = vmul.f32 %v7460_v52, %v7460_v52 }
0x16fd   :  { %7468 = vadd.xlane.f32.xlu0 %v7464_v34  ;;  %v7465_v23 = vmul.f32 %v7461_v0, %v7461_v0 }
0x16fe   :  { %v7453_v4 = vpop.xlane.xlu0 %7452 }
0x16ff   :  { %v7458_v10 = vmul.f32 0.0078125, %v7453_v4  ;;  %7470 = vadd.xlane.f32.xlu1 %v7465_v23 }
0x1700   :  { %v7455_v35 = vpop.xlane.xlu1 %7454 }
0x1701   :  { %v7462_v25 = vsub.f32 %v7444_v46, %v7458_v10  ;;  %v7459_v55 = vmul.f32 0.0078125, %v7455_v35 }
0x1703   :  { %v7463_v11 = vsub.f32 %v7445_v59, %v7459_v55  ;;  %v7466_v49 = vmul.f32 %v7462_v25, %v7462_v25 }
0x1705   :  { %7472 = vadd.xlane.f32.xlu0 %v7466_v49  ;;  %v7467_v41 = vmul.f32 %v7463_v11, %v7463_v11 }
0x1707   :  { %7474 = vadd.xlane.f32.xlu1 %v7467_v41 }
0x178a   :  { %v7469_v45 = vpop.xlane.xlu0 %7468 }
0x178b   :  { %v7476_v31 = vmul.f32 0.0078125, %v7469_v45 }
0x178c   :  { %v7471_v44 = vpop.xlane.xlu1 %7470 }
0x178d   :  { %v7480_v30 = vadd.f32 1e-05, %v7476_v31  ;;  %v7477_v43 = vmul.f32 0.0078125, %v7471_v44 }
0x178f   :  { %10122 = vrsqrt.f32 %v7480_v30  ;;  %v7481_v17 = vadd.f32 1e-05, %v7477_v43 }
0x1791   :  { %10124 = vrsqrt.f32 %v7481_v17 }
0x1792   :  { %v7473_v16 = vpop.xlane.xlu0 %7472 }
0x1793   :  { %v7478_v54 = vmul.f32 0.0078125, %v7473_v16 }
0x1794   :  { %v7475_v7 = vpop.xlane.xlu1 %7474 }
0x1795   :  { %v7482_v12 = vadd.f32 1e-05, %v7478_v54  ;;  %v7479_v37 = vmul.f32 0.0078125, %v7475_v7 }
0x1797   :  { %10126 = vrsqrt.f32 %v7482_v12  ;;  %v7483_v50 = vadd.f32 1e-05, %v7479_v37 }
0x1799   :  { %v10123_v53 = vpop.eup %10122  ;;  %10128 = vrsqrt.f32 %v7483_v50 }
0x179a   :  { %v7488_v58 = vmul.f32 %v10123_v53, %v7460_v52 }
0x179b   :  { %v10125_v51 = vpop.eup %10124 }
0x179c   :  { %v7498_v48 = vmul.f32 %v8169_v61, %v7488_v58  ;;  %v7489_v21 = vmul.f32 %v10125_v51, %v7461_v0 }
0x179e   :  { %v7499_v1 = vmul.f32 %v8169_v61, %v7489_v21  ;;  %v7508_v14 = vadd.f32 %v8170_v60, %v7498_v48  ;;  %v12339_v48 = vld [vmem:[#allocation22_spill] sm:$0xff]  ;;  %v12340_v21 = vld [vmem:[#allocation23_spill] sm:$0xff] }
0x17a0   :  { %v7509_v47 = vadd.f32 %v8170_v60, %v7499_v1  ;;  %7512 = vst [vmem:[%s12286_s19] sm:$0xff] %v7508_v14 }
0x17a1   :  { %v10127_v39 = vpop.eup %10126 }
0x17a2   :  { %7513 = vst [vmem:[%s12286_s19 + $0x8] sm:$0xff] %v7509_v47  ;;  %v7516_v32 = vpack.c.bf16 %v7509_v47, %v7508_v14  ;;  %v7490_v26 = vmul.f32 %v10127_v39, %v7462_v25 }
0x17a3   :  { %v10129_v46 = vpop.eup %10128 }
0x17a4   :  { %7659 = vmatmul.mubr.bf16.vlgmr.msra.gmra.mrb[176].mxu1 %v7516_v32  ;;  %v7491_v38 = vmul.f32 %v10129_v46, %v7463_v11  ;;  %v7500_v59 = vmul.f32 %v8169_v61, %v7490_v26 }
0x17a5   :  { %7668 = vmatprep.mubr.bf16.mxu1 %v12333_v29  ;;  %v7543_v29 = vrot.slane %v7534_v62, %v12335_v28 }
0x17a6   :  { %v7501_v3 = vmul.f32 %v8169_v61, %v7491_v38  ;;  %v7510_v57 = vadd.f32 %v8170_v60, %v7500_v59 }
0x17a8   :  { %v7511_v2 = vadd.f32 %v8170_v60, %v7501_v3  ;;  %7514 = vst [vmem:[%s12286_s19 + $0x10] sm:$0xff] %v7510_v57 }
0x17aa   :  { %7515 = vst [vmem:[%s12286_s19 + $0x18] sm:$0xff] %v7511_v2  ;;  %v7517_v8 = vpack.c.bf16 %v7511_v2, %v7510_v57 }
0x17ac   :  { %7669 = vmatmul.mubr.bf16.gmra.mrb[180].mxu1 %v7517_v8 }
0x1877   :  { %v7660_v24 = vpop.f32.mrb[176].mxu1 }
0x1878   :  { %v12144_v52 = vadd.f32 %v7660_v24, %v7539_v9  ;;  %v7662_v18 = vpop.f32.mrb[177].mxu1 }
0x1879   :  { %v12146_v0 = vadd.f32 %v7662_v18, %v7543_v29  ;;  %v7664_v34 = vpop.f32.mrb[178].mxu1 }
0x187a   :  { %7679 = vst [vmem:[#allocation13] sm:$0xff] %v12144_v52  ;;  %v12149_v23 = vadd.f32 %v7664_v34, %v7539_v9  ;;  %v7666_v4 = vpop.f32.mrb[179].mxu1 }
0x187b   :  { %7680 = vst [vmem:[#allocation13 + $0x8] sm:$0xff] %v12146_v0  ;;  %v12152_v10 = vadd.f32 %v7666_v4, %v7543_v29  ;;  %v7691_v6 = vmax.f32 %v12144_v52, %v12146_v0 }
0x187c   :  { %7681 = vst [vmem:[#allocation13 + $0x10] sm:$0xff] %v12149_v23 }
0x187d   :  { %7682 = vst [vmem:[#allocation13 + $0x18] sm:$0xff] %v12152_v10  ;;  %7692 = vmax.xlane.f32.xlu0 %v7691_v6  ;;  %v7694_v28 = vmax.f32 %v12149_v23, %v12152_v10 }
0x187f   :  { %7695 = vmax.xlane.f32.xlu1 %v7694_v28  ;;  %v7670_v35 = vpop.f32.mrb[180].mxu1 }
0x1880   :  { %v12160_v25 = vadd.f32 %v7670_v35, %v7539_v9  ;;  %v7672_v55 = vpop.f32.mrb[181].mxu1 }
0x1881   :  { %v12162_v11 = vadd.f32 %v7672_v55, %v7543_v29  ;;  %v7674_v49 = vpop.f32.mrb[182].mxu1 }
0x1882   :  { %7683 = vst [vmem:[#allocation13 + $0x20] sm:$0xff] %v12160_v25  ;;  %v12165_v41 = vadd.f32 %v7674_v49, %v7539_v9  ;;  %v7676_v27 = vpop.f32.mrb[183].mxu1 }
0x1883   :  { %7684 = vst [vmem:[#allocation13 + $0x28] sm:$0xff] %v12162_v11  ;;  %v12168_v56 = vadd.f32 %v7676_v27, %v7543_v29  ;;  %v7697_v63 = vmax.f32 %v12160_v25, %v12162_v11 }
0x1884   :  { %7685 = vst [vmem:[#allocation13 + $0x30] sm:$0xff] %v12165_v41 }
0x1885   :  { %7686 = vst [vmem:[#allocation13 + $0x38] sm:$0xff] %v12168_v56  ;;  %7698 = vmax.xlane.f32.xlu0 %v7697_v63  ;;  %v7700_v22 = vmax.f32 %v12165_v41, %v12168_v56 }
0x1890   :  { %7755 = vperm.xlu1 %8993, %v7688_v42  }
0x189b   :  { %7752 = vperm.xlu0 %8992, %v7687_v15  }
0x189f   :  { %7761 = vperm.xlu0 %8992, %v7690_v19  }
0x18b4   :  { %7701 = vmax.xlane.f32.xlu1 %v7700_v22 }
0x18c5   :  { %7758 = vperm.xlu1 %8993, %v7689_v40  }
0x190a   :  { %v12188_v33 = vpop.xlane.xlu0 %7692 }
0x190b   :  { %v7703_v36 = vsub.f32 %v12144_v52, %v12188_v33  ;;  %v7704_v5 = vsub.f32 %v12146_v0, %v12188_v33 }
0x190c   :  { %v12194_v20 = vpop.xlane.xlu1 %7695 }
0x190d   :  { %v7711_v45 = vmul.f32 1.442695, %v7703_v36  ;;  %v7713_v31 = vmul.f32 1.442695, %v7704_v5  ;;  %v7705_v44 = vsub.f32 %v12149_v23, %v12194_v20  ;;  %v7706_v30 = vsub.f32 %v12152_v10, %v12194_v20 }
0x190f   :  { %10130 = vpow2.f32 %v7711_v45  ;;  %v7715_v43 = vmul.f32 1.442695, %v7705_v44  ;;  %v7717_v17 = vmul.f32 1.442695, %v7706_v30 }
0x1910   :  { %10132 = vpow2.f32 %v7713_v31  ;;  %v7756_v3 = vpop.permute.xlu1 %7755 }
0x1911   :  { %10134 = vpow2.f32 %v7715_v43  ;;  %vm7765_vm8 = vcmp.eq.s32.totalorder %v12339_v48, %v7756_v3  ;;  %vm7766_vm9 = vcmp.eq.s32.totalorder %v12340_v21, %v7756_v3 }
0x1912   :  { %10136 = vpow2.f32 %v7717_v17  ;;  %v12200_v16 = vpop.xlane.xlu0 %7698  ;;  %v8189_v6 = vsel %vm7765_vm8, 1.0, %v12332_v13  ;;  %v8190_v28 = vsel %vm7766_vm9, 1.0, %v12332_v13 }
0x1913   :  { %v7707_v54 = vsub.f32 %v12160_v25, %v12200_v16  ;;  %v7708_v7 = vsub.f32 %v12162_v11, %v12200_v16 }
0x1915   :  { %v7719_v12 = vmul.f32 1.442695, %v7707_v54  ;;  %v7721_v37 = vmul.f32 1.442695, %v7708_v7 }
0x1917   :  { %10138 = vpow2.f32 %v7719_v12 }
0x1918   :  { %10140 = vpow2.f32 %v7721_v37 }
0x1919   :  { %v10131_v50 = vpop.eup %10130 }
0x191a   :  { %v10133_v53 = vpop.eup %10132  ;;  %v7753_v61 = vpop.permute.xlu0 %7752 }
0x191b   :  { %v10135_v58 = vpop.eup %10134  ;;  %v7727_v51 = vadd.f32 %v10133_v53, %v10131_v50  ;;  %vm7763_vm4 = vcmp.eq.s32.totalorder %v12339_v48, %v7753_v61  ;;  %vm7764_vm5 = vcmp.eq.s32.totalorder %v12340_v21, %v7753_v61 }
0x191c   :  { %v10137_v60 = vpop.eup %10136  ;;  %v8187_v14 = vsel %vm7763_vm4, 1.0, %v12332_v13  ;;  %v8188_v47 = vsel %vm7764_vm5, 1.0, %v12332_v13 }
0x191d   :  { %7728 = vadd.xlane.f32.xlu1 %v7727_v51  ;;  %v7730_v1 = vadd.f32 %v10137_v60, %v10135_v58  ;;  %v7787_v26 = vmul.f32 %v8187_v14, %v12144_v52  ;;  %v7788_v46 = vmul.f32 %v8188_v47, %v12146_v0 }
0x191e   :  { %v7762_v4 = vpop.permute.xlu0 %7761 }
0x191f   :  { %7731 = vadd.xlane.f32.xlu0 %v7730_v1  ;;  %v7795_v59 = vadd.f32 %v7788_v46, %v7787_v26  ;;  %vm7769_vm10 = vcmp.eq.s32.totalorder %v12339_v48, %v7762_v4  ;;  %vm7770_vm11 = vcmp.eq.s32.totalorder %v12340_v21, %v7762_v4 }
0x1920   :  { %v8193_v27 = vsel %vm7769_vm10, 1.0, %v12332_v13  ;;  %v8194_v63 = vsel %vm7770_vm11, 1.0, %v12332_v13 }
0x1921   :  { %v10139_v39 = vpop.eup %10138  ;;  %v7793_v42 = vmul.f32 %v8193_v27, %v12165_v41  ;;  %v7794_v15 = vmul.f32 %v8194_v63, %v12168_v56 }
0x1922   :  { %v10141_v32 = vpop.eup %10140 }
0x1923   :  { %v7733_v38 = vadd.f32 %v10141_v32, %v10139_v39  ;;  %v7804_v22 = vadd.f32 %v7794_v15, %v7793_v42 }
0x1925   :  { %7734 = vadd.xlane.f32.xlu0 %v7733_v38 }
0x1929   :  { %7796 = vadd.xlane.f32.xlu0 %v7795_v59 }
0x1941   :  { %v12212_v57 = vpop.xlane.xlu1 %7701 }
0x1942   :  { %v7709_v2 = vsub.f32 %v12165_v41, %v12212_v57  ;;  %v7710_v8 = vsub.f32 %v12168_v56, %v12212_v57 }
0x1944   :  { %v7723_v62 = vmul.f32 1.442695, %v7709_v2  ;;  %v7725_v9 = vmul.f32 1.442695, %v7710_v8 }
0x1945   :  { %v7759_v29 = vpop.permute.xlu1 %7758 }
0x1946   :  { %10142 = vpow2.f32 %v7723_v62  ;;  %vm7767_vm6 = vcmp.eq.s32.totalorder %v12339_v48, %v7759_v29  ;;  %vm7768_vm7 = vcmp.eq.s32.totalorder %v12340_v21, %v7759_v29 }
0x1947   :  { %10144 = vpow2.f32 %v7725_v9  ;;  %v8191_v24 = vsel %vm7767_vm6, 1.0, %v12332_v13  ;;  %v8192_v52 = vsel %vm7768_vm7, 1.0, %v12332_v13 }
0x1948   :  { %v7791_v18 = vmul.f32 %v8191_v24, %v12160_v25  ;;  %v7792_v0 = vmul.f32 %v8192_v52, %v12162_v11  ;;  %v7789_v25 = vmul.f32 %v8189_v6, %v12149_v23  ;;  %v7790_v11 = vmul.f32 %v8190_v28, %v12152_v10 }
0x194a   :  { %v7801_v34 = vadd.f32 %v7792_v0, %v7791_v18  ;;  %v7798_v19 = vadd.f32 %v7790_v11, %v7789_v25 }
0x194c   :  { %7802 = vadd.xlane.f32.xlu0 %v7801_v34 }
0x1950   :  { %v10143_v35 = vpop.eup %10142 }
0x1951   :  { %v10145_v55 = vpop.eup %10144 }
0x1952   :  { %v7736_v49 = vadd.f32 %v10145_v55, %v10143_v35 }
0x1954   :  { %7737 = vadd.xlane.f32.xlu1 %v7736_v49 }
0x1958   :  { %7799 = vadd.xlane.f32.xlu1 %v7798_v19 }
0x195c   :  { %7805 = vadd.xlane.f32.xlu1 %v7804_v22 }
0x195d   :  { %10297 = shalt.err (!%p10294_p10)
}
0x195e   :  { %s12341_s17 = sld [smem:[#allocation33_spill]] }
0x1964   :  { %s10298_s4 = scalar_lea.hbm %s12341_s17, 1024 }
0x1965   :  { %p10299_p11 = scmp.ne.s32.totalorder %s12341_s17, %s10298_s4  ;;  %p10302_p12 = scmp.lt.u32.totalorder %s10298_s4, %s12341_s17 }
0x1967   :  { %p10304_p13 = pnand %p10302_p12, %p10299_p11 }
0x1969   :  { %10307 = shalt.err (!%p10304_p13)
}
0x196a   :  { %s12342_s24 = smov 256   ;;  %vm7821_vm12 = vcmask 0  }
0x196b   :  { %7836 = dma.vmem_to_hbm [thread:$0]  %s7831_s8, 1024, %s12341_s17, [#allocation4], %s12342_s24, %s12342_s24, %s12331_s29  }
0x196c   :  { %s10366_s29 = smov [#allocation14]  }
0x196d   :  { %s7843_s25 = sshll.u32 %s10366_s29, 4  ;;  %s7844_s25 = int_to_ptr.vmem [resolvable:$true] %s7843_s25 }
0x196e   :  { %s10308_s15 = scalar_lea.vmem %s7844_s25, 16  ;;  %s10312_s16 = scalar_lea.vmem %s7844_s25, 32 }
0x196f   :  { %p10309_p0 = scmp.ne.s32.totalorder %s7844_s25, %s10308_s15  ;;  %p10313_p1 = scmp.lt.s32.totalorder %s7844_s25, %s7844_s25 }
0x1970   :  { %p10314_p2 = scmp.lt.s32.totalorder %s10312_s16, %s10308_s15 }
0x1972   :  { %p10315_p3 = por %p10314_p2, %p10313_p1 }
0x1974   :  { %p10316_p4 = pnand %p10315_p3, %p10309_p0 }
0x19aa   :  { %v7729_v13 = vpop.xlane.xlu1 %7728 }
0x19ab   :  { %10146 = vlog2.f32 %v7729_v13 }
0x19ac   :  { %v7732_v23 = vpop.xlane.xlu0 %7731 }
0x19ad   :  { %10148 = vlog2.f32 %v7732_v23 }
0x19b2   :  { %v7735_v10 = vpop.xlane.xlu0 %7734 }
0x19b3   :  { %10150 = vlog2.f32 %v7735_v10 }
0x19b5   :  { %v10147_v41 = vpop.eup %10146 }
0x19b6   :  { %v7740_v36 = vmul.f32 0.6931472, %v10147_v41  ;;  %v7797_v43 = vpop.xlane.xlu0 %7796 }
0x19b7   :  { %v10149_v56 = vpop.eup %10148 }
0x19b8   :  { %v7742_v5 = vmul.f32 0.6931472, %v10149_v56  ;;  %v7747_v44 = vadd.f32 %v7740_v36, %v12188_v33 }
0x19ba   :  { %v7748_v30 = vadd.f32 %v7742_v5, %v12194_v20  ;;  %v7807_v7 = vsub.f32 %v7747_v44, %v7797_v43 }
0x19bd   :  { %v10151_v45 = vpop.eup %10150 }
0x19be   :  { %v7744_v17 = vmul.f32 0.6931472, %v10151_v45 }
0x19c0   :  { %v7749_v50 = vadd.f32 %v7744_v17, %v12200_v16 }
0x19d9   :  { %v7803_v37 = vpop.xlane.xlu0 %7802 }
0x19da   :  { %v7809_v58 = vsub.f32 %v7749_v50, %v7803_v37 }
0x19e1   :  { %v7738_v40 = vpop.xlane.xlu1 %7737 }
0x19e2   :  { %10152 = vlog2.f32 %v7738_v40 }
0x19e5   :  { %v7800_v31 = vpop.xlane.xlu1 %7799 }
0x19e6   :  { %v7808_v54 = vsub.f32 %v7748_v30, %v7800_v31 }
0x19e8   :  { %v7811_v61 = vadd.f32 %v7808_v54, %v7807_v7 }
0x19e9   :  { %v7806_v60 = vpop.xlane.xlu1 %7805 }
0x19ea   :  { %v7812_v21 = vadd.f32 %v7811_v61, %v7809_v58 }
0x19ec   :  { %v10153_v12 = vpop.eup %10152 }
0x19ed   :  { %v7746_v53 = vmul.f32 0.6931472, %v10153_v12 }
0x19ef   :  { %v7750_v51 = vadd.f32 %v7746_v53, %v12212_v57 }
0x19f1   :  { %v7810_v48 = vsub.f32 %v7750_v51, %v7806_v60 }
0x19f3   :  { %v7813_v1 = vadd.f32 %v7812_v21, %v7810_v48 }
0x19f5   :  { %v7814_v33 = vrot.slane %v7813_v1, 4 }
0x19f7   :  { %v7815_v14 = vadd.f32 %v7814_v33, %v7813_v1 }
0x19f9   :  { %v7816_v20 = vrot.slane %v7815_v14, 2 }
0x19fb   :  { %v7817_v47 = vadd.f32 %v7816_v20, %v7815_v14 }
0x19fd   :  { %v7818_v39 = vrot.slane %v7817_v47, 1 }
0x19ff   :  { %v7819_v32 = vadd.f32 %v7818_v39, %v7817_v47 }
0x1a01   :  { %v7820_v26 = vmul.f32 0.03125, %v7819_v32 }
0x1a03   :  { %7822 = vst.msk [vmem:[#allocation14] sm:$0x1] %vm7821_vm12, %v7820_v26 }
0x1a04   :  { %10319 = shalt.err (!%p10316_p4)
}
0x1a05   :  { %s12343_s0 = sld [smem:[#allocation34_spill]] }
0x1a0b   :  { %s10320_s2 = scalar_lea.hbm %s12343_s0, 16 }
0x1a0c   :  { %p10321_p5 = scmp.ne.s32.totalorder %s12343_s0, %s10320_s2  ;;  %p10324_p6 = scmp.lt.u32.totalorder %s10320_s2, %s12343_s0 }
0x1a0e   :  { %p10326_p7 = pnand %p10324_p6, %p10321_p5 }
0x1a10   :  { %10329 = shalt.err (!%p10326_p7)
}
0x1a11   :  { %7846 = dma.vmem_to_hbm [thread:$0]  %s7844_s25, 16, %s12343_s0, [#allocation15]  }
0x1a12   :  { %10338 = dma.done.wait [#allocation4], 1024  }
0x1a13   :  { %10339 = vsyncadd [#allocation4], 4294966272 }
0x1a14   :  { %10340 = dma.done.wait [#allocation15], 16  }
0x1a15   :  { %10341 = vsyncadd [#allocation15], 4294967280 }
0x1a16   :  { %7855 = vsyncpa [#allocation3], 1 }
0x1a17   :  { %7856 = vsyncpa [#allocation6], 1 }
0x1a18   :  { %7857 = vsyncpa [#allocation9], 1 }
0x1a19   :  { %7858 = vsyncpa [#allocation12], 1 }
0x1a1a   :  { %7859 = vsyncpa [#allocation4], 1 }
0x1a1b   :  { %7860 = vsyncpa [#allocation15], 1 }

</bundles_post_ra>
